<compile_context>
chip_gen: v7x
topology: tpu7x:2x2x1
jax: 0.10.0
libtpu: 0.0.40
codegen_flags: <defaults>
</compile_context>

<pallas_src>
import math

import jax
import jax.numpy as jnp
from jax.experimental import pallas as pl
from jax.experimental.pallas import tpu as pltpu


# ----------------------------------------------------------------------------
# small-config hyper parameters (SMALL but consistent with the module)
# ----------------------------------------------------------------------------
N_NODES = 16            # number of residues / sequence positions
IN_SIZE = 7             # angle-feature channels
SEQ_SIZE = 20           # amino-acid alphabet (sequence_size)
SIZE = 32               # encoder hidden size ("size")
DIST_SIZE_IN = 3        # input pairwise feature channels (channel 0 = distance)
DIST_KERNELS = 8        # distance_kernels
MAX_DISTANCE = 20.0     # max_distance
HEADS = 4               # heads (small)
ATTN_SIZE = 16          # attention_size per head (small)
HIDDEN_SIZE = 32        # hidden_size of MLP
DEPTH = 2               # encoder depth (small)
BATCH = 2               # number of proteins processed in one call

D_EDGE = DIST_SIZE_IN + DIST_KERNELS - 1          # distance_size after RBF expansion (10)
DE_PAD = 16                                       # edge channels padded for layout
ENC_IN = IN_SIZE + SEQ_SIZE + 1                   # encoder input channels (28)
LOCAL_IN = SIZE + ENC_IN                          # LocalFeatures input channels (60)
HD = HEADS * ATTN_SIZE                            # 64
OUT_PAD = 128                                     # lane-padded decoder output width
NN = N_NODES * N_NODES

F32 = jnp.float32


# ----------------------------------------------------------------------------
# Fused forward kernel (one grid step == one protein)
# ----------------------------------------------------------------------------
def _fused_forward_kernel(
    feat_ref, edge_ref,
    emb_w_ref, emb_b_ref,
    a_wnode_ref, a_bnode_ref, a_wedge_ref, a_wo_ref, a_bo_ref,
    m_w1_ref, m_b1_ref, m_w2_ref, m_b2_ref, m_w3_ref, m_b3_ref,
    lp_w_ref, lp_b_ref, lb_w_ref, lb_b_ref,
    dec_w_ref, dec_b_ref,
    rep_ref, rept_ref, til_ref, hs_ref, he_ref, sm_ref, sp_ref,
    out_ref,
):
    n = N_NODES
    scale = 1.0 / math.sqrt(ATTN_SIZE)

    def mm(a, b):
        return jnp.dot(a, b, preferred_element_type=F32)

    feat = feat_ref[...]          # (N, ENC_IN)
    e = edge_ref[...]             # (N*N, DE_PAD)   e[(i,j), :] = edge features of (i, j)
    rep = rep_ref[...]            # (N*N, N)  rep[(i,j), i'] = 1 iff i' == i  (query repeat)
    rept = rept_ref[...]          # (N, N*N)  rep^T (sum over keys j per query i)
    til = til_ref[...]            # (N*N, N)  til[(i,j), j'] = 1 iff j' == j  (key tile)
    hs = hs_ref[...]              # (HD, H)   block-diag ones: per-head lane reduce
    he = he_ref[...]              # (H, HD)   hs^T: per-head broadcast across dk lanes

    # ---- encoder embedding ----
    h = mm(feat, emb_w_ref[...]) + emb_b_ref[...]                     # (N, SIZE)

    # ---- DEPTH x (edge-conditioned multi-head attention + residual MLP) ----
    for l in range(DEPTH):
        # fused node projection: [Wq | Wk_node | Wv_node]
        qkv = mm(h, a_wnode_ref[l]) + a_bnode_ref[l]                  # (N, 3*HD)
        q = qkv[:, :HD]
        k_node = qkv[:, HD:2 * HD]
        v_node = qkv[:, 2 * HD:]
        # fused edge projection: [Wk_edge | Wv_edge]
        kv_edge = mm(e, a_wedge_ref[l])                               # (N*N, 2*HD)

        # k[(i,j)] = Wk [h_j ; e_ij] (+bias),  v[(i,j)] = Wv [h_j ; e_ij] (+bias)
        k_full = mm(til, k_node) + kv_edge[:, :HD]                    # (N*N, HD)
        v_full = mm(til, v_node) + kv_edge[:, HD:]                    # (N*N, HD)
        qb = mm(rep, q)                                               # (N*N, HD)

        # per-head scores via block-diagonal reduce on the MXU
        s = mm(qb * k_full, hs) * scale                               # (N*N, H)
        s3 = s.reshape(n, n, HEADS)                                   # (Ni, Nj, H)
        p3 = jnp.exp(s3 - jnp.max(s3, axis=1, keepdims=True))
        denom = jnp.sum(p3, axis=1, keepdims=True)
        p3 = p3 * pl.reciprocal(denom, approx=True)
        p = p3.reshape(n * n, HEADS)                                  # (N*N, H)

        # weighted value aggregation: broadcast p per head, sum over keys via rep^T
        attn = mm(rept, mm(p, he) * v_full)                           # (N, HD)
        h = h + mm(attn, a_wo_ref[l]) + a_bo_ref[l]                   # residual

        # residual MLP block (mlp_depth = 3, relu)
        t = jnp.maximum(mm(h, m_w1_ref[l]) + m_b1_ref[l], 0.0)
        t = jnp.maximum(mm(t, m_w2_ref[l]) + m_b2_ref[l], 0.0)
        h = h + mm(t, m_w3_ref[l]) + m_b3_ref[l]

    # ---- LocalFeatures: Conv1d(k=3, dilation d, padding d) + InstanceNorm + ELU ----
    def elu(z):
        return jnp.where(z > 0.0, z, jnp.exp(jnp.minimum(z, 0.0)) - 1.0)

    def inorm(z):                          # InstanceNorm1d: per-channel over length
        mu = jnp.mean(z, axis=0, keepdims=True)
        var = jnp.mean((z - mu) * (z - mu), axis=0, keepdims=True)
        return (z - mu) * jax.lax.rsqrt(var + 1e-5)

    def conv3(inp, w_flat, bias, di):
        # shift matrices give x[t-d] / x[t+d] with zero padding, on the MXU
        xm = mm(sm_ref[di], inp)           # (L, Cin): row t -> inp[t - d] (0 if OOB)
        xp = mm(sp_ref[di], inp)           # (L, Cin): row t -> inp[t + d] (0 if OOB)
        stacked = jnp.concatenate([xm, inp, xp], axis=1)              # (L, 3*Cin)
        return mm(stacked, w_flat) + bias

    x = jnp.concatenate([h, feat], axis=1)                            # (N, LOCAL_IN)
    out = elu(conv3(x, lp_w_ref[...], lp_b_ref[...], 0))              # preprocess, d=1
    for idx in range(4):                                              # dilations 1,2,4,1
        out = elu(conv3(inorm(out), lb_w_ref[idx], lb_b_ref[idx], idx % 3)) + out

    # ---- decoder: Linear(size, sequence_size), lane-padded to 128 ----
    out_ref[...] = mm(out, dec_w_ref[...]) + dec_b_ref[...]


# ----------------------------------------------------------------------------
# Parameter construction (deterministic, synthetic) — "natural" layout
# ----------------------------------------------------------------------------
def _init(key, shape, scale=0.1):
    return jax.random.normal(key, shape, F32) * scale


def init_params(key):
    keys = iter(jax.random.split(key, 64))
    params = {
        "embed_w": _init(next(keys), (ENC_IN, SIZE)),
        "embed_b": _init(next(keys), (1, SIZE)),
        "layers": [],
        "local": {
            "pre_w": _init(next(keys), (3, LOCAL_IN, SIZE)),
            "pre_b": _init(next(keys), (1, SIZE)),
            "blk_w": _init(next(keys), (4, 3, SIZE, SIZE)),
            "blk_b": _init(next(keys), (4, 1, SIZE)),
        },
        "dec_w": _init(next(keys), (SIZE, SEQ_SIZE)),
        "dec_b": _init(next(keys), (1, SEQ_SIZE)),
    }
    for _ in range(DEPTH):
        layer = {
            "attn": {
                "wq": _init(next(keys), (SIZE, HD)), "bq": _init(next(keys), (1, HD)),
                "wk": _init(next(keys), (SIZE + D_EDGE, HD)), "bk": _init(next(keys), (1, HD)),
                "wv": _init(next(keys), (SIZE + D_EDGE, HD)), "bv": _init(next(keys), (1, HD)),
                "wo": _init(next(keys), (HD, SIZE)), "bo": _init(next(keys), (1, SIZE)),
            },
            "mlp": {
                "w1": _init(next(keys), (SIZE, HIDDEN_SIZE)), "b1": _init(next(keys), (1, HIDDEN_SIZE)),
                "w2": _init(next(keys), (HIDDEN_SIZE, HIDDEN_SIZE)), "b2": _init(next(keys), (1, HIDDEN_SIZE)),
                "w3": _init(next(keys), (HIDDEN_SIZE, SIZE)), "b3": _init(next(keys), (1, SIZE)),
            },
        }
        params["layers"].append(layer)
    return params


# ----------------------------------------------------------------------------
# Wrapper-side packing: fuse/stack weights, build constant selection matrices
# ----------------------------------------------------------------------------
def pack_params(params):
    wnode, bnode, wedge, wo, bo = [], [], [], [], []
    w1, b1, w2, b2, w3, b3 = [], [], [], [], [], []
    for layer in params["layers"]:
        a = layer["attn"]
        wnode.append(jnp.concatenate([a["wq"], a["wk"][:SIZE], a["wv"][:SIZE]], axis=1))
        bnode.append(jnp.concatenate([a["bq"], a["bk"], a["bv"]], axis=1))
        we = jnp.concatenate([a["wk"][SIZE:], a["wv"][SIZE:]], axis=1)          # (D_EDGE, 2*HD)
        wedge.append(jnp.pad(we, ((0, DE_PAD - D_EDGE), (0, 0))))               # (DE_PAD, 2*HD)
        wo.append(a["wo"]); bo.append(a["bo"])
        m = layer["mlp"]
        w1.append(m["w1"]); b1.append(m["b1"])
        w2.append(m["w2"]); b2.append(m["b2"])
        w3.append(m["w3"]); b3.append(m["b3"])
    loc = params["local"]
    return dict(
        emb_w=params["embed_w"], emb_b=params["embed_b"],
        a_wnode=jnp.stack(wnode), a_bnode=jnp.stack(bnode), a_wedge=jnp.stack(wedge),
        a_wo=jnp.stack(wo), a_bo=jnp.stack(bo),
        m_w1=jnp.stack(w1), m_b1=jnp.stack(b1),
        m_w2=jnp.stack(w2), m_b2=jnp.stack(b2),
        m_w3=jnp.stack(w3), m_b3=jnp.stack(b3),
        lp_w=loc["pre_w"].reshape(3 * LOCAL_IN, SIZE), lp_b=loc["pre_b"],
        lb_w=loc["blk_w"].reshape(4, 3 * SIZE, SIZE), lb_b=loc["blk_b"],
        dec_w=jnp.pad(params["dec_w"], ((0, 0), (0, OUT_PAD - SEQ_SIZE))),
        dec_b=jnp.pad(params["dec_b"], ((0, 0), (0, OUT_PAD - SEQ_SIZE))),
    )


def make_constants():
    idx = jnp.arange(NN)
    col = jnp.arange(N_NODES)
    rep = (idx[:, None] // N_NODES == col[None, :]).astype(F32)        # (NN, N)
    til = (idx[:, None] % N_NODES == col[None, :]).astype(F32)         # (NN, N)
    hs = (jnp.arange(HD)[:, None] // ATTN_SIZE
          == jnp.arange(HEADS)[None, :]).astype(F32)                   # (HD, H)
    t = jnp.arange(N_NODES)[:, None]
    s = jnp.arange(N_NODES)[None, :]
    sm = jnp.stack([(s == t - d).astype(F32) for d in (1, 2, 4)])      # (3, N, N)
    sp = jnp.stack([(s == t + d).astype(F32) for d in (1, 2, 4)])      # (3, N, N)
    return dict(rep=rep, rept=rep.T, til=til, hs=hs, he=hs.T, sm=sm, sp=sp)


# ----------------------------------------------------------------------------
# Forward pass (mirrors ConditionalStructuredTransformer.forward, sequence=False)
# Inputs carry a leading batch-of-proteins dimension; one grid step per protein.
# ----------------------------------------------------------------------------
def forward(params, angle_features, sequence, distances, structure):
    del structure  # distance/orientation features are supplied via `distances`
    b, n = angle_features.shape[:2]

    # features = cat((angle_features, sequence), dim=1)
    # TODO(synk): the encoder's declared input width is in_size + sequence_size + 1;
    # the extra channel comes from structure bookkeeping in protsupport — a constant
    # ones channel stands in for it here.
    feats = jnp.concatenate(
        [angle_features, sequence, jnp.ones((b, n, 1), F32)], axis=-1)          # (B, N, ENC_IN)

    # RelativeStructure(structure, rbf).message(distances, distances): RBF-expand the
    # scalar distance channel and keep the remaining relative channels.
    # TODO(synk): the exact RelativeStructure / OrientationStructure message code is
    # not available; this reproduces its documented channel arithmetic
    # (distance_size -> distance_size + distance_kernels - 1).
    centers = jnp.linspace(0.0, MAX_DISTANCE, DIST_KERNELS, dtype=F32)
    sigma = MAX_DISTANCE / DIST_KERNELS
    d0 = distances[..., :1]
    rbf = jnp.exp(-(((d0 - centers) / sigma) ** 2))
    rel = jnp.concatenate([rbf, distances[..., 1:]], axis=-1)                   # (B, N, N, D_EDGE)
    e_flat = rel.reshape(b, n * n, D_EDGE)
    e_flat = jnp.pad(e_flat, ((0, 0), (0, 0), (0, DE_PAD - D_EDGE)))            # (B, NN, DE_PAD)

    packed = pack_params(params)
    consts = make_constants()

    shared = [
        packed["emb_w"], packed["emb_b"],
        packed["a_wnode"], packed["a_bnode"], packed["a_wedge"],
        packed["a_wo"], packed["a_bo"],
        packed["m_w1"], packed["m_b1"], packed["m_w2"], packed["m_b2"],
        packed["m_w3"], packed["m_b3"],
        packed["lp_w"], packed["lp_b"], packed["lb_w"], packed["lb_b"],
        packed["dec_w"], packed["dec_b"],
        consts["rep"], consts["rept"], consts["til"], consts["hs"], consts["he"],
        consts["sm"], consts["sp"],
    ]

    def batched_spec(trailing):
        nd = len(trailing)
        return pl.BlockSpec((None,) + tuple(trailing),
                            lambda i, _nd=nd: (i,) + (0,) * _nd)

    def shared_spec(shape):
        nd = len(shape)
        return pl.BlockSpec(tuple(shape), lambda i, _nd=nd: (0,) * _nd)

    in_specs = ([batched_spec(feats.shape[1:]), batched_spec(e_flat.shape[1:])]
                + [shared_spec(a.shape) for a in shared])

    out = pl.pallas_call(
        _fused_forward_kernel,
        grid=(b,),
        in_specs=in_specs,
        out_specs=batched_spec((n, OUT_PAD)),
        out_shape=jax.ShapeDtypeStruct((b, n, OUT_PAD), F32),
        compiler_params=pltpu.CompilerParams(dimension_semantics=("parallel",)),
    )(feats, e_flat, *shared)

    # TODO(synk): the provided forward snippet calls self.local(encoding) alone, which
    # would be a channel mismatch with LocalFeatures.__init__; the kernel feeds
    # cat(encoding, features), matching the declared channel count.
    return out[:, :, :SEQ_SIZE]


# ----------------------------------------------------------------------------
if __name__ == "__main__":
    key = jax.random.PRNGKey(0)
    k1, k2, k3, k4 = jax.random.split(key, 4)

    angle_features = jax.random.normal(k1, (BATCH, N_NODES, IN_SIZE), F32)
    seq_idx = jax.random.randint(k2, (BATCH, N_NODES), 0, SEQ_SIZE)
    sequence = jax.nn.one_hot(seq_idx, SEQ_SIZE, dtype=F32)

    structure = jax.random.normal(k3, (BATCH, N_NODES, 3), F32) * 5.0           # CA positions
    dist_scalar = jnp.linalg.norm(
        structure[:, :, None, :] - structure[:, None, :, :], axis=-1)           # (B, N, N)
    extra_rel = jax.random.normal(k4, (BATCH, N_NODES, N_NODES, DIST_SIZE_IN - 1), F32)
    distances = jnp.concatenate([dist_scalar[..., None], extra_rel], axis=-1)

    params = init_params(jax.random.PRNGKey(42))

    fwd = jax.jit(forward)
    out = jax.block_until_ready(fwd(params, angle_features, sequence, distances, structure))

    assert out.shape == (BATCH, N_NODES, SEQ_SIZE), out.shape
    assert bool(jnp.all(jnp.isfinite(out)))
    print("KERNEL_OK")
</pallas_src>

<mosaic_0001>
module attributes {stable_mosaic.version = 11 : i64} {
  func.func @_fused_forward_kernel(%arg0: i32, %arg1: memref<1x16x28xf32, #tpu.memory_space<vmem>>, %arg2: memref<1x256x16xf32, #tpu.memory_space<vmem>>, %arg3: memref<28x32xf32, #tpu.memory_space<vmem>>, %arg4: memref<1x32xf32, #tpu.memory_space<vmem>>, %arg5: memref<2x32x192xf32, #tpu.memory_space<vmem>>, %arg6: memref<2x1x192xf32, #tpu.memory_space<vmem>>, %arg7: memref<2x16x128xf32, #tpu.memory_space<vmem>>, %arg8: memref<2x64x32xf32, #tpu.memory_space<vmem>>, %arg9: memref<2x1x32xf32, #tpu.memory_space<vmem>>, %arg10: memref<2x32x32xf32, #tpu.memory_space<vmem>>, %arg11: memref<2x1x32xf32, #tpu.memory_space<vmem>>, %arg12: memref<2x32x32xf32, #tpu.memory_space<vmem>>, %arg13: memref<2x1x32xf32, #tpu.memory_space<vmem>>, %arg14: memref<2x32x32xf32, #tpu.memory_space<vmem>>, %arg15: memref<2x1x32xf32, #tpu.memory_space<vmem>>, %arg16: memref<180x32xf32, #tpu.memory_space<vmem>>, %arg17: memref<1x32xf32, #tpu.memory_space<vmem>>, %arg18: memref<4x96x32xf32, #tpu.memory_space<vmem>>, %arg19: memref<4x1x32xf32, #tpu.memory_space<vmem>>, %arg20: memref<32x128xf32, #tpu.memory_space<vmem>>, %arg21: memref<1x128xf32, #tpu.memory_space<vmem>>, %arg22: memref<256x16xf32, #tpu.memory_space<vmem>>, %arg23: memref<16x256xf32, #tpu.memory_space<vmem>>, %arg24: memref<256x16xf32, #tpu.memory_space<vmem>>, %arg25: memref<64x4xf32, #tpu.memory_space<vmem>>, %arg26: memref<4x64xf32, #tpu.memory_space<vmem>>, %arg27: memref<3x16x16xf32, #tpu.memory_space<vmem>>, %arg28: memref<3x16x16xf32, #tpu.memory_space<vmem>>, %arg29: memref<1x16x128xf32, #tpu.memory_space<vmem>>) attributes {dimension_semantics = [#tpu.dimension_semantics<parallel>], iteration_bounds = array<i64: 2>, scalar_prefetch = 0 : i64, scratch_operands = 0 : i64, tpu.core_type = #tpu.core_type<tc>, window_params = [{transform_indices = @transform_0, window_bounds = array<i64: 1, 16, 28>}, {transform_indices = @transform_1, window_bounds = array<i64: 1, 256, 16>}, {pipeline_mode = #tpu.pipeline_mode<synchronous>, transform_indices = @transform_2, window_bounds = array<i64: 28, 32>}, {pipeline_mode = #tpu.pipeline_mode<synchronous>, transform_indices = @transform_3, window_bounds = array<i64: 1, 32>}, {pipeline_mode = #tpu.pipeline_mode<synchronous>, transform_indices = @transform_4, window_bounds = array<i64: 2, 32, 192>}, {pipeline_mode = #tpu.pipeline_mode<synchronous>, transform_indices = @transform_5, window_bounds = array<i64: 2, 1, 192>}, {pipeline_mode = #tpu.pipeline_mode<synchronous>, transform_indices = @transform_6, window_bounds = array<i64: 2, 16, 128>}, {pipeline_mode = #tpu.pipeline_mode<synchronous>, transform_indices = @transform_7, window_bounds = array<i64: 2, 64, 32>}, {pipeline_mode = #tpu.pipeline_mode<synchronous>, transform_indices = @transform_8, window_bounds = array<i64: 2, 1, 32>}, {pipeline_mode = #tpu.pipeline_mode<synchronous>, transform_indices = @transform_9, window_bounds = array<i64: 2, 32, 32>}, {pipeline_mode = #tpu.pipeline_mode<synchronous>, transform_indices = @transform_10, window_bounds = array<i64: 2, 1, 32>}, {pipeline_mode = #tpu.pipeline_mode<synchronous>, transform_indices = @transform_11, window_bounds = array<i64: 2, 32, 32>}, {pipeline_mode = #tpu.pipeline_mode<synchronous>, transform_indices = @transform_12, window_bounds = array<i64: 2, 1, 32>}, {pipeline_mode = #tpu.pipeline_mode<synchronous>, transform_indices = @transform_13, window_bounds = array<i64: 2, 32, 32>}, {pipeline_mode = #tpu.pipeline_mode<synchronous>, transform_indices = @transform_14, window_bounds = array<i64: 2, 1, 32>}, {pipeline_mode = #tpu.pipeline_mode<synchronous>, transform_indices = @transform_15, window_bounds = array<i64: 180, 32>}, {pipeline_mode = #tpu.pipeline_mode<synchronous>, transform_indices = @transform_16, window_bounds = array<i64: 1, 32>}, {pipeline_mode = #tpu.pipeline_mode<synchronous>, transform_indices = @transform_17, window_bounds = array<i64: 4, 96, 32>}, {pipeline_mode = #tpu.pipeline_mode<synchronous>, transform_indices = @transform_18, window_bounds = array<i64: 4, 1, 32>}, {pipeline_mode = #tpu.pipeline_mode<synchronous>, transform_indices = @transform_19, window_bounds = array<i64: 32, 128>}, {pipeline_mode = #tpu.pipeline_mode<synchronous>, transform_indices = @transform_20, window_bounds = array<i64: 1, 128>}, {pipeline_mode = #tpu.pipeline_mode<synchronous>, transform_indices = @transform_21, window_bounds = array<i64: 256, 16>}, {pipeline_mode = #tpu.pipeline_mode<synchronous>, transform_indices = @transform_22, window_bounds = array<i64: 16, 256>}, {pipeline_mode = #tpu.pipeline_mode<synchronous>, transform_indices = @transform_23, window_bounds = array<i64: 256, 16>}, {pipeline_mode = #tpu.pipeline_mode<synchronous>, transform_indices = @transform_24, window_bounds = array<i64: 64, 4>}, {pipeline_mode = #tpu.pipeline_mode<synchronous>, transform_indices = @transform_25, window_bounds = array<i64: 4, 64>}, {pipeline_mode = #tpu.pipeline_mode<synchronous>, transform_indices = @transform_26, window_bounds = array<i64: 3, 16, 16>}, {pipeline_mode = #tpu.pipeline_mode<synchronous>, transform_indices = @transform_27, window_bounds = array<i64: 3, 16, 16>}, {transform_indices = @transform_28, window_bounds = array<i64: 1, 16, 128>}]} {
    %c0 = arith.constant 0 : index
    %c0_0 = arith.constant 0 : index
    %c0_1 = arith.constant 0 : index
    %0 = vector.load %arg1[%c0, %c0_0, %c0_1] : memref<1x16x28xf32, #tpu.memory_space<vmem>>, vector<1x16x28xf32>
    %1 = vector.shape_cast %0 : vector<1x16x28xf32> to vector<16x28xf32>
    %c0_2 = arith.constant 0 : index
    %c0_3 = arith.constant 0 : index
    %c0_4 = arith.constant 0 : index
    %2 = vector.load %arg2[%c0_2, %c0_3, %c0_4] : memref<1x256x16xf32, #tpu.memory_space<vmem>>, vector<1x256x16xf32>
    %3 = vector.shape_cast %2 : vector<1x256x16xf32> to vector<256x16xf32>
    %c0_5 = arith.constant 0 : index
    %c0_6 = arith.constant 0 : index
    %4 = vector.load %arg22[%c0_5, %c0_6] : memref<256x16xf32, #tpu.memory_space<vmem>>, vector<256x16xf32>
    %c0_7 = arith.constant 0 : index
    %c0_8 = arith.constant 0 : index
    %5 = vector.load %arg23[%c0_7, %c0_8] : memref<16x256xf32, #tpu.memory_space<vmem>>, vector<16x256xf32>
    %c0_9 = arith.constant 0 : index
    %c0_10 = arith.constant 0 : index
    %6 = vector.load %arg24[%c0_9, %c0_10] : memref<256x16xf32, #tpu.memory_space<vmem>>, vector<256x16xf32>
    %c0_11 = arith.constant 0 : index
    %c0_12 = arith.constant 0 : index
    %7 = vector.load %arg25[%c0_11, %c0_12] : memref<64x4xf32, #tpu.memory_space<vmem>>, vector<64x4xf32>
    %c0_13 = arith.constant 0 : index
    %c0_14 = arith.constant 0 : index
    %8 = vector.load %arg26[%c0_13, %c0_14] : memref<4x64xf32, #tpu.memory_space<vmem>>, vector<4x64xf32>
    %c0_15 = arith.constant 0 : index
    %c0_16 = arith.constant 0 : index
    %9 = vector.load %arg3[%c0_15, %c0_16] : memref<28x32xf32, #tpu.memory_space<vmem>>, vector<28x32xf32>
    %cst = arith.constant dense<0.000000e+00> : vector<16x32xf32>
    %10 = tpu.matmul %1, %9, %cst {dimension_numbers = #tpu.dot_dimension_numbers<[1], [0], [0], [1], [0, 0, 1, 1], [], []>} : vector<16x28xf32>, vector<28x32xf32>, vector<16x32xf32> -> vector<16x32xf32>
    %c0_17 = arith.constant 0 : index
    %c0_18 = arith.constant 0 : index
    %11 = vector.load %arg4[%c0_17, %c0_18] : memref<1x32xf32, #tpu.memory_space<vmem>>, vector<1x32xf32>
    %12 = vector.broadcast %11 : vector<1x32xf32> to vector<16x32xf32>
    %13 = arith.addf %10, %12 : vector<16x32xf32>
    %c0_19 = arith.constant 0 : index
    %c0_20 = arith.constant 0 : index
    %c0_21 = arith.constant 0 : index
    %14 = vector.load %arg5[%c0_19, %c0_20, %c0_21] : memref<2x32x192xf32, #tpu.memory_space<vmem>>, vector<1x32x192xf32>
    %15 = vector.shape_cast %14 : vector<1x32x192xf32> to vector<32x192xf32>
    %cst_22 = arith.constant dense<0.000000e+00> : vector<16x192xf32>
    %16 = tpu.matmul %13, %15, %cst_22 {dimension_numbers = #tpu.dot_dimension_numbers<[1], [0], [0], [1], [0, 0, 1, 1], [], []>} : vector<16x32xf32>, vector<32x192xf32>, vector<16x192xf32> -> vector<16x192xf32>
    %c0_23 = arith.constant 0 : index
    %c0_24 = arith.constant 0 : index
    %c0_25 = arith.constant 0 : index
    %17 = vector.load %arg6[%c0_23, %c0_24, %c0_25] : memref<2x1x192xf32, #tpu.memory_space<vmem>>, vector<1x1x192xf32>
    %18 = vector.shape_cast %17 : vector<1x1x192xf32> to vector<1x192xf32>
    %19 = vector.broadcast %18 : vector<1x192xf32> to vector<16x192xf32>
    %20 = arith.addf %16, %19 : vector<16x192xf32>
    %21 = vector.extract_strided_slice %20 {offsets = [0, 0], sizes = [16, 64], strides = [1, 1]} : vector<16x192xf32> to vector<16x64xf32>
    %22 = vector.extract_strided_slice %20 {offsets = [0, 64], sizes = [16, 64], strides = [1, 1]} : vector<16x192xf32> to vector<16x64xf32>
    %23 = vector.extract_strided_slice %20 {offsets = [0, 128], sizes = [16, 64], strides = [1, 1]} : vector<16x192xf32> to vector<16x64xf32>
    %c0_26 = arith.constant 0 : index
    %c0_27 = arith.constant 0 : index
    %c0_28 = arith.constant 0 : index
    %24 = vector.load %arg7[%c0_26, %c0_27, %c0_28] : memref<2x16x128xf32, #tpu.memory_space<vmem>>, vector<1x16x128xf32>
    %25 = vector.shape_cast %24 : vector<1x16x128xf32> to vector<16x128xf32>
    %cst_29 = arith.constant dense<0.000000e+00> : vector<256x128xf32>
    %26 = tpu.matmul %3, %25, %cst_29 {dimension_numbers = #tpu.dot_dimension_numbers<[1], [0], [0], [1], [0, 0, 1, 1], [], []>} : vector<256x16xf32>, vector<16x128xf32>, vector<256x128xf32> -> vector<256x128xf32>
    %cst_30 = arith.constant dense<0.000000e+00> : vector<256x64xf32>
    %27 = tpu.matmul %6, %22, %cst_30 {dimension_numbers = #tpu.dot_dimension_numbers<[1], [0], [0], [1], [0, 0, 1, 1], [], []>} : vector<256x16xf32>, vector<16x64xf32>, vector<256x64xf32> -> vector<256x64xf32>
    %28 = vector.extract_strided_slice %26 {offsets = [0, 0], sizes = [256, 64], strides = [1, 1]} : vector<256x128xf32> to vector<256x64xf32>
    %29 = arith.addf %27, %28 : vector<256x64xf32>
    %cst_31 = arith.constant dense<0.000000e+00> : vector<256x64xf32>
    %30 = tpu.matmul %6, %23, %cst_31 {dimension_numbers = #tpu.dot_dimension_numbers<[1], [0], [0], [1], [0, 0, 1, 1], [], []>} : vector<256x16xf32>, vector<16x64xf32>, vector<256x64xf32> -> vector<256x64xf32>
    %31 = vector.extract_strided_slice %26 {offsets = [0, 64], sizes = [256, 64], strides = [1, 1]} : vector<256x128xf32> to vector<256x64xf32>
    %32 = arith.addf %30, %31 : vector<256x64xf32>
    %cst_32 = arith.constant dense<0.000000e+00> : vector<256x64xf32>
    %33 = tpu.matmul %4, %21, %cst_32 {dimension_numbers = #tpu.dot_dimension_numbers<[1], [0], [0], [1], [0, 0, 1, 1], [], []>} : vector<256x16xf32>, vector<16x64xf32>, vector<256x64xf32> -> vector<256x64xf32>
    %34 = arith.mulf %33, %29 : vector<256x64xf32>
    %cst_33 = arith.constant dense<0.000000e+00> : vector<256x4xf32>
    %35 = tpu.matmul %34, %7, %cst_33 {dimension_numbers = #tpu.dot_dimension_numbers<[1], [0], [0], [1], [0, 0, 1, 1], [], []>} : vector<256x64xf32>, vector<64x4xf32>, vector<256x4xf32> -> vector<256x4xf32>
    %cst_34 = arith.constant 2.500000e-01 : f32
    %36 = vector.broadcast %cst_34 : f32 to vector<256x4xf32>
    %37 = arith.mulf %35, %36 : vector<256x4xf32>
    %38 = vector.shape_cast %37 : vector<256x4xf32> to vector<16x16x4xf32>
    %cst_35 = arith.constant dense<0xFF800000> : vector<16x4xf32>
    %39 = vector.multi_reduction <maximumf>, %38, %cst_35 [1] : vector<16x16x4xf32> to vector<16x4xf32>
    %40 = vector.shape_cast %39 : vector<16x4xf32> to vector<16x1x4xf32>
    %41 = vector.broadcast %40 : vector<16x1x4xf32> to vector<16x16x4xf32>
    %42 = arith.subf %38, %41 : vector<16x16x4xf32>
    %43 = math.exp %42 : vector<16x16x4xf32>
    %cst_36 = arith.constant dense<0.000000e+00> : vector<16x4xf32>
    %44 = vector.multi_reduction <add>, %43, %cst_36 [1] : vector<16x16x4xf32> to vector<16x4xf32>
    %45 = vector.shape_cast %44 : vector<16x4xf32> to vector<16x1x4xf32>
    %46 = tpu.reciprocal %45 {approx = true} : vector<16x1x4xf32> -> vector<16x1x4xf32>
    %47 = vector.broadcast %46 : vector<16x1x4xf32> to vector<16x16x4xf32>
    %48 = arith.mulf %43, %47 : vector<16x16x4xf32>
    %49 = vector.shape_cast %48 : vector<16x16x4xf32> to vector<256x4xf32>
    %cst_37 = arith.constant dense<0.000000e+00> : vector<256x64xf32>
    %50 = tpu.matmul %49, %8, %cst_37 {dimension_numbers = #tpu.dot_dimension_numbers<[1], [0], [0], [1], [0, 0, 1, 1], [], []>} : vector<256x4xf32>, vector<4x64xf32>, vector<256x64xf32> -> vector<256x64xf32>
    %51 = arith.mulf %50, %32 : vector<256x64xf32>
    %cst_38 = arith.constant dense<0.000000e+00> : vector<16x64xf32>
    %52 = tpu.matmul %5, %51, %cst_38 {dimension_numbers = #tpu.dot_dimension_numbers<[1], [0], [0], [1], [0, 0, 1, 1], [], []>} : vector<16x256xf32>, vector<256x64xf32>, vector<16x64xf32> -> vector<16x64xf32>
    %c0_39 = arith.constant 0 : index
    %c0_40 = arith.constant 0 : index
    %c0_41 = arith.constant 0 : index
    %53 = vector.load %arg8[%c0_39, %c0_40, %c0_41] : memref<2x64x32xf32, #tpu.memory_space<vmem>>, vector<1x64x32xf32>
    %54 = vector.shape_cast %53 : vector<1x64x32xf32> to vector<64x32xf32>
    %cst_42 = arith.constant dense<0.000000e+00> : vector<16x32xf32>
    %55 = tpu.matmul %52, %54, %cst_42 {dimension_numbers = #tpu.dot_dimension_numbers<[1], [0], [0], [1], [0, 0, 1, 1], [], []>} : vector<16x64xf32>, vector<64x32xf32>, vector<16x32xf32> -> vector<16x32xf32>
    %56 = arith.addf %13, %55 : vector<16x32xf32>
    %c0_43 = arith.constant 0 : index
    %c0_44 = arith.constant 0 : index
    %c0_45 = arith.constant 0 : index
    %57 = vector.load %arg9[%c0_43, %c0_44, %c0_45] : memref<2x1x32xf32, #tpu.memory_space<vmem>>, vector<1x1x32xf32>
    %58 = vector.shape_cast %57 : vector<1x1x32xf32> to vector<1x32xf32>
    %59 = vector.broadcast %58 : vector<1x32xf32> to vector<16x32xf32>
    %60 = arith.addf %56, %59 : vector<16x32xf32>
    %c0_46 = arith.constant 0 : index
    %c0_47 = arith.constant 0 : index
    %c0_48 = arith.constant 0 : index
    %61 = vector.load %arg10[%c0_46, %c0_47, %c0_48] : memref<2x32x32xf32, #tpu.memory_space<vmem>>, vector<1x32x32xf32>
    %62 = vector.shape_cast %61 : vector<1x32x32xf32> to vector<32x32xf32>
    %cst_49 = arith.constant dense<0.000000e+00> : vector<16x32xf32>
    %63 = tpu.matmul %60, %62, %cst_49 {dimension_numbers = #tpu.dot_dimension_numbers<[1], [0], [0], [1], [0, 0, 1, 1], [], []>} : vector<16x32xf32>, vector<32x32xf32>, vector<16x32xf32> -> vector<16x32xf32>
    %c0_50 = arith.constant 0 : index
    %c0_51 = arith.constant 0 : index
    %c0_52 = arith.constant 0 : index
    %64 = vector.load %arg11[%c0_50, %c0_51, %c0_52] : memref<2x1x32xf32, #tpu.memory_space<vmem>>, vector<1x1x32xf32>
    %65 = vector.shape_cast %64 : vector<1x1x32xf32> to vector<1x32xf32>
    %66 = vector.broadcast %65 : vector<1x32xf32> to vector<16x32xf32>
    %67 = arith.addf %63, %66 : vector<16x32xf32>
    %cst_53 = arith.constant 0.000000e+00 : f32
    %68 = vector.broadcast %cst_53 : f32 to vector<16x32xf32>
    %69 = arith.maximumf %67, %68 : vector<16x32xf32>
    %c0_54 = arith.constant 0 : index
    %c0_55 = arith.constant 0 : index
    %c0_56 = arith.constant 0 : index
    %70 = vector.load %arg12[%c0_54, %c0_55, %c0_56] : memref<2x32x32xf32, #tpu.memory_space<vmem>>, vector<1x32x32xf32>
    %71 = vector.shape_cast %70 : vector<1x32x32xf32> to vector<32x32xf32>
    %cst_57 = arith.constant dense<0.000000e+00> : vector<16x32xf32>
    %72 = tpu.matmul %69, %71, %cst_57 {dimension_numbers = #tpu.dot_dimension_numbers<[1], [0], [0], [1], [0, 0, 1, 1], [], []>} : vector<16x32xf32>, vector<32x32xf32>, vector<16x32xf32> -> vector<16x32xf32>
    %c0_58 = arith.constant 0 : index
    %c0_59 = arith.constant 0 : index
    %c0_60 = arith.constant 0 : index
    %73 = vector.load %arg13[%c0_58, %c0_59, %c0_60] : memref<2x1x32xf32, #tpu.memory_space<vmem>>, vector<1x1x32xf32>
    %74 = vector.shape_cast %73 : vector<1x1x32xf32> to vector<1x32xf32>
    %75 = vector.broadcast %74 : vector<1x32xf32> to vector<16x32xf32>
    %76 = arith.addf %72, %75 : vector<16x32xf32>
    %cst_61 = arith.constant 0.000000e+00 : f32
    %77 = vector.broadcast %cst_61 : f32 to vector<16x32xf32>
    %78 = arith.maximumf %76, %77 : vector<16x32xf32>
    %c0_62 = arith.constant 0 : index
    %c0_63 = arith.constant 0 : index
    %c0_64 = arith.constant 0 : index
    %79 = vector.load %arg14[%c0_62, %c0_63, %c0_64] : memref<2x32x32xf32, #tpu.memory_space<vmem>>, vector<1x32x32xf32>
    %80 = vector.shape_cast %79 : vector<1x32x32xf32> to vector<32x32xf32>
    %cst_65 = arith.constant dense<0.000000e+00> : vector<16x32xf32>
    %81 = tpu.matmul %78, %80, %cst_65 {dimension_numbers = #tpu.dot_dimension_numbers<[1], [0], [0], [1], [0, 0, 1, 1], [], []>} : vector<16x32xf32>, vector<32x32xf32>, vector<16x32xf32> -> vector<16x32xf32>
    %82 = arith.addf %60, %81 : vector<16x32xf32>
    %c0_66 = arith.constant 0 : index
    %c0_67 = arith.constant 0 : index
    %c0_68 = arith.constant 0 : index
    %83 = vector.load %arg15[%c0_66, %c0_67, %c0_68] : memref<2x1x32xf32, #tpu.memory_space<vmem>>, vector<1x1x32xf32>
    %84 = vector.shape_cast %83 : vector<1x1x32xf32> to vector<1x32xf32>
    %85 = vector.broadcast %84 : vector<1x32xf32> to vector<16x32xf32>
    %86 = arith.addf %82, %85 : vector<16x32xf32>
    %c1 = arith.constant 1 : index
    %c0_69 = arith.constant 0 : index
    %c0_70 = arith.constant 0 : index
    %87 = vector.load %arg5[%c1, %c0_69, %c0_70] : memref<2x32x192xf32, #tpu.memory_space<vmem>>, vector<1x32x192xf32>
    %88 = vector.shape_cast %87 : vector<1x32x192xf32> to vector<32x192xf32>
    %cst_71 = arith.constant dense<0.000000e+00> : vector<16x192xf32>
    %89 = tpu.matmul %86, %88, %cst_71 {dimension_numbers = #tpu.dot_dimension_numbers<[1], [0], [0], [1], [0, 0, 1, 1], [], []>} : vector<16x32xf32>, vector<32x192xf32>, vector<16x192xf32> -> vector<16x192xf32>
    %c1_72 = arith.constant 1 : index
    %c0_73 = arith.constant 0 : index
    %c0_74 = arith.constant 0 : index
    %90 = vector.load %arg6[%c1_72, %c0_73, %c0_74] : memref<2x1x192xf32, #tpu.memory_space<vmem>>, vector<1x1x192xf32>
    %91 = vector.shape_cast %90 : vector<1x1x192xf32> to vector<1x192xf32>
    %92 = vector.broadcast %91 : vector<1x192xf32> to vector<16x192xf32>
    %93 = arith.addf %89, %92 : vector<16x192xf32>
    %94 = vector.extract_strided_slice %93 {offsets = [0, 0], sizes = [16, 64], strides = [1, 1]} : vector<16x192xf32> to vector<16x64xf32>
    %95 = vector.extract_strided_slice %93 {offsets = [0, 64], sizes = [16, 64], strides = [1, 1]} : vector<16x192xf32> to vector<16x64xf32>
    %96 = vector.extract_strided_slice %93 {offsets = [0, 128], sizes = [16, 64], strides = [1, 1]} : vector<16x192xf32> to vector<16x64xf32>
    %c1_75 = arith.constant 1 : index
    %c0_76 = arith.constant 0 : index
    %c0_77 = arith.constant 0 : index
    %97 = vector.load %arg7[%c1_75, %c0_76, %c0_77] : memref<2x16x128xf32, #tpu.memory_space<vmem>>, vector<1x16x128xf32>
    %98 = vector.shape_cast %97 : vector<1x16x128xf32> to vector<16x128xf32>
    %cst_78 = arith.constant dense<0.000000e+00> : vector<256x128xf32>
    %99 = tpu.matmul %3, %98, %cst_78 {dimension_numbers = #tpu.dot_dimension_numbers<[1], [0], [0], [1], [0, 0, 1, 1], [], []>} : vector<256x16xf32>, vector<16x128xf32>, vector<256x128xf32> -> vector<256x128xf32>
    %cst_79 = arith.constant dense<0.000000e+00> : vector<256x64xf32>
    %100 = tpu.matmul %6, %95, %cst_79 {dimension_numbers = #tpu.dot_dimension_numbers<[1], [0], [0], [1], [0, 0, 1, 1], [], []>} : vector<256x16xf32>, vector<16x64xf32>, vector<256x64xf32> -> vector<256x64xf32>
    %101 = vector.extract_strided_slice %99 {offsets = [0, 0], sizes = [256, 64], strides = [1, 1]} : vector<256x128xf32> to vector<256x64xf32>
    %102 = arith.addf %100, %101 : vector<256x64xf32>
    %cst_80 = arith.constant dense<0.000000e+00> : vector<256x64xf32>
    %103 = tpu.matmul %6, %96, %cst_80 {dimension_numbers = #tpu.dot_dimension_numbers<[1], [0], [0], [1], [0, 0, 1, 1], [], []>} : vector<256x16xf32>, vector<16x64xf32>, vector<256x64xf32> -> vector<256x64xf32>
    %104 = vector.extract_strided_slice %99 {offsets = [0, 64], sizes = [256, 64], strides = [1, 1]} : vector<256x128xf32> to vector<256x64xf32>
    %105 = arith.addf %103, %104 : vector<256x64xf32>
    %cst_81 = arith.constant dense<0.000000e+00> : vector<256x64xf32>
    %106 = tpu.matmul %4, %94, %cst_81 {dimension_numbers = #tpu.dot_dimension_numbers<[1], [0], [0], [1], [0, 0, 1, 1], [], []>} : vector<256x16xf32>, vector<16x64xf32>, vector<256x64xf32> -> vector<256x64xf32>
    %107 = arith.mulf %106, %102 : vector<256x64xf32>
    %cst_82 = arith.constant dense<0.000000e+00> : vector<256x4xf32>
    %108 = tpu.matmul %107, %7, %cst_82 {dimension_numbers = #tpu.dot_dimension_numbers<[1], [0], [0], [1], [0, 0, 1, 1], [], []>} : vector<256x64xf32>, vector<64x4xf32>, vector<256x4xf32> -> vector<256x4xf32>
    %cst_83 = arith.constant 2.500000e-01 : f32
    %109 = vector.broadcast %cst_83 : f32 to vector<256x4xf32>
    %110 = arith.mulf %108, %109 : vector<256x4xf32>
    %111 = vector.shape_cast %110 : vector<256x4xf32> to vector<16x16x4xf32>
    %cst_84 = arith.constant dense<0xFF800000> : vector<16x4xf32>
    %112 = vector.multi_reduction <maximumf>, %111, %cst_84 [1] : vector<16x16x4xf32> to vector<16x4xf32>
    %113 = vector.shape_cast %112 : vector<16x4xf32> to vector<16x1x4xf32>
    %114 = vector.broadcast %113 : vector<16x1x4xf32> to vector<16x16x4xf32>
    %115 = arith.subf %111, %114 : vector<16x16x4xf32>
    %116 = math.exp %115 : vector<16x16x4xf32>
    %cst_85 = arith.constant dense<0.000000e+00> : vector<16x4xf32>
    %117 = vector.multi_reduction <add>, %116, %cst_85 [1] : vector<16x16x4xf32> to vector<16x4xf32>
    %118 = vector.shape_cast %117 : vector<16x4xf32> to vector<16x1x4xf32>
    %119 = tpu.reciprocal %118 {approx = true} : vector<16x1x4xf32> -> vector<16x1x4xf32>
    %120 = vector.broadcast %119 : vector<16x1x4xf32> to vector<16x16x4xf32>
    %121 = arith.mulf %116, %120 : vector<16x16x4xf32>
    %122 = vector.shape_cast %121 : vector<16x16x4xf32> to vector<256x4xf32>
    %cst_86 = arith.constant dense<0.000000e+00> : vector<256x64xf32>
    %123 = tpu.matmul %122, %8, %cst_86 {dimension_numbers = #tpu.dot_dimension_numbers<[1], [0], [0], [1], [0, 0, 1, 1], [], []>} : vector<256x4xf32>, vector<4x64xf32>, vector<256x64xf32> -> vector<256x64xf32>
    %124 = arith.mulf %123, %105 : vector<256x64xf32>
    %cst_87 = arith.constant dense<0.000000e+00> : vector<16x64xf32>
    %125 = tpu.matmul %5, %124, %cst_87 {dimension_numbers = #tpu.dot_dimension_numbers<[1], [0], [0], [1], [0, 0, 1, 1], [], []>} : vector<16x256xf32>, vector<256x64xf32>, vector<16x64xf32> -> vector<16x64xf32>
    %c1_88 = arith.constant 1 : index
    %c0_89 = arith.constant 0 : index
    %c0_90 = arith.constant 0 : index
    %126 = vector.load %arg8[%c1_88, %c0_89, %c0_90] : memref<2x64x32xf32, #tpu.memory_space<vmem>>, vector<1x64x32xf32>
    %127 = vector.shape_cast %126 : vector<1x64x32xf32> to vector<64x32xf32>
    %cst_91 = arith.constant dense<0.000000e+00> : vector<16x32xf32>
    %128 = tpu.matmul %125, %127, %cst_91 {dimension_numbers = #tpu.dot_dimension_numbers<[1], [0], [0], [1], [0, 0, 1, 1], [], []>} : vector<16x64xf32>, vector<64x32xf32>, vector<16x32xf32> -> vector<16x32xf32>
    %129 = arith.addf %86, %128 : vector<16x32xf32>
    %c1_92 = arith.constant 1 : index
    %c0_93 = arith.constant 0 : index
    %c0_94 = arith.constant 0 : index
    %130 = vector.load %arg9[%c1_92, %c0_93, %c0_94] : memref<2x1x32xf32, #tpu.memory_space<vmem>>, vector<1x1x32xf32>
    %131 = vector.shape_cast %130 : vector<1x1x32xf32> to vector<1x32xf32>
    %132 = vector.broadcast %131 : vector<1x32xf32> to vector<16x32xf32>
    %133 = arith.addf %129, %132 : vector<16x32xf32>
    %c1_95 = arith.constant 1 : index
    %c0_96 = arith.constant 0 : index
    %c0_97 = arith.constant 0 : index
    %134 = vector.load %arg10[%c1_95, %c0_96, %c0_97] : memref<2x32x32xf32, #tpu.memory_space<vmem>>, vector<1x32x32xf32>
    %135 = vector.shape_cast %134 : vector<1x32x32xf32> to vector<32x32xf32>
    %cst_98 = arith.constant dense<0.000000e+00> : vector<16x32xf32>
    %136 = tpu.matmul %133, %135, %cst_98 {dimension_numbers = #tpu.dot_dimension_numbers<[1], [0], [0], [1], [0, 0, 1, 1], [], []>} : vector<16x32xf32>, vector<32x32xf32>, vector<16x32xf32> -> vector<16x32xf32>
    %c1_99 = arith.constant 1 : index
    %c0_100 = arith.constant 0 : index
    %c0_101 = arith.constant 0 : index
    %137 = vector.load %arg11[%c1_99, %c0_100, %c0_101] : memref<2x1x32xf32, #tpu.memory_space<vmem>>, vector<1x1x32xf32>
    %138 = vector.shape_cast %137 : vector<1x1x32xf32> to vector<1x32xf32>
    %139 = vector.broadcast %138 : vector<1x32xf32> to vector<16x32xf32>
    %140 = arith.addf %136, %139 : vector<16x32xf32>
    %cst_102 = arith.constant 0.000000e+00 : f32
    %141 = vector.broadcast %cst_102 : f32 to vector<16x32xf32>
    %142 = arith.maximumf %140, %141 : vector<16x32xf32>
    %c1_103 = arith.constant 1 : index
    %c0_104 = arith.constant 0 : index
    %c0_105 = arith.constant 0 : index
    %143 = vector.load %arg12[%c1_103, %c0_104, %c0_105] : memref<2x32x32xf32, #tpu.memory_space<vmem>>, vector<1x32x32xf32>
    %144 = vector.shape_cast %143 : vector<1x32x32xf32> to vector<32x32xf32>
    %cst_106 = arith.constant dense<0.000000e+00> : vector<16x32xf32>
    %145 = tpu.matmul %142, %144, %cst_106 {dimension_numbers = #tpu.dot_dimension_numbers<[1], [0], [0], [1], [0, 0, 1, 1], [], []>} : vector<16x32xf32>, vector<32x32xf32>, vector<16x32xf32> -> vector<16x32xf32>
    %c1_107 = arith.constant 1 : index
    %c0_108 = arith.constant 0 : index
    %c0_109 = arith.constant 0 : index
    %146 = vector.load %arg13[%c1_107, %c0_108, %c0_109] : memref<2x1x32xf32, #tpu.memory_space<vmem>>, vector<1x1x32xf32>
    %147 = vector.shape_cast %146 : vector<1x1x32xf32> to vector<1x32xf32>
    %148 = vector.broadcast %147 : vector<1x32xf32> to vector<16x32xf32>
    %149 = arith.addf %145, %148 : vector<16x32xf32>
    %cst_110 = arith.constant 0.000000e+00 : f32
    %150 = vector.broadcast %cst_110 : f32 to vector<16x32xf32>
    %151 = arith.maximumf %149, %150 : vector<16x32xf32>
    %c1_111 = arith.constant 1 : index
    %c0_112 = arith.constant 0 : index
    %c0_113 = arith.constant 0 : index
    %152 = vector.load %arg14[%c1_111, %c0_112, %c0_113] : memref<2x32x32xf32, #tpu.memory_space<vmem>>, vector<1x32x32xf32>
    %153 = vector.shape_cast %152 : vector<1x32x32xf32> to vector<32x32xf32>
    %cst_114 = arith.constant dense<0.000000e+00> : vector<16x32xf32>
    %154 = tpu.matmul %151, %153, %cst_114 {dimension_numbers = #tpu.dot_dimension_numbers<[1], [0], [0], [1], [0, 0, 1, 1], [], []>} : vector<16x32xf32>, vector<32x32xf32>, vector<16x32xf32> -> vector<16x32xf32>
    %155 = arith.addf %133, %154 : vector<16x32xf32>
    %c1_115 = arith.constant 1 : index
    %c0_116 = arith.constant 0 : index
    %c0_117 = arith.constant 0 : index
    %156 = vector.load %arg15[%c1_115, %c0_116, %c0_117] : memref<2x1x32xf32, #tpu.memory_space<vmem>>, vector<1x1x32xf32>
    %157 = vector.shape_cast %156 : vector<1x1x32xf32> to vector<1x32xf32>
    %158 = vector.broadcast %157 : vector<1x32xf32> to vector<16x32xf32>
    %159 = arith.addf %155, %158 : vector<16x32xf32>
    %160 = tpu.concatenate %159, %1 in 1 : vector<16x32xf32>, vector<16x28xf32> -> vector<16x60xf32>
    %c0_118 = arith.constant 0 : index
    %c0_119 = arith.constant 0 : index
    %161 = vector.load %arg16[%c0_118, %c0_119] : memref<180x32xf32, #tpu.memory_space<vmem>>, vector<180x32xf32>
    %c0_120 = arith.constant 0 : index
    %c0_121 = arith.constant 0 : index
    %162 = vector.load %arg17[%c0_120, %c0_121] : memref<1x32xf32, #tpu.memory_space<vmem>>, vector<1x32xf32>
    %c0_122 = arith.constant 0 : index
    %c0_123 = arith.constant 0 : index
    %c0_124 = arith.constant 0 : index
    %163 = vector.load %arg27[%c0_122, %c0_123, %c0_124] : memref<3x16x16xf32, #tpu.memory_space<vmem>>, vector<1x16x16xf32>
    %164 = vector.shape_cast %163 : vector<1x16x16xf32> to vector<16x16xf32>
    %cst_125 = arith.constant dense<0.000000e+00> : vector<16x60xf32>
    %165 = tpu.matmul %164, %160, %cst_125 {dimension_numbers = #tpu.dot_dimension_numbers<[1], [0], [0], [1], [0, 0, 1, 1], [], []>} : vector<16x16xf32>, vector<16x60xf32>, vector<16x60xf32> -> vector<16x60xf32>
    %c0_126 = arith.constant 0 : index
    %c0_127 = arith.constant 0 : index
    %c0_128 = arith.constant 0 : index
    %166 = vector.load %arg28[%c0_126, %c0_127, %c0_128] : memref<3x16x16xf32, #tpu.memory_space<vmem>>, vector<1x16x16xf32>
    %167 = vector.shape_cast %166 : vector<1x16x16xf32> to vector<16x16xf32>
    %cst_129 = arith.constant dense<0.000000e+00> : vector<16x60xf32>
    %168 = tpu.matmul %167, %160, %cst_129 {dimension_numbers = #tpu.dot_dimension_numbers<[1], [0], [0], [1], [0, 0, 1, 1], [], []>} : vector<16x16xf32>, vector<16x60xf32>, vector<16x60xf32> -> vector<16x60xf32>
    %169 = tpu.concatenate %165, %160, %168 in 1 : vector<16x60xf32>, vector<16x60xf32>, vector<16x60xf32> -> vector<16x180xf32>
    %cst_130 = arith.constant dense<0.000000e+00> : vector<16x32xf32>
    %170 = tpu.matmul %169, %161, %cst_130 {dimension_numbers = #tpu.dot_dimension_numbers<[1], [0], [0], [1], [0, 0, 1, 1], [], []>} : vector<16x180xf32>, vector<180x32xf32>, vector<16x32xf32> -> vector<16x32xf32>
    %171 = vector.broadcast %162 : vector<1x32xf32> to vector<16x32xf32>
    %172 = arith.addf %170, %171 : vector<16x32xf32>
    %cst_131 = arith.constant 0.000000e+00 : f32
    %173 = vector.broadcast %cst_131 : f32 to vector<16x32xf32>
    %174 = arith.cmpf ogt, %172, %173 : vector<16x32xf32>
    %cst_132 = arith.constant 0.000000e+00 : f32
    %175 = vector.broadcast %cst_132 : f32 to vector<16x32xf32>
    %176 = arith.minimumf %172, %175 : vector<16x32xf32>
    %177 = math.exp %176 : vector<16x32xf32>
    %cst_133 = arith.constant 1.000000e+00 : f32
    %178 = vector.broadcast %cst_133 : f32 to vector<16x32xf32>
    %179 = arith.subf %177, %178 : vector<16x32xf32>
    %180 = arith.select %174, %172, %179 : vector<16x32xi1>, vector<16x32xf32>
    %cst_134 = arith.constant dense<0.000000e+00> : vector<32xf32>
    %181 = vector.multi_reduction <add>, %180, %cst_134 [0] : vector<16x32xf32> to vector<32xf32>
    %182 = vector.shape_cast %181 : vector<32xf32> to vector<1x32xf32>
    %cst_135 = arith.constant 1.600000e+01 : f32
    %183 = vector.broadcast %cst_135 : f32 to vector<1x32xf32>
    %184 = arith.divf %182, %183 : vector<1x32xf32>
    %185 = vector.broadcast %184 : vector<1x32xf32> to vector<16x32xf32>
    %186 = arith.subf %180, %185 : vector<16x32xf32>
    %187 = vector.broadcast %184 : vector<1x32xf32> to vector<16x32xf32>
    %188 = arith.subf %180, %187 : vector<16x32xf32>
    %189 = arith.mulf %186, %188 : vector<16x32xf32>
    %cst_136 = arith.constant dense<0.000000e+00> : vector<32xf32>
    %190 = vector.multi_reduction <add>, %189, %cst_136 [0] : vector<16x32xf32> to vector<32xf32>
    %191 = vector.shape_cast %190 : vector<32xf32> to vector<1x32xf32>
    %cst_137 = arith.constant 1.600000e+01 : f32
    %192 = vector.broadcast %cst_137 : f32 to vector<1x32xf32>
    %193 = arith.divf %191, %192 : vector<1x32xf32>
    %194 = vector.broadcast %184 : vector<1x32xf32> to vector<16x32xf32>
    %195 = arith.subf %180, %194 : vector<16x32xf32>
    %cst_138 = arith.constant 9.99999974E-6 : f32
    %196 = vector.broadcast %cst_138 : f32 to vector<1x32xf32>
    %197 = arith.addf %193, %196 : vector<1x32xf32>
    %198 = math.rsqrt %197 : vector<1x32xf32>
    %199 = vector.broadcast %198 : vector<1x32xf32> to vector<16x32xf32>
    %200 = arith.mulf %195, %199 : vector<16x32xf32>
    %c0_139 = arith.constant 0 : index
    %c0_140 = arith.constant 0 : index
    %c0_141 = arith.constant 0 : index
    %201 = vector.load %arg18[%c0_139, %c0_140, %c0_141] : memref<4x96x32xf32, #tpu.memory_space<vmem>>, vector<1x96x32xf32>
    %202 = vector.shape_cast %201 : vector<1x96x32xf32> to vector<96x32xf32>
    %c0_142 = arith.constant 0 : index
    %c0_143 = arith.constant 0 : index
    %c0_144 = arith.constant 0 : index
    %203 = vector.load %arg19[%c0_142, %c0_143, %c0_144] : memref<4x1x32xf32, #tpu.memory_space<vmem>>, vector<1x1x32xf32>
    %204 = vector.shape_cast %203 : vector<1x1x32xf32> to vector<1x32xf32>
    %c0_145 = arith.constant 0 : index
    %c0_146 = arith.constant 0 : index
    %c0_147 = arith.constant 0 : index
    %205 = vector.load %arg27[%c0_145, %c0_146, %c0_147] : memref<3x16x16xf32, #tpu.memory_space<vmem>>, vector<1x16x16xf32>
    %206 = vector.shape_cast %205 : vector<1x16x16xf32> to vector<16x16xf32>
    %cst_148 = arith.constant dense<0.000000e+00> : vector<16x32xf32>
    %207 = tpu.matmul %206, %200, %cst_148 {dimension_numbers = #tpu.dot_dimension_numbers<[1], [0], [0], [1], [0, 0, 1, 1], [], []>} : vector<16x16xf32>, vector<16x32xf32>, vector<16x32xf32> -> vector<16x32xf32>
    %c0_149 = arith.constant 0 : index
    %c0_150 = arith.constant 0 : index
    %c0_151 = arith.constant 0 : index
    %208 = vector.load %arg28[%c0_149, %c0_150, %c0_151] : memref<3x16x16xf32, #tpu.memory_space<vmem>>, vector<1x16x16xf32>
    %209 = vector.shape_cast %208 : vector<1x16x16xf32> to vector<16x16xf32>
    %cst_152 = arith.constant dense<0.000000e+00> : vector<16x32xf32>
    %210 = tpu.matmul %209, %200, %cst_152 {dimension_numbers = #tpu.dot_dimension_numbers<[1], [0], [0], [1], [0, 0, 1, 1], [], []>} : vector<16x16xf32>, vector<16x32xf32>, vector<16x32xf32> -> vector<16x32xf32>
    %211 = tpu.concatenate %207, %200, %210 in 1 : vector<16x32xf32>, vector<16x32xf32>, vector<16x32xf32> -> vector<16x96xf32>
    %cst_153 = arith.constant dense<0.000000e+00> : vector<16x32xf32>
    %212 = tpu.matmul %211, %202, %cst_153 {dimension_numbers = #tpu.dot_dimension_numbers<[1], [0], [0], [1], [0, 0, 1, 1], [], []>} : vector<16x96xf32>, vector<96x32xf32>, vector<16x32xf32> -> vector<16x32xf32>
    %213 = vector.broadcast %204 : vector<1x32xf32> to vector<16x32xf32>
    %214 = arith.addf %212, %213 : vector<16x32xf32>
    %cst_154 = arith.constant 0.000000e+00 : f32
    %215 = vector.broadcast %cst_154 : f32 to vector<16x32xf32>
    %216 = arith.cmpf ogt, %214, %215 : vector<16x32xf32>
    %cst_155 = arith.constant 0.000000e+00 : f32
    %217 = vector.broadcast %cst_155 : f32 to vector<16x32xf32>
    %218 = arith.minimumf %214, %217 : vector<16x32xf32>
    %219 = math.exp %218 : vector<16x32xf32>
    %cst_156 = arith.constant 1.000000e+00 : f32
    %220 = vector.broadcast %cst_156 : f32 to vector<16x32xf32>
    %221 = arith.subf %219, %220 : vector<16x32xf32>
    %222 = arith.select %216, %214, %221 : vector<16x32xi1>, vector<16x32xf32>
    %223 = arith.addf %222, %180 : vector<16x32xf32>
    %cst_157 = arith.constant dense<0.000000e+00> : vector<32xf32>
    %224 = vector.multi_reduction <add>, %223, %cst_157 [0] : vector<16x32xf32> to vector<32xf32>
    %225 = vector.shape_cast %224 : vector<32xf32> to vector<1x32xf32>
    %cst_158 = arith.constant 1.600000e+01 : f32
    %226 = vector.broadcast %cst_158 : f32 to vector<1x32xf32>
    %227 = arith.divf %225, %226 : vector<1x32xf32>
    %228 = vector.broadcast %227 : vector<1x32xf32> to vector<16x32xf32>
    %229 = arith.subf %223, %228 : vector<16x32xf32>
    %230 = vector.broadcast %227 : vector<1x32xf32> to vector<16x32xf32>
    %231 = arith.subf %223, %230 : vector<16x32xf32>
    %232 = arith.mulf %229, %231 : vector<16x32xf32>
    %cst_159 = arith.constant dense<0.000000e+00> : vector<32xf32>
    %233 = vector.multi_reduction <add>, %232, %cst_159 [0] : vector<16x32xf32> to vector<32xf32>
    %234 = vector.shape_cast %233 : vector<32xf32> to vector<1x32xf32>
    %cst_160 = arith.constant 1.600000e+01 : f32
    %235 = vector.broadcast %cst_160 : f32 to vector<1x32xf32>
    %236 = arith.divf %234, %235 : vector<1x32xf32>
    %237 = vector.broadcast %227 : vector<1x32xf32> to vector<16x32xf32>
    %238 = arith.subf %223, %237 : vector<16x32xf32>
    %cst_161 = arith.constant 9.99999974E-6 : f32
    %239 = vector.broadcast %cst_161 : f32 to vector<1x32xf32>
    %240 = arith.addf %236, %239 : vector<1x32xf32>
    %241 = math.rsqrt %240 : vector<1x32xf32>
    %242 = vector.broadcast %241 : vector<1x32xf32> to vector<16x32xf32>
    %243 = arith.mulf %238, %242 : vector<16x32xf32>
    %c1_162 = arith.constant 1 : index
    %c0_163 = arith.constant 0 : index
    %c0_164 = arith.constant 0 : index
    %244 = vector.load %arg18[%c1_162, %c0_163, %c0_164] : memref<4x96x32xf32, #tpu.memory_space<vmem>>, vector<1x96x32xf32>
    %245 = vector.shape_cast %244 : vector<1x96x32xf32> to vector<96x32xf32>
    %c1_165 = arith.constant 1 : index
    %c0_166 = arith.constant 0 : index
    %c0_167 = arith.constant 0 : index
    %246 = vector.load %arg19[%c1_165, %c0_166, %c0_167] : memref<4x1x32xf32, #tpu.memory_space<vmem>>, vector<1x1x32xf32>
    %247 = vector.shape_cast %246 : vector<1x1x32xf32> to vector<1x32xf32>
    %c1_168 = arith.constant 1 : index
    %c0_169 = arith.constant 0 : index
    %c0_170 = arith.constant 0 : index
    %248 = vector.load %arg27[%c1_168, %c0_169, %c0_170] : memref<3x16x16xf32, #tpu.memory_space<vmem>>, vector<1x16x16xf32>
    %249 = vector.shape_cast %248 : vector<1x16x16xf32> to vector<16x16xf32>
    %cst_171 = arith.constant dense<0.000000e+00> : vector<16x32xf32>
    %250 = tpu.matmul %249, %243, %cst_171 {dimension_numbers = #tpu.dot_dimension_numbers<[1], [0], [0], [1], [0, 0, 1, 1], [], []>} : vector<16x16xf32>, vector<16x32xf32>, vector<16x32xf32> -> vector<16x32xf32>
    %c1_172 = arith.constant 1 : index
    %c0_173 = arith.constant 0 : index
    %c0_174 = arith.constant 0 : index
    %251 = vector.load %arg28[%c1_172, %c0_173, %c0_174] : memref<3x16x16xf32, #tpu.memory_space<vmem>>, vector<1x16x16xf32>
    %252 = vector.shape_cast %251 : vector<1x16x16xf32> to vector<16x16xf32>
    %cst_175 = arith.constant dense<0.000000e+00> : vector<16x32xf32>
    %253 = tpu.matmul %252, %243, %cst_175 {dimension_numbers = #tpu.dot_dimension_numbers<[1], [0], [0], [1], [0, 0, 1, 1], [], []>} : vector<16x16xf32>, vector<16x32xf32>, vector<16x32xf32> -> vector<16x32xf32>
    %254 = tpu.concatenate %250, %243, %253 in 1 : vector<16x32xf32>, vector<16x32xf32>, vector<16x32xf32> -> vector<16x96xf32>
    %cst_176 = arith.constant dense<0.000000e+00> : vector<16x32xf32>
    %255 = tpu.matmul %254, %245, %cst_176 {dimension_numbers = #tpu.dot_dimension_numbers<[1], [0], [0], [1], [0, 0, 1, 1], [], []>} : vector<16x96xf32>, vector<96x32xf32>, vector<16x32xf32> -> vector<16x32xf32>
    %256 = vector.broadcast %247 : vector<1x32xf32> to vector<16x32xf32>
    %257 = arith.addf %255, %256 : vector<16x32xf32>
    %cst_177 = arith.constant 0.000000e+00 : f32
    %258 = vector.broadcast %cst_177 : f32 to vector<16x32xf32>
    %259 = arith.cmpf ogt, %257, %258 : vector<16x32xf32>
    %cst_178 = arith.constant 0.000000e+00 : f32
    %260 = vector.broadcast %cst_178 : f32 to vector<16x32xf32>
    %261 = arith.minimumf %257, %260 : vector<16x32xf32>
    %262 = math.exp %261 : vector<16x32xf32>
    %cst_179 = arith.constant 1.000000e+00 : f32
    %263 = vector.broadcast %cst_179 : f32 to vector<16x32xf32>
    %264 = arith.subf %262, %263 : vector<16x32xf32>
    %265 = arith.select %259, %257, %264 : vector<16x32xi1>, vector<16x32xf32>
    %266 = arith.addf %265, %223 : vector<16x32xf32>
    %cst_180 = arith.constant dense<0.000000e+00> : vector<32xf32>
    %267 = vector.multi_reduction <add>, %266, %cst_180 [0] : vector<16x32xf32> to vector<32xf32>
    %268 = vector.shape_cast %267 : vector<32xf32> to vector<1x32xf32>
    %cst_181 = arith.constant 1.600000e+01 : f32
    %269 = vector.broadcast %cst_181 : f32 to vector<1x32xf32>
    %270 = arith.divf %268, %269 : vector<1x32xf32>
    %271 = vector.broadcast %270 : vector<1x32xf32> to vector<16x32xf32>
    %272 = arith.subf %266, %271 : vector<16x32xf32>
    %273 = vector.broadcast %270 : vector<1x32xf32> to vector<16x32xf32>
    %274 = arith.subf %266, %273 : vector<16x32xf32>
    %275 = arith.mulf %272, %274 : vector<16x32xf32>
    %cst_182 = arith.constant dense<0.000000e+00> : vector<32xf32>
    %276 = vector.multi_reduction <add>, %275, %cst_182 [0] : vector<16x32xf32> to vector<32xf32>
    %277 = vector.shape_cast %276 : vector<32xf32> to vector<1x32xf32>
    %cst_183 = arith.constant 1.600000e+01 : f32
    %278 = vector.broadcast %cst_183 : f32 to vector<1x32xf32>
    %279 = arith.divf %277, %278 : vector<1x32xf32>
    %280 = vector.broadcast %270 : vector<1x32xf32> to vector<16x32xf32>
    %281 = arith.subf %266, %280 : vector<16x32xf32>
    %cst_184 = arith.constant 9.99999974E-6 : f32
    %282 = vector.broadcast %cst_184 : f32 to vector<1x32xf32>
    %283 = arith.addf %279, %282 : vector<1x32xf32>
    %284 = math.rsqrt %283 : vector<1x32xf32>
    %285 = vector.broadcast %284 : vector<1x32xf32> to vector<16x32xf32>
    %286 = arith.mulf %281, %285 : vector<16x32xf32>
    %c2 = arith.constant 2 : index
    %c0_185 = arith.constant 0 : index
    %c0_186 = arith.constant 0 : index
    %287 = vector.load %arg18[%c2, %c0_185, %c0_186] : memref<4x96x32xf32, #tpu.memory_space<vmem>>, vector<1x96x32xf32>
    %288 = vector.shape_cast %287 : vector<1x96x32xf32> to vector<96x32xf32>
    %c2_187 = arith.constant 2 : index
    %c0_188 = arith.constant 0 : index
    %c0_189 = arith.constant 0 : index
    %289 = vector.load %arg19[%c2_187, %c0_188, %c0_189] : memref<4x1x32xf32, #tpu.memory_space<vmem>>, vector<1x1x32xf32>
    %290 = vector.shape_cast %289 : vector<1x1x32xf32> to vector<1x32xf32>
    %c2_190 = arith.constant 2 : index
    %c0_191 = arith.constant 0 : index
    %c0_192 = arith.constant 0 : index
    %291 = vector.load %arg27[%c2_190, %c0_191, %c0_192] : memref<3x16x16xf32, #tpu.memory_space<vmem>>, vector<1x16x16xf32>
    %292 = vector.shape_cast %291 : vector<1x16x16xf32> to vector<16x16xf32>
    %cst_193 = arith.constant dense<0.000000e+00> : vector<16x32xf32>
    %293 = tpu.matmul %292, %286, %cst_193 {dimension_numbers = #tpu.dot_dimension_numbers<[1], [0], [0], [1], [0, 0, 1, 1], [], []>} : vector<16x16xf32>, vector<16x32xf32>, vector<16x32xf32> -> vector<16x32xf32>
    %c2_194 = arith.constant 2 : index
    %c0_195 = arith.constant 0 : index
    %c0_196 = arith.constant 0 : index
    %294 = vector.load %arg28[%c2_194, %c0_195, %c0_196] : memref<3x16x16xf32, #tpu.memory_space<vmem>>, vector<1x16x16xf32>
    %295 = vector.shape_cast %294 : vector<1x16x16xf32> to vector<16x16xf32>
    %cst_197 = arith.constant dense<0.000000e+00> : vector<16x32xf32>
    %296 = tpu.matmul %295, %286, %cst_197 {dimension_numbers = #tpu.dot_dimension_numbers<[1], [0], [0], [1], [0, 0, 1, 1], [], []>} : vector<16x16xf32>, vector<16x32xf32>, vector<16x32xf32> -> vector<16x32xf32>
    %297 = tpu.concatenate %293, %286, %296 in 1 : vector<16x32xf32>, vector<16x32xf32>, vector<16x32xf32> -> vector<16x96xf32>
    %cst_198 = arith.constant dense<0.000000e+00> : vector<16x32xf32>
    %298 = tpu.matmul %297, %288, %cst_198 {dimension_numbers = #tpu.dot_dimension_numbers<[1], [0], [0], [1], [0, 0, 1, 1], [], []>} : vector<16x96xf32>, vector<96x32xf32>, vector<16x32xf32> -> vector<16x32xf32>
    %299 = vector.broadcast %290 : vector<1x32xf32> to vector<16x32xf32>
    %300 = arith.addf %298, %299 : vector<16x32xf32>
    %cst_199 = arith.constant 0.000000e+00 : f32
    %301 = vector.broadcast %cst_199 : f32 to vector<16x32xf32>
    %302 = arith.cmpf ogt, %300, %301 : vector<16x32xf32>
    %cst_200 = arith.constant 0.000000e+00 : f32
    %303 = vector.broadcast %cst_200 : f32 to vector<16x32xf32>
    %304 = arith.minimumf %300, %303 : vector<16x32xf32>
    %305 = math.exp %304 : vector<16x32xf32>
    %cst_201 = arith.constant 1.000000e+00 : f32
    %306 = vector.broadcast %cst_201 : f32 to vector<16x32xf32>
    %307 = arith.subf %305, %306 : vector<16x32xf32>
    %308 = arith.select %302, %300, %307 : vector<16x32xi1>, vector<16x32xf32>
    %309 = arith.addf %308, %266 : vector<16x32xf32>
    %cst_202 = arith.constant dense<0.000000e+00> : vector<32xf32>
    %310 = vector.multi_reduction <add>, %309, %cst_202 [0] : vector<16x32xf32> to vector<32xf32>
    %311 = vector.shape_cast %310 : vector<32xf32> to vector<1x32xf32>
    %cst_203 = arith.constant 1.600000e+01 : f32
    %312 = vector.broadcast %cst_203 : f32 to vector<1x32xf32>
    %313 = arith.divf %311, %312 : vector<1x32xf32>
    %314 = vector.broadcast %313 : vector<1x32xf32> to vector<16x32xf32>
    %315 = arith.subf %309, %314 : vector<16x32xf32>
    %316 = vector.broadcast %313 : vector<1x32xf32> to vector<16x32xf32>
    %317 = arith.subf %309, %316 : vector<16x32xf32>
    %318 = arith.mulf %315, %317 : vector<16x32xf32>
    %cst_204 = arith.constant dense<0.000000e+00> : vector<32xf32>
    %319 = vector.multi_reduction <add>, %318, %cst_204 [0] : vector<16x32xf32> to vector<32xf32>
    %320 = vector.shape_cast %319 : vector<32xf32> to vector<1x32xf32>
    %cst_205 = arith.constant 1.600000e+01 : f32
    %321 = vector.broadcast %cst_205 : f32 to vector<1x32xf32>
    %322 = arith.divf %320, %321 : vector<1x32xf32>
    %323 = vector.broadcast %313 : vector<1x32xf32> to vector<16x32xf32>
    %324 = arith.subf %309, %323 : vector<16x32xf32>
    %cst_206 = arith.constant 9.99999974E-6 : f32
    %325 = vector.broadcast %cst_206 : f32 to vector<1x32xf32>
    %326 = arith.addf %322, %325 : vector<1x32xf32>
    %327 = math.rsqrt %326 : vector<1x32xf32>
    %328 = vector.broadcast %327 : vector<1x32xf32> to vector<16x32xf32>
    %329 = arith.mulf %324, %328 : vector<16x32xf32>
    %c3 = arith.constant 3 : index
    %c0_207 = arith.constant 0 : index
    %c0_208 = arith.constant 0 : index
    %330 = vector.load %arg18[%c3, %c0_207, %c0_208] : memref<4x96x32xf32, #tpu.memory_space<vmem>>, vector<1x96x32xf32>
    %331 = vector.shape_cast %330 : vector<1x96x32xf32> to vector<96x32xf32>
    %c3_209 = arith.constant 3 : index
    %c0_210 = arith.constant 0 : index
    %c0_211 = arith.constant 0 : index
    %332 = vector.load %arg19[%c3_209, %c0_210, %c0_211] : memref<4x1x32xf32, #tpu.memory_space<vmem>>, vector<1x1x32xf32>
    %333 = vector.shape_cast %332 : vector<1x1x32xf32> to vector<1x32xf32>
    %c0_212 = arith.constant 0 : index
    %c0_213 = arith.constant 0 : index
    %c0_214 = arith.constant 0 : index
    %334 = vector.load %arg27[%c0_212, %c0_213, %c0_214] : memref<3x16x16xf32, #tpu.memory_space<vmem>>, vector<1x16x16xf32>
    %335 = vector.shape_cast %334 : vector<1x16x16xf32> to vector<16x16xf32>
    %cst_215 = arith.constant dense<0.000000e+00> : vector<16x32xf32>
    %336 = tpu.matmul %335, %329, %cst_215 {dimension_numbers = #tpu.dot_dimension_numbers<[1], [0], [0], [1], [0, 0, 1, 1], [], []>} : vector<16x16xf32>, vector<16x32xf32>, vector<16x32xf32> -> vector<16x32xf32>
    %c0_216 = arith.constant 0 : index
    %c0_217 = arith.constant 0 : index
    %c0_218 = arith.constant 0 : index
    %337 = vector.load %arg28[%c0_216, %c0_217, %c0_218] : memref<3x16x16xf32, #tpu.memory_space<vmem>>, vector<1x16x16xf32>
    %338 = vector.shape_cast %337 : vector<1x16x16xf32> to vector<16x16xf32>
    %cst_219 = arith.constant dense<0.000000e+00> : vector<16x32xf32>
    %339 = tpu.matmul %338, %329, %cst_219 {dimension_numbers = #tpu.dot_dimension_numbers<[1], [0], [0], [1], [0, 0, 1, 1], [], []>} : vector<16x16xf32>, vector<16x32xf32>, vector<16x32xf32> -> vector<16x32xf32>
    %340 = tpu.concatenate %336, %329, %339 in 1 : vector<16x32xf32>, vector<16x32xf32>, vector<16x32xf32> -> vector<16x96xf32>
    %cst_220 = arith.constant dense<0.000000e+00> : vector<16x32xf32>
    %341 = tpu.matmul %340, %331, %cst_220 {dimension_numbers = #tpu.dot_dimension_numbers<[1], [0], [0], [1], [0, 0, 1, 1], [], []>} : vector<16x96xf32>, vector<96x32xf32>, vector<16x32xf32> -> vector<16x32xf32>
    %342 = vector.broadcast %333 : vector<1x32xf32> to vector<16x32xf32>
    %343 = arith.addf %341, %342 : vector<16x32xf32>
    %cst_221 = arith.constant 0.000000e+00 : f32
    %344 = vector.broadcast %cst_221 : f32 to vector<16x32xf32>
    %345 = arith.cmpf ogt, %343, %344 : vector<16x32xf32>
    %cst_222 = arith.constant 0.000000e+00 : f32
    %346 = vector.broadcast %cst_222 : f32 to vector<16x32xf32>
    %347 = arith.minimumf %343, %346 : vector<16x32xf32>
    %348 = math.exp %347 : vector<16x32xf32>
    %cst_223 = arith.constant 1.000000e+00 : f32
    %349 = vector.broadcast %cst_223 : f32 to vector<16x32xf32>
    %350 = arith.subf %348, %349 : vector<16x32xf32>
    %351 = arith.select %345, %343, %350 : vector<16x32xi1>, vector<16x32xf32>
    %352 = arith.addf %351, %309 : vector<16x32xf32>
    %c0_224 = arith.constant 0 : index
    %c0_225 = arith.constant 0 : index
    %353 = vector.load %arg20[%c0_224, %c0_225] : memref<32x128xf32, #tpu.memory_space<vmem>>, vector<32x128xf32>
    %cst_226 = arith.constant dense<0.000000e+00> : vector<16x128xf32>
    %354 = tpu.matmul %352, %353, %cst_226 {dimension_numbers = #tpu.dot_dimension_numbers<[1], [0], [0], [1], [0, 0, 1, 1], [], []>} : vector<16x32xf32>, vector<32x128xf32>, vector<16x128xf32> -> vector<16x128xf32>
    %c0_227 = arith.constant 0 : index
    %c0_228 = arith.constant 0 : index
    %355 = vector.load %arg21[%c0_227, %c0_228] : memref<1x128xf32, #tpu.memory_space<vmem>>, vector<1x128xf32>
    %356 = vector.broadcast %355 : vector<1x128xf32> to vector<16x128xf32>
    %357 = arith.addf %354, %356 : vector<16x128xf32>
    %c0_229 = arith.constant 0 : index
    %c0_230 = arith.constant 0 : index
    %c0_231 = arith.constant 0 : index
    %358 = vector.load %arg29[%c0_229, %c0_230, %c0_231] : memref<1x16x128xf32, #tpu.memory_space<vmem>>, vector<1x16x128xf32>
    %359 = vector.shape_cast %358 : vector<1x16x128xf32> to vector<16x128xf32>
    %360 = vector.shape_cast %357 : vector<16x128xf32> to vector<1x16x128xf32>
    tpu.vector_store %arg29[%c0_229, %c0_230, %c0_231], %360 {strides = array<i32>} : memref<1x16x128xf32, #tpu.memory_space<vmem>>, vector<1x16x128xf32>,
    return
  }
  func.func @transform_0(%arg0: i32) -> (i32, i32, i32) {
    %c0_i32 = arith.constant 0 : i32
    %c0_i32_0 = arith.constant 0 : i32
    %c0_i32_1 = arith.constant 0 : i32
    return %arg0, %c0_i32, %c0_i32_0 : i32, i32, i32
  }
  func.func @transform_1(%arg0: i32) -> (i32, i32, i32) {
    %c0_i32 = arith.constant 0 : i32
    %c0_i32_0 = arith.constant 0 : i32
    %c0_i32_1 = arith.constant 0 : i32
    return %arg0, %c0_i32, %c0_i32_0 : i32, i32, i32
  }
  func.func @transform_2(%arg0: i32) -> (i32, i32) {
    %c0_i32 = arith.constant 0 : i32
    %c0_i32_0 = arith.constant 0 : i32
    %c0_i32_1 = arith.constant 0 : i32
    return %c0_i32, %c0_i32_0 : i32, i32
  }
  func.func @transform_3(%arg0: i32) -> (i32, i32) {
    %c0_i32 = arith.constant 0 : i32
    %c0_i32_0 = arith.constant 0 : i32
    %c0_i32_1 = arith.constant 0 : i32
    return %c0_i32, %c0_i32_0 : i32, i32
  }
  func.func @transform_4(%arg0: i32) -> (i32, i32, i32) {
    %c0_i32 = arith.constant 0 : i32
    %c0_i32_0 = arith.constant 0 : i32
    %c0_i32_1 = arith.constant 0 : i32
    %c0_i32_2 = arith.constant 0 : i32
    return %c0_i32, %c0_i32_0, %c0_i32_1 : i32, i32, i32
  }
  func.func @transform_5(%arg0: i32) -> (i32, i32, i32) {
    %c0_i32 = arith.constant 0 : i32
    %c0_i32_0 = arith.constant 0 : i32
    %c0_i32_1 = arith.constant 0 : i32
    %c0_i32_2 = arith.constant 0 : i32
    return %c0_i32, %c0_i32_0, %c0_i32_1 : i32, i32, i32
  }
  func.func @transform_6(%arg0: i32) -> (i32, i32, i32) {
    %c0_i32 = arith.constant 0 : i32
    %c0_i32_0 = arith.constant 0 : i32
    %c0_i32_1 = arith.constant 0 : i32
    %c0_i32_2 = arith.constant 0 : i32
    return %c0_i32, %c0_i32_0, %c0_i32_1 : i32, i32, i32
  }
  func.func @transform_7(%arg0: i32) -> (i32, i32, i32) {
    %c0_i32 = arith.constant 0 : i32
    %c0_i32_0 = arith.constant 0 : i32
    %c0_i32_1 = arith.constant 0 : i32
    %c0_i32_2 = arith.constant 0 : i32
    return %c0_i32, %c0_i32_0, %c0_i32_1 : i32, i32, i32
  }
  func.func @transform_8(%arg0: i32) -> (i32, i32, i32) {
    %c0_i32 = arith.constant 0 : i32
    %c0_i32_0 = arith.constant 0 : i32
    %c0_i32_1 = arith.constant 0 : i32
    %c0_i32_2 = arith.constant 0 : i32
    return %c0_i32, %c0_i32_0, %c0_i32_1 : i32, i32, i32
  }
  func.func @transform_9(%arg0: i32) -> (i32, i32, i32) {
    %c0_i32 = arith.constant 0 : i32
    %c0_i32_0 = arith.constant 0 : i32
    %c0_i32_1 = arith.constant 0 : i32
    %c0_i32_2 = arith.constant 0 : i32
    return %c0_i32, %c0_i32_0, %c0_i32_1 : i32, i32, i32
  }
  func.func @transform_10(%arg0: i32) -> (i32, i32, i32) {
    %c0_i32 = arith.constant 0 : i32
    %c0_i32_0 = arith.constant 0 : i32
    %c0_i32_1 = arith.constant 0 : i32
    %c0_i32_2 = arith.constant 0 : i32
    return %c0_i32, %c0_i32_0, %c0_i32_1 : i32, i32, i32
  }
  func.func @transform_11(%arg0: i32) -> (i32, i32, i32) {
    %c0_i32 = arith.constant 0 : i32
    %c0_i32_0 = arith.constant 0 : i32
    %c0_i32_1 = arith.constant 0 : i32
    %c0_i32_2 = arith.constant 0 : i32
    return %c0_i32, %c0_i32_0, %c0_i32_1 : i32, i32, i32
  }
  func.func @transform_12(%arg0: i32) -> (i32, i32, i32) {
    %c0_i32 = arith.constant 0 : i32
    %c0_i32_0 = arith.constant 0 : i32
    %c0_i32_1 = arith.constant 0 : i32
    %c0_i32_2 = arith.constant 0 : i32
    return %c0_i32, %c0_i32_0, %c0_i32_1 : i32, i32, i32
  }
  func.func @transform_13(%arg0: i32) -> (i32, i32, i32) {
    %c0_i32 = arith.constant 0 : i32
    %c0_i32_0 = arith.constant 0 : i32
    %c0_i32_1 = arith.constant 0 : i32
    %c0_i32_2 = arith.constant 0 : i32
    return %c0_i32, %c0_i32_0, %c0_i32_1 : i32, i32, i32
  }
  func.func @transform_14(%arg0: i32) -> (i32, i32, i32) {
    %c0_i32 = arith.constant 0 : i32
    %c0_i32_0 = arith.constant 0 : i32
    %c0_i32_1 = arith.constant 0 : i32
    %c0_i32_2 = arith.constant 0 : i32
    return %c0_i32, %c0_i32_0, %c0_i32_1 : i32, i32, i32
  }
  func.func @transform_15(%arg0: i32) -> (i32, i32) {
    %c0_i32 = arith.constant 0 : i32
    %c0_i32_0 = arith.constant 0 : i32
    %c0_i32_1 = arith.constant 0 : i32
    return %c0_i32, %c0_i32_0 : i32, i32
  }
  func.func @transform_16(%arg0: i32) -> (i32, i32) {
    %c0_i32 = arith.constant 0 : i32
    %c0_i32_0 = arith.constant 0 : i32
    %c0_i32_1 = arith.constant 0 : i32
    return %c0_i32, %c0_i32_0 : i32, i32
  }
  func.func @transform_17(%arg0: i32) -> (i32, i32, i32) {
    %c0_i32 = arith.constant 0 : i32
    %c0_i32_0 = arith.constant 0 : i32
    %c0_i32_1 = arith.constant 0 : i32
    %c0_i32_2 = arith.constant 0 : i32
    return %c0_i32, %c0_i32_0, %c0_i32_1 : i32, i32, i32
  }
  func.func @transform_18(%arg0: i32) -> (i32, i32, i32) {
    %c0_i32 = arith.constant 0 : i32
    %c0_i32_0 = arith.constant 0 : i32
    %c0_i32_1 = arith.constant 0 : i32
    %c0_i32_2 = arith.constant 0 : i32
    return %c0_i32, %c0_i32_0, %c0_i32_1 : i32, i32, i32
  }
  func.func @transform_19(%arg0: i32) -> (i32, i32) {
    %c0_i32 = arith.constant 0 : i32
    %c0_i32_0 = arith.constant 0 : i32
    %c0_i32_1 = arith.constant 0 : i32
    return %c0_i32, %c0_i32_0 : i32, i32
  }
  func.func @transform_20(%arg0: i32) -> (i32, i32) {
    %c0_i32 = arith.constant 0 : i32
    %c0_i32_0 = arith.constant 0 : i32
    %c0_i32_1 = arith.constant 0 : i32
    return %c0_i32, %c0_i32_0 : i32, i32
  }
  func.func @transform_21(%arg0: i32) -> (i32, i32) {
    %c0_i32 = arith.constant 0 : i32
    %c0_i32_0 = arith.constant 0 : i32
    %c0_i32_1 = arith.constant 0 : i32
    return %c0_i32, %c0_i32_0 : i32, i32
  }
  func.func @transform_22(%arg0: i32) -> (i32, i32) {
    %c0_i32 = arith.constant 0 : i32
    %c0_i32_0 = arith.constant 0 : i32
    %c0_i32_1 = arith.constant 0 : i32
    return %c0_i32, %c0_i32_0 : i32, i32
  }
  func.func @transform_23(%arg0: i32) -> (i32, i32) {
    %c0_i32 = arith.constant 0 : i32
    %c0_i32_0 = arith.constant 0 : i32
    %c0_i32_1 = arith.constant 0 : i32
    return %c0_i32, %c0_i32_0 : i32, i32
  }
  func.func @transform_24(%arg0: i32) -> (i32, i32) {
    %c0_i32 = arith.constant 0 : i32
    %c0_i32_0 = arith.constant 0 : i32
    %c0_i32_1 = arith.constant 0 : i32
    return %c0_i32, %c0_i32_0 : i32, i32
  }
  func.func @transform_25(%arg0: i32) -> (i32, i32) {
    %c0_i32 = arith.constant 0 : i32
    %c0_i32_0 = arith.constant 0 : i32
    %c0_i32_1 = arith.constant 0 : i32
    return %c0_i32, %c0_i32_0 : i32, i32
  }
  func.func @transform_26(%arg0: i32) -> (i32, i32, i32) {
    %c0_i32 = arith.constant 0 : i32
    %c0_i32_0 = arith.constant 0 : i32
    %c0_i32_1 = arith.constant 0 : i32
    %c0_i32_2 = arith.constant 0 : i32
    return %c0_i32, %c0_i32_0, %c0_i32_1 : i32, i32, i32
  }
  func.func @transform_27(%arg0: i32) -> (i32, i32, i32) {
    %c0_i32 = arith.constant 0 : i32
    %c0_i32_0 = arith.constant 0 : i32
    %c0_i32_1 = arith.constant 0 : i32
    %c0_i32_2 = arith.constant 0 : i32
    return %c0_i32, %c0_i32_0, %c0_i32_1 : i32, i32, i32
  }
  func.func @transform_28(%arg0: i32) -> (i32, i32, i32) {
    %c0_i32 = arith.constant 0 : i32
    %c0_i32_0 = arith.constant 0 : i32
    %c0_i32_1 = arith.constant 0 : i32
    return %arg0, %c0_i32, %c0_i32_0 : i32, i32, i32
  }
}

</mosaic_0001>

<bundles_post_ra>
// kernel: forward.1
= control target key start
LH: loop header
LB: loop body
LE: loop exit
PB: predicated region body
PF: predicated region fallthrough
CT: control target
= control target key end

     0   :  { %s15458_s0 = inlined_call_operand.vmem [shape: f32[2,16,28], index: 0, kind: input, shape index: {}]   ;;  %s15459_s1 = inlined_call_operand.vmem [shape: f32[2,256,16], index: 1, kind: input, shape index: {}]   ;;  %s15460_s2 = inlined_call_operand.vmem [shape: f32[28,32], index: 2, kind: input, shape index: {}]   ;;  %s15461_s3 = inlined_call_operand.vmem [shape: f32[1,32], index: 3, kind: input, shape index: {}]   ;;  %s15462_s4 = inlined_call_operand.vmem [shape: f32[2,32,192], index: 4, kind: input, shape index: {}]   ;;  %s15463_s5 = inlined_call_operand.vmem [shape: f32[2,1,192], index: 5, kind: input, shape index: {}]   ;;  %s15464_s6 = inlined_call_operand.vmem [shape: f32[2,16,128], index: 6, kind: input, shape index: {}]   ;;  %s15465_s7 = inlined_call_operand.vmem [shape: f32[2,64,32], index: 7, kind: input, shape index: {}]   ;;  %s15466_s8 = inlined_call_operand.vmem [shape: f32[2,1,32], index: 8, kind: input, shape index: {}]   ;;  %s15467_s9 = inlined_call_operand.vmem [shape: f32[2,32,32], index: 9, kind: input, shape index: {}]   ;;  %s15468_s10 = inlined_call_operand.vmem [shape: f32[2,1,32], index: 10, kind: input, shape index: {}]   ;;  %s15469_s11 = inlined_call_operand.vmem [shape: f32[2,32,32], index: 11, kind: input, shape index: {}]   ;;  %s15470_s12 = inlined_call_operand.vmem [shape: f32[2,1,32], index: 12, kind: input, shape index: {}]   ;;  %s15471_s13 = inlined_call_operand.vmem [shape: f32[2,32,32], index: 13, kind: input, shape index: {}]   ;;  %s15472_s14 = inlined_call_operand.vmem [shape: f32[2,1,32], index: 14, kind: input, shape index: {}]   ;;  %s15473_s15 = inlined_call_operand.vmem [shape: f32[180,32], index: 15, kind: input, shape index: {}]   ;;  %s15474_s16 = inlined_call_operand.vmem [shape: f32[1,32], index: 16, kind: input, shape index: {}]   ;;  %s15475_s17 = inlined_call_operand.vmem [shape: f32[4,96,32], index: 17, kind: input, shape index: {}]   ;;  %s15476_s18 = inlined_call_operand.vmem [shape: f32[4,1,32], index: 18, kind: input, shape index: {}]   ;;  %s15477_s19 = inlined_call_operand.vmem [shape: f32[32,128], index: 19, kind: input, shape index: {}]   ;;  %s15478_s20 = inlined_call_operand.vmem [shape: f32[1,128], index: 20, kind: input, shape index: {}]   ;;  %s15479_s21 = inlined_call_operand.vmem [shape: f32[256,16], index: 21, kind: input, shape index: {}]   ;;  %s15480_s22 = inlined_call_operand.vmem [shape: f32[16,256], index: 22, kind: input, shape index: {}]   ;;  %s15481_s23 = inlined_call_operand.vmem [shape: f32[256,16], index: 23, kind: input, shape index: {}]   ;;  %s15482_s24 = inlined_call_operand.vmem [shape: f32[64,4], index: 24, kind: input, shape index: {}]   ;;  %s15483_s25 = inlined_call_operand.vmem [shape: f32[4,64], index: 25, kind: input, shape index: {}]   ;;  %s15484_s26 = inlined_call_operand.vmem [shape: f32[3,16,16], index: 26, kind: input, shape index: {}]   ;;  %s15485_s27 = inlined_call_operand.vmem [shape: f32[3,16,16], index: 27, kind: input, shape index: {}]   ;;  %s15486_s28 = inlined_call_operand.hbm [shape: f32[2,16,128], index: 28, kind: output, shape index: {}]  }
   0x1   :  { %15542 = sst [smem:[#allocation55_spill]] %s15458_s0 }
   0x2   :  { %15543 = sst [smem:[#allocation56_spill]] %s15459_s1 }
   0x3   :  { %15544 = sst [smem:[#allocation57_spill]] %s15460_s2 }
   0x4   :  { %15545 = sst [smem:[#allocation58_spill]] %s15461_s3 }
   0x5   :  { %15546 = sst [smem:[#allocation59_spill]] %s15462_s4 }
   0x6   :  { %15547 = sst [smem:[#allocation60_spill]] %s15463_s5 }
   0x7   :  { %15548 = sst [smem:[#allocation61_spill]] %s15464_s6 }
   0x8   :  { %15549 = sst [smem:[#allocation62_spill]] %s15465_s7 }
   0x9   :  { %15550 = sst [smem:[#allocation63_spill]] %s15466_s8 }
   0xa   :  { %15551 = sst [smem:[#allocation64_spill]] %s15467_s9 }
   0xb   :  { %15552 = sst [smem:[#allocation65_spill]] %s15468_s10 }
   0xc   :  { %15553 = sst [smem:[#allocation66_spill]] %s15469_s11 }
   0xd   :  { %15554 = sst [smem:[#allocation67_spill]] %s15470_s12 }
   0xe   :  { %15555 = sst [smem:[#allocation68_spill]] %s15476_s18 }
   0xf   :  { %15556 = sst [smem:[#allocation69_spill]] %s15477_s19 }
  0x10   :  { %15557 = sst [smem:[#allocation70_spill]] %s15478_s20 }
  0x11   :  { %15558 = sst [smem:[#allocation71_spill]] %s15482_s24 }
  0x12   :  { %15559 = sst [smem:[#allocation72_spill]] %s15486_s28 }
  0x13   :  { %33 = vsyncpa [#allocation3], 0 }
  0x14   :  { %35 = vsyncpa [#allocation3 + $0x1], 0  ;;  %s11899_s8 = smov 0   ;;  %s11901_s5 = smov 0  }
  0x15   :  { %s11903_s9 = smov 0   ;;  %s11905_s30 = smov 0  }
  0x16 LB: > { %15560 = sst [smem:[#allocation5_spill]] %s11730_s8  ;;  %s11920_s3 = sadd.s32 4294967295, %s11742_s30   ;;  %s11742_s30 = sphi %s11905_s30, %s15759_s30   ;;  %s11738_s9 = sphi %s11903_s9, %s15762_s9   ;;  %s11734_s5 = sphi %s11901_s5, %s15761_s5   ;;  %s11730_s8 = sphi %s11899_s8, %s15760_s8  }
  0x17   : > { %15561 = sst [smem:[#allocation6_spill]] %s11734_s5  ;;  %s8713_s6 = sadd.s32 4294967294, %s11742_s30  }
  0x18   : > { %15562 = sst [smem:[#allocation7_spill]] %s11738_s9  ;;  %s11924_s10 = sadd.s32 1, %s11742_s30  }
  0x19   : > { %15563 = sst [smem:[#allocation8_spill]] %s11742_s30  ;;  %s646_s0 = sadd.s32 1, %s11738_s9 }
  0x1a   : > { %15564 = sst [smem:[#allocation9_spill]] %s11920_s3  ;;  %s643_s11 = ssub.s32 %s11742_s30, %s11924_s10 }
  0x1b   : > { %15565 = sst [smem:[#allocation10_spill]] %s11924_s10  ;;  %p656_p0 = scmp.ne.s32.totalorder %s11738_s9, %s11734_s5 }
  0x1c   : > { %p644_p1 = scmp.eq.s32.totalorder %s643_s11, 0  ;;  %p657_p2 = scmp.eq.s32.totalorder %s11920_s3, 1 }
  0x1d   : > { %p662_p3 = scmp.ne.s32.totalorder %s11734_s5, %s11730_s8  ;;  %p663_p4 = scmp.eq.s32.totalorder %s8713_s6, 1 }
  0x1e   : > { %s11935_s29 = scalar_select %p644_p1, %s11738_s9, %s646_s0  }
  0x1f   : > { %p11937_p5 = por %p657_p2, %p656_p0  ;;  %p11941_p6 = por %p663_p4, %p662_p3 }
  0x20   : > { %15566 = sst [smem:[#allocation11_spill]] %s11935_s29  ;;  %p8716_p7 = scmp.ge.s32.totalorder %s11742_s30, 1 }
  0x21   : > { %s15567_s2 = scalar_select %p11937_p5, 1, 0 }
  0x22   : > { %s15569_s7 = scalar_select %p11941_p6, 1, 0 }
  0x23   : > { %15568 = sst [smem:[#allocation12_spill]] %s15567_s2  ;;  %p775_p8 = scmp.lt.s32.totalorder %s11742_s30, 3 }
  0x24   : > { %15570 = sst [smem:[#allocation13_spill]] %s15569_s7 }
  0x25   : > { %p776_p9 = pnand %p8716_p7, %p775_p8 }
  0x27   : > { %779 = sbr.rel (%p776_p9) target bundleno = 8223 (0x201f), region = 132 }
  0x2e   : > { %s15571_s4 = sld [smem:[#allocation57_spill]]  ;;  %vm993_vm0 = vcmask 1043456   ;;  %p854_p10 = scmp.lt.s32.totalorder %s11920_s3, 1  ;;  %vm11744_vm1 = vmmov 1   ;;  %vm986_vm3 = vcmask 228352   ;;  %v15508_v22 = vmov 0.0  }
  0x2f   : > { %vm11961_vm2 = vmpackc.low %vm993_vm0, %vm11744_vm1  ;;  %s15574_s6 = sld [smem:[#allocation59_spill]]  ;;  %s15575_s11 = sld [smem:[#allocation55_spill]]  ;;  %1163 = vmatprep.mubr.f32.mxu1 %v15508_v22  ;;  %vm1092_vm4 = vcmask 261120   ;;  %vm1178_vm5 = vcmask 130048   ;;  %v1082_v33 = vlaneseq  ;;  %v12051_v42 = vld [vmem:[%s15481_s23] sm:$0xff]  ;;  %vm2535_vm6 = vcmask 523264  }
  0x30   : > { %s11969_s29 = scalar_select %p854_p10, %s11920_s3, 1  ;;  %vm2889_vm7 = vcmask 31744   ;;  %vm7132_vm8 = vcmask 490496   ;;  %vm7135_vm9 = vcmask 982016   ;;  %vm7144_vm10 = vcmask 424960  }
  0x31   : > { %v12037_v34 = vshrl.u32 %v1082_v33, 7  ;;  %s15584_s10 = sld [smem:[#allocation60_spill]]  ;;  %s15504_s0 = smov 64   ;;  %v12184_v33 = vld [vmem:[%s15481_s23 + $0x50] sm:$0xff]  ;;  %vm7457_vm13 = vcmask 785408  }
  0x32   : > { %s9276_s12 = sshll.u32 %s11969_s29, 4  ;;  %s9277_s9 = sshll.u32 %s11969_s29, 8 }
  0x33   : > { %15583 = vst [vmem:[#allocation18_spill] sm:$0xff] %v12037_v34  ;;  %v15507_v35 = vsub.s32 0, %v12037_v34  ;;  %v15506_v37 = vsub.s32 1, %v12037_v34  ;;  %s15586_s24 = sld [smem:[#allocation71_spill]]  ;;  %s15623_s29 = sld [smem:[#allocation62_spill]] }
  0x34   : > { %v975_v0 = vld [vmem:[%s15571_s4] sm:$0xff]  ;;  %v976_v1 = vld [vmem:[%s15571_s4 + $0x8] sm:$0xff]  ;;  %v977_v2 = vld [vmem:[%s15571_s4 + $0x10] sm:$0xff]  ;;  %s15656_s1 = sld [smem:[#allocation64_spill]]  ;;  %s15660_s28 = sld [smem:[#allocation63_spill]] }
  0x35   : > { %v10885_v3 = vpack.c.bf16 %v976_v1, %v975_v0  ;;  %v978_v4 = vld [vmem:[%s15571_s4 + $0x18] sm:$0xf]  ;;  %v1073_v6 = vld [vmem:[%s15574_s6 + $0x8] sm:$0xff]  ;;  %v1072_v9 = vld [vmem:[%s15574_s6] sm:$0xff]  ;;  %s858_s8 = scalar_lea.vmem %s15575_s11, %s9276_s12  ;;  %s15578_s4 = sld [smem:[#allocation58_spill]] }
  0x36   : > { %v10889_v7 = vpack.c.bf16 %v978_v4, %v977_v2  ;;  %v1075_v8 = vld [vmem:[%s15574_s6 + $0x18] sm:$0xff]  ;;  %v1074_v10 = vld [vmem:[%s15574_s6 + $0x10] sm:$0xff]  ;;  %v11986_v13 = vld [vmem:[%s858_s8] sm:$0xff]  ;;  %s15581_s12 = sld [smem:[#allocation61_spill]]  ;;  %s15662_s5 = sld [smem:[#allocation65_spill]] }
  0x37   : > { %10886 = vmatprep.subr.bf16.mxu0 %v10885_v3  ;;  %v10895_v11 = vpack.c.bf16 %v1075_v8, %v1073_v6  ;;  %v10897_v12 = vpack.c.bf16 %v1074_v10, %v1072_v9  ;;  %15576 = vst [vmem:[#allocation14_spill] sm:$0xff] %v11986_v13  ;;  %v11988_v14 = vld [vmem:[%s858_s8 + $0x8] sm:$0xff]  ;;  %9945 = vmatprep.mubr.msk.f32.mxu0 %vm986_vm3, %v11986_v13  ;;  %v1079_v17 = vld [vmem:[%s15574_s6 + $0x38] sm:$0xff]  ;;  %v1076_v19 = vld [vmem:[%s15574_s6 + $0x20] sm:$0xff]  ;;  %s15657_s8 = sld [smem:[#allocation66_spill]]  ;;  %s15751_s18 = sld [smem:[#allocation9_spill]] }
  0x38   : > { %10888 = vmatpush3.bf16.msra.mxu0 %v10885_v3  ;;  %15577 = vst [vmem:[#allocation15_spill] sm:$0xff] %v11988_v14  ;;  %v1077_v16 = vld [vmem:[%s15574_s6 + $0x28] sm:$0xff]  ;;  %v1078_v20 = vld [vmem:[%s15574_s6 + $0x30] sm:$0xff]  ;;  %v1080_v36 = vld [vmem:[%s15584_s10] sm:$0x3] }
  0x39   : > { %10891 = vmatprep.subr.msk.bf16.mxu0 %vm11961_vm2, %v10889_v7  ;;  %10896 = vmatprep.subr.bf16.mxu1 %v10895_v11  ;;  %v10899_v18 = vpack.c.bf16 %v1079_v17, %v1077_v16  ;;  %v10901_v21 = vpack.c.bf16 %v1078_v20, %v1076_v19  ;;  %v1085_v39 = vrot.slane %v1080_v36, %v15507_v35 }
  0x3a   : > { %10898 = vmatpush1.bf16.msra.mxu1 %v10897_v12  ;;  %v1089_v41 = vrot.slane %v1080_v36, %v15506_v37  ;;  %v945_v36 = vld [vmem:[%s15481_s23 + $0x58] sm:$0xff] }
  0x3b   : > { %10900 = vmatprep.subr.bf16.mxu1 %v10899_v18  ;;  %v8722_v23 = vld [vmem:[%s15578_s4] ss:$0 sm:$0xff]  ;;  %s15582_s4 = sld [smem:[#allocation56_spill]] }
  0x3c   : > { %10894 = vmatpush3.bf16.msk.msra.mxu0 %vm11961_vm2, %v10889_v7  ;;  %v1176_v28 = vld [vmem:[%s15581_s12] sm:$0xff]  ;;  %v1177_v29 = vld [vmem:[%s15581_s12 + $0x8] sm:$0xff]  ;;  %s15663_s19 = smov %s15662_s5 }
  0x3d   : > { %v10903_v30 = vpack.c.bf16 %v1177_v29, %v1176_v28  ;;  %v12151_v28 = vld [vmem:[%s15481_s23 + $0x28] sm:$0xff]  ;;  %v12156_v29 = vld [vmem:[%s15481_s23 + $0x30] sm:$0xff]  ;;  %s15658_s20 = smov %s15657_s8 }
  0x3e   : > { %10902 = vmatpush1.bf16.msra.mxu1 %v10901_v21  ;;  %v12123_v21 = vld [vmem:[%s15481_s23 + $0x8] sm:$0xff] }
  0x3f   : > { %9946 = vmatmul.mubr.msk.f32.vlgmr.msra.gmra.mrb[0].mxu0 %vm986_vm3, %v11988_v14  ;;  %10904 = vmatprep.subr.bf16.mxu0 %v10903_v30 }
  0x40   : > { %10906 = vmatpush3.bf16.msra.mxu0 %v10903_v30  ;;  %v12165_v30 = vld [vmem:[%s15481_s23 + $0x38] sm:$0xff] }
  0x41   : > { %s12031_s30 = scalar_lea.vmem %s15582_s4, %s9277_s9  ;;  %s11750_s9 = smov 120  }
  0x42   : > { %v866_v31 = vld [vmem:[%s12031_s30] sm:$0xff]  ;;  %v867_v32 = vld [vmem:[%s12031_s30 + $0x8] sm:$0xff]  ;;  %v868_v43 = vld [vmem:[%s12031_s30 + $0x10] sm:$0xff] }
  0x43   : > { %9952 = vmatprep.mubr.msk.f32.mxu0 %vm1178_vm5, %v866_v31  ;;  %v869_v45 = vld [vmem:[%s12031_s30 + $0x18] sm:$0xff]  ;;  %v870_v49 = vld [vmem:[%s12031_s30 + $0x20] sm:$0xff]  ;;  %v871_v55 = vld [vmem:[%s12031_s30 + $0x28] sm:$0xff] }
  0x44   : > { %9953 = vmatmul.mubr.msk.f32.vlgmr.msra.gmra.mrb[2].mxu0 %vm1178_vm5, %v867_v32  ;;  %v872_v56 = vld [vmem:[%s12031_s30 + $0x30] sm:$0xff]  ;;  %v873_v57 = vld [vmem:[%s12031_s30 + $0x38] sm:$0xff]  ;;  %v874_v58 = vld [vmem:[%s12031_s30 + $0x40] sm:$0xff] }
  0x45   : > { %9955 = vmatprep.mubr.msk.f32.mxu0 %vm1178_vm5, %v868_v43  ;;  %v875_v59 = vld [vmem:[%s12031_s30 + $0x48] sm:$0xff]  ;;  %v876_v60 = vld [vmem:[%s12031_s30 + $0x50] sm:$0xff]  ;;  %v877_v61 = vld [vmem:[%s12031_s30 + $0x58] sm:$0xff] }
  0x46   : > { %v878_v62 = vld [vmem:[%s12031_s30 + $0x60] sm:$0xff]  ;;  %v879_v63 = vld [vmem:[%s12031_s30 + $0x68] sm:$0xff]  ;;  %v880_v0 = vld [vmem:[%s12031_s30 + $0x70] sm:$0xff] }
  0x47   : > { %v881_v1 = vld [vmem:[%s12031_s30 + $0x78] sm:$0xff]  ;;  %v882_v2 = vld [vmem:[%s12031_s30 + $0x80] sm:$0xff]  ;;  %v883_v3 = vld [vmem:[%s12031_s30 + $0x88] sm:$0xff] }
  0x48   : > { %9956 = vmatmul.mubr.msk.f32.gmra.mrb[4].mxu0 %vm1178_vm5, %v869_v45  ;;  %v884_v4 = vld [vmem:[%s12031_s30 + $0x90] sm:$0xff]  ;;  %v885_v5 = vld [vmem:[%s12031_s30 + $0x98] sm:$0xff]  ;;  %v886_v6 = vld [vmem:[%s12031_s30 + $0xa0] sm:$0xff] }
  0x49   : > { %9958 = vmatprep.mubr.msk.f32.mxu0 %vm1178_vm5, %v870_v49  ;;  %v887_v7 = vld [vmem:[%s12031_s30 + $0xa8] sm:$0xff]  ;;  %v888_v8 = vld [vmem:[%s12031_s30 + $0xb0] sm:$0xff]  ;;  %v889_v9 = vld [vmem:[%s12031_s30 + $0xb8] sm:$0xff] }
  0x4a   : > { %v890_v10 = vld [vmem:[%s12031_s30 + $0xc0] sm:$0xff]  ;;  %v891_v11 = vld [vmem:[%s12031_s30 + $0xc8] sm:$0xff]  ;;  %v892_v12 = vld [vmem:[%s12031_s30 + $0xd0] sm:$0xff] }
  0x4b   : > { %v893_v16 = vld [vmem:[%s12031_s30 + $0xd8] sm:$0xff]  ;;  %v894_v17 = vld [vmem:[%s12031_s30 + $0xe0] sm:$0xff]  ;;  %v895_v18 = vld [vmem:[%s12031_s30 + $0xe8] sm:$0xff] }
  0x4c   : > { %9959 = vmatmul.mubr.msk.f32.gmra.mrb[6].mxu0 %vm1178_vm5, %v871_v55  ;;  %v896_v19 = vld [vmem:[%s12031_s30 + $0xf0] sm:$0xff]  ;;  %v897_v20 = vld [vmem:[%s12031_s30 + $0xf8] sm:$0xff]  ;;  %v12170_v31 = vld [vmem:[%s15481_s23 + $0x40] sm:$0xff] }
  0x4d   : > { %9961 = vmatprep.mubr.msk.f32.mxu0 %vm1178_vm5, %v872_v56  ;;  %v12179_v32 = vld [vmem:[%s15481_s23 + $0x48] sm:$0xff]  ;;  %v953_v45 = vld [vmem:[%s15481_s23 + $0x98] sm:$0xff]  ;;  %v962_v55 = vld [vmem:[%s15481_s23 + $0xe0] sm:$0xff] }
  0x4e   : > { %v951_v43 = vld [vmem:[%s15481_s23 + $0x88] sm:$0xff]  ;;  %v957_v49 = vld [vmem:[%s15481_s23 + $0xb8] sm:$0xff] }
  0x4f   : > { %v963_v56 = vld [vmem:[%s15481_s23 + $0xe8] sm:$0xff] }
  0x50   : > { %9962 = vmatmul.mubr.msk.f32.gmra.mrb[8].mxu0 %vm1178_vm5, %v873_v57  ;;  %v964_v57 = vld [vmem:[%s15481_s23 + $0xf0] sm:$0xff] }
  0x51   : > { %9964 = vmatprep.mubr.msk.f32.mxu0 %vm1178_vm5, %v874_v58 }
  0x54   : > { %9965 = vmatmul.mubr.msk.f32.gmra.mrb[10].mxu0 %vm1178_vm5, %v875_v59 }
  0x55   : > { %9967 = vmatprep.mubr.msk.f32.mxu0 %vm1178_vm5, %v876_v60 }
  0x58   : > { %9968 = vmatmul.mubr.msk.f32.gmra.mrb[12].mxu0 %vm1178_vm5, %v877_v61  ;;  %v965_v61 = vld [vmem:[%s15481_s23 + $0xf8] sm:$0xff] }
  0x59   : > { %9970 = vmatprep.mubr.msk.f32.mxu0 %vm1178_vm5, %v878_v62 }
  0x5c   : > { %9971 = vmatmul.mubr.msk.f32.gmra.mrb[14].mxu0 %vm1178_vm5, %v879_v63 }
  0x5d   : > { %9973 = vmatprep.mubr.msk.f32.mxu0 %vm1178_vm5, %v880_v0  ;;  %v899_v0 = vld [vmem:[%s15479_s21 + $0x8] sm:$0xff] }
  0x60   : > { %9974 = vmatmul.mubr.msk.f32.gmra.mrb[16].mxu0 %vm1178_vm5, %v881_v1  ;;  %v900_v1 = vld [vmem:[%s15479_s21 + $0x10] sm:$0xff] }
  0x61   : > { %9976 = vmatprep.mubr.msk.f32.mxu0 %vm1178_vm5, %v882_v2  ;;  %v901_v2 = vld [vmem:[%s15479_s21 + $0x18] sm:$0xff] }
  0x64   : > { %9977 = vmatmul.mubr.msk.f32.gmra.mrb[18].mxu0 %vm1178_vm5, %v883_v3  ;;  %v902_v3 = vld [vmem:[%s15479_s21 + $0x20] sm:$0xff] }
  0x65   : > { %9979 = vmatprep.mubr.msk.f32.mxu0 %vm1178_vm5, %v884_v4  ;;  %v903_v4 = vld [vmem:[%s15479_s21 + $0x28] sm:$0xff] }
  0x68   : > { %9980 = vmatmul.mubr.msk.f32.gmra.mrb[20].mxu0 %vm1178_vm5, %v885_v5  ;;  %v904_v5 = vld [vmem:[%s15479_s21 + $0x30] sm:$0xff] }
  0x69   : > { %9982 = vmatprep.mubr.msk.f32.mxu0 %vm1178_vm5, %v886_v6  ;;  %v905_v6 = vld [vmem:[%s15479_s21 + $0x38] sm:$0xff] }
  0x6c   : > { %9983 = vmatmul.mubr.msk.f32.gmra.mrb[22].mxu0 %vm1178_vm5, %v887_v7  ;;  %v906_v7 = vld [vmem:[%s15479_s21 + $0x40] sm:$0xff] }
  0x6d   : > { %9985 = vmatprep.mubr.msk.f32.mxu0 %vm1178_vm5, %v888_v8  ;;  %v907_v8 = vld [vmem:[%s15479_s21 + $0x48] sm:$0xff] }
  0x70   : > { %9986 = vmatmul.mubr.msk.f32.gmra.mrb[24].mxu0 %vm1178_vm5, %v889_v9  ;;  %v908_v9 = vld [vmem:[%s15479_s21 + $0x50] sm:$0xff] }
  0x71   : > { %9988 = vmatprep.mubr.msk.f32.mxu0 %vm1178_vm5, %v890_v10  ;;  %v909_v10 = vld [vmem:[%s15479_s21 + $0x58] sm:$0xff] }
  0x74   : > { %9989 = vmatmul.mubr.msk.f32.gmra.mrb[26].mxu0 %vm1178_vm5, %v891_v11  ;;  %v910_v11 = vld [vmem:[%s15479_s21 + $0x60] sm:$0xff] }
  0x75   : > { %9991 = vmatprep.mubr.msk.f32.mxu0 %vm1178_vm5, %v892_v12 }
  0x78   : > { %9992 = vmatmul.mubr.msk.f32.gmra.mrb[28].mxu0 %vm1178_vm5, %v893_v16  ;;  %v911_v16 = vld [vmem:[%s15479_s21 + $0x68] sm:$0xff] }
  0x79   : > { %9994 = vmatprep.mubr.msk.f32.mxu0 %vm1178_vm5, %v894_v17 }
  0x7c   : > { %9995 = vmatmul.mubr.msk.f32.gmra.mrb[30].mxu0 %vm1178_vm5, %v895_v18  ;;  %v912_v18 = vld [vmem:[%s15479_s21 + $0x70] sm:$0xff] }
  0x7d   : > { %9997 = vmatprep.mubr.msk.f32.mxu0 %vm1178_vm5, %v896_v19 }
  0x80   : > { %9998 = vmatmul.mubr.msk.f32.gmra.mrb[32].mxu0 %vm1178_vm5, %v897_v20  ;;  %v913_v20 = vld [vmem:[%s15479_s21 + $0x78] sm:$0xff] }
  0x81   : > { %10056 = vmatprep.mubr.msk.f32.mxu0 %vm1178_vm5, %v12051_v42 }
 0x112   : > { %v9947_v24 = vpop.f32.mrb[0].mxu0 }
 0x113   : > { %v1063_v25 = vpop.f32.mrb[1].mxu0  ;;  %v12017_v27 = vadd.f32 %v9947_v24, %v8722_v23  ;;  %v12137_v24 = vld [vmem:[%s15481_s23 + $0x18] sm:$0xff] }
 0x114   : > { %v12012_v26 = vadd.f32 %v8722_v23, %v1063_v25  ;;  %v12128_v23 = vld [vmem:[%s15481_s23 + $0x10] sm:$0xff]  ;;  %v12142_v25 = vld [vmem:[%s15481_s23 + $0x20] sm:$0xff] }
 0x115   : > { %15580 = vst [vmem:[#allocation17_spill] sm:$0xff] %v12017_v27 }
 0x116   : > { %15579 = vst [vmem:[#allocation16_spill] sm:$0xff] %v12012_v26  ;;  %8726 = vmatmul.mubr.msk.f32.vlgmr.msra.gmra.mrb[0].mxu1 %vm1092_vm4, %v12012_v26 }
 0x117   : > { %1169 = vmatprep.mubr.f32.mxu1 %v15508_v22  ;;  %v12274_v63 = vpop.f32.mrb[2].mxu0 }
 0x118   : > { %v12370_v12 = vpop.f32.mrb[3].mxu0 }
 0x11a   : > { %8727 = vmatmul.mubr.msk.f32.gmra.mrb[2].mxu1 %vm1092_vm4, %v12017_v27 }
 0x11b   : > { %10004 = vmatprep.mubr.msk.f32.mxu1 %vm1178_vm5, %v12051_v42  ;;  %v950_v42 = vld [vmem:[%s15481_s23 + $0x80] sm:$0xff]  ;;  %v12376_v17 = vpop.f32.mrb[4].mxu0 }
 0x11c   : > { %v12382_v19 = vpop.f32.mrb[5].mxu0 }
 0x1e9   : > { %v1165_v38 = vpop.f32.mrb[0].mxu1 }
 0x1ea   : > { %v1167_v40 = vpop.f32.mrb[1].mxu1  ;;  %v1166_v46 = vadd.f32 %v1165_v38, %v1085_v39  ;;  %v946_v38 = vld [vmem:[%s15481_s23 + $0x60] sm:$0xff] }
 0x1eb   : > { %v1168_v50 = vadd.f32 %v1167_v40, %v1089_v41  ;;  %v948_v40 = vld [vmem:[%s15481_s23 + $0x70] sm:$0xff] }
 0x1ed   : > { %v1171_v44 = vpop.f32.mrb[2].mxu1 }
 0x1ee   : > { %v1172_v47 = vadd.f32 %v1171_v44, %v1085_v39  ;;  %v1173_v48 = vpop.f32.mrb[3].mxu1  ;;  %v947_v39 = vld [vmem:[%s15481_s23 + $0x68] sm:$0xff]  ;;  %v952_v44 = vld [vmem:[%s15481_s23 + $0x90] sm:$0xff] }
 0x1ef   : > { %v1174_v51 = vadd.f32 %v1173_v48, %v1089_v41  ;;  %v949_v41 = vld [vmem:[%s15481_s23 + $0x78] sm:$0xff]  ;;  %v956_v48 = vld [vmem:[%s15481_s23 + $0xb0] sm:$0xff] }
 0x1f0   : > { %v12061_v52 = vpack.c.bf16 %v1172_v47, %v1166_v46  ;;  %v11344_v53 = vpack.i.bf16 %v1172_v47, %v1166_v46  ;;  %v954_v46 = vld [vmem:[%s15481_s23 + $0xa0] sm:$0xff]  ;;  %v955_v47 = vld [vmem:[%s15481_s23 + $0xa8] sm:$0xff] }
 0x1f1   : > { %v10911_v54 = vpack.c.bf16 %v1174_v51, %v1168_v50  ;;  %v958_v50 = vld [vmem:[%s15481_s23 + $0xc0] sm:$0xff]  ;;  %v959_v51 = vld [vmem:[%s15481_s23 + $0xc8] sm:$0xff] }
 0x1f2   : > { %11345 = vrot.lane.b32.xlu0 %v11344_v53, %s15504_s0  ;;  %v960_v53 = vld [vmem:[%s15481_s23 + $0xd0] sm:$0xff]  ;;  %s15585_s0 = smov 64  }
 0x1f3   : > { %10912 = vmatprep.subr.bf16.mxu0 %v10911_v54 }
 0x1f4   : > { %10914 = vmatpush3.bf16.msra.mxu0 %v10911_v54  ;;  %v961_v54 = vld [vmem:[%s15481_s23 + $0xd8] sm:$0xff] }
 0x1f7   : > { %10057 = vmatmul.mubr.msk.f32.vlgmr.msra.gmra.mrb[34].mxu0 %vm1178_vm5, %v12123_v21 }
 0x1f8   : > { %10059 = vmatprep.mubr.msk.f32.mxu0 %vm1178_vm5, %v12128_v23 }
 0x1fb   : > { %10060 = vmatmul.mubr.msk.f32.gmra.mrb[36].mxu0 %vm1178_vm5, %v12137_v24 }
 0x1fc   : > { %10062 = vmatprep.mubr.msk.f32.mxu0 %vm1178_vm5, %v12142_v25 }
 0x1ff   : > { %10063 = vmatmul.mubr.msk.f32.gmra.mrb[38].mxu0 %vm1178_vm5, %v12151_v28 }
 0x200   : > { %10065 = vmatprep.mubr.msk.f32.mxu0 %vm1178_vm5, %v12156_v29 }
 0x203   : > { %10066 = vmatmul.mubr.msk.f32.gmra.mrb[40].mxu0 %vm1178_vm5, %v12165_v30 }
 0x204   : > { %10068 = vmatprep.mubr.msk.f32.mxu0 %vm1178_vm5, %v12170_v31 }
 0x207   : > { %10069 = vmatmul.mubr.msk.f32.gmra.mrb[42].mxu0 %vm1178_vm5, %v12179_v32 }
 0x208   : > { %10071 = vmatprep.mubr.msk.f32.mxu0 %vm1178_vm5, %v12184_v33 }
 0x20b   : > { %10072 = vmatmul.mubr.msk.f32.gmra.mrb[44].mxu0 %vm1178_vm5, %v945_v36 }
 0x20c   : > { %10074 = vmatprep.mubr.msk.f32.mxu0 %vm1178_vm5, %v946_v38 }
 0x20f   : > { %10075 = vmatmul.mubr.msk.f32.gmra.mrb[46].mxu0 %vm1178_vm5, %v947_v39 }
 0x210   : > { %10077 = vmatprep.mubr.msk.f32.mxu0 %vm1178_vm5, %v948_v40 }
 0x213   : > { %10078 = vmatmul.mubr.msk.f32.gmra.mrb[48].mxu0 %vm1178_vm5, %v949_v41 }
 0x214   : > { %10080 = vmatprep.mubr.msk.f32.mxu0 %vm1178_vm5, %v950_v42 }
 0x217   : > { %10081 = vmatmul.mubr.msk.f32.gmra.mrb[50].mxu0 %vm1178_vm5, %v951_v43 }
 0x218   : > { %10083 = vmatprep.mubr.msk.f32.mxu0 %vm1178_vm5, %v952_v44 }
 0x21b   : > { %10084 = vmatmul.mubr.msk.f32.gmra.mrb[52].mxu0 %vm1178_vm5, %v953_v45 }
 0x21c   : > { %10086 = vmatprep.mubr.msk.f32.mxu0 %vm1178_vm5, %v954_v46 }
 0x21f   : > { %10087 = vmatmul.mubr.msk.f32.gmra.mrb[54].mxu0 %vm1178_vm5, %v955_v47 }
 0x220   : > { %10089 = vmatprep.mubr.msk.f32.mxu0 %vm1178_vm5, %v956_v48 }
 0x223   : > { %10090 = vmatmul.mubr.msk.f32.gmra.mrb[56].mxu0 %vm1178_vm5, %v957_v49 }
 0x224   : > { %10092 = vmatprep.mubr.msk.f32.mxu0 %vm1178_vm5, %v958_v50 }
 0x227   : > { %10093 = vmatmul.mubr.msk.f32.gmra.mrb[58].mxu0 %vm1178_vm5, %v959_v51 }
 0x228   : > { %10095 = vmatprep.mubr.msk.f32.mxu0 %vm1178_vm5, %v960_v53 }
 0x22b   : > { %10096 = vmatmul.mubr.msk.f32.gmra.mrb[60].mxu0 %vm1178_vm5, %v961_v54 }
 0x22c   : > { %10098 = vmatprep.mubr.msk.f32.mxu0 %vm1178_vm5, %v962_v55 }
 0x22f   : > { %10099 = vmatmul.mubr.msk.f32.gmra.mrb[62].mxu0 %vm1178_vm5, %v963_v56 }
 0x230   : > { %10101 = vmatprep.mubr.msk.f32.mxu0 %vm1178_vm5, %v964_v57 }
 0x233   : > { %10102 = vmatmul.mubr.msk.f32.gmra.mrb[64].mxu0 %vm1178_vm5, %v965_v61 }
 0x264   : > { %v11346_v58 = vpop.permute.xlu0 %11345 }
 0x265   : > { %v11348_v59 = vunpack.i.h.bf16 %v11346_v58  ;;  %v11347_v60 = vunpack.i.l.bf16 %v11346_v58 }
 0x267   : > { %v10907_v62 = vpack.c.bf16 %v11348_v59, %v11347_v60  ;;  %v929_v59 = vld [vmem:[%s15479_s21 + $0xf8] sm:$0xff]  ;;  %v966_v60 = vld [vmem:[%s15586_s24] sm:$0xff] }
 0x269   : > { %10908 = vmatprep.subr.bf16.mxu1 %v10907_v62 }
 0x26a   : > { %10910 = vmatpush3.bf16.msra.mxu1 %v10907_v62 }
 0x26b   : > { %10916 = vmatprep.subr.bf16.mxu1 %v12061_v52 }
 0x26d   : > { %10005 = vmatmul.mubr.msk.f32.vlgmr.msra.gmra.mrb[4].mxu1 %vm1178_vm5, %v12123_v21  ;;  %v12388_v21 = vpop.f32.mrb[6].mxu0 }
 0x26e   : > { %10918 = vmatpush3.bf16.msra.mxu1 %v12061_v52  ;;  %10007 = vmatprep.mubr.msk.f32.mxu1 %vm1178_vm5, %v12128_v23  ;;  %v898_v52 = vld [vmem:[%s15479_s21] sm:$0xff] }
 0x26f   : > { %v914_v23 = vld [vmem:[%s15479_s21 + $0x80] sm:$0xff] }
 0x271   : > { %10008 = vmatmul.mubr.msk.f32.gmra.mrb[6].mxu1 %vm1178_vm5, %v12137_v24  ;;  %v12394_v24 = vpop.f32.mrb[7].mxu0 }
 0x272   : > { %10010 = vmatprep.mubr.msk.f32.mxu1 %vm1178_vm5, %v12142_v25  ;;  %v915_v25 = vld [vmem:[%s15479_s21 + $0x88] sm:$0xff] }
 0x275   : > { %10011 = vmatmul.mubr.msk.f32.gmra.mrb[8].mxu1 %vm1178_vm5, %v12151_v28  ;;  %v12400_v28 = vpop.f32.mrb[8].mxu0 }
 0x276   : > { %10013 = vmatprep.mubr.msk.f32.mxu1 %vm1178_vm5, %v12156_v29  ;;  %v916_v29 = vld [vmem:[%s15479_s21 + $0x90] sm:$0xff] }
 0x279   : > { %10014 = vmatmul.mubr.msk.f32.gmra.mrb[10].mxu1 %vm1178_vm5, %v12165_v30  ;;  %v12406_v30 = vpop.f32.mrb[9].mxu0 }
 0x27a   : > { %10016 = vmatprep.mubr.msk.f32.mxu1 %vm1178_vm5, %v12170_v31  ;;  %v917_v31 = vld [vmem:[%s15479_s21 + $0x98] sm:$0xff] }
 0x27d   : > { %10017 = vmatmul.mubr.msk.f32.gmra.mrb[12].mxu1 %vm1178_vm5, %v12179_v32  ;;  %v12412_v32 = vpop.f32.mrb[10].mxu0 }
 0x27e   : > { %10019 = vmatprep.mubr.msk.f32.mxu1 %vm1178_vm5, %v12184_v33  ;;  %v918_v33 = vld [vmem:[%s15479_s21 + $0xa0] sm:$0xff] }
 0x281   : > { %10020 = vmatmul.mubr.msk.f32.gmra.mrb[14].mxu1 %vm1178_vm5, %v945_v36  ;;  %v12418_v36 = vpop.f32.mrb[11].mxu0 }
 0x282   : > { %10022 = vmatprep.mubr.msk.f32.mxu1 %vm1178_vm5, %v946_v38  ;;  %v919_v38 = vld [vmem:[%s15479_s21 + $0xa8] sm:$0xff] }
 0x285   : > { %10023 = vmatmul.mubr.msk.f32.gmra.mrb[16].mxu1 %vm1178_vm5, %v947_v39  ;;  %v12424_v39 = vpop.f32.mrb[12].mxu0 }
 0x286   : > { %10025 = vmatprep.mubr.msk.f32.mxu1 %vm1178_vm5, %v948_v40  ;;  %v920_v40 = vld [vmem:[%s15479_s21 + $0xb0] sm:$0xff] }
 0x289   : > { %10026 = vmatmul.mubr.msk.f32.gmra.mrb[18].mxu1 %vm1178_vm5, %v949_v41  ;;  %v12430_v41 = vpop.f32.mrb[13].mxu0 }
 0x28a   : > { %10028 = vmatprep.mubr.msk.f32.mxu1 %vm1178_vm5, %v950_v42  ;;  %v921_v42 = vld [vmem:[%s15479_s21 + $0xb8] sm:$0xff] }
 0x28d   : > { %10029 = vmatmul.mubr.msk.f32.gmra.mrb[20].mxu1 %vm1178_vm5, %v951_v43  ;;  %v12436_v43 = vpop.f32.mrb[14].mxu0 }
 0x28e   : > { %10031 = vmatprep.mubr.msk.f32.mxu1 %vm1178_vm5, %v952_v44  ;;  %v922_v44 = vld [vmem:[%s15479_s21 + $0xc0] sm:$0xff] }
 0x291   : > { %10032 = vmatmul.mubr.msk.f32.gmra.mrb[22].mxu1 %vm1178_vm5, %v953_v45  ;;  %v12442_v45 = vpop.f32.mrb[15].mxu0 }
 0x292   : > { %10034 = vmatprep.mubr.msk.f32.mxu1 %vm1178_vm5, %v954_v46  ;;  %v923_v46 = vld [vmem:[%s15479_s21 + $0xc8] sm:$0xff] }
 0x295   : > { %10035 = vmatmul.mubr.msk.f32.gmra.mrb[24].mxu1 %vm1178_vm5, %v955_v47  ;;  %v12448_v47 = vpop.f32.mrb[16].mxu0 }
 0x296   : > { %10037 = vmatprep.mubr.msk.f32.mxu1 %vm1178_vm5, %v956_v48  ;;  %v924_v48 = vld [vmem:[%s15479_s21 + $0xd0] sm:$0xff] }
 0x299   : > { %10038 = vmatmul.mubr.msk.f32.gmra.mrb[26].mxu1 %vm1178_vm5, %v957_v49  ;;  %v12453_v49 = vpop.f32.mrb[17].mxu0 }
 0x29a   : > { %10040 = vmatprep.mubr.msk.f32.mxu1 %vm1178_vm5, %v958_v50  ;;  %v12456_v50 = vpop.f32.mrb[18].mxu0 }
 0x29b   : > { %1895 = vrot.lane.b32.xlu1 %v12456_v50, %s15585_s0 }
 0x29d   : > { %10041 = vmatmul.mubr.msk.f32.gmra.mrb[28].mxu1 %vm1178_vm5, %v959_v51  ;;  %v925_v51 = vld [vmem:[%s15479_s21 + $0xd8] sm:$0xff] }
 0x29e   : > { %10043 = vmatprep.mubr.msk.f32.mxu1 %vm1178_vm5, %v960_v53  ;;  %v12462_v53 = vpop.f32.mrb[19].mxu0 }
 0x29f   : > { %1893 = vrot.lane.b32.xlu0 %v12462_v53, %s15585_s0  ;;  %1861 = vrot.lane.b32.xlu1 %v12370_v12, %s15585_s0 }
 0x2a1   : > { %10044 = vmatmul.mubr.msk.f32.gmra.mrb[30].mxu1 %vm1178_vm5, %v961_v54  ;;  %v926_v54 = vld [vmem:[%s15479_s21 + $0xe0] sm:$0xff] }
 0x2a2   : > { %10046 = vmatprep.mubr.msk.f32.mxu1 %vm1178_vm5, %v962_v55  ;;  %v927_v55 = vld [vmem:[%s15479_s21 + $0xe8] sm:$0xff] }
 0x2a3   : > { %1863 = vrot.lane.b32.xlu0 %v12274_v63, %s15585_s0 }
 0x2a5   : > { %10047 = vmatmul.mubr.msk.f32.gmra.mrb[32].mxu1 %vm1178_vm5, %v963_v56  ;;  %v12478_v56 = vpop.f32.mrb[20].mxu0 }
 0x2a6   : > { %10049 = vmatprep.mubr.msk.f32.mxu1 %vm1178_vm5, %v964_v57  ;;  %v928_v57 = vld [vmem:[%s15479_s21 + $0xf0] sm:$0xff]  ;;  %v12486_v58 = vpop.f32.mrb[21].mxu0 }
 0x2a7   : > { %1897 = vrot.lane.b32.xlu1 %v12486_v58, %s15585_s0  ;;  %v12500_v62 = vpop.f32.mrb[22].mxu0  ;;  %1899 = vrot.lane.b32.xlu0 %v12478_v56, %s15585_s0 }
 0x2a9   : > { %10050 = vmatmul.mubr.msk.f32.gmra.mrb[34].mxu1 %vm1178_vm5, %v965_v61  ;;  %v967_v61 = vld [vmem:[%s15586_s24 + $0x8] sm:$0xff] }
 0x2aa   : > { %10108 = vmatprep.mubr.msk.f32.mxu1 %vm1178_vm5, %v898_v52  ;;  %v12502_v52 = vpack.c.bf16 %v967_v61, %v966_v60 }
 0x2ab   : > { %1865 = vrot.lane.b32.xlu1 %v12382_v19, %s15585_s0  ;;  %1867 = vrot.lane.b32.xlu0 %v12376_v17, %s15585_s0 }
 0x2ac   : > { %15587 = vst [vmem:[#allocation19_spill] sm:$0xff] %v12502_v52  ;;  %10920 = vmatprep.subr.bf16.mxu0 %v12502_v52 }
 0x2ad   : > { %10109 = vmatmul.mubr.msk.f32.vlgmr.msra.gmra.mrb[36].mxu1 %vm1178_vm5, %v899_v0  ;;  %v12508_v0 = vpop.f32.mrb[23].mxu0  ;;  %10922 = vmatpush3.bf16.msra.mxu0 %v12502_v52 }
 0x2ae   : > { %10111 = vmatprep.mubr.msk.f32.mxu1 %vm1178_vm5, %v900_v1  ;;  %v12513_v1 = vpop.f32.mrb[24].mxu0 }
 0x2af   : > { %1901 = vrot.lane.b32.xlu1 %v12508_v0, %s15585_s0  ;;  %1903 = vrot.lane.b32.xlu0 %v12500_v62, %s15585_s0 }
 0x2b1   : > { %10112 = vmatmul.mubr.msk.f32.gmra.mrb[38].mxu1 %vm1178_vm5, %v901_v2  ;;  %v12517_v2 = vpop.f32.mrb[25].mxu0 }
 0x2b2   : > { %10114 = vmatprep.mubr.msk.f32.mxu1 %vm1178_vm5, %v902_v3  ;;  %v12521_v3 = vpop.f32.mrb[26].mxu0 }
 0x2b3   : > { %1869 = vrot.lane.b32.xlu1 %v12394_v24, %s15585_s0  ;;  %1871 = vrot.lane.b32.xlu0 %v12388_v21, %s15585_s0 }
 0x2b5   : > { %10115 = vmatmul.mubr.msk.f32.gmra.mrb[40].mxu1 %vm1178_vm5, %v903_v4  ;;  %v12525_v4 = vpop.f32.mrb[27].mxu0 }
 0x2b6   : > { %10117 = vmatprep.mubr.msk.f32.mxu1 %vm1178_vm5, %v904_v5  ;;  %v12529_v5 = vpop.f32.mrb[28].mxu0 }
 0x2b7   : > { %1905 = vrot.lane.b32.xlu1 %v12517_v2, %s15585_s0  ;;  %1907 = vrot.lane.b32.xlu0 %v12513_v1, %s15585_s0 }
 0x2b9   : > { %10118 = vmatmul.mubr.msk.f32.gmra.mrb[42].mxu1 %vm1178_vm5, %v905_v6  ;;  %v12533_v6 = vpop.f32.mrb[29].mxu0 }
 0x2ba   : > { %10120 = vmatprep.mubr.msk.f32.mxu1 %vm1178_vm5, %v906_v7  ;;  %v968_v7 = vld [vmem:[%s15586_s24 + $0x10] sm:$0xff] }
 0x2bb   : > { %1873 = vrot.lane.b32.xlu1 %v12406_v30, %s15585_s0  ;;  %1875 = vrot.lane.b32.xlu0 %v12400_v28, %s15585_s0 }
 0x2bd   : > { %10121 = vmatmul.mubr.msk.f32.gmra.mrb[44].mxu1 %vm1178_vm5, %v907_v8  ;;  %v969_v8 = vld [vmem:[%s15586_s24 + $0x18] sm:$0xff] }
 0x2be   : > { %10123 = vmatprep.mubr.msk.f32.mxu1 %vm1178_vm5, %v908_v9  ;;  %v12543_v9 = vpop.f32.mrb[30].mxu0 }
 0x2bf   : > { %1909 = vrot.lane.b32.xlu1 %v12525_v4, %s15585_s0  ;;  %1911 = vrot.lane.b32.xlu0 %v12521_v3, %s15585_s0 }
 0x2c1   : > { %10124 = vmatmul.mubr.msk.f32.gmra.mrb[46].mxu1 %vm1178_vm5, %v909_v10  ;;  %v12545_v10 = vpack.c.bf16 %v969_v8, %v968_v7 }
 0x2c2   : > { %10126 = vmatprep.mubr.msk.f32.mxu1 %vm1178_vm5, %v910_v11  ;;  %v12550_v11 = vpop.f32.mrb[31].mxu0 }
 0x2c3   : > { %15588 = vst [vmem:[#allocation20_spill] sm:$0xff] %v12545_v10  ;;  %10924 = vmatprep.subr.bf16.mxu0 %v12545_v10  ;;  %1877 = vrot.lane.b32.xlu1 %v12418_v36, %s15585_s0 }
 0x2c4   : > { %10926 = vmatpush3.bf16.msra.mxu0 %v12545_v10  ;;  %1879 = vrot.lane.b32.xlu0 %v12412_v32, %s15585_s0 }
 0x2c5   : > { %10127 = vmatmul.mubr.msk.f32.gmra.mrb[48].mxu1 %vm1178_vm5, %v911_v16  ;;  %v12555_v16 = vpop.f32.mrb[32].mxu0 }
 0x2c6   : > { %10129 = vmatprep.mubr.msk.f32.mxu1 %vm1178_vm5, %v912_v18  ;;  %v970_v18 = vld [vmem:[%s15586_s24 + $0x20] sm:$0xff] }
 0x2c7   : > { %1913 = vrot.lane.b32.xlu1 %v12533_v6, %s15585_s0 }
 0x2c8   : > { %1915 = vrot.lane.b32.xlu0 %v12529_v5, %s15585_s0 }
 0x2c9   : > { %10130 = vmatmul.mubr.msk.f32.gmra.mrb[50].mxu1 %vm1178_vm5, %v913_v20  ;;  %v971_v20 = vld [vmem:[%s15586_s24 + $0x28] sm:$0xff] }
 0x2ca   : > { %10132 = vmatprep.mubr.msk.f32.mxu1 %vm1178_vm5, %v914_v23  ;;  %v12565_v23 = vpack.c.bf16 %v971_v20, %v970_v18 }
 0x2cb   : > { %1881 = vrot.lane.b32.xlu1 %v12430_v41, %s15585_s0 }
 0x2cc   : > { %15589 = vst [vmem:[#allocation21_spill] sm:$0xff] %v12565_v23  ;;  %10928 = vmatprep.subr.bf16.mxu0 %v12565_v23  ;;  %1883 = vrot.lane.b32.xlu0 %v12424_v39, %s15585_s0 }
 0x2cd   : > { %10133 = vmatmul.mubr.msk.f32.gmra.mrb[52].mxu1 %vm1178_vm5, %v915_v25  ;;  %v12567_v25 = vpop.f32.mrb[33].mxu0  ;;  %10930 = vmatpush3.bf16.msra.mxu0 %v12565_v23 }
 0x2ce   : > { %10135 = vmatprep.mubr.msk.f32.mxu1 %vm1178_vm5, %v916_v29  ;;  %v972_v29 = vld [vmem:[%s15586_s24 + $0x30] sm:$0xff] }
 0x2cf   : > { %1917 = vrot.lane.b32.xlu1 %v12550_v11, %s15585_s0 }
 0x2d0   : > { %1919 = vrot.lane.b32.xlu0 %v12543_v9, %s15585_s0 }
 0x2d1   : > { %10136 = vmatmul.mubr.msk.f32.gmra.mrb[54].mxu1 %vm1178_vm5, %v917_v31  ;;  %v973_v31 = vld [vmem:[%s15586_s24 + $0x38] sm:$0xff]  ;;  %s15749_s24 = sld [smem:[#allocation69_spill]] }
 0x2d2   : > { %10138 = vmatprep.mubr.msk.f32.mxu1 %vm1178_vm5, %v918_v33  ;;  %v12581_v33 = vpack.c.bf16 %v973_v31, %v972_v29 }
 0x2d3   : > { %1885 = vrot.lane.b32.xlu1 %v12442_v45, %s15585_s0 }
 0x2d4   : > { %15590 = vst [vmem:[#allocation22_spill] sm:$0xff] %v12581_v33  ;;  %10932 = vmatprep.subr.bf16.mxu0 %v12581_v33  ;;  %1887 = vrot.lane.b32.xlu0 %v12436_v43, %s15585_s0 }
 0x2d5   : > { %10139 = vmatmul.mubr.msk.f32.gmra.mrb[56].mxu1 %vm1178_vm5, %v919_v38  ;;  %10934 = vmatpush3.bf16.msra.mxu0 %v12581_v33 }
 0x2d6   : > { %10141 = vmatprep.mubr.msk.f32.mxu1 %vm1178_vm5, %v920_v40 }
 0x2d7   : > { %1921 = vrot.lane.b32.xlu1 %v12567_v25, %s15585_s0 }
 0x2d8   : > { %1923 = vrot.lane.b32.xlu0 %v12555_v16, %s15585_s0 }
 0x2d9   : > { %10142 = vmatmul.mubr.msk.f32.gmra.mrb[58].mxu1 %vm1178_vm5, %v921_v42 }
 0x2da   : > { %10144 = vmatprep.mubr.msk.f32.mxu1 %vm1178_vm5, %v922_v44  ;;  %v12616_v44 = vpop.f32.mrb[34].mxu0 }
 0x2db   : > { %1889 = vrot.lane.b32.xlu1 %v12453_v49, %s15585_s0  ;;  %15591 = vst [vmem:[#allocation23_spill] sm:$0xff] %v12616_v44 }
 0x2dc   : > { %1891 = vrot.lane.b32.xlu0 %v12448_v47, %s15585_s0 }
 0x2dd   : > { %10145 = vmatmul.mubr.msk.f32.gmra.mrb[60].mxu1 %vm1178_vm5, %v923_v46 }
 0x2de   : > { %10147 = vmatprep.mubr.msk.f32.mxu1 %vm1178_vm5, %v924_v48  ;;  %v12621_v48 = vpop.f32.mrb[35].mxu0 }
 0x2df   : > { %15592 = vst [vmem:[#allocation24_spill] sm:$0xff] %v12621_v48 }
 0x2e1   : > { %10148 = vmatmul.mubr.msk.f32.gmra.mrb[62].mxu1 %vm1178_vm5, %v925_v51  ;;  %v12623_v51 = vpop.f32.mrb[36].mxu0 }
 0x2e2   : > { %10150 = vmatprep.mubr.msk.f32.mxu1 %vm1178_vm5, %v926_v54  ;;  %15593 = vst [vmem:[#allocation25_spill] sm:$0xff] %v12623_v51 }
 0x2e5   : > { %10151 = vmatmul.mubr.msk.f32.gmra.mrb[64].mxu1 %vm1178_vm5, %v927_v55  ;;  %v12625_v55 = vpop.f32.mrb[37].mxu0 }
 0x2e6   : > { %10153 = vmatprep.mubr.msk.f32.mxu1 %vm1178_vm5, %v928_v57  ;;  %15594 = vst [vmem:[#allocation26_spill] sm:$0xff] %v12625_v55  ;;  %v12630_v60 = vpop.f32.mrb[38].mxu0 }
 0x2e7   : > { %15595 = vst [vmem:[#allocation27_spill] sm:$0xff] %v12630_v60  ;;  %v12635_v61 = vpop.f32.mrb[39].mxu0 }
 0x2e8   : > { %15596 = vst [vmem:[#allocation28_spill] sm:$0xff] %v12635_v61 }
 0x2e9   : > { %10154 = vmatmul.mubr.msk.f32.gmra.mrb[66].mxu1 %vm1178_vm5, %v929_v59 }
 0x340   : > { %v10006_v38 = vpop.f32.mrb[4].mxu1 }
 0x341   : > { %v12614_v40 = vadd.f32 %v10006_v38, %v12274_v63  ;;  %v1670_v42 = vpop.f32.mrb[5].mxu1 }
 0x342   : > { %v12619_v46 = vadd.f32 %v1670_v42, %v12370_v12  ;;  %v12637_v12 = vpop.f32.mrb[40].mxu0 }
 0x343   : > { %15597 = vst [vmem:[#allocation29_spill] sm:$0xff] %v12637_v12  ;;  %v12639_v8 = vpop.f32.mrb[41].mxu0 }
 0x344   : > { %v10009_v54 = vpop.f32.mrb[6].mxu1  ;;  %15598 = vst [vmem:[#allocation30_spill] sm:$0xff] %v12639_v8  ;;  %v12644_v29 = vpop.f32.mrb[42].mxu0 }
 0x345   : > { %v12628_v57 = vadd.f32 %v10009_v54, %v12376_v17  ;;  %v1680_v59 = vpop.f32.mrb[7].mxu1  ;;  %15599 = vst [vmem:[#allocation31_spill] sm:$0xff] %v12644_v29  ;;  %v12649_v31 = vpop.f32.mrb[43].mxu0 }
 0x346   : > { %v12633_v63 = vadd.f32 %v1680_v59, %v12382_v19  ;;  %15600 = vst [vmem:[#allocation32_spill] sm:$0xff] %v12649_v31  ;;  %v12651_v19 = vpop.f32.mrb[44].mxu0 }
 0x347   : > { %15601 = vst [vmem:[#allocation33_spill] sm:$0xff] %v12651_v19  ;;  %v12653_v42 = vpop.f32.mrb[45].mxu0 }
 0x348   : > { %v10012_v7 = vpop.f32.mrb[8].mxu1  ;;  %15602 = vst [vmem:[#allocation34_spill] sm:$0xff] %v12653_v42  ;;  %v12658_v15 = vpop.f32.mrb[46].mxu0 }
 0x349   : > { %v12642_v18 = vadd.f32 %v10012_v7, %v12388_v21  ;;  %v1690_v20 = vpop.f32.mrb[9].mxu1  ;;  %15603 = vst [vmem:[#allocation35_spill] sm:$0xff] %v12658_v15  ;;  %v12663_v7 = vpop.f32.mrb[47].mxu0 }
 0x34a   : > { %v12647_v17 = vadd.f32 %v1690_v20, %v12394_v24  ;;  %15604 = vst [vmem:[#allocation36_spill] sm:$0xff] %v12663_v7  ;;  %v12665_v24 = vpop.f32.mrb[48].mxu0 }
 0x34b   : > { %15605 = vst [vmem:[#allocation37_spill] sm:$0xff] %v12665_v24 }
 0x34c   : > { %v10015_v38 = vpop.f32.mrb[10].mxu1 }
 0x34d   : > { %v12656_v54 = vadd.f32 %v10015_v38, %v12400_v28  ;;  %v1700_v59 = vpop.f32.mrb[11].mxu1  ;;  %v12673_v28 = vpop.f32.mrb[49].mxu0 }
 0x34e   : > { %v12661_v21 = vadd.f32 %v1700_v59, %v12406_v30  ;;  %15606 = vst [vmem:[#allocation38_spill] sm:$0xff] %v12673_v28  ;;  %v12675_v38 = vpop.f32.mrb[50].mxu0 }
 0x34f   : > { %15607 = vst [vmem:[#allocation39_spill] sm:$0xff] %v12675_v38  ;;  %v12683_v33 = vpop.f32.mrb[51].mxu0 }
 0x350   : > { %v10018_v20 = vpop.f32.mrb[12].mxu1  ;;  %15608 = vst [vmem:[#allocation40_spill] sm:$0xff] %v12683_v33 }
 0x351   : > { %v12668_v37 = vadd.f32 %v10018_v20, %v12412_v32  ;;  %v1710_v35 = vpop.f32.mrb[13].mxu1  ;;  %v12685_v32 = vpop.f32.mrb[52].mxu0 }
 0x352   : > { %v12671_v22 = vadd.f32 %v1710_v35, %v12418_v36  ;;  %15609 = vst [vmem:[#allocation41_spill] sm:$0xff] %v12685_v32  ;;  %v12693_v10 = vpop.f32.mrb[53].mxu0 }
 0x353   : > { %15610 = vst [vmem:[#allocation42_spill] sm:$0xff] %v12693_v10 }
 0x354   : > { %v10021_v13 = vpop.f32.mrb[14].mxu1 }
 0x355   : > { %v12678_v30 = vadd.f32 %v10021_v13, %v12424_v39  ;;  %v1720_v59 = vpop.f32.mrb[15].mxu1  ;;  %v12695_v13 = vpop.f32.mrb[54].mxu0 }
 0x356   : > { %v12681_v14 = vadd.f32 %v1720_v59, %v12430_v41  ;;  %15611 = vst [vmem:[#allocation43_spill] sm:$0xff] %v12695_v13  ;;  %v12703_v34 = vpop.f32.mrb[55].mxu0 }
 0x357   : > { %15612 = vst [vmem:[#allocation44_spill] sm:$0xff] %v12703_v34 }
 0x358   : > { %v10024_v20 = vpop.f32.mrb[16].mxu1 }
 0x359   : > { %v12688_v35 = vadd.f32 %v10024_v20, %v12436_v43  ;;  %v1730_v36 = vpop.f32.mrb[17].mxu1  ;;  %v12705_v43 = vpop.f32.mrb[56].mxu0 }
 0x35a   : > { %v12691_v23 = vadd.f32 %v1730_v36, %v12442_v45  ;;  %15613 = vst [vmem:[#allocation45_spill] sm:$0xff] %v12705_v43  ;;  %v12713_v27 = vpop.f32.mrb[57].mxu0 }
 0x35b   : > { %15614 = vst [vmem:[#allocation46_spill] sm:$0xff] %v12713_v27 }
 0x35c   : > { %v10027_v39 = vpop.f32.mrb[18].mxu1 }
 0x35d   : > { %v12698_v41 = vadd.f32 %v10027_v39, %v12448_v47  ;;  %v1740_v59 = vpop.f32.mrb[19].mxu1  ;;  %v12715_v47 = vpop.f32.mrb[58].mxu0 }
 0x35e   : > { %v12701_v52 = vadd.f32 %v1740_v59, %v12453_v49  ;;  %15615 = vst [vmem:[#allocation47_spill] sm:$0xff] %v12715_v47  ;;  %v12723_v43 = vpop.f32.mrb[59].mxu0 }
 0x35f   : > { %15616 = vst [vmem:[#allocation48_spill] sm:$0xff] %v12723_v43 }
 0x360   : > { %v10030_v20 = vpop.f32.mrb[20].mxu1 }
 0x361   : > { %v12708_v45 = vadd.f32 %v10030_v20, %v12456_v50  ;;  %v1750_v36 = vpop.f32.mrb[21].mxu1  ;;  %v12725_v50 = vpop.f32.mrb[60].mxu0 }
 0x362   : > { %v12711_v26 = vadd.f32 %v1750_v36, %v12462_v53  ;;  %15617 = vst [vmem:[#allocation49_spill] sm:$0xff] %v12725_v50  ;;  %v12733_v47 = vpop.f32.mrb[61].mxu0 }
 0x363   : > { %15618 = vst [vmem:[#allocation50_spill] sm:$0xff] %v12733_v47 }
 0x364   : > { %v10033_v39 = vpop.f32.mrb[22].mxu1 }
 0x365   : > { %v12718_v49 = vadd.f32 %v10033_v39, %v12478_v56  ;;  %v1760_v59 = vpop.f32.mrb[23].mxu1  ;;  %v12735_v56 = vpop.f32.mrb[62].mxu0 }
 0x366   : > { %v12721_v34 = vadd.f32 %v1760_v59, %v12486_v58  ;;  %15619 = vst [vmem:[#allocation51_spill] sm:$0xff] %v12735_v56  ;;  %v12743_v50 = vpop.f32.mrb[63].mxu0 }
 0x367   : > { %15620 = vst [vmem:[#allocation52_spill] sm:$0xff] %v12743_v50 }
 0x368   : > { %v10036_v20 = vpop.f32.mrb[24].mxu1 }
 0x369   : > { %v12728_v53 = vadd.f32 %v10036_v20, %v12500_v62  ;;  %v1770_v36 = vpop.f32.mrb[25].mxu1  ;;  %v12745_v62 = vpop.f32.mrb[64].mxu0 }
 0x36a   : > { %v12731_v27 = vadd.f32 %v1770_v36, %v12508_v0  ;;  %15621 = vst [vmem:[#allocation53_spill] sm:$0xff] %v12745_v62  ;;  %v12753_v56 = vpop.f32.mrb[65].mxu0 }
 0x36b   : > { %15622 = vst [vmem:[#allocation54_spill] sm:$0xff] %v12753_v56 }
 0x36c   : > { %v10039_v39 = vpop.f32.mrb[26].mxu1 }
 0x36d   : > { %v12738_v58 = vadd.f32 %v10039_v39, %v12513_v1  ;;  %v1780_v59 = vpop.f32.mrb[27].mxu1 }
 0x36e   : > { %v12741_v43 = vadd.f32 %v1780_v59, %v12517_v2 }
 0x370   : > { %v10042_v20 = vpop.f32.mrb[28].mxu1 }
 0x371   : > { %v12748_v0 = vadd.f32 %v10042_v20, %v12521_v3  ;;  %v1790_v36 = vpop.f32.mrb[29].mxu1 }
 0x372   : > { %v12751_v47 = vadd.f32 %v1790_v36, %v12525_v4 }
 0x374   : > { %v10045_v1 = vpop.f32.mrb[30].mxu1 }
 0x375   : > { %v12756_v39 = vadd.f32 %v10045_v1, %v12529_v5  ;;  %v1800_v2 = vpop.f32.mrb[31].mxu1 }
 0x376   : > { %v12759_v59 = vadd.f32 %v1800_v2, %v12533_v6 }
 0x378   : > { %v10048_v50 = vpop.f32.mrb[32].mxu1 }
 0x379   : > { %v12762_v62 = vadd.f32 %v10048_v50, %v12543_v9  ;;  %v1810_v3 = vpop.f32.mrb[33].mxu1 }
 0x37a   : > { %v12765_v20 = vadd.f32 %v1810_v3, %v12550_v11 }
 0x37c   : > { %v10051_v4 = vpop.f32.mrb[34].mxu1 }
 0x37d   : > { %v12768_v36 = vadd.f32 %v10051_v4, %v12555_v16  ;;  %v1820_v56 = vpop.f32.mrb[35].mxu1 }
 0x37e   : > { %v12771_v5 = vadd.f32 %v1820_v56, %v12567_v25 }
 0x380   : > { %v10110_v1 = vpop.f32.mrb[36].mxu1 }
 0x381   : > { %v2504_v6 = vmul.f32 %v10110_v1, %v12614_v40  ;;  %v2344_v2 = vpop.f32.mrb[37].mxu1 }
 0x382   : > { %v2503_v9 = vmul.f32 %v2344_v2, %v12619_v46 }
 0x384   : > { %v10113_v50 = vpop.f32.mrb[38].mxu1  ;;  %10172 = vmatprep.mubr.msk.f32.mxu0 %vm2535_vm6, %v2503_v9 }
 0x385   : > { %v2506_v11 = vmul.f32 %v10113_v50, %v12628_v57  ;;  %v2354_v3 = vpop.f32.mrb[39].mxu1  ;;  %10173 = vmatmul.mubr.msk.f32.vlgmr.msra.gmra.mrb[66].mxu0 %vm2535_vm6, %v2504_v6 }
 0x386   : > { %v2505_v16 = vmul.f32 %v2354_v3, %v12633_v63 }
 0x388   : > { %v10116_v4 = vpop.f32.mrb[40].mxu1  ;;  %10175 = vmatprep.mubr.msk.f32.mxu0 %vm2535_vm6, %v2505_v16 }
 0x389   : > { %v2508_v25 = vmul.f32 %v10116_v4, %v12642_v18  ;;  %v2364_v40 = vpop.f32.mrb[41].mxu1  ;;  %10176 = vmatmul.mubr.msk.f32.gmra.mrb[68].mxu0 %vm2535_vm6, %v2506_v11 }
 0x38a   : > { %v2507_v46 = vmul.f32 %v2364_v40, %v12647_v17 }
 0x38c   : > { %v10119_v56 = vpop.f32.mrb[42].mxu1  ;;  %10178 = vmatprep.mubr.msk.f32.mxu0 %vm2535_vm6, %v2507_v46 }
 0x38d   : > { %v2510_v57 = vmul.f32 %v10119_v56, %v12656_v54  ;;  %v2374_v1 = vpop.f32.mrb[43].mxu1  ;;  %10179 = vmatmul.mubr.msk.f32.gmra.mrb[70].mxu0 %vm2535_vm6, %v2508_v25 }
 0x38e   : > { %v2509_v63 = vmul.f32 %v2374_v1, %v12661_v21 }
 0x390   : > { %v10122_v6 = vpop.f32.mrb[44].mxu1  ;;  %10181 = vmatprep.mubr.msk.f32.mxu0 %vm2535_vm6, %v2509_v63 }
 0x391   : > { %v2512_v18 = vmul.f32 %v10122_v6, %v12668_v37  ;;  %v2384_v2 = vpop.f32.mrb[45].mxu1  ;;  %10182 = vmatmul.mubr.msk.f32.gmra.mrb[72].mxu0 %vm2535_vm6, %v2510_v57 }
 0x392   : > { %v2511_v17 = vmul.f32 %v2384_v2, %v12671_v22 }
 0x394   : > { %v10125_v9 = vpop.f32.mrb[46].mxu1  ;;  %10184 = vmatprep.mubr.msk.f32.mxu0 %vm2535_vm6, %v2511_v17 }
 0x395   : > { %v2514_v54 = vmul.f32 %v10125_v9, %v12678_v30  ;;  %v2394_v50 = vpop.f32.mrb[47].mxu1  ;;  %10185 = vmatmul.mubr.msk.f32.gmra.mrb[74].mxu0 %vm2535_vm6, %v2512_v18 }
 0x396   : > { %v2513_v21 = vmul.f32 %v2394_v50, %v12681_v14 }
 0x398   : > { %v10128_v11 = vpop.f32.mrb[48].mxu1  ;;  %10187 = vmatprep.mubr.msk.f32.mxu0 %vm2535_vm6, %v2513_v21 }
 0x399   : > { %v2516_v37 = vmul.f32 %v10128_v11, %v12688_v35  ;;  %v2404_v3 = vpop.f32.mrb[49].mxu1  ;;  %10188 = vmatmul.mubr.msk.f32.gmra.mrb[76].mxu0 %vm2535_vm6, %v2514_v54 }
 0x39a   : > { %v2515_v22 = vmul.f32 %v2404_v3, %v12691_v23 }
 0x39c   : > { %v10131_v16 = vpop.f32.mrb[50].mxu1  ;;  %10190 = vmatprep.mubr.msk.f32.mxu0 %vm2535_vm6, %v2515_v22 }
 0x39d   : > { %v2518_v30 = vmul.f32 %v10131_v16, %v12698_v41  ;;  %v2414_v4 = vpop.f32.mrb[51].mxu1  ;;  %10191 = vmatmul.mubr.msk.f32.gmra.mrb[78].mxu0 %vm2535_vm6, %v2516_v37 }
 0x39e   : > { %v2517_v14 = vmul.f32 %v2414_v4, %v12701_v52 }
 0x3a0   : > { %v10134_v25 = vpop.f32.mrb[52].mxu1  ;;  %10193 = vmatprep.mubr.msk.f32.mxu0 %vm2535_vm6, %v2517_v14 }
 0x3a1   : > { %v2520_v35 = vmul.f32 %v10134_v25, %v12708_v45  ;;  %v2424_v40 = vpop.f32.mrb[53].mxu1  ;;  %10194 = vmatmul.mubr.msk.f32.gmra.mrb[80].mxu0 %vm2535_vm6, %v2518_v30 }
 0x3a2   : > { %v2519_v23 = vmul.f32 %v2424_v40, %v12711_v26 }
 0x3a4   : > { %v10137_v46 = vpop.f32.mrb[54].mxu1  ;;  %10196 = vmatprep.mubr.msk.f32.mxu0 %vm2535_vm6, %v2519_v23 }
 0x3a5   : > { %v2522_v41 = vmul.f32 %v10137_v46, %v12718_v49  ;;  %v2434_v56 = vpop.f32.mrb[55].mxu1  ;;  %10197 = vmatmul.mubr.msk.f32.gmra.mrb[82].mxu0 %vm2535_vm6, %v2520_v35 }
 0x3a6   : > { %v2521_v52 = vmul.f32 %v2434_v56, %v12721_v34 }
 0x3a8   : > { %v10140_v57 = vpop.f32.mrb[56].mxu1  ;;  %10199 = vmatprep.mubr.msk.f32.mxu0 %vm2535_vm6, %v2521_v52 }
 0x3a9   : > { %v2524_v45 = vmul.f32 %v10140_v57, %v12728_v53  ;;  %v2444_v1 = vpop.f32.mrb[57].mxu1  ;;  %10200 = vmatmul.mubr.msk.f32.gmra.mrb[84].mxu0 %vm2535_vm6, %v2522_v41 }
 0x3aa   : > { %v2523_v26 = vmul.f32 %v2444_v1, %v12731_v27 }
 0x3ac   : > { %v10143_v63 = vpop.f32.mrb[58].mxu1  ;;  %10202 = vmatprep.mubr.msk.f32.mxu0 %vm2535_vm6, %v2523_v26 }
 0x3ad   : > { %v2526_v49 = vmul.f32 %v10143_v63, %v12738_v58  ;;  %v2454_v6 = vpop.f32.mrb[59].mxu1  ;;  %10203 = vmatmul.mubr.msk.f32.gmra.mrb[86].mxu0 %vm2535_vm6, %v2524_v45 }
 0x3ae   : > { %v2525_v34 = vmul.f32 %v2454_v6, %v12741_v43 }
 0x3b0   : > { %v10146_v18 = vpop.f32.mrb[60].mxu1  ;;  %10205 = vmatprep.mubr.msk.f32.mxu0 %vm2535_vm6, %v2525_v34 }
 0x3b1   : > { %v2528_v53 = vmul.f32 %v10146_v18, %v12748_v0  ;;  %v2464_v2 = vpop.f32.mrb[61].mxu1  ;;  %10206 = vmatmul.mubr.msk.f32.gmra.mrb[88].mxu0 %vm2535_vm6, %v2526_v49 }
 0x3b2   : > { %v2527_v27 = vmul.f32 %v2464_v2, %v12751_v47 }
 0x3b4   : > { %v10149_v17 = vpop.f32.mrb[62].mxu1  ;;  %10208 = vmatprep.mubr.msk.f32.mxu0 %vm2535_vm6, %v2527_v27 }
 0x3b5   : > { %v2530_v58 = vmul.f32 %v10149_v17, %v12756_v39  ;;  %v2474_v9 = vpop.f32.mrb[63].mxu1  ;;  %10209 = vmatmul.mubr.msk.f32.gmra.mrb[90].mxu0 %vm2535_vm6, %v2528_v53 }
 0x3b6   : > { %v2529_v43 = vmul.f32 %v2474_v9, %v12759_v59 }
 0x3b8   : > { %v10152_v54 = vpop.f32.mrb[64].mxu1  ;;  %10211 = vmatprep.mubr.msk.f32.mxu0 %vm2535_vm6, %v2529_v43 }
 0x3b9   : > { %v2532_v0 = vmul.f32 %v10152_v54, %v12762_v62  ;;  %v2484_v50 = vpop.f32.mrb[65].mxu1  ;;  %10212 = vmatmul.mubr.msk.f32.gmra.mrb[92].mxu0 %vm2535_vm6, %v2530_v58  ;;  %v974_v62 = vld [vmem:[%s15483_s25] sm:$0xf] }
 0x3ba   : > { %v2531_v47 = vmul.f32 %v2484_v50, %v12765_v20  ;;  %10220 = vmatprep.subr.msk.mxu1 %vm993_vm0, %v974_v62 }
 0x3bb   : > { %10221 = vmatpush3.msk.msra.mxu1 %vm993_vm0, %v974_v62 }
 0x3bc   : > { %v10155_v21 = vpop.f32.mrb[66].mxu1  ;;  %10214 = vmatprep.mubr.msk.f32.mxu0 %vm2535_vm6, %v2531_v47 }
 0x3bd   : > { %v2534_v39 = vmul.f32 %v10155_v21, %v12768_v36  ;;  %v2494_v11 = vpop.f32.mrb[67].mxu1  ;;  %10215 = vmatmul.mubr.msk.f32.gmra.mrb[94].mxu0 %vm2535_vm6, %v2532_v0 }
 0x3be   : > { %v2533_v59 = vmul.f32 %v2494_v11, %v12771_v5 }
 0x3c0   : > { %10217 = vmatprep.mubr.msk.f32.mxu0 %vm2535_vm6, %v2533_v59 }
 0x3c1   : > { %10218 = vmatmul.mubr.msk.f32.gmra.mrb[96].mxu0 %vm2535_vm6, %v2534_v39 }
 0x458   : > { %v10174_v20 = vpop.f32.mrb[66].mxu0 }
 0x459   : > { %v2858_v36 = vmul.f32 0.25, %v10174_v20  ;;  %v2698_v37 = vpop.f32.mrb[67].mxu0 }
 0x45a   : > { %v2857_v3 = vmul.f32 0.25, %v2698_v37 }
 0x45b   : > { %v2891_v22 = vsel %vm2889_vm7, %v2858_v36, -inf }
 0x45c   : > { %v2890_v5 = vsel %vm2889_vm7, %v2857_v3, -inf  ;;  %v10177_v16 = vpop.f32.mrb[68].mxu0 }
 0x45d   : > { %v2892_v30 = vmax.f32 %v2890_v5, %v2891_v22  ;;  %v12844_v4 = vmul.f32 0.25, %v10177_v16  ;;  %v2708_v14 = vpop.f32.mrb[69].mxu0 }
 0x45e   : > { %v2859_v25 = vmul.f32 0.25, %v2708_v14 }
 0x45f   : > { %v2893_v35 = vrot.slane %v2892_v30, 4  ;;  %v2900_v40 = vsel %vm2889_vm7, %v12844_v4, -inf }
 0x460   : > { %v2899_v23 = vsel %vm2889_vm7, %v2859_v25, -inf  ;;  %v10180_v46 = vpop.f32.mrb[70].mxu0 }
 0x461   : > { %v2894_v41 = vmax.f32 %v2892_v30, %v2893_v35  ;;  %v2901_v56 = vmax.f32 %v2899_v23, %v2900_v40  ;;  %v12849_v52 = vmul.f32 0.25, %v10180_v46  ;;  %v2718_v57 = vpop.f32.mrb[71].mxu0 }
 0x462   : > { %v12851_v45 = vmul.f32 0.25, %v2718_v57 }
 0x463   : > { %v2895_v1 = vrot.slane %v2894_v41, 2  ;;  %v2902_v26 = vrot.slane %v2901_v56, 4  ;;  %v2909_v63 = vsel %vm2889_vm7, %v12849_v52, -inf }
 0x464   : > { %v2908_v49 = vsel %vm2889_vm7, %v12851_v45, -inf  ;;  %v10183_v6 = vpop.f32.mrb[72].mxu0 }
 0x465   : > { %v2896_v34 = vmax.f32 %v2894_v41, %v2895_v1  ;;  %v2903_v18 = vmax.f32 %v2901_v56, %v2902_v26  ;;  %v2910_v53 = vmax.f32 %v2908_v49, %v2909_v63  ;;  %v12857_v2 = vmul.f32 0.25, %v10183_v6  ;;  %v2728_v27 = vpop.f32.mrb[73].mxu0 }
 0x466   : > { %v12859_v17 = vmul.f32 0.25, %v2728_v27 }
 0x467   : > { %v2897_v58 = vrot.slane %v2896_v34, 1  ;;  %v2904_v9 = vrot.slane %v2903_v18, 2  ;;  %v2911_v43 = vrot.slane %v2910_v53, 4  ;;  %v2918_v54 = vsel %vm2889_vm7, %v12857_v2, -inf }
 0x468   : > { %v2917_v0 = vsel %vm2889_vm7, %v12859_v17, -inf  ;;  %v10186_v50 = vpop.f32.mrb[74].mxu0 }
 0x469   : > { %v2898_v47 = vmax.f32 %v2896_v34, %v2897_v58  ;;  %v2905_v21 = vmax.f32 %v2903_v18, %v2904_v9  ;;  %v2912_v39 = vmax.f32 %v2910_v53, %v2911_v43  ;;  %v2919_v11 = vmax.f32 %v2917_v0, %v2918_v54  ;;  %v2738_v59 = vpop.f32.mrb[75].mxu0 }
 0x46a   : > { %v12865_v62 = vmul.f32 0.25, %v10186_v50  ;;  %v12867_v20 = vmul.f32 0.25, %v2738_v59 }
 0x46b   : > { %v3034_v37 = vsub.f32 %v2857_v3, %v2898_v47  ;;  %v3035_v22 = vsub.f32 %v2858_v36, %v2898_v47  ;;  %v2906_v5 = vrot.slane %v2905_v21, 1  ;;  %v2913_v16 = vrot.slane %v2912_v39, 2 }
 0x46c   : > { %v2920_v30 = vrot.slane %v2919_v11, 4  ;;  %v2927_v14 = vsel %vm2889_vm7, %v12865_v62, -inf  ;;  %v2926_v35 = vsel %vm2889_vm7, %v12867_v20, -inf  ;;  %v10189_v40 = vpop.f32.mrb[76].mxu0 }
 0x46d   : > { %v3066_v23 = vmul.f32 1.442695, %v3034_v37  ;;  %v3068_v46 = vmul.f32 1.442695, %v3035_v22  ;;  %v2907_v41 = vmax.f32 %v2905_v21, %v2906_v5  ;;  %v2914_v56 = vmax.f32 %v2912_v39, %v2913_v16  ;;  %v2748_v57 = vpop.f32.mrb[77].mxu0 }
 0x46e   : > { %v2921_v1 = vmax.f32 %v2919_v11, %v2920_v30  ;;  %v2928_v26 = vmax.f32 %v2926_v35, %v2927_v14  ;;  %v12873_v63 = vmul.f32 0.25, %v10189_v40  ;;  %v12875_v36 = vmul.f32 0.25, %v2748_v57 }
 0x46f   : > { %11359 = vpow2.f32 %v3066_v23  ;;  %v3036_v3 = vsub.f32 %v2859_v25, %v2907_v41  ;;  %v3037_v49 = vsub.f32 %v12844_v4, %v2907_v41  ;;  %v2915_v6 = vrot.slane %v2914_v56, 1 }
 0x470   : > { %11361 = vpow2.f32 %v3068_v46  ;;  %v2922_v34 = vrot.slane %v2921_v1, 2  ;;  %v2929_v18 = vrot.slane %v2928_v26, 4  ;;  %v2936_v53 = vsel %vm2889_vm7, %v12873_v63, -inf  ;;  %v10192_v27 = vpop.f32.mrb[78].mxu0 }
 0x471   : > { %v3070_v58 = vmul.f32 1.442695, %v3036_v3  ;;  %v3072_v9 = vmul.f32 1.442695, %v3037_v49  ;;  %v2916_v43 = vmax.f32 %v2914_v56, %v2915_v6  ;;  %v2935_v54 = vsel %vm2889_vm7, %v12875_v36, -inf  ;;  %v2758_v0 = vpop.f32.mrb[79].mxu0 }
 0x472   : > { %v2923_v50 = vmax.f32 %v2921_v1, %v2922_v34  ;;  %v2930_v47 = vmax.f32 %v2928_v26, %v2929_v18  ;;  %v2937_v25 = vmax.f32 %v2935_v54, %v2936_v53  ;;  %v12882_v21 = vmul.f32 0.25, %v10192_v27 }
 0x473   : > { %11363 = vpow2.f32 %v3070_v58  ;;  %v3038_v4 = vsub.f32 %v12851_v45, %v2916_v43  ;;  %v3039_v39 = vsub.f32 %v12849_v52, %v2916_v43  ;;  %v12886_v11 = vmul.f32 0.25, %v2758_v0 }
 0x474   : > { %11365 = vpow2.f32 %v3072_v9  ;;  %v2924_v59 = vrot.slane %v2923_v50, 1  ;;  %v2931_v37 = vrot.slane %v2930_v47, 2  ;;  %v2938_v22 = vrot.slane %v2937_v25, 4  ;;  %v10195_v5 = vpop.f32.mrb[80].mxu0 }
 0x475   : > { %v3074_v16 = vmul.f32 1.442695, %v3038_v4  ;;  %v3076_v30 = vmul.f32 1.442695, %v3039_v39  ;;  %v2945_v14 = vsel %vm2889_vm7, %v12882_v21, -inf  ;;  %v2944_v35 = vsel %vm2889_vm7, %v12886_v11, -inf }
 0x476   : > { %v2925_v40 = vmax.f32 %v2923_v50, %v2924_v59  ;;  %v2932_v23 = vmax.f32 %v2930_v47, %v2931_v37  ;;  %v2939_v45 = vmax.f32 %v2937_v25, %v2938_v22  ;;  %v2946_v46 = vmax.f32 %v2944_v35, %v2945_v14  ;;  %v2768_v52 = vpop.f32.mrb[81].mxu0 }
 0x477   : > { %11367 = vpow2.f32 %v3074_v16  ;;  %v12892_v41 = vmul.f32 0.25, %v10195_v5  ;;  %v12894_v56 = vmul.f32 0.25, %v2768_v52 }
 0x478   : > { %11369 = vpow2.f32 %v3076_v30  ;;  %v3040_v57 = vsub.f32 %v12859_v17, %v2925_v40  ;;  %v3041_v1 = vsub.f32 %v12857_v2, %v2925_v40  ;;  %v2933_v26 = vrot.slane %v2932_v23, 1  ;;  %v10198_v3 = vpop.f32.mrb[82].mxu0 }
 0x479   : > { %v12898_v49 = vpop.eup %11359  ;;  %v2940_v6 = vrot.slane %v2939_v45, 2  ;;  %v2947_v34 = vrot.slane %v2946_v46, 4  ;;  %v2954_v18 = vsel %vm2889_vm7, %v12892_v41, -inf  ;;  %v2953_v53 = vsel %vm2889_vm7, %v12894_v56, -inf  ;;  %v12904_v27 = vpop.f32.mrb[83].mxu0 }
 0x47a   : > { %v12906_v58 = vpop.eup %11361  ;;  %v3130_v17 = vsel %vm2889_vm7, %v12898_v49, 0.0  ;;  %v3078_v2 = vmul.f32 1.442695, %v3040_v57  ;;  %v3080_v9 = vmul.f32 1.442695, %v3041_v1  ;;  %v2934_v43 = vmax.f32 %v2932_v23, %v2933_v26 }
 0x47b   : > { %v3131_v54 = vsel %vm2889_vm7, %v12906_v58, 0.0  ;;  %v2941_v0 = vmax.f32 %v2939_v45, %v2940_v6  ;;  %v2948_v50 = vmax.f32 %v2946_v46, %v2947_v34  ;;  %v2955_v47 = vmax.f32 %v2953_v53, %v2954_v18 }
 0x47c   : > { %v3132_v25 = vadd.f32 %v3131_v54, %v3130_v17  ;;  %11371 = vpow2.f32 %v3078_v2  ;;  %v3042_v4 = vsub.f32 %v12867_v20, %v2934_v43  ;;  %v3043_v39 = vsub.f32 %v12865_v62, %v2934_v43  ;;  %v12914_v59 = vpop.f32.mrb[84].mxu0 }
 0x47d   : > { %v12916_v37 = vpop.eup %11363  ;;  %11373 = vpow2.f32 %v3080_v9  ;;  %v2942_v22 = vrot.slane %v2941_v0, 1  ;;  %v2949_v5 = vrot.slane %v2948_v50, 2  ;;  %v2956_v16 = vrot.slane %v2955_v47, 4  ;;  %v12918_v30 = vpop.f32.mrb[85].mxu0 }
 0x47e   : > { %v12920_v14 = vpop.eup %11365  ;;  %v3133_v35 = vrot.slane %v3132_v25, 4  ;;  %v3139_v40 = vsel %vm2889_vm7, %v12916_v37, 0.0  ;;  %v3082_v23 = vmul.f32 1.442695, %v3042_v4  ;;  %v3084_v20 = vmul.f32 1.442695, %v3043_v39 }
 0x47f   : > { %v3140_v62 = vsel %vm2889_vm7, %v12920_v14, 0.0  ;;  %v2943_v45 = vmax.f32 %v2941_v0, %v2942_v22  ;;  %v2950_v46 = vmax.f32 %v2948_v50, %v2949_v5  ;;  %v2957_v52 = vmax.f32 %v2955_v47, %v2956_v16 }
 0x480   : > { %v3134_v57 = vadd.f32 %v3133_v35, %v3132_v25  ;;  %v3141_v1 = vadd.f32 %v3140_v62, %v3139_v40  ;;  %11375 = vpow2.f32 %v3082_v23  ;;  %v12926_v26 = vmul.f32 0.25, %v10198_v3  ;;  %v12928_v6 = vpop.f32.mrb[86].mxu0 }
 0x481   : > { %v12930_v34 = vpop.eup %11367  ;;  %11377 = vpow2.f32 %v3084_v20  ;;  %v3044_v18 = vsub.f32 %v12875_v36, %v2943_v45  ;;  %v3045_v53 = vsub.f32 %v12873_v63, %v2943_v45  ;;  %v2951_v17 = vrot.slane %v2950_v46, 1  ;;  %v2798_v2 = vpop.f32.mrb[87].mxu0 }
 0x482   : > { %v12934_v9 = vpop.eup %11369  ;;  %v3135_v43 = vrot.slane %v3134_v57, 2  ;;  %v3142_v54 = vrot.slane %v3141_v1, 4  ;;  %v3148_v0 = vsel %vm2889_vm7, %v12930_v34, 0.0  ;;  %v2958_v3 = vrot.slane %v2957_v52, 2 }
 0x483   : > { %v3149_v50 = vsel %vm2889_vm7, %v12934_v9, 0.0  ;;  %v3086_v47 = vmul.f32 1.442695, %v3044_v18  ;;  %v3088_v25 = vmul.f32 1.442695, %v3045_v53  ;;  %v2952_v4 = vmax.f32 %v2950_v46, %v2951_v17 }
 0x484   : > { %v12940_v39 = vadd.f32 %v3135_v43, %v3134_v57  ;;  %v3143_v36 = vadd.f32 %v3142_v54, %v3141_v1  ;;  %v3150_v63 = vadd.f32 %v3149_v50, %v3148_v0  ;;  %v2959_v22 = vmax.f32 %v2957_v52, %v2958_v3  ;;  %v10207_v5 = vpop.f32.mrb[88].mxu0 }
 0x485   : > { %11379 = vpow2.f32 %v3086_v47  ;;  %v3046_v16 = vsub.f32 %v12886_v11, %v2952_v4  ;;  %v3047_v35 = vsub.f32 %v12882_v21, %v2952_v4  ;;  %v2963_v40 = vsel %vm2889_vm7, %v12926_v26, -inf  ;;  %v12946_v23 = vpop.f32.mrb[89].mxu0 }
 0x486   : > { %v12948_v20 = vpop.eup %11371  ;;  %v3144_v62 = vrot.slane %v3143_v36, 2  ;;  %v3151_v45 = vrot.slane %v3150_v63, 4  ;;  %11381 = vpow2.f32 %v3088_v25  ;;  %v2960_v46 = vrot.slane %v2959_v22, 1 }
 0x487   : > { %v12950_v57 = vpop.eup %11373  ;;  %v3157_v52 = vsel %vm2889_vm7, %v12948_v20, 0.0  ;;  %v3090_v1 = vmul.f32 1.442695, %v3046_v16  ;;  %v3092_v11 = vmul.f32 1.442695, %v3047_v35  ;;  %v12955_v21 = vmul.f32 0.25, %v12904_v27 }
 0x488   : > { %v12957_v18 = vadd.f32 %v3144_v62, %v3143_v36  ;;  %v3152_v53 = vadd.f32 %v3151_v45, %v3150_v63  ;;  %v3158_v17 = vsel %vm2889_vm7, %v12950_v57, 0.0  ;;  %v2961_v43 = vmax.f32 %v2959_v22, %v2960_v46  ;;  %v10210_v54 = vpop.f32.mrb[90].mxu0 }
 0x489   : > { %v3159_v0 = vadd.f32 %v3158_v17, %v3157_v52  ;;  %11383 = vpow2.f32 %v3090_v1  ;;  %v2962_v3 = vsel %vm2889_vm7, %v12955_v21, -inf  ;;  %v12964_v50 = vmul.f32 0.25, %v12914_v59  ;;  %v12966_v47 = vpop.f32.mrb[91].mxu0 }
 0x48a   : > { %v12968_v27 = vpop.eup %11375  ;;  %v3153_v25 = vrot.slane %v3152_v53, 2  ;;  %11385 = vpow2.f32 %v3092_v11  ;;  %v3048_v4 = vsub.f32 %v12894_v56, %v2961_v43  ;;  %v3049_v36 = vsub.f32 %v12892_v41, %v2961_v43 }
 0x48b   : > { %v12972_v63 = vpop.eup %11377  ;;  %v3160_v22 = vrot.slane %v3159_v0, 4  ;;  %v3166_v16 = vsel %vm2889_vm7, %v12968_v27, 0.0  ;;  %v2964_v35 = vmax.f32 %v2962_v3, %v2963_v40  ;;  %v2972_v59 = vsel %vm2889_vm7, %v12964_v50, -inf }
 0x48c   : > { %v12978_v62 = vadd.f32 %v3153_v25, %v3152_v53  ;;  %v3167_v45 = vsel %vm2889_vm7, %v12972_v63, 0.0  ;;  %v3094_v46 = vmul.f32 1.442695, %v3048_v4  ;;  %v3096_v52 = vmul.f32 1.442695, %v3049_v36  ;;  %v12982_v56 = vpop.f32.mrb[92].mxu0 }
 0x48d   : > { %v3161_v41 = vadd.f32 %v3160_v22, %v3159_v0  ;;  %v3168_v1 = vadd.f32 %v3167_v45, %v3166_v16  ;;  %v2965_v11 = vrot.slane %v2964_v35, 4  ;;  %v12985_v17 = vmul.f32 0.25, %v12918_v30  ;;  %v12987_v43 = vpop.f32.mrb[93].mxu0 }
 0x48e   : > { %11387 = vpow2.f32 %v3094_v46  ;;  %v12990_v40 = vmul.f32 0.25, %v12928_v6  ;;  %v12992_v53 = vmul.f32 0.25, %v2798_v2  ;;  %v12994_v3 = vmul.f32 0.25, %v10207_v5 }
 0x48f   : > { %v12996_v25 = vpop.eup %11379  ;;  %v3162_v4 = vrot.slane %v3161_v41, 2  ;;  %v3169_v36 = vrot.slane %v3168_v1, 4  ;;  %11389 = vpow2.f32 %v3096_v52  ;;  %v2966_v0 = vmax.f32 %v2964_v35, %v2965_v11 }
 0x490   : > { %v12998_v22 = vpop.eup %11381  ;;  %v3175_v30 = vsel %vm2889_vm7, %v12996_v25, 0.0  ;;  %v2971_v16 = vsel %vm2889_vm7, %v12985_v17, -inf  ;;  %v2981_v6 = vsel %vm2889_vm7, %v12990_v40, -inf  ;;  %v2980_v2 = vsel %vm2889_vm7, %v12992_v53, -inf  ;;  %v13008_v5 = vpop.f32.mrb[94].mxu0 }
 0x491   : > { %v13010_v45 = vadd.f32 %v3162_v4, %v3161_v41  ;;  %v3170_v46 = vadd.f32 %v3169_v36, %v3168_v1  ;;  %v3176_v35 = vsel %vm2889_vm7, %v12998_v22, 0.0  ;;  %v2967_v52 = vrot.slane %v2966_v0, 2  ;;  %v13014_v11 = vpop.f32.mrb[95].mxu0 }
 0x492   : > { %v3177_v13 = vadd.f32 %v3176_v35, %v3175_v30  ;;  %v2973_v10 = vmax.f32 %v2971_v16, %v2972_v59  ;;  %v2982_v32 = vmax.f32 %v2980_v2, %v2981_v6  ;;  %v2990_v33 = vsel %vm2889_vm7, %v12994_v3, -inf }
 0x493   : > { %v13018_v38 = vpop.eup %11383  ;;  %v3171_v28 = vrot.slane %v3170_v46, 2  ;;  %v2968_v24 = vmax.f32 %v2966_v0, %v2967_v52  ;;  %v13021_v41 = vmul.f32 0.25, %v12946_v23  ;;  %v13023_v1 = vmul.f32 0.25, %v10210_v54 }
 0x494   : > { %v13025_v4 = vpop.eup %11385  ;;  %v3178_v36 = vrot.slane %v3177_v13, 4  ;;  %v3184_v30 = vsel %vm2889_vm7, %v13018_v38, 0.0  ;;  %v2974_v59 = vrot.slane %v2973_v10, 4  ;;  %v2983_v16 = vrot.slane %v2982_v32, 4  ;;  %v13029_v6 = vpop.f32.mrb[96].mxu0 }
 0x495   : > { %v13031_v2 = vadd.f32 %v3171_v28, %v3170_v46  ;;  %v3185_v0 = vsel %vm2889_vm7, %v13025_v4, 0.0  ;;  %v2969_v35 = vrot.slane %v2968_v24, 1  ;;  %v2989_v23 = vsel %vm2889_vm7, %v13021_v41, -inf  ;;  %v13037_v54 = vpop.f32.mrb[97].mxu0 }
 0x496   : > { %v3179_v52 = vadd.f32 %v3178_v36, %v3177_v13  ;;  %v3186_v7 = vadd.f32 %v3185_v0, %v3184_v30  ;;  %v2975_v15 = vmax.f32 %v2973_v10, %v2974_v59  ;;  %v2984_v42 = vmax.f32 %v2982_v32, %v2983_v16 }
 0x497   : > { %v2970_v19 = vmax.f32 %v2968_v24, %v2969_v35  ;;  %v2991_v31 = vmax.f32 %v2989_v23, %v2990_v33  ;;  %v2999_v29 = vsel %vm2889_vm7, %v13023_v1, -inf  ;;  %v13042_v28 = vmul.f32 0.25, %v12966_v47 }
 0x498   : > { %v13044_v46 = vpop.eup %11387  ;;  %v3180_v8 = vrot.slane %v3179_v52, 2  ;;  %v3187_v12 = vrot.slane %v3186_v7, 4  ;;  %v2976_v61 = vrot.slane %v2975_v15, 2  ;;  %v2985_v60 = vrot.slane %v2984_v42, 2 }
 0x499   : > { %v13046_v55 = vpop.eup %11389  ;;  %v3193_v10 = vsel %vm2889_vm7, %v13044_v46, 0.0  ;;  %v3050_v24 = vsub.f32 %v12955_v21, %v2970_v19  ;;  %v3051_v33 = vsub.f32 %v12926_v26, %v2970_v19  ;;  %v2992_v32 = vrot.slane %v2991_v31, 4 }
 0x49a   : > { %v13052_v13 = vadd.f32 %v3180_v8, %v3179_v52  ;;  %v3188_v47 = vadd.f32 %v3187_v12, %v3186_v7  ;;  %v3194_v36 = vsel %vm2889_vm7, %v13046_v55, 0.0  ;;  %v2977_v30 = vmax.f32 %v2975_v15, %v2976_v61 }
 0x49b   : > { %v3195_v59 = vadd.f32 %v3194_v36, %v3193_v10  ;;  %v3098_v16 = vmul.f32 1.442695, %v3050_v24  ;;  %v3100_v0 = vmul.f32 1.442695, %v3051_v33  ;;  %v2986_v35 = vmax.f32 %v2984_v42, %v2985_v60 }
 0x49c   : > { %v3189_v23 = vrot.slane %v3188_v47, 2  ;;  %v2978_v51 = vrot.slane %v2977_v30, 1  ;;  %v2993_v48 = vmax.f32 %v2991_v31, %v2992_v32  ;;  %v2998_v21 = vsel %vm2889_vm7, %v13042_v28, -inf }
 0x49d   : > { %v3196_v44 = vrot.slane %v3195_v59, 4  ;;  %11391 = vpow2.f32 %v3098_v16  ;;  %v2987_v19 = vrot.slane %v2986_v35, 1  ;;  %v3000_v8 = vmax.f32 %v2998_v21, %v2999_v29 }
 0x49e   : > { %v13058_v26 = vadd.f32 %v3189_v23, %v3188_v47  ;;  %11393 = vpow2.f32 %v3100_v0  ;;  %v2979_v12 = vmax.f32 %v2977_v30, %v2978_v51  ;;  %v2994_v7 = vrot.slane %v2993_v48, 2 }
 0x49f   : > { %v3197_v15 = vadd.f32 %v3196_v44, %v3195_v59  ;;  %v2988_v61 = vmax.f32 %v2986_v35, %v2987_v19  ;;  %v3001_v52 = vrot.slane %v3000_v8, 4  ;;  %v13061_v60 = vmul.f32 0.25, %v12982_v56 }
 0x4a0   : > { %v3052_v31 = vsub.f32 %v12985_v17, %v2979_v12  ;;  %v3053_v42 = vsub.f32 %v12964_v50, %v2979_v12  ;;  %v2995_v10 = vmax.f32 %v2993_v48, %v2994_v7  ;;  %v13066_v24 = vmul.f32 0.25, %v12987_v43 }
 0x4a1   : > { %v3198_v29 = vrot.slane %v3197_v15, 2  ;;  %v3054_v33 = vsub.f32 %v12992_v53, %v2988_v61  ;;  %v3055_v51 = vsub.f32 %v12990_v40, %v2988_v61  ;;  %v3002_v32 = vmax.f32 %v3000_v8, %v3001_v52 }
 0x4a2   : > { %v3102_v44 = vmul.f32 1.442695, %v3052_v31  ;;  %v3104_v47 = vmul.f32 1.442695, %v3053_v42  ;;  %v2996_v36 = vrot.slane %v2995_v10, 1  ;;  %v3008_v56 = vsel %vm2889_vm7, %v13061_v60, -inf }
 0x4a3   : > { %v13072_v30 = vadd.f32 %v3198_v29, %v3197_v15  ;;  %v3106_v17 = vmul.f32 1.442695, %v3054_v33  ;;  %v3108_v50 = vmul.f32 1.442695, %v3055_v51  ;;  %v3003_v48 = vrot.slane %v3002_v32, 2 }
 0x4a4   : > { %11395 = vpow2.f32 %v3102_v44  ;;  %v2997_v43 = vmax.f32 %v2995_v10, %v2996_v36  ;;  %v3007_v59 = vsel %vm2889_vm7, %v13066_v24, -inf  ;;  %v13077_v53 = vmul.f32 0.25, %v13008_v5 }
 0x4a5   : > { %11397 = vpow2.f32 %v3104_v47  ;;  %v3004_v40 = vmax.f32 %v3002_v32, %v3003_v48  ;;  %v3009_v16 = vmax.f32 %v3007_v59, %v3008_v56  ;;  %v13080_v0 = vmul.f32 0.25, %v13014_v11 }
 0x4a6   : > { %11399 = vpow2.f32 %v3106_v17  ;;  %v3056_v35 = vsub.f32 %v13021_v41, %v2997_v43  ;;  %v3057_v23 = vsub.f32 %v12994_v3, %v2997_v43  ;;  %v3017_v21 = vsel %vm2889_vm7, %v13077_v53, -inf }
 0x4a7   : > { %v13086_v19 = vpop.eup %11391  ;;  %11401 = vpow2.f32 %v3108_v50  ;;  %v3005_v8 = vrot.slane %v3004_v40, 1  ;;  %v3010_v5 = vrot.slane %v3009_v16, 4  ;;  %v3016_v12 = vsel %vm2889_vm7, %v13080_v0, -inf }
 0x4a8   : > { %v13090_v7 = vpop.eup %11393  ;;  %v3202_v11 = vsel %vm2889_vm7, %v13086_v19, 0.0  ;;  %v3110_v15 = vmul.f32 1.442695, %v3056_v35  ;;  %v3112_v41 = vmul.f32 1.442695, %v3057_v23  ;;  %v3018_v61 = vmax.f32 %v3016_v12, %v3017_v21 }
 0x4a9   : > { %v3203_v3 = vsel %vm2889_vm7, %v13090_v7, 0.0  ;;  %v3006_v52 = vmax.f32 %v3004_v40, %v3005_v8  ;;  %v3011_v31 = vmax.f32 %v3009_v16, %v3010_v5  ;;  %v13097_v42 = vmul.f32 0.25, %v13029_v6 }
 0x4aa   : > { %v3204_v10 = vadd.f32 %v3203_v3, %v3202_v11  ;;  %11403 = vpow2.f32 %v3110_v15  ;;  %v3019_v29 = vrot.slane %v3018_v61, 4  ;;  %v13100_v33 = vmul.f32 0.25, %v13037_v54 }
 0x4ab   : > { %11405 = vpow2.f32 %v3112_v41  ;;  %v3058_v51 = vsub.f32 %v13042_v28, %v3006_v52  ;;  %v3059_v32 = vsub.f32 %v13023_v1, %v3006_v52  ;;  %v3012_v44 = vrot.slane %v3011_v31, 2 }
 0x4ac   : > { %v3205_v47 = vrot.slane %v3204_v10, 4  ;;  %v3020_v36 = vmax.f32 %v3018_v61, %v3019_v29  ;;  %v3026_v56 = vsel %vm2889_vm7, %v13097_v42, -inf  ;;  %v3025_v6 = vsel %vm2889_vm7, %v13100_v33, -inf }
 0x4ad   : > { %v3114_v17 = vmul.f32 1.442695, %v3058_v51  ;;  %v3116_v50 = vmul.f32 1.442695, %v3059_v32  ;;  %v3013_v48 = vmax.f32 %v3011_v31, %v3012_v44  ;;  %v3027_v43 = vmax.f32 %v3025_v6, %v3026_v56 }
 0x4ae   : > { %v13108_v54 = vpop.eup %11395  ;;  %v3206_v59 = vadd.f32 %v3205_v47, %v3204_v10  ;;  %v3021_v40 = vrot.slane %v3020_v36, 2  ;;  %v3137_v28 = vrot.slane %v12940_v39, 1  ;;  %v3146_v1 = vrot.slane %v12957_v18, 1 }
 0x4af   : > { %v13112_v16 = vpop.eup %11397  ;;  %v3211_v35 = vsel %vm2889_vm7, %v13108_v54, 0.0  ;;  %11407 = vpow2.f32 %v3114_v17  ;;  %v3014_v23 = vrot.slane %v3013_v48, 1  ;;  %v3028_v21 = vrot.slane %v3027_v43, 4 }
 0x4b0   : > { %v13116_v8 = vpop.eup %11399  ;;  %v3207_v5 = vrot.slane %v3206_v59, 2  ;;  %v3212_v12 = vsel %vm2889_vm7, %v13112_v16, 0.0  ;;  %11409 = vpow2.f32 %v3116_v50  ;;  %v3022_v11 = vmax.f32 %v3020_v36, %v3021_v40 }
 0x4b1   : > { %v13120_v15 = vpop.eup %11401  ;;  %v3213_v41 = vadd.f32 %v3212_v12, %v3211_v35  ;;  %v3220_v61 = vsel %vm2889_vm7, %v13116_v8, 0.0  ;;  %v3015_v3 = vmax.f32 %v3013_v48, %v3014_v23  ;;  %v3029_v52 = vmax.f32 %v3027_v43, %v3028_v21 }
 0x4b2   : > { %v13124_v31 = vadd.f32 %v3207_v5, %v3206_v59  ;;  %v3221_v10 = vsel %vm2889_vm7, %v13120_v15, 0.0  ;;  %v3023_v29 = vrot.slane %v3022_v11, 1  ;;  %v3138_v51 = vadd.f32 %v3137_v28, %v12940_v39 }
 0x4b3   : > { %v3214_v32 = vrot.slane %v3213_v41, 4  ;;  %v3222_v44 = vadd.f32 %v3221_v10, %v3220_v61  ;;  %v3060_v47 = vsub.f32 %v13066_v24, %v3015_v3  ;;  %v3061_v36 = vsub.f32 %v13061_v60, %v3015_v3 }
 0x4b4   : > { %v13131_v56 = vpop.eup %11403  ;;  %v3024_v6 = vmax.f32 %v3022_v11, %v3023_v29  ;;  %v3030_v17 = vrot.slane %v3029_v52, 2  ;;  %11411 = vrcp.f32 %v3138_v51  ;;  %v3147_v50 = vadd.f32 %v3146_v1, %v12957_v18 }
 0x4b5   : > { %v13134_v48 = vpop.eup %11405  ;;  %v3215_v43 = vadd.f32 %v3214_v32, %v3213_v41  ;;  %v3223_v59 = vrot.slane %v3222_v44, 4  ;;  %v3229_v39 = vsel %vm2889_vm7, %v13131_v56, 0.0  ;;  %v3118_v40 = vmul.f32 1.442695, %v3060_v47 }
 0x4b6   : > { %v3230_v24 = vsel %vm2889_vm7, %v13134_v48, 0.0  ;;  %v3120_v28 = vmul.f32 1.442695, %v3061_v36  ;;  %v3062_v60 = vsub.f32 %v13080_v0, %v3024_v6  ;;  %v3063_v35 = vsub.f32 %v13077_v53, %v3024_v6 }
 0x4b7   : > { %v3216_v23 = vrot.slane %v3215_v43, 2  ;;  %v3224_v21 = vadd.f32 %v3223_v59, %v3222_v44  ;;  %v3231_v5 = vadd.f32 %v3230_v24, %v3229_v39  ;;  %11413 = vpow2.f32 %v3118_v40 }
 0x4b8   : > { %11415 = vpow2.f32 %v3120_v28  ;;  %v3122_v18 = vmul.f32 1.442695, %v3062_v60  ;;  %v3124_v1 = vmul.f32 1.442695, %v3063_v35  ;;  %v3031_v12 = vmax.f32 %v3029_v52, %v3030_v17 }
 0x4b9   : > { %v13142_v11 = vpop.eup %11407  ;;  %v3217_v41 = vadd.f32 %v3216_v23, %v3215_v43  ;;  %v3225_v61 = vrot.slane %v3224_v21, 2  ;;  %v3232_v3 = vrot.slane %v3231_v5, 4  ;;  %11417 = vrcp.f32 %v3147_v50 }
 0x4ba   : > { %v13144_v10 = vpop.eup %11409  ;;  %v3238_v0 = vsel %vm2889_vm7, %v13142_v11, 0.0  ;;  %11419 = vpow2.f32 %v3122_v18  ;;  %v3032_v53 = vrot.slane %v3031_v12, 1  ;;  %v3155_v29 = vrot.slane %v12978_v62, 1 }
 0x4bb   : > { %v13149_v51 = vadd.f32 %v3225_v61, %v3224_v21  ;;  %v3233_v32 = vadd.f32 %v3232_v3, %v3231_v5  ;;  %v3239_v52 = vsel %vm2889_vm7, %v13144_v10, 0.0  ;;  %11421 = vpow2.f32 %v3124_v1 }
 0x4bc   : > { %v3240_v44 = vadd.f32 %v3239_v52, %v3238_v0  ;;  %v3033_v47 = vmax.f32 %v3031_v12, %v3032_v53  ;;  %v3156_v36 = vadd.f32 %v3155_v29, %v12978_v62  ;;  %v3164_v6 = vrot.slane %v13010_v45, 1 }
 0x4bd   : > { %v3234_v17 = vrot.slane %v3233_v32, 2  ;;  %v3173_v50 = vrot.slane %v13031_v2, 1  ;;  %v3182_v43 = vrot.slane %v13052_v13, 1  ;;  %v3191_v59 = vrot.slane %v13058_v26, 1 }
 0x4be   : > { %v11412_v39 = vpop.eup %11411  ;;  %v3241_v40 = vrot.slane %v3240_v44, 4  ;;  %v3064_v24 = vsub.f32 %v13100_v33, %v3033_v47  ;;  %v3065_v28 = vsub.f32 %v13097_v42, %v3033_v47  ;;  %11423 = vrcp.f32 %v3156_v36 }
 0x4bf   : > { %v3235_v60 = vadd.f32 %v3234_v17, %v3233_v32  ;;  %v3290_v35 = vmul.f32 %v11412_v39, %v12898_v49  ;;  %v3291_v62 = vmul.f32 %v11412_v39, %v12906_v58  ;;  %v3165_v23 = vadd.f32 %v3164_v6, %v13010_v45 }
 0x4c0   : > { %v3242_v21 = vadd.f32 %v3241_v40, %v3240_v44  ;;  %v3126_v5 = vmul.f32 1.442695, %v3064_v24  ;;  %v3128_v18 = vmul.f32 1.442695, %v3065_v28  ;;  %v3174_v1 = vadd.f32 %v3173_v50, %v13031_v2 }
 0x4c1   : > { %v13164_v12 = vpop.eup %11413  ;;  %10222 = vmatprep.mubr.msk.f32.mxu1 %vm2889_vm7, %v3290_v35  ;;  %11425 = vrcp.f32 %v3165_v23  ;;  %v3183_v42 = vadd.f32 %v3182_v43, %v13052_v13  ;;  %v3192_v33 = vadd.f32 %v3191_v59, %v13058_v26  ;;  %v3200_v49 = vrot.slane %v13072_v30, 1 }
 0x4c2   : > { %v13170_v61 = vpop.eup %11415  ;;  %v3243_v58 = vrot.slane %v3242_v21, 2  ;;  %v3247_v45 = vsel %vm2889_vm7, %v13164_v12, 0.0  ;;  %11427 = vpow2.f32 %v3126_v5  ;;  %10223 = vmatmul.mubr.msk.f32.vlgmr.msra.gmra.mrb[68].mxu1 %vm2889_vm7, %v3291_v62  ;;  %v3209_v2 = vrot.slane %v13124_v31, 1 }
 0x4c3   : > { %v11418_v3 = vpop.eup %11417  ;;  %v3248_v0 = vsel %vm2889_vm7, %v13170_v61, 0.0  ;;  %11429 = vpow2.f32 %v3128_v18  ;;  %v3201_v13 = vadd.f32 %v3200_v49, %v13072_v30  ;;  %v3218_v26 = vrot.slane %v3217_v41, 1 }
 0x4c4   : > { %v13179_v53 = vpop.eup %11419  ;;  %v3244_v29 = vadd.f32 %v3243_v58, %v3242_v21  ;;  %v3249_v32 = vadd.f32 %v3248_v0, %v3247_v45  ;;  %v3292_v52 = vmul.f32 %v11418_v3, %v12916_v37  ;;  %v3293_v44 = vmul.f32 %v11418_v3, %v12920_v14 }
 0x4c5   : > { %v13183_v47 = vpop.eup %11421  ;;  %v3256_v36 = vsel %vm2889_vm7, %v13179_v53, 0.0  ;;  %11431 = vrcp.f32 %v3174_v1  ;;  %v3210_v6 = vadd.f32 %v3209_v2, %v13124_v31  ;;  %v3219_v17 = vadd.f32 %v3218_v26, %v3217_v41 }
 0x4c6   : > { %v3250_v50 = vrot.slane %v3249_v32, 4  ;;  %v3257_v30 = vsel %vm2889_vm7, %v13183_v47, 0.0  ;;  %10225 = vmatprep.mubr.msk.f32.mxu1 %vm2889_vm7, %v3292_v52  ;;  %11433 = vrcp.f32 %v3183_v42  ;;  %v3227_v37 = vrot.slane %v13149_v51, 1 }
 0x4c7   : > { %v3258_v43 = vadd.f32 %v3257_v30, %v3256_v36  ;;  %10226 = vmatmul.mubr.msk.f32.gmra.mrb[70].mxu1 %vm2889_vm7, %v3293_v44  ;;  %11435 = vrcp.f32 %v3192_v33  ;;  %v3236_v14 = vrot.slane %v3235_v60, 1  ;;  %v3245_v59 = vrot.slane %v3244_v29, 1 }
 0x4c8   : > { %v11424_v39 = vpop.eup %11423  ;;  %v3251_v40 = vadd.f32 %v3250_v50, %v3249_v32  ;;  %11437 = vrcp.f32 %v3201_v13  ;;  %v3228_v31 = vadd.f32 %v3227_v37, %v13149_v51 }
 0x4c9   : > { %v3259_v41 = vrot.slane %v3258_v43, 4  ;;  %v3294_v24 = vmul.f32 %v11424_v39, %v12930_v34  ;;  %v3295_v28 = vmul.f32 %v11424_v39, %v12934_v9  ;;  %11439 = vrcp.f32 %v3210_v6 }
 0x4ca   : > { %v3252_v35 = vrot.slane %v3251_v40, 2  ;;  %11441 = vrcp.f32 %v3219_v17  ;;  %v3237_v62 = vadd.f32 %v3236_v14, %v3235_v60  ;;  %v3246_v23 = vadd.f32 %v3245_v59, %v3244_v29 }
 0x4cb   : > { %v11426_v21 = vpop.eup %11425  ;;  %v3260_v5 = vadd.f32 %v3259_v41, %v3258_v43  ;;  %10228 = vmatprep.mubr.msk.f32.mxu1 %vm2889_vm7, %v3294_v24  ;;  %11443 = vrcp.f32 %v3228_v31 }
 0x4cc   : > { %v13197_v18 = vpop.eup %11427  ;;  %v3253_v1 = vadd.f32 %v3252_v35, %v3251_v40  ;;  %10229 = vmatmul.mubr.msk.f32.gmra.mrb[72].mxu1 %vm2889_vm7, %v3295_v28  ;;  %v3296_v51 = vmul.f32 %v11426_v21, %v12948_v20  ;;  %v3297_v34 = vmul.f32 %v11426_v21, %v12950_v57  ;;  %11445 = vrcp.f32 %v3237_v62  ;;  %v931_v28 = vld [vmem:[%s15480_s22 + $0x8] sm:$0xff]  ;;  %v3753_v21 = vld [vmem:[%s15623_s29] sm:$0xff] }
 0x4cd   : > { %v13202_v9 = vpop.eup %11429  ;;  %v3261_v42 = vrot.slane %v3260_v5, 2  ;;  %v3265_v60 = vsel %vm2889_vm7, %v13197_v18, 0.0  ;;  %11447 = vrcp.f32 %v3246_v23  ;;  %3742 = vmatprep.mubr.f32.mxu0 %v931_v28 }
 0x4ce   : > { %v3266_v33 = vsel %vm2889_vm7, %v13202_v9, 0.0  ;;  %10231 = vmatprep.mubr.msk.f32.mxu1 %vm2889_vm7, %v3296_v51  ;;  %v3254_v49 = vrot.slane %v3253_v1, 1 }
 0x4cf   : > { %v11432_v58 = vpop.eup %11431  ;;  %v3262_v45 = vadd.f32 %v3261_v42, %v3260_v5  ;;  %v3267_v2 = vadd.f32 %v3266_v33, %v3265_v60  ;;  %v3754_v5 = vld [vmem:[%s15623_s29 + $0x8] sm:$0xff] }
 0x4d0   : > { %v11434_v20 = vpop.eup %11433  ;;  %10232 = vmatmul.mubr.msk.f32.gmra.mrb[74].mxu1 %vm2889_vm7, %v3297_v34  ;;  %v3298_v57 = vmul.f32 %v11432_v58, %v12968_v27  ;;  %v3299_v3 = vmul.f32 %v11432_v58, %v12972_v63  ;;  %v3255_v0 = vadd.f32 %v3254_v49, %v3253_v1  ;;  %v10967_v51 = vpack.c.bf16 %v3754_v5, %v3753_v21  ;;  %v3756_v34 = vld [vmem:[%s15623_s29 + $0x18] sm:$0xff] }
 0x4d1   : > { %v11436_v13 = vpop.eup %11435  ;;  %v3268_v26 = vrot.slane %v3267_v2, 4  ;;  %v3300_v29 = vmul.f32 %v11434_v20, %v12996_v25  ;;  %v3301_v32 = vmul.f32 %v11434_v20, %v12998_v22  ;;  %v3263_v52 = vrot.slane %v3262_v45, 1 }
 0x4d2   : > { %v11438_v44 = vpop.eup %11437  ;;  %10234 = vmatprep.mubr.msk.f32.mxu1 %vm2889_vm7, %v3298_v57  ;;  %v3302_v36 = vmul.f32 %v11436_v13, %v13018_v38  ;;  %v3303_v6 = vmul.f32 %v11436_v13, %v13025_v4  ;;  %11449 = vrcp.f32 %v3255_v0  ;;  %10968 = vmatprep.subr.bf16.mxu1 %v10967_v51 }
 0x4d3   : > { %v11440_v17 = vpop.eup %11439  ;;  %v3269_v27 = vadd.f32 %v3268_v26, %v3267_v2  ;;  %v3304_v63 = vmul.f32 %v11438_v44, %v13044_v46  ;;  %v3305_v50 = vmul.f32 %v11438_v44, %v13046_v55  ;;  %v3264_v30 = vadd.f32 %v3263_v52, %v3262_v45  ;;  %10970 = vmatpush3.bf16.msra.mxu1 %v10967_v51  ;;  %v15624_v44 = vld [vmem:[#allocation23_spill] sm:$0xff] }
 0x4d4   : > { %v11442_v37 = vpop.eup %11441  ;;  %10235 = vmatmul.mubr.msk.f32.gmra.mrb[76].mxu1 %vm2889_vm7, %v3299_v3  ;;  %v3306_v25 = vmul.f32 %v11440_v17, %v13086_v19  ;;  %v3307_v22 = vmul.f32 %v11440_v17, %v13090_v7  ;;  %v15632_v51 = vld [vmem:[#allocation31_spill] sm:$0xff] }
 0x4d5   : > { %v11444_v43 = vpop.eup %11443  ;;  %v3270_v14 = vrot.slane %v3269_v27, 2  ;;  %10237 = vmatprep.mubr.msk.f32.mxu1 %vm2889_vm7, %v3300_v29  ;;  %v3308_v38 = vmul.f32 %v11442_v37, %v13108_v54  ;;  %v3309_v4 = vmul.f32 %v11442_v37, %v13112_v16  ;;  %11451 = vrcp.f32 %v3264_v30 }
 0x4d6   : > { %v11446_v46 = vpop.eup %11445  ;;  %v3310_v55 = vmul.f32 %v11444_v43, %v13116_v8  ;;  %v3311_v59 = vmul.f32 %v11444_v43, %v13120_v15 }
 0x4d7   : > { %v11448_v39 = vpop.eup %11447  ;;  %v3271_v40 = vadd.f32 %v3270_v14, %v3269_v27  ;;  %v3312_v19 = vmul.f32 %v11446_v46, %v13131_v56  ;;  %v3313_v7 = vmul.f32 %v11446_v46, %v13134_v48 }
 0x4d8   : > { %10238 = vmatmul.mubr.msk.f32.gmra.mrb[78].mxu1 %vm2889_vm7, %v3301_v32  ;;  %v3314_v31 = vmul.f32 %v11448_v39, %v13142_v11  ;;  %v3315_v54 = vmul.f32 %v11448_v39, %v13144_v10 }
 0x4d9   : > { %10240 = vmatprep.mubr.msk.f32.mxu1 %vm2889_vm7, %v3302_v36  ;;  %v3272_v16 = vrot.slane %v3271_v40, 1 }
 0x4db   : > { %v3273_v41 = vadd.f32 %v3272_v16, %v3271_v40  ;;  %v15629_v16 = vld [vmem:[#allocation28_spill] sm:$0xff] }
 0x4dc   : > { %v11450_v24 = vpop.eup %11449  ;;  %10241 = vmatmul.mubr.msk.f32.gmra.mrb[80].mxu1 %vm2889_vm7, %v3303_v6  ;;  %v15625_v6 = vld [vmem:[#allocation24_spill] sm:$0xff] }
 0x4dd   : > { %10243 = vmatprep.mubr.msk.f32.mxu1 %vm2889_vm7, %v3304_v63  ;;  %v3316_v8 = vmul.f32 %v11450_v24, %v13164_v12  ;;  %v3317_v15 = vmul.f32 %v11450_v24, %v13170_v61  ;;  %11453 = vrcp.f32 %v3273_v41 }
 0x4df   : > { %v11452_v56 = vpop.eup %11451 }
 0x4e0   : > { %10244 = vmatmul.mubr.msk.f32.gmra.mrb[82].mxu1 %vm2889_vm7, %v3305_v50  ;;  %v3318_v48 = vmul.f32 %v11452_v56, %v13179_v53  ;;  %v3319_v11 = vmul.f32 %v11452_v56, %v13183_v47  ;;  %v13258_v53 = vpop.permute.xlu0 %1893  ;;  %v13260_v47 = vpop.permute.xlu1 %1895 }
 0x4e1   : > { %10246 = vmatprep.mubr.msk.f32.mxu1 %vm2889_vm7, %v3306_v25 }
 0x4e4   : > { %10247 = vmatmul.mubr.msk.f32.gmra.mrb[84].mxu1 %vm2889_vm7, %v3307_v22  ;;  %v1864_v35 = vpop.permute.xlu0 %1863  ;;  %v1862_v62 = vpop.permute.xlu1 %1861  ;;  %v15626_v22 = vld [vmem:[#allocation25_spill] sm:$0xff] }
 0x4e5   : > { %10249 = vmatprep.mubr.msk.f32.mxu1 %vm2889_vm7, %v3308_v38  ;;  %v2029_v36 = vadd.f32 %v15624_v44, %v1864_v35  ;;  %v2024_v17 = vadd.f32 %v15625_v6, %v1862_v62  ;;  %v15627_v38 = vld [vmem:[#allocation26_spill] sm:$0xff] }
 0x4e7   : > { %v11454_v10 = vpop.eup %11453 }
 0x4e8   : > { %10250 = vmatmul.mubr.msk.f32.gmra.mrb[86].mxu1 %vm2889_vm7, %v3309_v4  ;;  %v3320_v12 = vmul.f32 %v11454_v10, %v13197_v18  ;;  %v3321_v61 = vmul.f32 %v11454_v10, %v13202_v9  ;;  %v13265_v23 = vpop.permute.xlu0 %1899  ;;  %v3755_v18 = vld [vmem:[%s15623_s29 + $0x10] sm:$0xff]  ;;  %v13276_v1 = vpop.permute.xlu1 %1897  ;;  %v15631_v10 = vld [vmem:[#allocation30_spill] sm:$0xff] }
 0x4e9   : > { %10252 = vmatprep.mubr.msk.f32.mxu1 %vm2889_vm7, %v3310_v55  ;;  %v10971_v9 = vpack.c.bf16 %v3756_v34, %v3755_v18 }
 0x4eb   : > { %10972 = vmatprep.subr.bf16.mxu1 %v10971_v9 }
 0x4ec   : > { %10253 = vmatmul.mubr.msk.f32.gmra.mrb[88].mxu1 %vm2889_vm7, %v3311_v59  ;;  %v1868_v42 = vpop.permute.xlu0 %1867  ;;  %v1866_v60 = vpop.permute.xlu1 %1865 }
 0x4ed   : > { %10255 = vmatprep.mubr.msk.f32.mxu1 %vm2889_vm7, %v3312_v19  ;;  %10974 = vmatpush3.bf16.msra.mxu1 %v10971_v9  ;;  %v2039_v43 = vadd.f32 %v15626_v22, %v1868_v42  ;;  %v2034_v4 = vadd.f32 %v15627_v38, %v1866_v60  ;;  %v15628_v19 = vld [vmem:[#allocation27_spill] sm:$0xff]  ;;  %v15633_v9 = vld [vmem:[#allocation32_spill] sm:$0xff] }
 0x4f0   : > { %10256 = vmatmul.mubr.msk.f32.gmra.mrb[90].mxu1 %vm2889_vm7, %v3313_v7  ;;  %v13281_v33 = vpop.permute.xlu0 %1903  ;;  %v13283_v49 = vpop.permute.xlu1 %1901 }
 0x4f1   : > { %10258 = vmatprep.mubr.msk.f32.mxu1 %vm2889_vm7, %v3314_v31 }
 0x4f4   : > { %10259 = vmatmul.mubr.msk.f32.gmra.mrb[92].mxu1 %vm2889_vm7, %v3315_v54  ;;  %v1872_v58 = vpop.permute.xlu0 %1871  ;;  %v1870_v45 = vpop.permute.xlu1 %1869 }
 0x4f5   : > { %10261 = vmatprep.mubr.msk.f32.mxu1 %vm2889_vm7, %v3316_v8  ;;  %v2049_v7 = vadd.f32 %v15628_v19, %v1872_v58  ;;  %v2044_v41 = vadd.f32 %v15629_v16, %v1870_v45 }
 0x4f8   : > { %10262 = vmatmul.mubr.msk.f32.gmra.mrb[94].mxu1 %vm2889_vm7, %v3317_v15  ;;  %v13285_v2 = vpop.permute.xlu0 %1907  ;;  %v13287_v20 = vpop.permute.xlu1 %1905 }
 0x4f9   : > { %10264 = vmatprep.mubr.msk.f32.mxu1 %vm2889_vm7, %v3318_v48  ;;  %v15630_v48 = vld [vmem:[#allocation29_spill] sm:$0xff] }
 0x4fc   : > { %10265 = vmatmul.mubr.msk.f32.gmra.mrb[96].mxu1 %vm2889_vm7, %v3319_v11  ;;  %v1876_v57 = vpop.permute.xlu0 %1875  ;;  %v1874_v3 = vpop.permute.xlu1 %1873 }
 0x4fd   : > { %10267 = vmatprep.mubr.msk.f32.mxu1 %vm2889_vm7, %v3320_v12  ;;  %v2059_v11 = vadd.f32 %v15630_v48, %v1876_v57  ;;  %v2054_v12 = vadd.f32 %v15631_v10, %v1874_v3  ;;  %v15638_v48 = vld [vmem:[#allocation37_spill] sm:$0xff]  ;;  %v15639_v10 = vld [vmem:[#allocation38_spill] sm:$0xff] }
 0x500   : > { %10268 = vmatmul.mubr.msk.f32.gmra.mrb[98].mxu1 %vm2889_vm7, %v3321_v61  ;;  %v13289_v0 = vpop.permute.xlu0 %1911  ;;  %v13291_v13 = vpop.permute.xlu1 %1909 }
 0x504   : > { %v1880_v26 = vpop.permute.xlu0 %1879  ;;  %v1878_v29 = vpop.permute.xlu1 %1877 }
 0x505   : > { %v2069_v34 = vadd.f32 %v15632_v51, %v1880_v26  ;;  %v2064_v42 = vadd.f32 %v15633_v9, %v1878_v29 }
 0x508   : > { %v13293_v32 = vpop.permute.xlu0 %1915  ;;  %v13295_v52 = vpop.permute.xlu1 %1913 }
 0x50c   : > { %v1884_v30 = vpop.permute.xlu0 %1883  ;;  %v1882_v25 = vpop.permute.xlu1 %1881 }
 0x510   : > { %v13311_v40 = vpop.permute.xlu0 %1919  ;;  %v13314_v31 = vpop.permute.xlu1 %1917 }
 0x514   : > { %v1888_v61 = vpop.permute.xlu0 %1887  ;;  %v1886_v62 = vpop.permute.xlu1 %1885 }
 0x518   : > { %v13337_v3 = vpop.permute.xlu0 %1923 }
 0x595   : > { %v10224_v27 = vpop.f32.mrb[68].mxu1 }
 0x596   : > { %v13299_v63 = vmul.f32 %v10224_v27, %v2029_v36  ;;  %v3487_v50 = vpop.f32.mrb[69].mxu1  ;;  %v15634_v36 = vld [vmem:[#allocation33_spill] sm:$0xff]  ;;  %v15635_v27 = vld [vmem:[#allocation34_spill] sm:$0xff] }
 0x597   : > { %v13301_v37 = vmul.f32 %v3487_v50, %v2024_v17  ;;  %v2079_v6 = vadd.f32 %v15634_v36, %v1884_v30  ;;  %v13342_v17 = vpop.permute.xlu1 %1921  ;;  %v2074_v50 = vadd.f32 %v15635_v27, %v1882_v25 }
 0x599   : > { %v10937_v14 = vpack.c.bf16 %v13299_v63, %v13301_v37 }
 0x59a   : > { %v10227_v46 = vpop.f32.mrb[70].mxu1 }
 0x59b   : > { %v13307_v55 = vmul.f32 %v10227_v46, %v2039_v43  ;;  %v3497_v59 = vpop.f32.mrb[71].mxu1 }
 0x59c   : > { %v13309_v39 = vmul.f32 %v3497_v59, %v2034_v4  ;;  %v15636_v4 = vld [vmem:[#allocation35_spill] sm:$0xff]  ;;  %v15637_v59 = vld [vmem:[#allocation36_spill] sm:$0xff] }
 0x59d   : > { %v2089_v46 = vadd.f32 %v15636_v4, %v1888_v61  ;;  %v2084_v19 = vadd.f32 %v15637_v59, %v1886_v62  ;;  %v15643_v4 = vld [vmem:[#allocation42_spill] sm:$0xff] }
 0x59e   : > { %v10941_v54 = vpack.c.bf16 %v13307_v55, %v13309_v39 }
 0x59f   : > { %v10230_v24 = vpop.f32.mrb[72].mxu1 }
 0x5a0   : > { %v13319_v8 = vmul.f32 %v10230_v24, %v2049_v7  ;;  %v3507_v15 = vpop.f32.mrb[73].mxu1  ;;  %v1892_v7 = vpop.permute.xlu0 %1891 }
 0x5a1   : > { %v13321_v56 = vmul.f32 %v3507_v15, %v2044_v41  ;;  %v1890_v41 = vpop.permute.xlu1 %1889 }
 0x5a3   : > { %v10945_v28 = vpack.c.bf16 %v13319_v8, %v13321_v56  ;;  %v10233_v35 = vpop.f32.mrb[74].mxu1 }
 0x5a4   : > { %v13327_v21 = vmul.f32 %v10233_v35, %v2059_v11  ;;  %v3517_v5 = vpop.f32.mrb[75].mxu1  ;;  %v2099_v11 = vadd.f32 %v15638_v48, %v1892_v7 }
 0x5a5   : > { %v13329_v18 = vmul.f32 %v3517_v5, %v2054_v12  ;;  %v2094_v12 = vadd.f32 %v15639_v10, %v1890_v41 }
 0x5a7   : > { %v10949_v60 = vpack.c.bf16 %v13327_v21, %v13329_v18  ;;  %v10236_v58 = vpop.f32.mrb[76].mxu1 }
 0x5a8   : > { %v13335_v45 = vmul.f32 %v10236_v58, %v2069_v34  ;;  %v3527_v57 = vpop.f32.mrb[77].mxu1  ;;  %v15640_v34 = vld [vmem:[#allocation39_spill] sm:$0xff] }
 0x5a9   : > { %v13339_v44 = vmul.f32 %v3527_v57, %v2064_v42  ;;  %v2109_v9 = vadd.f32 %v15640_v34, %v13260_v47  ;;  %v15641_v42 = vld [vmem:[#allocation40_spill] sm:$0xff] }
 0x5aa   : > { %v2104_v58 = vadd.f32 %v15641_v42, %v13258_v53  ;;  %v15644_v53 = vld [vmem:[#allocation43_spill] sm:$0xff] }
 0x5ab   : > { %v10953_v26 = vpack.c.bf16 %v13335_v45, %v13339_v44  ;;  %v10239_v29 = vpop.f32.mrb[78].mxu1  ;;  %v2129_v41 = vadd.f32 %v15644_v53, %v13281_v33  ;;  %v15647_v33 = vld [vmem:[#allocation46_spill] sm:$0xff]  ;;  %v15648_v42 = vld [vmem:[#allocation47_spill] sm:$0xff] }
 0x5ac   : > { %v13347_v22 = vmul.f32 %v10239_v29, %v2079_v6  ;;  %v3537_v43 = vpop.f32.mrb[79].mxu1  ;;  %v15642_v29 = vld [vmem:[#allocation41_spill] sm:$0xff]  ;;  %v2134_v63 = vadd.f32 %v15647_v33, %v13287_v20 }
 0x5ad   : > { %v13349_v38 = vmul.f32 %v3537_v43, %v2074_v50  ;;  %v2119_v43 = vadd.f32 %v15642_v29, %v13265_v23 }
 0x5af   : > { %v10957_v30 = vpack.c.bf16 %v13347_v22, %v13349_v38  ;;  %v10242_v16 = vpop.f32.mrb[80].mxu1  ;;  %v932_v22 = vld [vmem:[%s15480_s22 + $0x10] sm:$0xff]  ;;  %v3757_v38 = vld [vmem:[%s15623_s29 + $0x20] sm:$0xff] }
 0x5b0   : > { %v13355_v25 = vmul.f32 %v10242_v16, %v2089_v46  ;;  %v3547_v24 = vpop.f32.mrb[81].mxu1  ;;  %v2114_v46 = vadd.f32 %v15643_v4, %v13276_v1  ;;  %v15652_v4 = vld [vmem:[#allocation51_spill] sm:$0xff] }
 0x5b1   : > { %v13357_v15 = vmul.f32 %v3547_v24, %v2084_v19  ;;  %v15645_v24 = vld [vmem:[#allocation44_spill] sm:$0xff] }
 0x5b2   : > { %v2124_v48 = vadd.f32 %v15645_v24, %v13283_v49 }
 0x5b3   : > { %v10961_v61 = vpack.c.bf16 %v13355_v25, %v13357_v15  ;;  %v10245_v35 = vpop.f32.mrb[82].mxu1  ;;  %v3759_v15 = vld [vmem:[%s15623_s29 + $0x30] sm:$0xff] }
 0x5b4   : > { %v13363_v62 = vmul.f32 %v10245_v35, %v2099_v11  ;;  %v3557_v5 = vpop.f32.mrb[83].mxu1  ;;  %v15646_v35 = vld [vmem:[#allocation45_spill] sm:$0xff] }
 0x5b5   : > { %v13365_v51 = vmul.f32 %v3557_v5, %v2094_v12  ;;  %v2139_v5 = vadd.f32 %v15646_v35, %v13285_v2  ;;  %v15649_v2 = vld [vmem:[#allocation48_spill] sm:$0xff] }
 0x5b6   : > { %v2144_v55 = vadd.f32 %v15649_v2, %v13291_v13  ;;  %v3855_v35 = vld [vmem:[%s15656_s1 + $0x10] sm:$0xff] }
 0x5b7   : > { %v10965_v57 = vpack.c.bf16 %v13363_v62, %v13365_v51  ;;  %v10248_v36 = vpop.f32.mrb[84].mxu1  ;;  %v3853_v51 = vld [vmem:[%s15656_s1] sm:$0xff]  ;;  %v15661_v2 = vld [vmem:[#allocation16_spill] sm:$0xff] }
 0x5b8   : > { %v3663_v6 = vmul.f32 %v10248_v36, %v2109_v9  ;;  %v3567_v27 = vpop.f32.mrb[85].mxu1 }
 0x5b9   : > { %v3662_v50 = vmul.f32 %v3567_v27, %v2104_v58  ;;  %v2149_v58 = vadd.f32 %v15648_v42, %v13289_v0  ;;  %v15650_v27 = vld [vmem:[#allocation49_spill] sm:$0xff]  ;;  %v15651_v0 = vld [vmem:[#allocation50_spill] sm:$0xff] }
 0x5ba   : > { %v2154_v8 = vadd.f32 %v15651_v0, %v13295_v52  ;;  %v8923_v42 = vld [vmem:[%s15660_s28] ss:$0 sm:$0xff] }
 0x5bb   : > { %v10935_v59 = vpack.c.bf16 %v3663_v6, %v3662_v50  ;;  %v10251_v19 = vpop.f32.mrb[86].mxu1  ;;  %v2159_v50 = vadd.f32 %v15650_v27, %v13293_v32  ;;  %v15653_v32 = vld [vmem:[#allocation52_spill] sm:$0xff]  ;;  %v4041_v27 = vld [vmem:[%s15471_s13] sm:$0xff] }
 0x5bc   : > { %v3665_v7 = vmul.f32 %v10251_v19, %v2119_v43  ;;  %v3577_v47 = vpop.f32.mrb[87].mxu1  ;;  %v2164_v21 = vadd.f32 %v15653_v32, %v13314_v31  ;;  %v4043_v32 = vld [vmem:[%s15471_s13 + $0x10] sm:$0xff] }
 0x5bd   : > { %v3664_v16 = vmul.f32 %v3577_v47, %v2114_v46  ;;  %10936 = vmatprep.subr.bf16.mxu0 %v10935_v59  ;;  %v2169_v46 = vadd.f32 %v15652_v4, %v13311_v40  ;;  %v15655_v40 = vld [vmem:[#allocation54_spill] sm:$0xff] }
 0x5be   : > { %10938 = vmatpush3.bf16.msra.mxu0 %v10937_v14  ;;  %v2174_v45 = vadd.f32 %v15655_v40, %v13342_v17  ;;  %v933_v17 = vld [vmem:[%s15480_s22 + $0x18] sm:$0xff] }
 0x5bf   : > { %v10939_v23 = vpack.c.bf16 %v3665_v7, %v3664_v16  ;;  %v10254_v11 = vpop.f32.mrb[88].mxu1  ;;  %v15654_v7 = vld [vmem:[#allocation53_spill] sm:$0xff] }
 0x5c0   : > { %v3667_v10 = vmul.f32 %v10254_v11, %v2129_v41  ;;  %v3587_v1 = vpop.f32.mrb[89].mxu1  ;;  %v2179_v47 = vadd.f32 %v15654_v7, %v13337_v3  ;;  %v930_v3 = vld [vmem:[%s15480_s22] sm:$0xff]  ;;  %v8935_v7 = vld [vmem:[%s15574_s6 + $0x50] sm:$0xff] }
 0x5c1   : > { %v3666_v12 = vmul.f32 %v3587_v1, %v2124_v48  ;;  %10940 = vmatprep.subr.bf16.mxu0 %v10939_v23 }
 0x5c2   : > { %10942 = vmatpush3.bf16.msra.mxu0 %v10941_v54 }
 0x5c3   : > { %v10943_v37 = vpack.c.bf16 %v3667_v10, %v3666_v12  ;;  %v10257_v14 = vpop.f32.mrb[90].mxu1 }
 0x5c4   : > { %v3669_v34 = vmul.f32 %v10257_v14, %v2139_v5  ;;  %v3597_v49 = vpop.f32.mrb[91].mxu1  ;;  %v3856_v5 = vld [vmem:[%s15656_s1 + $0x18] sm:$0xff] }
 0x5c5   : > { %v3668_v9 = vmul.f32 %v3597_v49, %v2134_v63  ;;  %10944 = vmatprep.subr.bf16.mxu0 %v10943_v37  ;;  %v10987_v33 = vpack.c.bf16 %v3856_v5, %v3855_v35  ;;  %v3947_v63 = vld [vmem:[%s15657_s8] sm:$0xff]  ;;  %v3948_v37 = vld [vmem:[%s15658_s20 + $0x8] sm:$0xff]  ;;  %v15659_v49 = vld [vmem:[#allocation17_spill] sm:$0xff]  ;;  %s11748_s8 = smov 60  }
 0x5c6   : > { %10946 = vmatpush3.bf16.msra.mxu0 %v10945_v28  ;;  %v10991_v14 = vpack.c.bf16 %v3948_v37, %v3947_v63  ;;  %v11582_v35 = vld [vmem:[%s12031_s30 + $0x10] sm:$0xff]  ;;  %v11583_v5 = vld [vmem:[%s12031_s30 + $0x18] sm:$0xff]  ;;  %v11585_v63 = vld [vmem:[%s12031_s30 + $0x28] sm:$0xff] }
 0x5c7   : > { %v10947_v39 = vpack.c.bf16 %v3669_v34, %v3668_v9  ;;  %v10260_v54 = vpop.f32.mrb[92].mxu1  ;;  %v11586_v37 = vld [vmem:[%s12031_s30 + $0x30] sm:$0xff] }
 0x5c8   : > { %v3671_v36 = vmul.f32 %v10260_v54, %v2149_v58  ;;  %v3607_v20 = vpop.f32.mrb[93].mxu1 }
 0x5c9   : > { %v3670_v6 = vmul.f32 %v3607_v20, %v2144_v55  ;;  %10948 = vmatprep.subr.bf16.mxu0 %v10947_v39  ;;  %v3950_v20 = vld [vmem:[%s15658_s20 + $0x18] sm:$0xff] }
 0x5ca   : > { %10950 = vmatpush3.bf16.msra.mxu0 %v10949_v60 }
 0x5cb   : > { %v10951_v56 = vpack.c.bf16 %v3671_v36, %v3670_v6  ;;  %v10263_v28 = vpop.f32.mrb[94].mxu1  ;;  %v3949_v36 = vld [vmem:[%s15658_s20 + $0x10] sm:$0xff] }
 0x5cc   : > { %v3673_v29 = vmul.f32 %v10263_v28, %v2159_v50  ;;  %v3617_v13 = vpop.f32.mrb[95].mxu1  ;;  %v10995_v6 = vpack.c.bf16 %v3950_v20, %v3949_v36  ;;  %v4042_v50 = vld [vmem:[%s15471_s13 + $0x8] sm:$0xff]  ;;  %v11598_v20 = vld [vmem:[%s12031_s30 + $0x90] sm:$0xff] }
 0x5cd   : > { %v3672_v43 = vmul.f32 %v3617_v13, %v2154_v8  ;;  %10952 = vmatprep.subr.bf16.mxu0 %v10951_v56  ;;  %v10999_v0 = vpack.c.bf16 %v4042_v50, %v4041_v27  ;;  %v8924_v8 = vld [vmem:[%s15662_s5] ss:$0 sm:$0xff]  ;;  %s15665_s5 = sld [smem:[#allocation67_spill]]  ;;  %v11597_v36 = vld [vmem:[%s12031_s30 + $0x88] sm:$0xff] }
 0x5ce   : > { %10954 = vmatpush3.bf16.msra.mxu0 %v10953_v26  ;;  %v11600_v27 = vld [vmem:[%s12031_s30 + $0xa0] sm:$0xff]  ;;  %v11601_v50 = vld [vmem:[%s12031_s30 + $0xa8] sm:$0xff] }
 0x5cf   : > { %v10955_v18 = vpack.c.bf16 %v3673_v29, %v3672_v43  ;;  %v10266_v60 = vpop.f32.mrb[96].mxu1 }
 0x5d0   : > { %v3675_v59 = vmul.f32 %v10266_v60, %v2169_v46  ;;  %v3627_v52 = vpop.f32.mrb[97].mxu1  ;;  %v15664_v46 = vmov 0.0   ;;  %v8934_v60 = vld [vmem:[%s15574_s6 + $0x48] sm:$0xff] }
 0x5d1   : > { %v3674_v19 = vmul.f32 %v3627_v52, %v2164_v21  ;;  %10956 = vmatprep.subr.bf16.mxu0 %v10955_v18  ;;  %v4044_v21 = vld [vmem:[%s15471_s13 + $0x18] sm:$0xff]  ;;  %v8933_v52 = vld [vmem:[%s15574_s6 + $0x40] sm:$0xff] }
 0x5d2   : > { %10958 = vmatpush3.bf16.msra.mxu0 %v10957_v30  ;;  %v3758_v30 = vld [vmem:[%s15623_s29 + $0x28] sm:$0xff]  ;;  %v11003_v18 = vpack.c.bf16 %v4044_v21, %v4043_v32  ;;  %v11610_v32 = vld [vmem:[%s12031_s30 + $0xf0] sm:$0xff]  ;;  %v11611_v21 = vld [vmem:[%s12031_s30 + $0xf8] sm:$0xff] }
 0x5d3   : > { %v10959_v44 = vpack.c.bf16 %v3675_v59, %v3674_v19  ;;  %v10269_v26 = vpop.f32.mrb[98].mxu1  ;;  %v10975_v25 = vpack.c.bf16 %v3758_v30, %v3757_v38  ;;  %v8936_v59 = vld [vmem:[%s15574_s6 + $0x58] sm:$0xff]  ;;  %s15666_s11 = smov %s15665_s5  ;;  %v8927_v40 = vld [vmem:[%s15665_s5] ss:$0 sm:$0xff]  ;;  %v8939_v30 = vld [vmem:[%s15574_s6 + $0x70] sm:$0xff]  ;;  %s15748_s5 = smov 32  }
 0x5d4   : > { %v3677_v16 = vmul.f32 %v10269_v26, %v2179_v47  ;;  %v3637_v31 = vpop.f32.mrb[99].mxu1  ;;  %v11007_v19 = vpack.c.bf16 %v8936_v59, %v8934_v60  ;;  %v11009_v47 = vpack.c.bf16 %v8935_v7, %v8933_v52  ;;  %v8937_v38 = vld [vmem:[%s15574_s6 + $0x60] sm:$0xff] }
 0x5d5   : > { %v3676_v53 = vmul.f32 %v3637_v31, %v2174_v45  ;;  %10960 = vmatprep.subr.bf16.mxu0 %v10959_v44  ;;  %10976 = vmatprep.subr.bf16.mxu1 %v10975_v25  ;;  %v15669_v59 = vld [vmem:[#allocation18_spill] sm:$0xff] }
 0x5d6   : > { %10962 = vmatpush3.bf16.msra.mxu0 %v10961_v61  ;;  %10978 = vmatpush3.bf16.msra.mxu1 %v10975_v25  ;;  %v3760_v61 = vld [vmem:[%s15623_s29 + $0x38] sm:$0xff]  ;;  %v11013_v25 = vpack.c.bf16 %v8939_v30, %v8937_v38  ;;  %v15670_v52 = vsub.s32 0, %v15669_v59  ;;  %v13631_v38 = vld [vmem:[%s15481_s23 + $0x8] sm:$0xff]  ;;  %v13638_v30 = vld [vmem:[%s15481_s23 + $0x10] sm:$0xff] }
 0x5d7   : > { %v10963_v41 = vpack.c.bf16 %v3677_v16, %v3676_v53  ;;  %v10979_v62 = vpack.c.bf16 %v3760_v61, %v3759_v15  ;;  %v8932_v61 = vld [vmem:[%s15472_s14] ss:$0 sm:$0xff] }
 0x5d9   : > { %10964 = vmatprep.subr.bf16.mxu0 %v10963_v41  ;;  %10980 = vmatprep.subr.bf16.mxu1 %v10979_v62  ;;  %v11579_v41 = vld [vmem:[%s12031_s30] sm:$0xff] }
 0x5da   : > { %10966 = vmatpush3.bf16.msra.mxu0 %v10965_v57  ;;  %10982 = vmatpush3.bf16.msra.mxu1 %v10979_v62  ;;  %v3854_v57 = vld [vmem:[%s15656_s1 + $0x8] sm:$0xff] }
 0x5db   : > { %v10983_v24 = vpack.c.bf16 %v3854_v57, %v3853_v51  ;;  %10992 = vmatprep.subr.bf16.mxu1 %v10991_v14 }
 0x5dd   : > { %3743 = vmatmul.mubr.f32.vlgmr.msra.gmra.mrb[98].mxu0 %v930_v3  ;;  %10984 = vmatprep.subr.bf16.mxu0 %v10983_v24  ;;  %v8938_v3 = vld [vmem:[%s15574_s6 + $0x68] sm:$0xff] }
 0x5de   : > { %3747 = vmatprep.mubr.f32.mxu0 %v933_v17  ;;  %10986 = vmatpush3.bf16.msra.mxu0 %v10983_v24  ;;  %v8940_v17 = vld [vmem:[%s15574_s6 + $0x78] sm:$0xff] }
 0x5df   : > { %10988 = vmatprep.subr.bf16.mxu0 %v10987_v33 }
 0x5e1   : > { %3748 = vmatmul.mubr.f32.gmra.mrb[100].mxu0 %v932_v22  ;;  %v11011_v22 = vpack.c.bf16 %v8940_v17, %v8938_v3 }
 0x5e2   : > { %10990 = vmatpush3.bf16.msra.mxu0 %v10987_v33  ;;  %v11584_v33 = vld [vmem:[%s12031_s30 + $0x20] sm:$0xff] }
 0x5e3   : > { %11000 = vmatprep.subr.bf16.mxu0 %v10999_v0 }
 0x6b0   : > { %v9526_v48 = vpop.f32.mrb[98].mxu0 }
 0x6b1   : > { %v9527_v23 = vpop.f32.mrb[99].mxu0 }
 0x6b2   : > { %v9528_v11 = vadd.f32 %v9527_v23, %v9526_v48  ;;  %v13543_v23 = vld [vmem:[%s15481_s23] sm:$0xff] }
 0x6b4   : > { %v9529_v10 = vpop.f32.mrb[100].mxu0  ;;  %10286 = vmatprep.mubr.msk.f32.mxu1 %vm2535_vm6, %v9528_v11  ;;  %v8944_v11 = vld [vmem:[%s15581_s12 + $0x10] sm:$0xff] }
 0x6b5   : > { %v9530_v1 = vpop.f32.mrb[101].mxu0 }
 0x6b6   : > { %v9531_v12 = vadd.f32 %v9530_v1, %v9529_v10  ;;  %v8945_v10 = vld [vmem:[%s15581_s12 + $0x18] sm:$0xff] }
 0x6b7   : > { %v11015_v1 = vpack.c.bf16 %v8945_v10, %v8944_v11  ;;  %v13679_v11 = vld [vmem:[%s15481_s23 + $0x38] sm:$0xff]  ;;  %v13686_v10 = vld [vmem:[%s15481_s23 + $0x40] sm:$0xff] }
 0x6b8   : > { %10287 = vmatmul.mubr.msk.f32.vlgmr.msra.gmra.mrb[100].mxu1 %vm2535_vm6, %v9531_v12  ;;  %v11581_v12 = vld [vmem:[%s12031_s30 + $0x8] sm:$0xff] }
 0x6b9   : > { %10994 = vmatpush3.bf16.msra.mxu1 %v10991_v14  ;;  %v11587_v14 = vld [vmem:[%s12031_s30 + $0x38] sm:$0xff] }
 0x6ba   : > { %10996 = vmatprep.subr.bf16.mxu1 %v10995_v6 }
 0x6bd   : > { %10998 = vmatpush3.bf16.msra.mxu1 %v10995_v6  ;;  %v11599_v6 = vld [vmem:[%s12031_s30 + $0x98] sm:$0xff] }
 0x6be   : > { %11008 = vmatprep.subr.bf16.mxu1 %v11007_v19 }
 0x78b   : > { %v10288_v34 = vpop.f32.mrb[100].mxu1 }
 0x78c   : > { %v3843_v9 = vadd.f32 %v10288_v34, %v15659_v49  ;;  %v3833_v58 = vpop.f32.mrb[101].mxu1  ;;  %v11588_v34 = vld [vmem:[%s12031_s30 + $0x40] sm:$0xff]  ;;  %v11589_v49 = vld [vmem:[%s12031_s30 + $0x48] sm:$0xff] }
 0x78d   : > { %v3842_v55 = vadd.f32 %v3833_v58, %v15661_v2  ;;  %v11592_v58 = vld [vmem:[%s12031_s30 + $0x60] sm:$0xff]  ;;  %v11593_v2 = vld [vmem:[%s12031_s30 + $0x68] sm:$0xff] }
 0x78e   : > { %v3852_v54 = vadd.f32 %v8923_v42, %v3843_v9  ;;  %v11590_v9 = vld [vmem:[%s12031_s30 + $0x50] sm:$0xff] }
 0x78f   : > { %v3851_v39 = vadd.f32 %v8923_v42, %v3842_v55  ;;  %v11591_v42 = vld [vmem:[%s12031_s30 + $0x58] sm:$0xff]  ;;  %v11594_v55 = vld [vmem:[%s12031_s30 + $0x70] sm:$0xff] }
 0x791   : > { %10297 = vmatprep.mubr.msk.f32.mxu0 %vm1092_vm4, %v3851_v39 }
 0x792   : > { %10298 = vmatmul.mubr.msk.f32.vlgmr.msra.gmra.mrb[102].mxu0 %vm1092_vm4, %v3852_v54 }
 0x793   : > { %11002 = vmatpush3.bf16.msra.mxu0 %v10999_v0  ;;  %v11602_v0 = vld [vmem:[%s12031_s30 + $0xb0] sm:$0xff] }
 0x794   : > { %11004 = vmatprep.subr.bf16.mxu0 %v11003_v18 }
 0x797   : > { %11006 = vmatpush3.bf16.msra.mxu0 %v11003_v18  ;;  %v8941_v18 = vld [vmem:[%s15584_s10 + $0x2] sm:$0x3] }
 0x798   : > { %11016 = vmatprep.subr.bf16.mxu0 %v11015_v1  ;;  %v4152_v19 = vrot.slane %v8941_v18, %v15670_v52  ;;  %v11650_v52 = vld [vmem:[%s15479_s21 + $0x30] sm:$0xff] }
 0x865   : > { %v10299_v56 = vpop.f32.mrb[102].mxu0 }
 0x866   : > { %v3942_v28 = vadd.f32 %v10299_v56, %v8924_v8  ;;  %v3936_v29 = vpop.f32.mrb[103].mxu0  ;;  %v11604_v56 = vld [vmem:[%s12031_s30 + $0xc0] sm:$0xff] }
 0x867   : > { %v3937_v13 = vadd.f32 %v8924_v8, %v3936_v29  ;;  %v11603_v8 = vld [vmem:[%s12031_s30 + $0xb8] sm:$0xff]  ;;  %v11606_v29 = vld [vmem:[%s12031_s30 + $0xd0] sm:$0xff] }
 0x868   : > { %v3946_v4 = vmax.f32 %v3942_v28, 0.0  ;;  %v11605_v28 = vld [vmem:[%s12031_s30 + $0xc8] sm:$0xff] }
 0x869   : > { %v3945_v43 = vmax.f32 %v3937_v13, 0.0  ;;  %v11607_v13 = vld [vmem:[%s12031_s30 + $0xd8] sm:$0xff] }
 0x86b   : > { %10308 = vmatprep.mubr.msk.f32.mxu1 %vm1092_vm4, %v3945_v43  ;;  %v11608_v43 = vld [vmem:[%s12031_s30 + $0xe0] sm:$0xff] }
 0x86c   : > { %10309 = vmatmul.mubr.msk.f32.vlgmr.msra.gmra.mrb[102].mxu1 %vm1092_vm4, %v3946_v4  ;;  %v11609_v4 = vld [vmem:[%s12031_s30 + $0xe8] sm:$0xff] }
 0x86d   : > { %4229 = vmatprep.mubr.f32.mxu1 %v15664_v46  ;;  %11010 = vmatpush1.bf16.msra.mxu1 %v11009_v47  ;;  %v15671_v47 = vsub.s32 1, %v15669_v59  ;;  %v11649_v59 = vld [vmem:[%s15479_s21 + $0x28] sm:$0xff] }
 0x86e   : > { %11012 = vmatprep.subr.bf16.mxu1 %v11011_v22  ;;  %v15672_v22 = vld [vmem:[#allocation19_spill] sm:$0xff] }
 0x871   : > { %11014 = vmatpush1.bf16.msra.mxu1 %v11013_v25  ;;  %v15673_v25 = vld [vmem:[#allocation20_spill] sm:$0xff] }
 0x93f   : > { %v10310_v45 = vpop.f32.mrb[102].mxu1 }
 0x940   : > { %v4036_v44 = vadd.f32 %v10310_v45, %v8927_v40  ;;  %v4030_v26 = vpop.f32.mrb[103].mxu1 }
 0x941   : > { %v4031_v16 = vadd.f32 %v8927_v40, %v4030_v26  ;;  %v4156_v40 = vrot.slane %v8941_v18, %v15671_v47  ;;  %v11647_v18 = vld [vmem:[%s15479_s21 + $0x18] sm:$0xff]  ;;  %v11653_v47 = vld [vmem:[%s15479_s21 + $0x48] sm:$0xff] }
 0x942   : > { %v4040_v53 = vmax.f32 %v4036_v44, 0.0 }
 0x943   : > { %v4039_v31 = vmax.f32 %v4031_v16, 0.0 }
 0x945   : > { %10319 = vmatprep.mubr.msk.f32.mxu0 %vm1092_vm4, %v4039_v31 }
 0x946   : > { %10320 = vmatmul.mubr.msk.f32.vlgmr.msra.gmra.mrb[104].mxu0 %vm1092_vm4, %v4040_v53 }
 0x947   : > { %10326 = vmatprep.mubr.msk.f32.mxu0 %vm1178_vm5, %v11579_v41  ;;  %11018 = vmatpush3.bf16.msra.mxu0 %v11015_v1  ;;  %v13694_v1 = vld [vmem:[%s15481_s23 + $0x48] sm:$0xff] }
 0x94a   : > { %10327 = vmatmul.mubr.msk.f32.vlgmr.msra.gmra.mrb[106].mxu0 %vm1178_vm5, %v11581_v12  ;;  %v13701_v12 = vld [vmem:[%s15481_s23 + $0x50] sm:$0xff] }
 0x94b   : > { %10329 = vmatprep.mubr.msk.f32.mxu0 %vm1178_vm5, %v11582_v35  ;;  %v13708_v35 = vld [vmem:[%s15481_s23 + $0x58] sm:$0xff] }
 0x94e   : > { %10330 = vmatmul.mubr.msk.f32.gmra.mrb[108].mxu0 %vm1178_vm5, %v11583_v5  ;;  %v11623_v5 = vld [vmem:[%s15481_s23 + $0x60] sm:$0xff] }
 0x94f   : > { %10332 = vmatprep.mubr.msk.f32.mxu0 %vm1178_vm5, %v11584_v33  ;;  %v11624_v33 = vld [vmem:[%s15481_s23 + $0x68] sm:$0xff] }
 0x952   : > { %10333 = vmatmul.mubr.msk.f32.gmra.mrb[110].mxu0 %vm1178_vm5, %v11585_v63  ;;  %v11625_v63 = vld [vmem:[%s15481_s23 + $0x70] sm:$0xff] }
 0x953   : > { %10335 = vmatprep.mubr.msk.f32.mxu0 %vm1178_vm5, %v11586_v37  ;;  %v11626_v37 = vld [vmem:[%s15481_s23 + $0x78] sm:$0xff] }
 0x956   : > { %10336 = vmatmul.mubr.msk.f32.gmra.mrb[112].mxu0 %vm1178_vm5, %v11587_v14  ;;  %v11627_v14 = vld [vmem:[%s15481_s23 + $0x80] sm:$0xff] }
 0x957   : > { %10338 = vmatprep.mubr.msk.f32.mxu0 %vm1178_vm5, %v11588_v34  ;;  %v11628_v34 = vld [vmem:[%s15481_s23 + $0x88] sm:$0xff] }
 0x95a   : > { %10339 = vmatmul.mubr.msk.f32.gmra.mrb[114].mxu0 %vm1178_vm5, %v11589_v49  ;;  %v11629_v49 = vld [vmem:[%s15481_s23 + $0x90] sm:$0xff] }
 0x95b   : > { %10341 = vmatprep.mubr.msk.f32.mxu0 %vm1178_vm5, %v11590_v9  ;;  %v11630_v9 = vld [vmem:[%s15481_s23 + $0x98] sm:$0xff] }
 0x95e   : > { %10342 = vmatmul.mubr.msk.f32.gmra.mrb[116].mxu0 %vm1178_vm5, %v11591_v42  ;;  %v11631_v42 = vld [vmem:[%s15481_s23 + $0xa0] sm:$0xff] }
 0x95f   : > { %10344 = vmatprep.mubr.msk.f32.mxu0 %vm1178_vm5, %v11592_v58  ;;  %v11632_v58 = vld [vmem:[%s15481_s23 + $0xa8] sm:$0xff] }
 0x962   : > { %10345 = vmatmul.mubr.msk.f32.gmra.mrb[118].mxu0 %vm1178_vm5, %v11593_v2  ;;  %v11633_v2 = vld [vmem:[%s15481_s23 + $0xb0] sm:$0xff] }
 0x963   : > { %10347 = vmatprep.mubr.msk.f32.mxu0 %vm1178_vm5, %v11594_v55  ;;  %v11634_v55 = vld [vmem:[%s15481_s23 + $0xb8] sm:$0xff] }
 0xa19   : > { %v10321_v15 = vpop.f32.mrb[104].mxu0 }
 0xa1a   : > { %v4117_v62 = vpop.f32.mrb[105].mxu0  ;;  %v4127_v57 = vadd.f32 %v10321_v15, %v3852_v54  ;;  %v11596_v54 = vld [vmem:[%s12031_s30 + $0x80] sm:$0xff]  ;;  %v13647_v15 = vld [vmem:[%s15481_s23 + $0x18] sm:$0xff] }
 0xa1b   : > { %v4126_v51 = vadd.f32 %v4117_v62, %v3851_v39  ;;  %v11595_v39 = vld [vmem:[%s12031_s30 + $0x78] sm:$0xff]  ;;  %s15534_s30 = smov 32  }
 0xa1c   : > { %v13536_v48 = vadd.f32 %v8932_v61, %v4127_v57  ;;  %10348 = vmatmul.mubr.msk.f32.gmra.mrb[120].mxu0 %vm1178_vm5, %v11595_v39  ;;  %v15674_v62 = vld [vmem:[#allocation21_spill] sm:$0xff]  ;;  %v13670_v57 = vld [vmem:[%s15481_s23 + $0x30] sm:$0xff]  ;;  %v11635_v39 = vld [vmem:[%s15481_s23 + $0xc0] sm:$0xff] }
 0xa1d   : > { %v13531_v24 = vadd.f32 %v8932_v61, %v4126_v51  ;;  %10350 = vmatprep.mubr.msk.f32.mxu0 %vm1178_vm5, %v11596_v54  ;;  %v13654_v61 = vld [vmem:[%s15481_s23 + $0x20] sm:$0xff]  ;;  %v13663_v51 = vld [vmem:[%s15481_s23 + $0x28] sm:$0xff] }
 0xa1e   : > { %15668 = vst [vmem:[#allocation24_spill] sm:$0xff] %v13536_v48  ;;  %v11636_v54 = vld [vmem:[%s15481_s23 + $0xc8] sm:$0xff] }
 0xa1f   : > { %15667 = vst [vmem:[#allocation23_spill] sm:$0xff] %v13531_v24  ;;  %8942 = vmatmul.mubr.msk.f32.vlgmr.msra.gmra.mrb[104].mxu1 %vm1092_vm4, %v13531_v24 }
 0xa20   : > { %4235 = vmatprep.mubr.f32.mxu1 %v15664_v46  ;;  %10351 = vmatmul.mubr.msk.f32.gmra.mrb[122].mxu0 %vm1178_vm5, %v11597_v36  ;;  %v11637_v36 = vld [vmem:[%s15481_s23 + $0xd0] sm:$0xff] }
 0xa21   : > { %10353 = vmatprep.mubr.msk.f32.mxu0 %vm1178_vm5, %v11598_v20  ;;  %v11638_v20 = vld [vmem:[%s15481_s23 + $0xd8] sm:$0xff] }
 0xa23   : > { %8943 = vmatmul.mubr.msk.f32.gmra.mrb[106].mxu1 %vm1092_vm4, %v13536_v48 }
 0xa24   : > { %10378 = vmatprep.mubr.msk.f32.mxu1 %vm1178_vm5, %v13543_v23  ;;  %10354 = vmatmul.mubr.msk.f32.gmra.mrb[124].mxu0 %vm1178_vm5, %v11599_v6  ;;  %v11639_v6 = vld [vmem:[%s15481_s23 + $0xe0] sm:$0xff] }
 0xa25   : > { %10356 = vmatprep.mubr.msk.f32.mxu0 %vm1178_vm5, %v11600_v27  ;;  %v11640_v27 = vld [vmem:[%s15481_s23 + $0xe8] sm:$0xff] }
 0xa28   : > { %10357 = vmatmul.mubr.msk.f32.gmra.mrb[126].mxu0 %vm1178_vm5, %v11601_v50  ;;  %v11641_v50 = vld [vmem:[%s15481_s23 + $0xf0] sm:$0xff] }
 0xa29   : > { %10359 = vmatprep.mubr.msk.f32.mxu0 %vm1178_vm5, %v11602_v0  ;;  %v11642_v0 = vld [vmem:[%s15481_s23 + $0xf8] sm:$0xff] }
 0xa2c   : > { %10360 = vmatmul.mubr.msk.f32.gmra.mrb[128].mxu0 %vm1178_vm5, %v11603_v8 }
 0xa2d   : > { %10362 = vmatprep.mubr.msk.f32.mxu0 %vm1178_vm5, %v11604_v56 }
 0xa30   : > { %10363 = vmatmul.mubr.msk.f32.gmra.mrb[130].mxu0 %vm1178_vm5, %v11605_v28 }
 0xa31   : > { %10365 = vmatprep.mubr.msk.f32.mxu0 %vm1178_vm5, %v11606_v29 }
 0xa34   : > { %10366 = vmatmul.mubr.msk.f32.gmra.mrb[132].mxu0 %vm1178_vm5, %v11607_v13  ;;  %v13792_v13 = vpop.f32.mrb[106].mxu0 }
 0xa35   : > { %10368 = vmatprep.mubr.msk.f32.mxu0 %vm1178_vm5, %v11608_v43  ;;  %v11643_v43 = vld [vmem:[%s15483_s25] sm:$0xf] }
 0xa38   : > { %10369 = vmatmul.mubr.msk.f32.gmra.mrb[134].mxu0 %vm1178_vm5, %v11609_v4  ;;  %v11644_v4 = vld [vmem:[%s15479_s21] sm:$0xff] }
 0xa39   : > { %10371 = vmatprep.mubr.msk.f32.mxu0 %vm1178_vm5, %v11610_v32  ;;  %v11645_v32 = vld [vmem:[%s15479_s21 + $0x8] sm:$0xff] }
 0xa3c   : > { %10372 = vmatmul.mubr.msk.f32.gmra.mrb[136].mxu0 %vm1178_vm5, %v11611_v21  ;;  %v11646_v21 = vld [vmem:[%s15479_s21 + $0x10] sm:$0xff] }
 0xa3d   : > { %10430 = vmatprep.mubr.msk.f32.mxu0 %vm1178_vm5, %v13543_v23  ;;  %v15675_v23 = vld [vmem:[#allocation22_spill] sm:$0xff] }
 0xaf2   : > { %v4231_v60 = vpop.f32.mrb[104].mxu1 }
 0xaf3   : > { %v4233_v7 = vpop.f32.mrb[105].mxu1  ;;  %v4232_v44 = vadd.f32 %v4231_v60, %v4152_v19  ;;  %v11648_v60 = vld [vmem:[%s15479_s21 + $0x20] sm:$0xff] }
 0xaf4   : > { %v4234_v31 = vadd.f32 %v4233_v7, %v4156_v40  ;;  %v11652_v7 = vld [vmem:[%s15479_s21 + $0x40] sm:$0xff] }
 0xaf6   : > { %v4237_v45 = vpop.f32.mrb[106].mxu1 }
 0xaf7   : > { %v4238_v26 = vadd.f32 %v4237_v45, %v4152_v19  ;;  %v4239_v16 = vpop.f32.mrb[107].mxu1  ;;  %v11651_v19 = vld [vmem:[%s15479_s21 + $0x38] sm:$0xff] }
 0xaf8   : > { %v4240_v53 = vadd.f32 %v4239_v16, %v4156_v40  ;;  %v11654_v40 = vld [vmem:[%s15479_s21 + $0x50] sm:$0xff]  ;;  %v11655_v45 = vld [vmem:[%s15479_s21 + $0x58] sm:$0xff] }
 0xaf9   : > { %v11349_v41 = vpack.i.bf16 %v4238_v26, %v4232_v44  ;;  %v13624_v3 = vpack.c.bf16 %v4238_v26, %v4232_v44  ;;  %v13891_v44 = vpop.f32.mrb[107].mxu0  ;;  %v11656_v26 = vld [vmem:[%s15479_s21 + $0x60] sm:$0xff] }
 0xafa   : > { %v11023_v17 = vpack.c.bf16 %v4240_v53, %v4234_v31  ;;  %v13897_v16 = vpop.f32.mrb[108].mxu0  ;;  %v11657_v31 = vld [vmem:[%s15479_s21 + $0x68] sm:$0xff] }
 0xafb   : > { %11350 = vrot.lane.b32.xlu1 %v11349_v41, %s15585_s0  ;;  %v13903_v53 = vpop.f32.mrb[109].mxu0  ;;  %v11658_v41 = vld [vmem:[%s15479_s21 + $0x70] sm:$0xff] }
 0xafc   : > { %11024 = vmatprep.subr.bf16.mxu0 %v11023_v17 }
 0xafd   : > { %11026 = vmatpush3.bf16.msra.mxu0 %v11023_v17  ;;  %v11659_v17 = vld [vmem:[%s15479_s21 + $0x78] sm:$0xff] }
 0xafe   : > { %11032 = vmatprep.subr.bf16.mxu0 %v15672_v22 }
 0xb00   : > { %10431 = vmatmul.mubr.msk.f32.vlgmr.msra.gmra.mrb[138].mxu0 %vm1178_vm5, %v13631_v38 }
 0xb01   : > { %10433 = vmatprep.mubr.msk.f32.mxu0 %vm1178_vm5, %v13638_v30  ;;  %11034 = vmatpush3.bf16.msra.mxu0 %v15672_v22 }
 0xb02   : > { %11036 = vmatprep.subr.bf16.mxu0 %v15673_v25 }
 0xb04   : > { %10434 = vmatmul.mubr.msk.f32.gmra.mrb[140].mxu0 %vm1178_vm5, %v13647_v15 }
 0xb05   : > { %10436 = vmatprep.mubr.msk.f32.mxu0 %vm1178_vm5, %v13654_v61  ;;  %11038 = vmatpush3.bf16.msra.mxu0 %v15673_v25  ;;  %v11661_v25 = vld [vmem:[%s15479_s21 + $0x88] sm:$0xff] }
 0xb06   : > { %11040 = vmatprep.subr.bf16.mxu0 %v15674_v62 }
 0xb08   : > { %10437 = vmatmul.mubr.msk.f32.gmra.mrb[142].mxu0 %vm1178_vm5, %v13663_v51 }
 0xb09   : > { %10439 = vmatprep.mubr.msk.f32.mxu0 %vm1178_vm5, %v13670_v57  ;;  %11042 = vmatpush3.bf16.msra.mxu0 %v15674_v62 }
 0xb0a   : > { %11044 = vmatprep.subr.bf16.mxu0 %v15675_v23 }
 0xb0c   : > { %10440 = vmatmul.mubr.msk.f32.gmra.mrb[144].mxu0 %vm1178_vm5, %v13679_v11 }
 0xb0d   : > { %10442 = vmatprep.mubr.msk.f32.mxu0 %vm1178_vm5, %v13686_v10  ;;  %11046 = vmatpush3.bf16.msra.mxu0 %v15675_v23  ;;  %v11664_v23 = vld [vmem:[%s15479_s21 + $0xa0] sm:$0xff] }
 0xb10   : > { %10443 = vmatmul.mubr.msk.f32.gmra.mrb[146].mxu0 %vm1178_vm5, %v13694_v1 }
 0xb11   : > { %10445 = vmatprep.mubr.msk.f32.mxu0 %vm1178_vm5, %v13701_v12 }
 0xb14   : > { %10446 = vmatmul.mubr.msk.f32.gmra.mrb[148].mxu0 %vm1178_vm5, %v13708_v35 }
 0xb15   : > { %10448 = vmatprep.mubr.msk.f32.mxu0 %vm1178_vm5, %v11623_v5 }
 0xb18   : > { %10449 = vmatmul.mubr.msk.f32.gmra.mrb[150].mxu0 %vm1178_vm5, %v11624_v33 }
 0xb19   : > { %10451 = vmatprep.mubr.msk.f32.mxu0 %vm1178_vm5, %v11625_v63 }
 0xb1c   : > { %10452 = vmatmul.mubr.msk.f32.gmra.mrb[152].mxu0 %vm1178_vm5, %v11626_v37 }
 0xb1d   : > { %10454 = vmatprep.mubr.msk.f32.mxu0 %vm1178_vm5, %v11627_v14 }
 0xb20   : > { %10455 = vmatmul.mubr.msk.f32.gmra.mrb[154].mxu0 %vm1178_vm5, %v11628_v34 }
 0xb21   : > { %10457 = vmatprep.mubr.msk.f32.mxu0 %vm1178_vm5, %v11629_v49 }
 0xb24   : > { %10458 = vmatmul.mubr.msk.f32.gmra.mrb[156].mxu0 %vm1178_vm5, %v11630_v9 }
 0xb25   : > { %10460 = vmatprep.mubr.msk.f32.mxu0 %vm1178_vm5, %v11631_v42 }
 0xb28   : > { %10461 = vmatmul.mubr.msk.f32.gmra.mrb[158].mxu0 %vm1178_vm5, %v11632_v58 }
 0xb29   : > { %10463 = vmatprep.mubr.msk.f32.mxu0 %vm1178_vm5, %v11633_v2 }
 0xb2c   : > { %10464 = vmatmul.mubr.msk.f32.gmra.mrb[160].mxu0 %vm1178_vm5, %v11634_v55 }
 0xb2d   : > { %10466 = vmatprep.mubr.msk.f32.mxu0 %vm1178_vm5, %v11635_v39 }
 0xb30   : > { %10467 = vmatmul.mubr.msk.f32.gmra.mrb[162].mxu0 %vm1178_vm5, %v11636_v54 }
 0xb31   : > { %10469 = vmatprep.mubr.msk.f32.mxu0 %vm1178_vm5, %v11637_v36 }
 0xb34   : > { %10470 = vmatmul.mubr.msk.f32.gmra.mrb[164].mxu0 %vm1178_vm5, %v11638_v20 }
 0xb35   : > { %10472 = vmatprep.mubr.msk.f32.mxu0 %vm1178_vm5, %v11639_v6 }
 0xb38   : > { %10473 = vmatmul.mubr.msk.f32.gmra.mrb[166].mxu0 %vm1178_vm5, %v11640_v27 }
 0xb39   : > { %10475 = vmatprep.mubr.msk.f32.mxu0 %vm1178_vm5, %v11641_v50 }
 0xb3c   : > { %10476 = vmatmul.mubr.msk.f32.gmra.mrb[168].mxu0 %vm1178_vm5, %v11642_v0 }
 0xb6d   : > { %v11351_v8 = vpop.permute.xlu1 %11350 }
 0xb6e   : > { %v11353_v56 = vunpack.i.h.bf16 %v11351_v8  ;;  %v11352_v28 = vunpack.i.l.bf16 %v11351_v8 }
 0xb70   : > { %v11019_v29 = vpack.c.bf16 %v11353_v56, %v11352_v28 }
 0xb72   : > { %11020 = vmatprep.subr.bf16.mxu1 %v11019_v29 }
 0xb73   : > { %11022 = vmatpush3.bf16.msra.mxu1 %v11019_v29 }
 0xb74   : > { %11028 = vmatprep.subr.bf16.mxu1 %v13624_v3 }
 0xb76   : > { %10379 = vmatmul.mubr.msk.f32.vlgmr.msra.gmra.mrb[108].mxu1 %vm1178_vm5, %v13631_v38  ;;  %v11660_v38 = vld [vmem:[%s15479_s21 + $0x80] sm:$0xff] }
 0xb77   : > { %11030 = vmatpush3.bf16.msra.mxu1 %v13624_v3  ;;  %10381 = vmatprep.mubr.msk.f32.mxu1 %vm1178_vm5, %v13638_v30  ;;  %v13909_v3 = vpop.f32.mrb[110].mxu0 }
 0xb78   : > { %10594 = vmatprep.subr.msk.mxu1 %vm993_vm0, %v11643_v43  ;;  %v13915_v22 = vpop.f32.mrb[111].mxu0 }
 0xb79   : > { %v13921_v30 = vpop.f32.mrb[112].mxu0 }
 0xb7a   : > { %10382 = vmatmul.mubr.msk.f32.gmra.mrb[110].mxu1 %vm1178_vm5, %v13647_v15  ;;  %v13927_v15 = vpop.f32.mrb[113].mxu0 }
 0xb7b   : > { %10384 = vmatprep.mubr.msk.f32.mxu1 %vm1178_vm5, %v13654_v61  ;;  %v11662_v61 = vld [vmem:[%s15479_s21 + $0x90] sm:$0xff]  ;;  %v13933_v62 = vpop.f32.mrb[114].mxu0 }
 0xb7e   : > { %10385 = vmatmul.mubr.msk.f32.gmra.mrb[112].mxu1 %vm1178_vm5, %v13663_v51  ;;  %v11663_v51 = vld [vmem:[%s15479_s21 + $0x98] sm:$0xff] }
 0xb7f   : > { %10387 = vmatprep.mubr.msk.f32.mxu1 %vm1178_vm5, %v13670_v57  ;;  %v13939_v57 = vpop.f32.mrb[115].mxu0 }
 0xb82   : > { %10388 = vmatmul.mubr.msk.f32.gmra.mrb[114].mxu1 %vm1178_vm5, %v13679_v11  ;;  %v13945_v11 = vpop.f32.mrb[116].mxu0 }
 0xb83   : > { %10390 = vmatprep.mubr.msk.f32.mxu1 %vm1178_vm5, %v13686_v10  ;;  %v11665_v10 = vld [vmem:[%s15479_s21 + $0xa8] sm:$0xff] }
 0xb86   : > { %10391 = vmatmul.mubr.msk.f32.gmra.mrb[116].mxu1 %vm1178_vm5, %v13694_v1  ;;  %v13951_v1 = vpop.f32.mrb[117].mxu0 }
 0xb87   : > { %10393 = vmatprep.mubr.msk.f32.mxu1 %vm1178_vm5, %v13701_v12  ;;  %v11666_v12 = vld [vmem:[%s15479_s21 + $0xb0] sm:$0xff] }
 0xb8a   : > { %10394 = vmatmul.mubr.msk.f32.gmra.mrb[118].mxu1 %vm1178_vm5, %v13708_v35  ;;  %v13957_v35 = vpop.f32.mrb[118].mxu0 }
 0xb8b   : > { %10396 = vmatprep.mubr.msk.f32.mxu1 %vm1178_vm5, %v11623_v5  ;;  %v11667_v5 = vld [vmem:[%s15479_s21 + $0xb8] sm:$0xff] }
 0xb8e   : > { %10397 = vmatmul.mubr.msk.f32.gmra.mrb[120].mxu1 %vm1178_vm5, %v11624_v33  ;;  %v13963_v33 = vpop.f32.mrb[119].mxu0 }
 0xb8f   : > { %10399 = vmatprep.mubr.msk.f32.mxu1 %vm1178_vm5, %v11625_v63  ;;  %v11668_v63 = vld [vmem:[%s15479_s21 + $0xc0] sm:$0xff] }
 0xb92   : > { %10400 = vmatmul.mubr.msk.f32.gmra.mrb[122].mxu1 %vm1178_vm5, %v11626_v37  ;;  %v13969_v37 = vpop.f32.mrb[120].mxu0 }
 0xb93   : > { %10402 = vmatprep.mubr.msk.f32.mxu1 %vm1178_vm5, %v11627_v14  ;;  %v13971_v14 = vpop.f32.mrb[121].mxu0 }
 0xb96   : > { %10403 = vmatmul.mubr.msk.f32.gmra.mrb[124].mxu1 %vm1178_vm5, %v11628_v34  ;;  %v11669_v34 = vld [vmem:[%s15479_s21 + $0xc8] sm:$0xff] }
 0xb97   : > { %10405 = vmatprep.mubr.msk.f32.mxu1 %vm1178_vm5, %v11629_v49  ;;  %v13977_v49 = vpop.f32.mrb[122].mxu0 }
 0xb98   : > { %4769 = vrot.lane.b32.xlu1 %v13977_v49, %s15585_s0 }
 0xb9a   : > { %10406 = vmatmul.mubr.msk.f32.gmra.mrb[126].mxu1 %vm1178_vm5, %v11630_v9  ;;  %v11670_v9 = vld [vmem:[%s15479_s21 + $0xd0] sm:$0xff] }
 0xb9b   : > { %10408 = vmatprep.mubr.msk.f32.mxu1 %vm1178_vm5, %v11631_v42  ;;  %v13983_v42 = vpop.f32.mrb[123].mxu0 }
 0xb9c   : > { %4767 = vrot.lane.b32.xlu0 %v13983_v42, %s15585_s0  ;;  %4737 = vrot.lane.b32.xlu1 %v13792_v13, %s15585_s0 }
 0xb9e   : > { %10409 = vmatmul.mubr.msk.f32.gmra.mrb[128].mxu1 %vm1178_vm5, %v11632_v58  ;;  %v11671_v58 = vld [vmem:[%s15479_s21 + $0xd8] sm:$0xff] }
 0xb9f   : > { %10411 = vmatprep.mubr.msk.f32.mxu1 %vm1178_vm5, %v11633_v2  ;;  %v11672_v2 = vld [vmem:[%s15479_s21 + $0xe0] sm:$0xff] }
 0xba0   : > { %4735 = vrot.lane.b32.xlu0 %v13891_v44, %s15585_s0 }
 0xba2   : > { %10412 = vmatmul.mubr.msk.f32.gmra.mrb[130].mxu1 %vm1178_vm5, %v11634_v55  ;;  %v13999_v55 = vpop.f32.mrb[124].mxu0 }
 0xba3   : > { %10414 = vmatprep.mubr.msk.f32.mxu1 %vm1178_vm5, %v11635_v39  ;;  %v11673_v39 = vld [vmem:[%s15479_s21 + $0xe8] sm:$0xff]  ;;  %4773 = vrot.lane.b32.xlu1 %v13999_v55, %s15585_s0 }
 0xba6   : > { %10415 = vmatmul.mubr.msk.f32.gmra.mrb[132].mxu1 %vm1178_vm5, %v11636_v54  ;;  %v14007_v54 = vpop.f32.mrb[125].mxu0 }
 0xba7   : > { %10417 = vmatprep.mubr.msk.f32.mxu1 %vm1178_vm5, %v11637_v36  ;;  %v11674_v36 = vld [vmem:[%s15479_s21 + $0xf0] sm:$0xff]  ;;  %4771 = vrot.lane.b32.xlu0 %v14007_v54, %s15585_s0 }
 0xba8   : > { %4741 = vrot.lane.b32.xlu1 %v13897_v16, %s15585_s0 }
 0xbaa   : > { %10418 = vmatmul.mubr.msk.f32.gmra.mrb[134].mxu1 %vm1178_vm5, %v11638_v20  ;;  %v14015_v20 = vpop.f32.mrb[126].mxu0 }
 0xbab   : > { %10420 = vmatprep.mubr.msk.f32.mxu1 %vm1178_vm5, %v11639_v6  ;;  %v11675_v6 = vld [vmem:[%s15479_s21 + $0xf8] sm:$0xff]  ;;  %4739 = vrot.lane.b32.xlu0 %v13903_v53, %s15585_s0 }
 0xbac   : > { %4777 = vrot.lane.b32.xlu1 %v14015_v20, %s15585_s0 }
 0xbae   : > { %10421 = vmatmul.mubr.msk.f32.gmra.mrb[136].mxu1 %vm1178_vm5, %v11640_v27  ;;  %v14023_v27 = vpop.f32.mrb[127].mxu0 }
 0xbaf   : > { %10423 = vmatprep.mubr.msk.f32.mxu1 %vm1178_vm5, %v11641_v50  ;;  %v14027_v50 = vpop.f32.mrb[128].mxu0  ;;  %4775 = vrot.lane.b32.xlu0 %v14023_v27, %s15585_s0 }
 0xbb0   : > { %4745 = vrot.lane.b32.xlu1 %v13909_v3, %s15585_s0 }
 0xbb2   : > { %10424 = vmatmul.mubr.msk.f32.gmra.mrb[138].mxu1 %vm1178_vm5, %v11642_v0  ;;  %v14031_v0 = vpop.f32.mrb[129].mxu0 }
 0xbb3   : > { %10482 = vmatprep.mubr.msk.f32.mxu1 %vm1178_vm5, %v11644_v4  ;;  %v14035_v8 = vpop.f32.mrb[130].mxu0  ;;  %4743 = vrot.lane.b32.xlu0 %v13915_v22, %s15585_s0 }
 0xbb4   : > { %v14039_v56 = vpop.f32.mrb[131].mxu0  ;;  %4781 = vrot.lane.b32.xlu1 %v14027_v50, %s15585_s0 }
 0xbb5   : > { %v14043_v28 = vpop.f32.mrb[132].mxu0 }
 0xbb6   : > { %10483 = vmatmul.mubr.msk.f32.vlgmr.msra.gmra.mrb[140].mxu1 %vm1178_vm5, %v11645_v32  ;;  %v14047_v29 = vpop.f32.mrb[133].mxu0 }
 0xbb7   : > { %10485 = vmatprep.mubr.msk.f32.mxu1 %vm1178_vm5, %v11646_v21  ;;  %10595 = vmatpush3.msk.msra.mxu1 %vm993_vm0, %v11643_v43  ;;  %v14051_v43 = vpop.f32.mrb[134].mxu0 }
 0xbb8   : > { %4779 = vrot.lane.b32.xlu0 %v14031_v0, %s15585_s0  ;;  %v14055_v4 = vpop.f32.mrb[135].mxu0  ;;  %4749 = vrot.lane.b32.xlu1 %v13921_v30, %s15585_s0 }
 0xbb9   : > { %v14059_v32 = vpop.f32.mrb[136].mxu0 }
 0xbba   : > { %10486 = vmatmul.mubr.msk.f32.gmra.mrb[142].mxu1 %vm1178_vm5, %v11647_v18  ;;  %v14063_v21 = vpop.f32.mrb[137].mxu0 }
 0xbbb   : > { %10488 = vmatprep.mubr.msk.f32.mxu1 %vm1178_vm5, %v11648_v60 }
 0xbbc   : > { %4747 = vrot.lane.b32.xlu0 %v13927_v15, %s15585_s0  ;;  %4785 = vrot.lane.b32.xlu1 %v14035_v8, %s15585_s0 }
 0xbbe   : > { %10489 = vmatmul.mubr.msk.f32.gmra.mrb[144].mxu1 %vm1178_vm5, %v11649_v59 }
 0xbbf   : > { %10491 = vmatprep.mubr.msk.f32.mxu1 %vm1178_vm5, %v11650_v52 }
 0xbc0   : > { %4783 = vrot.lane.b32.xlu0 %v14039_v56, %s15585_s0  ;;  %4753 = vrot.lane.b32.xlu1 %v13933_v62, %s15585_s0 }
 0xbc2   : > { %10492 = vmatmul.mubr.msk.f32.gmra.mrb[146].mxu1 %vm1178_vm5, %v11651_v19 }
 0xbc3   : > { %10494 = vmatprep.mubr.msk.f32.mxu1 %vm1178_vm5, %v11652_v7 }
 0xbc4   : > { %4751 = vrot.lane.b32.xlu0 %v13939_v57, %s15585_s0  ;;  %4789 = vrot.lane.b32.xlu1 %v14043_v28, %s15585_s0 }
 0xbc6   : > { %10495 = vmatmul.mubr.msk.f32.gmra.mrb[148].mxu1 %vm1178_vm5, %v11653_v47 }
 0xbc7   : > { %10497 = vmatprep.mubr.msk.f32.mxu1 %vm1178_vm5, %v11654_v40 }
 0xbc8   : > { %4787 = vrot.lane.b32.xlu0 %v14047_v29, %s15585_s0  ;;  %4757 = vrot.lane.b32.xlu1 %v13945_v11, %s15585_s0 }
 0xbca   : > { %10498 = vmatmul.mubr.msk.f32.gmra.mrb[150].mxu1 %vm1178_vm5, %v11655_v45 }
 0xbcb   : > { %10500 = vmatprep.mubr.msk.f32.mxu1 %vm1178_vm5, %v11656_v26 }
 0xbcc   : > { %4755 = vrot.lane.b32.xlu0 %v13951_v1, %s15585_s0  ;;  %4793 = vrot.lane.b32.xlu1 %v14051_v43, %s15585_s0 }
 0xbce   : > { %10501 = vmatmul.mubr.msk.f32.gmra.mrb[152].mxu1 %vm1178_vm5, %v11657_v31 }
 0xbcf   : > { %10503 = vmatprep.mubr.msk.f32.mxu1 %vm1178_vm5, %v11658_v41 }
 0xbd0   : > { %4791 = vrot.lane.b32.xlu0 %v14055_v4, %s15585_s0  ;;  %4761 = vrot.lane.b32.xlu1 %v13957_v35, %s15585_s0 }
 0xbd2   : > { %10504 = vmatmul.mubr.msk.f32.gmra.mrb[154].mxu1 %vm1178_vm5, %v11659_v17 }
 0xbd3   : > { %10506 = vmatprep.mubr.msk.f32.mxu1 %vm1178_vm5, %v11660_v38  ;;  %v14100_v52 = vpop.f32.mrb[138].mxu0 }
 0xbd4   : > { %4759 = vrot.lane.b32.xlu0 %v13963_v33, %s15585_s0  ;;  %4797 = vrot.lane.b32.xlu1 %v14059_v32, %s15585_s0  ;;  %15676 = vst [vmem:[#allocation25_spill] sm:$0xff] %v14100_v52  ;;  %v14105_v7 = vpop.f32.mrb[139].mxu0 }
 0xbd5   : > { %15677 = vst [vmem:[#allocation26_spill] sm:$0xff] %v14105_v7 }
 0xbd6   : > { %10507 = vmatmul.mubr.msk.f32.gmra.mrb[156].mxu1 %vm1178_vm5, %v11661_v25 }
 0xbd7   : > { %10509 = vmatprep.mubr.msk.f32.mxu1 %vm1178_vm5, %v11662_v61  ;;  %v14107_v47 = vpop.f32.mrb[140].mxu0 }
 0xbd8   : > { %4795 = vrot.lane.b32.xlu0 %v14063_v21, %s15585_s0  ;;  %4765 = vrot.lane.b32.xlu1 %v13969_v37, %s15585_s0  ;;  %15678 = vst [vmem:[#allocation27_spill] sm:$0xff] %v14107_v47  ;;  %v14109_v45 = vpop.f32.mrb[141].mxu0 }
 0xbd9   : > { %15679 = vst [vmem:[#allocation28_spill] sm:$0xff] %v14109_v45 }
 0xbda   : > { %10510 = vmatmul.mubr.msk.f32.gmra.mrb[158].mxu1 %vm1178_vm5, %v11663_v51 }
 0xbdb   : > { %10512 = vmatprep.mubr.msk.f32.mxu1 %vm1178_vm5, %v11664_v23  ;;  %v14114_v41 = vpop.f32.mrb[142].mxu0 }
 0xbdc   : > { %4763 = vrot.lane.b32.xlu0 %v13971_v14, %s15585_s0  ;;  %15680 = vst [vmem:[#allocation29_spill] sm:$0xff] %v14114_v41  ;;  %v14119_v17 = vpop.f32.mrb[143].mxu0 }
 0xbdd   : > { %15681 = vst [vmem:[#allocation30_spill] sm:$0xff] %v14119_v17 }
 0xbde   : > { %10513 = vmatmul.mubr.msk.f32.gmra.mrb[160].mxu1 %vm1178_vm5, %v11665_v10 }
 0xbdf   : > { %10515 = vmatprep.mubr.msk.f32.mxu1 %vm1178_vm5, %v11666_v12 }
 0xbe2   : > { %10516 = vmatmul.mubr.msk.f32.gmra.mrb[162].mxu1 %vm1178_vm5, %v11667_v5 }
 0xbe3   : > { %10518 = vmatprep.mubr.msk.f32.mxu1 %vm1178_vm5, %v11668_v63 }
 0xbe6   : > { %10519 = vmatmul.mubr.msk.f32.gmra.mrb[164].mxu1 %vm1178_vm5, %v11669_v34 }
 0xbe7   : > { %10521 = vmatprep.mubr.msk.f32.mxu1 %vm1178_vm5, %v11670_v9 }
 0xbea   : > { %10522 = vmatmul.mubr.msk.f32.gmra.mrb[166].mxu1 %vm1178_vm5, %v11671_v58 }
 0xbeb   : > { %10524 = vmatprep.mubr.msk.f32.mxu1 %vm1178_vm5, %v11672_v2 }
 0xbee   : > { %10525 = vmatmul.mubr.msk.f32.gmra.mrb[168].mxu1 %vm1178_vm5, %v11673_v39 }
 0xbef   : > { %10527 = vmatprep.mubr.msk.f32.mxu1 %vm1178_vm5, %v11674_v36 }
 0xbf2   : > { %10528 = vmatmul.mubr.msk.f32.gmra.mrb[170].mxu1 %vm1178_vm5, %v11675_v6 }
 0xc49   : > { %v10380_v18 = vpop.f32.mrb[108].mxu1 }
 0xc4a   : > { %v14098_v60 = vadd.f32 %v10380_v18, %v13792_v13  ;;  %v4544_v59 = vpop.f32.mrb[109].mxu1 }
 0xc4b   : > { %v14103_v19 = vadd.f32 %v4544_v59, %v13891_v44  ;;  %v14121_v44 = vpop.f32.mrb[144].mxu0 }
 0xc4c   : > { %15682 = vst [vmem:[#allocation31_spill] sm:$0xff] %v14121_v44  ;;  %v14123_v25 = vpop.f32.mrb[145].mxu0 }
 0xc4d   : > { %v10383_v40 = vpop.f32.mrb[110].mxu1  ;;  %15683 = vst [vmem:[#allocation32_spill] sm:$0xff] %v14123_v25  ;;  %v14128_v23 = vpop.f32.mrb[146].mxu0 }
 0xc4e   : > { %v14112_v26 = vadd.f32 %v10383_v40, %v13897_v16  ;;  %v4554_v31 = vpop.f32.mrb[111].mxu1  ;;  %15684 = vst [vmem:[#allocation33_spill] sm:$0xff] %v14128_v23  ;;  %v14133_v10 = vpop.f32.mrb[147].mxu0 }
 0xc4f   : > { %v14117_v13 = vadd.f32 %v4554_v31, %v13903_v53  ;;  %15685 = vst [vmem:[#allocation34_spill] sm:$0xff] %v14133_v10  ;;  %v14135_v53 = vpop.f32.mrb[148].mxu0 }
 0xc50   : > { %15686 = vst [vmem:[#allocation35_spill] sm:$0xff] %v14135_v53  ;;  %v14137_v5 = vpop.f32.mrb[149].mxu0 }
 0xc51   : > { %v10386_v38 = vpop.f32.mrb[112].mxu1  ;;  %15687 = vst [vmem:[#allocation36_spill] sm:$0xff] %v14137_v5  ;;  %v14142_v9 = vpop.f32.mrb[150].mxu0 }
 0xc52   : > { %v14126_v61 = vadd.f32 %v10386_v38, %v13909_v3  ;;  %v4564_v51 = vpop.f32.mrb[113].mxu1  ;;  %15688 = vst [vmem:[#allocation37_spill] sm:$0xff] %v14142_v9  ;;  %v14147_v58 = vpop.f32.mrb[151].mxu0 }
 0xc53   : > { %v14131_v16 = vadd.f32 %v4564_v51, %v13915_v22  ;;  %15689 = vst [vmem:[#allocation38_spill] sm:$0xff] %v14147_v58  ;;  %v14149_v22 = vpop.f32.mrb[152].mxu0 }
 0xc54   : > { %15690 = vst [vmem:[#allocation39_spill] sm:$0xff] %v14149_v22 }
 0xc55   : > { %v10389_v12 = vpop.f32.mrb[114].mxu1 }
 0xc56   : > { %v14140_v63 = vadd.f32 %v10389_v12, %v13921_v30  ;;  %v4574_v34 = vpop.f32.mrb[115].mxu1  ;;  %v14157_v30 = vpop.f32.mrb[153].mxu0 }
 0xc57   : > { %v14145_v3 = vadd.f32 %v4574_v34, %v13927_v15  ;;  %15691 = vst [vmem:[#allocation40_spill] sm:$0xff] %v14157_v30  ;;  %v14159_v18 = vpop.f32.mrb[154].mxu0 }
 0xc58   : > { %15692 = vst [vmem:[#allocation41_spill] sm:$0xff] %v14159_v18  ;;  %v14167_v38 = vpop.f32.mrb[155].mxu0 }
 0xc59   : > { %v10392_v2 = vpop.f32.mrb[116].mxu1  ;;  %15693 = vst [vmem:[#allocation42_spill] sm:$0xff] %v14167_v38 }
 0xc5a   : > { %v14152_v39 = vadd.f32 %v10392_v2, %v13933_v62  ;;  %v4584_v36 = vpop.f32.mrb[117].mxu1  ;;  %v14169_v62 = vpop.f32.mrb[156].mxu0 }
 0xc5b   : > { %v14155_v6 = vadd.f32 %v4584_v36, %v13939_v57  ;;  %15694 = vst [vmem:[#allocation43_spill] sm:$0xff] %v14169_v62  ;;  %v14177_v2 = vpop.f32.mrb[157].mxu0 }
 0xc5c   : > { %15695 = vst [vmem:[#allocation44_spill] sm:$0xff] %v14177_v2 }
 0xc5d   : > { %v10395_v59 = vpop.f32.mrb[118].mxu1 }
 0xc5e   : > { %v14162_v15 = vadd.f32 %v10395_v59, %v13945_v11  ;;  %v4594_v40 = vpop.f32.mrb[119].mxu1  ;;  %v14179_v11 = vpop.f32.mrb[158].mxu0 }
 0xc5f   : > { %v14165_v31 = vadd.f32 %v4594_v40, %v13951_v1  ;;  %15696 = vst [vmem:[#allocation45_spill] sm:$0xff] %v14179_v11  ;;  %v14187_v46 = vpop.f32.mrb[159].mxu0 }
 0xc60   : > { %15697 = vst [vmem:[#allocation46_spill] sm:$0xff] %v14187_v46 }
 0xc61   : > { %v10398_v51 = vpop.f32.mrb[120].mxu1 }
 0xc62   : > { %v14172_v57 = vadd.f32 %v10398_v51, %v13957_v35  ;;  %v4604_v12 = vpop.f32.mrb[121].mxu1  ;;  %v14189_v35 = vpop.f32.mrb[160].mxu0 }
 0xc63   : > { %v14175_v34 = vadd.f32 %v4604_v12, %v13963_v33  ;;  %15698 = vst [vmem:[#allocation47_spill] sm:$0xff] %v14189_v35  ;;  %v14197_v48 = vpop.f32.mrb[161].mxu0 }
 0xc64   : > { %15699 = vst [vmem:[#allocation48_spill] sm:$0xff] %v14197_v48 }
 0xc65   : > { %v10401_v36 = vpop.f32.mrb[122].mxu1 }
 0xc66   : > { %v14182_v1 = vadd.f32 %v10401_v36, %v13969_v37  ;;  %v4614_v59 = vpop.f32.mrb[123].mxu1  ;;  %v14199_v37 = vpop.f32.mrb[162].mxu0 }
 0xc67   : > { %v14185_v40 = vadd.f32 %v4614_v59, %v13971_v14  ;;  %15700 = vst [vmem:[#allocation49_spill] sm:$0xff] %v14199_v37  ;;  %v14207_v35 = vpop.f32.mrb[163].mxu0 }
 0xc68   : > { %15701 = vst [vmem:[#allocation50_spill] sm:$0xff] %v14207_v35 }
 0xc69   : > { %v10404_v51 = vpop.f32.mrb[124].mxu1 }
 0xc6a   : > { %v14192_v33 = vadd.f32 %v10404_v51, %v13977_v49  ;;  %v4624_v12 = vpop.f32.mrb[125].mxu1  ;;  %v14209_v49 = vpop.f32.mrb[164].mxu0 }
 0xc6b   : > { %v14195_v24 = vadd.f32 %v4624_v12, %v13983_v42  ;;  %15702 = vst [vmem:[#allocation51_spill] sm:$0xff] %v14209_v49  ;;  %v14217_v37 = vpop.f32.mrb[165].mxu0 }
 0xc6c   : > { %15703 = vst [vmem:[#allocation52_spill] sm:$0xff] %v14217_v37 }
 0xc6d   : > { %v10407_v36 = vpop.f32.mrb[126].mxu1 }
 0xc6e   : > { %v14202_v14 = vadd.f32 %v10407_v36, %v13999_v55  ;;  %v4634_v59 = vpop.f32.mrb[127].mxu1  ;;  %v14219_v55 = vpop.f32.mrb[166].mxu0 }
 0xc6f   : > { %v14205_v46 = vadd.f32 %v4634_v59, %v14007_v54  ;;  %15704 = vst [vmem:[#allocation53_spill] sm:$0xff] %v14219_v55  ;;  %v14227_v49 = vpop.f32.mrb[167].mxu0 }
 0xc70   : > { %15705 = vst [vmem:[#allocation54_spill] sm:$0xff] %v14227_v49 }
 0xc71   : > { %v10410_v51 = vpop.f32.mrb[128].mxu1 }
 0xc72   : > { %v14212_v42 = vadd.f32 %v10410_v51, %v14015_v20  ;;  %v4644_v12 = vpop.f32.mrb[129].mxu1  ;;  %v14229_v20 = vpop.f32.mrb[168].mxu0 }
 0xc73   : > { %v14215_v48 = vadd.f32 %v4644_v12, %v14023_v27  ;;  %15706 = vst [vmem:[#allocation17_spill] sm:$0xff] %v14229_v20  ;;  %v14237_v55 = vpop.f32.mrb[169].mxu0 }
 0xc74   : > { %15707 = vst [vmem:[#allocation16_spill] sm:$0xff] %v14237_v55 }
 0xc75   : > { %v10413_v36 = vpop.f32.mrb[130].mxu1 }
 0xc76   : > { %v14222_v54 = vadd.f32 %v10413_v36, %v14027_v50  ;;  %v4654_v59 = vpop.f32.mrb[131].mxu1 }
 0xc77   : > { %v14225_v35 = vadd.f32 %v4654_v59, %v14031_v0 }
 0xc79   : > { %v10416_v51 = vpop.f32.mrb[132].mxu1 }
 0xc7a   : > { %v14232_v27 = vadd.f32 %v10416_v51, %v14035_v8  ;;  %v4664_v12 = vpop.f32.mrb[133].mxu1 }
 0xc7b   : > { %v14235_v37 = vadd.f32 %v4664_v12, %v14039_v56 }
 0xc7d   : > { %v10419_v50 = vpop.f32.mrb[134].mxu1 }
 0xc7e   : > { %v14240_v36 = vadd.f32 %v10419_v50, %v14043_v28  ;;  %v4674_v0 = vpop.f32.mrb[135].mxu1 }
 0xc7f   : > { %v14243_v59 = vadd.f32 %v4674_v0, %v14047_v29 }
 0xc81   : > { %v10422_v49 = vpop.f32.mrb[136].mxu1 }
 0xc82   : > { %v14246_v20 = vadd.f32 %v10422_v49, %v14051_v43  ;;  %v4684_v8 = vpop.f32.mrb[137].mxu1 }
 0xc83   : > { %v14249_v51 = vadd.f32 %v4684_v8, %v14055_v4 }
 0xc85   : > { %v10425_v56 = vpop.f32.mrb[138].mxu1 }
 0xc86   : > { %v14252_v12 = vadd.f32 %v10425_v56, %v14059_v32  ;;  %v4694_v55 = vpop.f32.mrb[139].mxu1 }
 0xc87   : > { %v14255_v28 = vadd.f32 %v4694_v55, %v14063_v21 }
 0xc89   : > { %v10484_v50 = vpop.f32.mrb[140].mxu1 }
 0xc8a   : > { %v5282_v29 = vmul.f32 %v10484_v50, %v14098_v60  ;;  %v5122_v0 = vpop.f32.mrb[141].mxu1 }
 0xc8b   : > { %v5281_v11 = vmul.f32 %v5122_v0, %v14103_v19 }
 0xc8d   : > { %v10487_v43 = vpop.f32.mrb[142].mxu1  ;;  %10546 = vmatprep.mubr.msk.f32.mxu0 %vm2535_vm6, %v5281_v11 }
 0xc8e   : > { %v5284_v4 = vmul.f32 %v10487_v43, %v14112_v26  ;;  %v5132_v49 = vpop.f32.mrb[143].mxu1  ;;  %10547 = vmatmul.mubr.msk.f32.vlgmr.msra.gmra.mrb[170].mxu0 %vm2535_vm6, %v5282_v29 }
 0xc8f   : > { %v5283_v32 = vmul.f32 %v5132_v49, %v14117_v13 }
 0xc91   : > { %v10490_v8 = vpop.f32.mrb[144].mxu1  ;;  %10549 = vmatprep.mubr.msk.f32.mxu0 %vm2535_vm6, %v5283_v32 }
 0xc92   : > { %v5286_v21 = vmul.f32 %v10490_v8, %v14126_v61  ;;  %v5142_v55 = vpop.f32.mrb[145].mxu1  ;;  %10550 = vmatmul.mubr.msk.f32.gmra.mrb[172].mxu0 %vm2535_vm6, %v5284_v4 }
 0xc93   : > { %v5285_v60 = vmul.f32 %v5142_v55, %v14131_v16 }
 0xc95   : > { %v10493_v19 = vpop.f32.mrb[146].mxu1  ;;  %10552 = vmatprep.mubr.msk.f32.mxu0 %vm2535_vm6, %v5285_v60 }
 0xc96   : > { %v5288_v26 = vmul.f32 %v10493_v19, %v14140_v63  ;;  %v5152_v11 = vpop.f32.mrb[147].mxu1  ;;  %10553 = vmatmul.mubr.msk.f32.gmra.mrb[174].mxu0 %vm2535_vm6, %v5286_v21 }
 0xc97   : > { %v5287_v13 = vmul.f32 %v5152_v11, %v14145_v3 }
 0xc99   : > { %v10496_v56 = vpop.f32.mrb[148].mxu1  ;;  %10555 = vmatprep.mubr.msk.f32.mxu0 %vm2535_vm6, %v5287_v13 }
 0xc9a   : > { %v5290_v61 = vmul.f32 %v10496_v56, %v14152_v39  ;;  %v5162_v50 = vpop.f32.mrb[149].mxu1  ;;  %10556 = vmatmul.mubr.msk.f32.gmra.mrb[176].mxu0 %vm2535_vm6, %v5288_v26 }
 0xc9b   : > { %v5289_v16 = vmul.f32 %v5162_v50, %v14155_v6 }
 0xc9d   : > { %v10499_v29 = vpop.f32.mrb[150].mxu1  ;;  %10558 = vmatprep.mubr.msk.f32.mxu0 %vm2535_vm6, %v5289_v16 }
 0xc9e   : > { %v5292_v63 = vmul.f32 %v10499_v29, %v14162_v15  ;;  %v5172_v0 = vpop.f32.mrb[151].mxu1  ;;  %10559 = vmatmul.mubr.msk.f32.gmra.mrb[178].mxu0 %vm2535_vm6, %v5290_v61 }
 0xc9f   : > { %v5291_v3 = vmul.f32 %v5172_v0, %v14165_v31 }
 0xca1   : > { %v10502_v43 = vpop.f32.mrb[152].mxu1  ;;  %10561 = vmatprep.mubr.msk.f32.mxu0 %vm2535_vm6, %v5291_v3 }
 0xca2   : > { %v5294_v39 = vmul.f32 %v10502_v43, %v14172_v57  ;;  %v5182_v4 = vpop.f32.mrb[153].mxu1  ;;  %10562 = vmatmul.mubr.msk.f32.gmra.mrb[180].mxu0 %vm2535_vm6, %v5292_v63 }
 0xca3   : > { %v5293_v6 = vmul.f32 %v5182_v4, %v14175_v34 }
 0xca5   : > { %v10505_v49 = vpop.f32.mrb[154].mxu1  ;;  %10564 = vmatprep.mubr.msk.f32.mxu0 %vm2535_vm6, %v5293_v6 }
 0xca6   : > { %v5296_v15 = vmul.f32 %v10505_v49, %v14182_v1  ;;  %v5192_v32 = vpop.f32.mrb[155].mxu1  ;;  %10565 = vmatmul.mubr.msk.f32.gmra.mrb[182].mxu0 %vm2535_vm6, %v5294_v39 }
 0xca7   : > { %v5295_v31 = vmul.f32 %v5192_v32, %v14185_v40 }
 0xca9   : > { %v10508_v8 = vpop.f32.mrb[156].mxu1  ;;  %10567 = vmatprep.mubr.msk.f32.mxu0 %vm2535_vm6, %v5295_v31 }
 0xcaa   : > { %v5298_v57 = vmul.f32 %v10508_v8, %v14192_v33  ;;  %v5202_v21 = vpop.f32.mrb[157].mxu1  ;;  %10568 = vmatmul.mubr.msk.f32.gmra.mrb[184].mxu0 %vm2535_vm6, %v5296_v15 }
 0xcab   : > { %v5297_v34 = vmul.f32 %v5202_v21, %v14195_v24 }
 0xcad   : > { %v10511_v55 = vpop.f32.mrb[158].mxu1  ;;  %10570 = vmatprep.mubr.msk.f32.mxu0 %vm2535_vm6, %v5297_v34 }
 0xcae   : > { %v5300_v1 = vmul.f32 %v10511_v55, %v14202_v14  ;;  %v5212_v60 = vpop.f32.mrb[159].mxu1  ;;  %10571 = vmatmul.mubr.msk.f32.gmra.mrb[186].mxu0 %vm2535_vm6, %v5298_v57 }
 0xcaf   : > { %v5299_v40 = vmul.f32 %v5212_v60, %v14205_v46 }
 0xcb1   : > { %v10514_v19 = vpop.f32.mrb[160].mxu1  ;;  %10573 = vmatprep.mubr.msk.f32.mxu0 %vm2535_vm6, %v5299_v40 }
 0xcb2   : > { %v5302_v33 = vmul.f32 %v10514_v19, %v14212_v42  ;;  %v5222_v26 = vpop.f32.mrb[161].mxu1  ;;  %10574 = vmatmul.mubr.msk.f32.gmra.mrb[188].mxu0 %vm2535_vm6, %v5300_v1 }
 0xcb3   : > { %v5301_v24 = vmul.f32 %v5222_v26, %v14215_v48 }
 0xcb5   : > { %v10517_v11 = vpop.f32.mrb[162].mxu1  ;;  %10576 = vmatprep.mubr.msk.f32.mxu0 %vm2535_vm6, %v5301_v24 }
 0xcb6   : > { %v5304_v14 = vmul.f32 %v10517_v11, %v14222_v54  ;;  %v5232_v13 = vpop.f32.mrb[163].mxu1  ;;  %10577 = vmatmul.mubr.msk.f32.gmra.mrb[190].mxu0 %vm2535_vm6, %v5302_v33 }
 0xcb7   : > { %v5303_v46 = vmul.f32 %v5232_v13, %v14225_v35 }
 0xcb9   : > { %v10520_v56 = vpop.f32.mrb[164].mxu1  ;;  %10579 = vmatprep.mubr.msk.f32.mxu0 %vm2535_vm6, %v5303_v46 }
 0xcba   : > { %v5306_v42 = vmul.f32 %v10520_v56, %v14232_v27  ;;  %v5242_v61 = vpop.f32.mrb[165].mxu1  ;;  %10580 = vmatmul.mubr.msk.f32.gmra.mrb[192].mxu0 %vm2535_vm6, %v5304_v14 }
 0xcbb   : > { %v5305_v48 = vmul.f32 %v5242_v61, %v14235_v37 }
 0xcbd   : > { %v10523_v50 = vpop.f32.mrb[166].mxu1  ;;  %10582 = vmatprep.mubr.msk.f32.mxu0 %vm2535_vm6, %v5305_v48 }
 0xcbe   : > { %v5308_v54 = vmul.f32 %v10523_v50, %v14240_v36  ;;  %v5252_v16 = vpop.f32.mrb[167].mxu1  ;;  %10583 = vmatmul.mubr.msk.f32.gmra.mrb[194].mxu0 %vm2535_vm6, %v5306_v42 }
 0xcbf   : > { %v5307_v35 = vmul.f32 %v5252_v16, %v14243_v59 }
 0xcc1   : > { %v10526_v29 = vpop.f32.mrb[168].mxu1  ;;  %10585 = vmatprep.mubr.msk.f32.mxu0 %vm2535_vm6, %v5307_v35 }
 0xcc2   : > { %v5310_v27 = vmul.f32 %v10526_v29, %v14246_v20  ;;  %v5262_v63 = vpop.f32.mrb[169].mxu1  ;;  %10586 = vmatmul.mubr.msk.f32.gmra.mrb[196].mxu0 %vm2535_vm6, %v5308_v54  ;;  %v11676_v20 = vld [vmem:[%s15480_s22 + $0x8] sm:$0xff] }
 0xcc3   : > { %v5309_v37 = vmul.f32 %v5262_v63, %v14249_v51 }
 0xcc5   : > { %v10529_v0 = vpop.f32.mrb[170].mxu1  ;;  %10588 = vmatprep.mubr.msk.f32.mxu0 %vm2535_vm6, %v5309_v37 }
 0xcc6   : > { %v5312_v36 = vmul.f32 %v10529_v0, %v14252_v12  ;;  %v5272_v3 = vpop.f32.mrb[171].mxu1  ;;  %10589 = vmatmul.mubr.msk.f32.gmra.mrb[198].mxu0 %vm2535_vm6, %v5310_v27 }
 0xcc7   : > { %v5311_v59 = vmul.f32 %v5272_v3, %v14255_v28 }
 0xcc9   : > { %10591 = vmatprep.mubr.msk.f32.mxu0 %vm2535_vm6, %v5311_v59 }
 0xcca   : > { %10592 = vmatmul.mubr.msk.f32.gmra.mrb[200].mxu0 %vm2535_vm6, %v5312_v36 }
 0xccb   : > { %6515 = vmatprep.mubr.f32.mxu0 %v11676_v20 }
 0xd61   : > { %v10548_v51 = vpop.f32.mrb[170].mxu0 }
 0xd62   : > { %v5635_v43 = vmul.f32 0.25, %v10548_v51  ;;  %v5475_v39 = vpop.f32.mrb[171].mxu0 }
 0xd63   : > { %v5634_v4 = vmul.f32 0.25, %v5475_v39 }
 0xd64   : > { %v5667_v12 = vsel %vm2889_vm7, %v5635_v43, -inf }
 0xd65   : > { %v5666_v6 = vsel %vm2889_vm7, %v5634_v4, -inf  ;;  %v10551_v49 = vpop.f32.mrb[172].mxu0 }
 0xd66   : > { %v5668_v15 = vmax.f32 %v5666_v6, %v5667_v12  ;;  %v14326_v28 = vmul.f32 0.25, %v10551_v49  ;;  %v5485_v32 = vpop.f32.mrb[173].mxu0 }
 0xd67   : > { %v5636_v31 = vmul.f32 0.25, %v5485_v32 }
 0xd68   : > { %v5669_v8 = vrot.slane %v5668_v15, 4  ;;  %v5676_v57 = vsel %vm2889_vm7, %v14326_v28, -inf }
 0xd69   : > { %v5675_v21 = vsel %vm2889_vm7, %v5636_v31, -inf  ;;  %v10554_v34 = vpop.f32.mrb[174].mxu0 }
 0xd6a   : > { %v5670_v55 = vmax.f32 %v5668_v15, %v5669_v8  ;;  %v5677_v1 = vmax.f32 %v5675_v21, %v5676_v57  ;;  %v14331_v60 = vmul.f32 0.25, %v10554_v34  ;;  %v5495_v40 = vpop.f32.mrb[175].mxu0 }
 0xd6b   : > { %v14333_v19 = vmul.f32 0.25, %v5495_v40 }
 0xd6c   : > { %v5671_v33 = vrot.slane %v5670_v55, 2  ;;  %v5678_v26 = vrot.slane %v5677_v1, 4  ;;  %v5685_v24 = vsel %vm2889_vm7, %v14331_v60, -inf }
 0xd6d   : > { %v5684_v11 = vsel %vm2889_vm7, %v14333_v19, -inf  ;;  %v10557_v14 = vpop.f32.mrb[176].mxu0 }
 0xd6e   : > { %v5672_v13 = vmax.f32 %v5670_v55, %v5671_v33  ;;  %v5679_v46 = vmax.f32 %v5677_v1, %v5678_v26  ;;  %v5686_v56 = vmax.f32 %v5684_v11, %v5685_v24  ;;  %v14339_v42 = vmul.f32 0.25, %v10557_v14  ;;  %v5505_v61 = vpop.f32.mrb[177].mxu0 }
 0xd6f   : > { %v14341_v48 = vmul.f32 0.25, %v5505_v61 }
 0xd70   : > { %v5673_v50 = vrot.slane %v5672_v13, 1  ;;  %v5680_v54 = vrot.slane %v5679_v46, 2  ;;  %v5687_v16 = vrot.slane %v5686_v56, 4  ;;  %v5694_v35 = vsel %vm2889_vm7, %v14339_v42, -inf }
 0xd71   : > { %v5693_v29 = vsel %vm2889_vm7, %v14341_v48, -inf  ;;  %v10560_v27 = vpop.f32.mrb[178].mxu0 }
 0xd72   : > { %v5674_v63 = vmax.f32 %v5672_v13, %v5673_v50  ;;  %v5681_v37 = vmax.f32 %v5679_v46, %v5680_v54  ;;  %v5688_v0 = vmax.f32 %v5686_v56, %v5687_v16  ;;  %v5695_v36 = vmax.f32 %v5693_v29, %v5694_v35  ;;  %v5515_v3 = vpop.f32.mrb[179].mxu0 }
 0xd73   : > { %v14347_v59 = vmul.f32 0.25, %v10560_v27  ;;  %v14349_v20 = vmul.f32 0.25, %v5515_v3 }
 0xd74   : > { %v5810_v51 = vsub.f32 %v5634_v4, %v5674_v63  ;;  %v5811_v39 = vsub.f32 %v5635_v43, %v5674_v63  ;;  %v5682_v12 = vrot.slane %v5681_v37, 1  ;;  %v5689_v6 = vrot.slane %v5688_v0, 2 }
 0xd75   : > { %v5696_v49 = vrot.slane %v5695_v36, 4  ;;  %v5703_v15 = vsel %vm2889_vm7, %v14347_v59, -inf  ;;  %v5702_v32 = vsel %vm2889_vm7, %v14349_v20, -inf  ;;  %v10563_v8 = vpop.f32.mrb[180].mxu0 }
 0xd76   : > { %v5842_v57 = vmul.f32 1.442695, %v5810_v51  ;;  %v5844_v21 = vmul.f32 1.442695, %v5811_v39  ;;  %v5683_v34 = vmax.f32 %v5681_v37, %v5682_v12  ;;  %v5690_v55 = vmax.f32 %v5688_v0, %v5689_v6  ;;  %v5525_v1 = vpop.f32.mrb[181].mxu0 }
 0xd77   : > { %v5697_v40 = vmax.f32 %v5695_v36, %v5696_v49  ;;  %v5704_v33 = vmax.f32 %v5702_v32, %v5703_v15  ;;  %v14355_v26 = vmul.f32 0.25, %v10563_v8  ;;  %v14357_v43 = vmul.f32 0.25, %v5525_v1 }
 0xd78   : > { %11455 = vpow2.f32 %v5842_v57  ;;  %v5812_v4 = vsub.f32 %v5636_v31, %v5683_v34  ;;  %v5813_v24 = vsub.f32 %v14326_v28, %v5683_v34  ;;  %v5691_v11 = vrot.slane %v5690_v55, 1 }
 0xd79   : > { %11457 = vpow2.f32 %v5844_v21  ;;  %v5698_v14 = vrot.slane %v5697_v40, 2  ;;  %v5705_v13 = vrot.slane %v5704_v33, 4  ;;  %v5712_v46 = vsel %vm2889_vm7, %v14355_v26, -inf  ;;  %v10566_v56 = vpop.f32.mrb[182].mxu0 }
 0xd7a   : > { %v5846_v61 = vmul.f32 1.442695, %v5812_v4  ;;  %v5848_v50 = vmul.f32 1.442695, %v5813_v24  ;;  %v5692_v54 = vmax.f32 %v5690_v55, %v5691_v11  ;;  %v5711_v16 = vsel %vm2889_vm7, %v14357_v43, -inf  ;;  %v5535_v35 = vpop.f32.mrb[183].mxu0 }
 0xd7b   : > { %v5699_v29 = vmax.f32 %v5697_v40, %v5698_v14  ;;  %v5706_v27 = vmax.f32 %v5704_v33, %v5705_v13  ;;  %v5713_v31 = vmax.f32 %v5711_v16, %v5712_v46  ;;  %v14364_v63 = vmul.f32 0.25, %v10566_v56 }
 0xd7c   : > { %11459 = vpow2.f32 %v5846_v61  ;;  %v5814_v28 = vsub.f32 %v14333_v19, %v5692_v54  ;;  %v5815_v37 = vsub.f32 %v14331_v60, %v5692_v54  ;;  %v14368_v0 = vmul.f32 0.25, %v5535_v35 }
 0xd7d   : > { %11461 = vpow2.f32 %v5848_v50  ;;  %v5700_v36 = vrot.slane %v5699_v29, 1  ;;  %v5707_v3 = vrot.slane %v5706_v27, 2  ;;  %v5714_v51 = vrot.slane %v5713_v31, 4  ;;  %v10569_v39 = vpop.f32.mrb[184].mxu0 }
 0xd7e   : > { %v5850_v12 = vmul.f32 1.442695, %v5814_v28  ;;  %v5852_v6 = vmul.f32 1.442695, %v5815_v37  ;;  %v5721_v49 = vsel %vm2889_vm7, %v14364_v63, -inf  ;;  %v5720_v15 = vsel %vm2889_vm7, %v14368_v0, -inf }
 0xd7f   : > { %v5701_v32 = vmax.f32 %v5699_v29, %v5700_v36  ;;  %v5708_v8 = vmax.f32 %v5706_v27, %v5707_v3  ;;  %v5715_v19 = vmax.f32 %v5713_v31, %v5714_v51  ;;  %v5722_v57 = vmax.f32 %v5720_v15, %v5721_v49  ;;  %v5545_v60 = vpop.f32.mrb[185].mxu0 }
 0xd80   : > { %11463 = vpow2.f32 %v5850_v12  ;;  %v14374_v21 = vmul.f32 0.25, %v10569_v39  ;;  %v14376_v34 = vmul.f32 0.25, %v5545_v60 }
 0xd81   : > { %11465 = vpow2.f32 %v5852_v6  ;;  %v5816_v55 = vsub.f32 %v14341_v48, %v5701_v32  ;;  %v5817_v1 = vsub.f32 %v14339_v42, %v5701_v32  ;;  %v5709_v40 = vrot.slane %v5708_v8, 1  ;;  %v10572_v33 = vpop.f32.mrb[186].mxu0 }
 0xd82   : > { %v14380_v4 = vpop.eup %11455  ;;  %v5716_v24 = vrot.slane %v5715_v19, 2  ;;  %v5723_v11 = vrot.slane %v5722_v57, 4  ;;  %v5730_v14 = vsel %vm2889_vm7, %v14374_v21, -inf  ;;  %v5729_v13 = vsel %vm2889_vm7, %v14376_v34, -inf  ;;  %v14386_v46 = vpop.f32.mrb[187].mxu0 }
 0xd83   : > { %v14388_v56 = vpop.eup %11457  ;;  %v5906_v48 = vsel %vm2889_vm7, %v14380_v4, 0.0  ;;  %v5854_v42 = vmul.f32 1.442695, %v5816_v55  ;;  %v5856_v61 = vmul.f32 1.442695, %v5817_v1  ;;  %v5710_v50 = vmax.f32 %v5708_v8, %v5709_v40 }
 0xd84   : > { %v5907_v54 = vsel %vm2889_vm7, %v14388_v56, 0.0  ;;  %v5717_v16 = vmax.f32 %v5715_v19, %v5716_v24  ;;  %v5724_v35 = vmax.f32 %v5722_v57, %v5723_v11  ;;  %v5731_v29 = vmax.f32 %v5729_v13, %v5730_v14 }
 0xd85   : > { %v5908_v27 = vadd.f32 %v5907_v54, %v5906_v48  ;;  %11467 = vpow2.f32 %v5854_v42  ;;  %v5818_v31 = vsub.f32 %v14349_v20, %v5710_v50  ;;  %v5819_v28 = vsub.f32 %v14347_v59, %v5710_v50  ;;  %v14396_v37 = vpop.f32.mrb[188].mxu0 }
 0xd86   : > { %v14398_v36 = vpop.eup %11459  ;;  %11469 = vpow2.f32 %v5856_v61  ;;  %v5718_v3 = vrot.slane %v5717_v16, 1  ;;  %v5725_v51 = vrot.slane %v5724_v35, 2  ;;  %v5732_v39 = vrot.slane %v5731_v29, 4  ;;  %v14400_v12 = vpop.f32.mrb[189].mxu0 }
 0xd87   : > { %v14402_v6 = vpop.eup %11461  ;;  %v5909_v49 = vrot.slane %v5908_v27, 4  ;;  %v5915_v15 = vsel %vm2889_vm7, %v14398_v36, 0.0  ;;  %v5858_v32 = vmul.f32 1.442695, %v5818_v31  ;;  %v5860_v20 = vmul.f32 1.442695, %v5819_v28 }
 0xd88   : > { %v5916_v59 = vsel %vm2889_vm7, %v14402_v6, 0.0  ;;  %v5719_v8 = vmax.f32 %v5717_v16, %v5718_v3  ;;  %v5726_v19 = vmax.f32 %v5724_v35, %v5725_v51  ;;  %v5733_v57 = vmax.f32 %v5731_v29, %v5732_v39 }
 0xd89   : > { %v5910_v60 = vadd.f32 %v5909_v49, %v5908_v27  ;;  %v5917_v55 = vadd.f32 %v5916_v59, %v5915_v15  ;;  %11471 = vpow2.f32 %v5858_v32  ;;  %v14408_v1 = vmul.f32 0.25, %v10572_v33  ;;  %v14410_v40 = vpop.f32.mrb[190].mxu0 }
 0xd8a   : > { %v14412_v24 = vpop.eup %11463  ;;  %11473 = vpow2.f32 %v5860_v20  ;;  %v5820_v11 = vsub.f32 %v14357_v43, %v5719_v8  ;;  %v5821_v14 = vsub.f32 %v14355_v26, %v5719_v8  ;;  %v5727_v13 = vrot.slane %v5726_v19, 1  ;;  %v5575_v48 = vpop.f32.mrb[191].mxu0 }
 0xd8b   : > { %v14416_v42 = vpop.eup %11465  ;;  %v5911_v61 = vrot.slane %v5910_v60, 2  ;;  %v5918_v50 = vrot.slane %v5917_v55, 4  ;;  %v5924_v54 = vsel %vm2889_vm7, %v14412_v24, 0.0  ;;  %v5734_v33 = vrot.slane %v5733_v57, 2 }
 0xd8c   : > { %v5925_v16 = vsel %vm2889_vm7, %v14416_v42, 0.0  ;;  %v5862_v35 = vmul.f32 1.442695, %v5820_v11  ;;  %v5864_v29 = vmul.f32 1.442695, %v5821_v14  ;;  %v5728_v27 = vmax.f32 %v5726_v19, %v5727_v13 }
 0xd8d   : > { %v14422_v31 = vadd.f32 %v5911_v61, %v5910_v60  ;;  %v5919_v43 = vadd.f32 %v5918_v50, %v5917_v55  ;;  %v5926_v26 = vadd.f32 %v5925_v16, %v5924_v54  ;;  %v5735_v28 = vmax.f32 %v5733_v57, %v5734_v33  ;;  %v10581_v3 = vpop.f32.mrb[192].mxu0 }
 0xd8e   : > { %11475 = vpow2.f32 %v5862_v35  ;;  %v5822_v51 = vsub.f32 %v14368_v0, %v5728_v27  ;;  %v5823_v39 = vsub.f32 %v14364_v63, %v5728_v27  ;;  %v5739_v49 = vsel %vm2889_vm7, %v14408_v1, -inf  ;;  %v14428_v15 = vpop.f32.mrb[193].mxu0 }
 0xd8f   : > { %v14430_v32 = vpop.eup %11467  ;;  %v5920_v20 = vrot.slane %v5919_v43, 2  ;;  %v5927_v59 = vrot.slane %v5926_v26, 4  ;;  %11477 = vpow2.f32 %v5864_v29  ;;  %v5736_v8 = vrot.slane %v5735_v28, 1 }
 0xd90   : > { %v14432_v19 = vpop.eup %11469  ;;  %v5933_v57 = vsel %vm2889_vm7, %v14430_v32, 0.0  ;;  %v5866_v60 = vmul.f32 1.442695, %v5822_v51  ;;  %v5868_v0 = vmul.f32 1.442695, %v5823_v39  ;;  %v14437_v63 = vmul.f32 0.25, %v14386_v46 }
 0xd91   : > { %v14439_v55 = vadd.f32 %v5920_v20, %v5919_v43  ;;  %v5928_v11 = vadd.f32 %v5927_v59, %v5926_v26  ;;  %v5934_v14 = vsel %vm2889_vm7, %v14432_v19, 0.0  ;;  %v5737_v13 = vmax.f32 %v5735_v28, %v5736_v8  ;;  %v10584_v61 = vpop.f32.mrb[194].mxu0 }
 0xd92   : > { %v5935_v50 = vadd.f32 %v5934_v14, %v5933_v57  ;;  %11479 = vpow2.f32 %v5866_v60  ;;  %v5738_v54 = vsel %vm2889_vm7, %v14437_v63, -inf  ;;  %v14446_v33 = vmul.f32 0.25, %v14396_v37  ;;  %v14448_v16 = vpop.f32.mrb[195].mxu0 }
 0xd93   : > { %v14450_v46 = vpop.eup %11471  ;;  %v5929_v35 = vrot.slane %v5928_v11, 2  ;;  %11481 = vpow2.f32 %v5868_v0  ;;  %v5824_v29 = vsub.f32 %v14376_v34, %v5737_v13  ;;  %v5825_v27 = vsub.f32 %v14374_v21, %v5737_v13 }
 0xd94   : > { %v14454_v43 = vpop.eup %11473  ;;  %v5936_v26 = vrot.slane %v5935_v50, 4  ;;  %v5942_v28 = vsel %vm2889_vm7, %v14450_v46, 0.0  ;;  %v5740_v51 = vmax.f32 %v5738_v54, %v5739_v49  ;;  %v5748_v37 = vsel %vm2889_vm7, %v14446_v33, -inf }
 0xd95   : > { %v14460_v39 = vadd.f32 %v5929_v35, %v5928_v11  ;;  %v5943_v20 = vsel %vm2889_vm7, %v14454_v43, 0.0  ;;  %v5870_v59 = vmul.f32 1.442695, %v5824_v29  ;;  %v5872_v8 = vmul.f32 1.442695, %v5825_v27  ;;  %v14464_v34 = vpop.f32.mrb[196].mxu0 }
 0xd96   : > { %v5937_v21 = vadd.f32 %v5936_v26, %v5935_v50  ;;  %v5944_v57 = vadd.f32 %v5943_v20, %v5942_v28  ;;  %v5741_v60 = vrot.slane %v5740_v51, 4  ;;  %v14467_v0 = vmul.f32 0.25, %v14400_v12  ;;  %v14469_v14 = vpop.f32.mrb[197].mxu0 }
 0xd97   : > { %11483 = vpow2.f32 %v5870_v59  ;;  %v14472_v49 = vmul.f32 0.25, %v14410_v40  ;;  %v14474_v11 = vmul.f32 0.25, %v5575_v48  ;;  %v14476_v13 = vmul.f32 0.25, %v10581_v3 }
 0xd98   : > { %v14478_v54 = vpop.eup %11475  ;;  %v5938_v35 = vrot.slane %v5937_v21, 2  ;;  %v5945_v29 = vrot.slane %v5944_v57, 4  ;;  %11485 = vpow2.f32 %v5872_v8  ;;  %v5742_v50 = vmax.f32 %v5740_v51, %v5741_v60 }
 0xd99   : > { %v14480_v27 = vpop.eup %11477  ;;  %v5951_v12 = vsel %vm2889_vm7, %v14478_v54, 0.0  ;;  %v5747_v26 = vsel %vm2889_vm7, %v14467_v0, -inf  ;;  %v5757_v40 = vsel %vm2889_vm7, %v14472_v49, -inf  ;;  %v5756_v48 = vsel %vm2889_vm7, %v14474_v11, -inf  ;;  %v14490_v3 = vpop.f32.mrb[198].mxu0 }
 0xd9a   : > { %v14492_v28 = vadd.f32 %v5938_v35, %v5937_v21  ;;  %v5946_v20 = vadd.f32 %v5945_v29, %v5944_v57  ;;  %v5952_v51 = vsel %vm2889_vm7, %v14480_v27, 0.0  ;;  %v5743_v59 = vrot.slane %v5742_v50, 2  ;;  %v14496_v8 = vpop.f32.mrb[199].mxu0 }
 0xd9b   : > { %v5953_v60 = vadd.f32 %v5952_v51, %v5951_v12  ;;  %v5749_v2 = vmax.f32 %v5747_v26, %v5748_v37  ;;  %v5758_v62 = vmax.f32 %v5756_v48, %v5757_v40  ;;  %v5766_v38 = vsel %vm2889_vm7, %v14476_v13, -inf }
 0xd9c   : > { %v14500_v18 = vpop.eup %11479  ;;  %v5947_v30 = vrot.slane %v5946_v20, 2  ;;  %v5744_v22 = vmax.f32 %v5742_v50, %v5743_v59  ;;  %v14503_v21 = vmul.f32 0.25, %v14428_v15  ;;  %v14505_v57 = vmul.f32 0.25, %v10584_v61 }
 0xd9d   : > { %v14507_v35 = vpop.eup %11481  ;;  %v5954_v29 = vrot.slane %v5953_v60, 4  ;;  %v5960_v12 = vsel %vm2889_vm7, %v14500_v18, 0.0  ;;  %v5750_v37 = vrot.slane %v5749_v2, 4  ;;  %v5759_v26 = vrot.slane %v5758_v62, 4  ;;  %v14511_v40 = vpop.f32.mrb[200].mxu0 }
 0xd9e   : > { %v14513_v48 = vadd.f32 %v5947_v30, %v5946_v20  ;;  %v5961_v50 = vsel %vm2889_vm7, %v14507_v35, 0.0  ;;  %v5745_v51 = vrot.slane %v5744_v22, 1  ;;  %v5765_v15 = vsel %vm2889_vm7, %v14503_v21, -inf  ;;  %v14519_v61 = vpop.f32.mrb[201].mxu0 }
 0xd9f   : > { %v5955_v59 = vadd.f32 %v5954_v29, %v5953_v60  ;;  %v5962_v58 = vadd.f32 %v5961_v50, %v5960_v12  ;;  %v5751_v9 = vmax.f32 %v5749_v2, %v5750_v37  ;;  %v5760_v5 = vmax.f32 %v5758_v62, %v5759_v26 }
 0xda0   : > { %v5746_v53 = vmax.f32 %v5744_v22, %v5745_v51  ;;  %v5767_v10 = vmax.f32 %v5765_v15, %v5766_v38  ;;  %v5775_v23 = vsel %vm2889_vm7, %v14505_v57, -inf  ;;  %v14524_v30 = vmul.f32 0.25, %v14448_v16 }
 0xda1   : > { %v14526_v20 = vpop.eup %11483  ;;  %v5956_v25 = vrot.slane %v5955_v59, 2  ;;  %v5963_v44 = vrot.slane %v5962_v58, 4  ;;  %v5752_v17 = vrot.slane %v5751_v9, 2  ;;  %v5761_v41 = vrot.slane %v5760_v5, 2 }
 0xda2   : > { %v14528_v45 = vpop.eup %11485  ;;  %v5969_v2 = vsel %vm2889_vm7, %v14526_v20, 0.0  ;;  %v5826_v22 = vsub.f32 %v14437_v63, %v5746_v53  ;;  %v5827_v38 = vsub.f32 %v14408_v1, %v5746_v53  ;;  %v5768_v62 = vrot.slane %v5767_v10, 4 }
 0xda3   : > { %v14534_v60 = vadd.f32 %v5956_v25, %v5955_v59  ;;  %v5964_v16 = vadd.f32 %v5963_v44, %v5962_v58  ;;  %v5970_v29 = vsel %vm2889_vm7, %v14528_v45, 0.0  ;;  %v5753_v12 = vmax.f32 %v5751_v9, %v5752_v17 }
 0xda4   : > { %v5971_v37 = vadd.f32 %v5970_v29, %v5969_v2  ;;  %v5874_v26 = vmul.f32 1.442695, %v5826_v22  ;;  %v5876_v50 = vmul.f32 1.442695, %v5827_v38  ;;  %v5762_v51 = vmax.f32 %v5760_v5, %v5761_v41 }
 0xda5   : > { %v5965_v15 = vrot.slane %v5964_v16, 2  ;;  %v5754_v47 = vrot.slane %v5753_v12, 1  ;;  %v5769_v7 = vmax.f32 %v5767_v10, %v5768_v62  ;;  %v5774_v63 = vsel %vm2889_vm7, %v14524_v30, -inf }
 0xda6   : > { %v5972_v52 = vrot.slane %v5971_v37, 4  ;;  %11487 = vpow2.f32 %v5874_v26  ;;  %v5763_v53 = vrot.slane %v5762_v51, 1  ;;  %v5776_v25 = vmax.f32 %v5774_v63, %v5775_v23 }
 0xda7   : > { %v14540_v1 = vadd.f32 %v5965_v15, %v5964_v16  ;;  %11489 = vpow2.f32 %v5876_v50  ;;  %v5755_v44 = vmax.f32 %v5753_v12, %v5754_v47  ;;  %v5770_v58 = vrot.slane %v5769_v7, 2 }
 0xda8   : > { %v5973_v17 = vadd.f32 %v5972_v52, %v5971_v37  ;;  %v5764_v9 = vmax.f32 %v5762_v51, %v5763_v53  ;;  %v5777_v59 = vrot.slane %v5776_v25, 4  ;;  %v14543_v41 = vmul.f32 0.25, %v14464_v34 }
 0xda9   : > { %v5828_v10 = vsub.f32 %v14467_v0, %v5755_v44  ;;  %v5829_v5 = vsub.f32 %v14446_v33, %v5755_v44  ;;  %v5771_v2 = vmax.f32 %v5769_v7, %v5770_v58  ;;  %v14548_v22 = vmul.f32 0.25, %v14469_v14 }
 0xdaa   : > { %v5974_v23 = vrot.slane %v5973_v17, 2  ;;  %v5830_v38 = vsub.f32 %v14474_v11, %v5764_v9  ;;  %v5831_v47 = vsub.f32 %v14472_v49, %v5764_v9  ;;  %v5778_v62 = vmax.f32 %v5776_v25, %v5777_v59 }
 0xdab   : > { %v5878_v52 = vmul.f32 1.442695, %v5828_v10  ;;  %v5880_v16 = vmul.f32 1.442695, %v5829_v5  ;;  %v5772_v29 = vrot.slane %v5771_v2, 1  ;;  %v5784_v34 = vsel %vm2889_vm7, %v14543_v41, -inf }
 0xdac   : > { %v14554_v12 = vadd.f32 %v5974_v23, %v5973_v17  ;;  %v5882_v0 = vmul.f32 1.442695, %v5830_v38  ;;  %v5884_v33 = vmul.f32 1.442695, %v5831_v47  ;;  %v5779_v7 = vrot.slane %v5778_v62, 2 }
 0xdad   : > { %11491 = vpow2.f32 %v5878_v52  ;;  %v5773_v14 = vmax.f32 %v5771_v2, %v5772_v29  ;;  %v5783_v37 = vsel %vm2889_vm7, %v14548_v22, -inf  ;;  %v14559_v11 = vmul.f32 0.25, %v14490_v3 }
 0xdae   : > { %11493 = vpow2.f32 %v5880_v16  ;;  %v5780_v49 = vmax.f32 %v5778_v62, %v5779_v7  ;;  %v5785_v26 = vmax.f32 %v5783_v37, %v5784_v34  ;;  %v14562_v50 = vmul.f32 0.25, %v14496_v8 }
 0xdaf   : > { %11495 = vpow2.f32 %v5882_v0  ;;  %v5832_v51 = vsub.f32 %v14503_v21, %v5773_v14  ;;  %v5833_v15 = vsub.f32 %v14476_v13, %v5773_v14  ;;  %v5793_v63 = vsel %vm2889_vm7, %v14559_v11, -inf }
 0xdb0   : > { %v14568_v53 = vpop.eup %11487  ;;  %11497 = vpow2.f32 %v5884_v33  ;;  %v5781_v25 = vrot.slane %v5780_v49, 1  ;;  %v5786_v3 = vrot.slane %v5785_v26, 4  ;;  %v5792_v44 = vsel %vm2889_vm7, %v14562_v50, -inf }
 0xdb1   : > { %v14572_v58 = vpop.eup %11489  ;;  %v5978_v8 = vsel %vm2889_vm7, %v14568_v53, 0.0  ;;  %v5886_v17 = vmul.f32 1.442695, %v5832_v51  ;;  %v5888_v21 = vmul.f32 1.442695, %v5833_v15  ;;  %v5794_v9 = vmax.f32 %v5792_v44, %v5793_v63 }
 0xdb2   : > { %v5979_v13 = vsel %vm2889_vm7, %v14572_v58, 0.0  ;;  %v5782_v59 = vmax.f32 %v5780_v49, %v5781_v25  ;;  %v5787_v10 = vmax.f32 %v5785_v26, %v5786_v3  ;;  %v14579_v5 = vmul.f32 0.25, %v14511_v40 }
 0xdb3   : > { %v5980_v2 = vadd.f32 %v5979_v13, %v5978_v8  ;;  %11499 = vpow2.f32 %v5886_v17  ;;  %v5795_v23 = vrot.slane %v5794_v9, 4  ;;  %v14582_v38 = vmul.f32 0.25, %v14519_v61 }
 0xdb4   : > { %11501 = vpow2.f32 %v5888_v21  ;;  %v5834_v47 = vsub.f32 %v14524_v30, %v5782_v59  ;;  %v5835_v62 = vsub.f32 %v14505_v57, %v5782_v59  ;;  %v5788_v52 = vrot.slane %v5787_v10, 2 }
 0xdb5   : > { %v5981_v16 = vrot.slane %v5980_v2, 4  ;;  %v5796_v29 = vmax.f32 %v5794_v9, %v5795_v23  ;;  %v5802_v34 = vsel %vm2889_vm7, %v14579_v5, -inf  ;;  %v5801_v40 = vsel %vm2889_vm7, %v14582_v38, -inf }
 0xdb6   : > { %v5890_v0 = vmul.f32 1.442695, %v5834_v47  ;;  %v5892_v33 = vmul.f32 1.442695, %v5835_v62  ;;  %v5789_v7 = vmax.f32 %v5787_v10, %v5788_v52  ;;  %v5803_v14 = vmax.f32 %v5801_v40, %v5802_v34 }
 0xdb7   : > { %v14590_v61 = vpop.eup %11491  ;;  %v5982_v37 = vadd.f32 %v5981_v16, %v5980_v2  ;;  %v5797_v49 = vrot.slane %v5796_v29, 2  ;;  %v5913_v30 = vrot.slane %v14422_v31, 1  ;;  %v5922_v57 = vrot.slane %v14439_v55, 1 }
 0xdb8   : > { %v14594_v26 = vpop.eup %11493  ;;  %v5987_v51 = vsel %vm2889_vm7, %v14590_v61, 0.0  ;;  %11503 = vpow2.f32 %v5890_v0  ;;  %v5790_v15 = vrot.slane %v5789_v7, 1  ;;  %v5804_v63 = vrot.slane %v5803_v14, 4 }
 0xdb9   : > { %v14598_v25 = vpop.eup %11495  ;;  %v5983_v3 = vrot.slane %v5982_v37, 2  ;;  %v5988_v44 = vsel %vm2889_vm7, %v14594_v26, 0.0  ;;  %11505 = vpow2.f32 %v5892_v33  ;;  %v5798_v8 = vmax.f32 %v5796_v29, %v5797_v49 }
 0xdba   : > { %v14602_v17 = vpop.eup %11497  ;;  %v5989_v21 = vadd.f32 %v5988_v44, %v5987_v51  ;;  %v5996_v9 = vsel %vm2889_vm7, %v14598_v25, 0.0  ;;  %v5791_v13 = vmax.f32 %v5789_v7, %v5790_v15  ;;  %v5805_v59 = vmax.f32 %v5803_v14, %v5804_v63 }
 0xdbb   : > { %v14606_v10 = vadd.f32 %v5983_v3, %v5982_v37  ;;  %v5997_v2 = vsel %vm2889_vm7, %v14602_v17, 0.0  ;;  %v5799_v23 = vrot.slane %v5798_v8, 1  ;;  %v5914_v47 = vadd.f32 %v5913_v30, %v14422_v31 }
 0xdbc   : > { %v5990_v62 = vrot.slane %v5989_v21, 4  ;;  %v5998_v52 = vadd.f32 %v5997_v2, %v5996_v9  ;;  %v5836_v16 = vsub.f32 %v14548_v22, %v5791_v13  ;;  %v5837_v29 = vsub.f32 %v14543_v41, %v5791_v13 }
 0xdbd   : > { %v14613_v34 = vpop.eup %11499  ;;  %v5800_v40 = vmax.f32 %v5798_v8, %v5799_v23  ;;  %v5806_v0 = vrot.slane %v5805_v59, 2  ;;  %11507 = vrcp.f32 %v5914_v47  ;;  %v5923_v33 = vadd.f32 %v5922_v57, %v14439_v55 }
 0xdbe   : > { %v14616_v7 = vpop.eup %11501  ;;  %v5991_v14 = vadd.f32 %v5990_v62, %v5989_v21  ;;  %v5999_v37 = vrot.slane %v5998_v52, 4  ;;  %v6005_v31 = vsel %vm2889_vm7, %v14613_v34, 0.0  ;;  %v5894_v49 = vmul.f32 1.442695, %v5836_v16 }
 0xdbf   : > { %v6006_v22 = vsel %vm2889_vm7, %v14616_v7, 0.0  ;;  %v5896_v30 = vmul.f32 1.442695, %v5837_v29  ;;  %v5838_v41 = vsub.f32 %v14562_v50, %v5800_v40  ;;  %v5839_v51 = vsub.f32 %v14559_v11, %v5800_v40 }
 0xdc0   : > { %v5992_v15 = vrot.slane %v5991_v14, 2  ;;  %v6000_v63 = vadd.f32 %v5999_v37, %v5998_v52  ;;  %v6007_v3 = vadd.f32 %v6006_v22, %v6005_v31  ;;  %11509 = vpow2.f32 %v5894_v49 }
 0xdc1   : > { %11511 = vpow2.f32 %v5896_v30  ;;  %v5898_v55 = vmul.f32 1.442695, %v5838_v41  ;;  %v5900_v57 = vmul.f32 1.442695, %v5839_v51  ;;  %v5807_v44 = vmax.f32 %v5805_v59, %v5806_v0 }
 0xdc2   : > { %v14624_v8 = vpop.eup %11503  ;;  %v5993_v21 = vadd.f32 %v5992_v15, %v5991_v14  ;;  %v6001_v9 = vrot.slane %v6000_v63, 2  ;;  %v6008_v13 = vrot.slane %v6007_v3, 4  ;;  %11513 = vrcp.f32 %v5923_v33 }
 0xdc3   : > { %v14626_v2 = vpop.eup %11505  ;;  %v6014_v50 = vsel %vm2889_vm7, %v14624_v8, 0.0  ;;  %11515 = vpow2.f32 %v5898_v55  ;;  %v5808_v11 = vrot.slane %v5807_v44, 1  ;;  %v5931_v23 = vrot.slane %v14460_v39, 1 }
 0xdc4   : > { %v14631_v47 = vadd.f32 %v6001_v9, %v6000_v63  ;;  %v6009_v62 = vadd.f32 %v6008_v13, %v6007_v3  ;;  %v6015_v59 = vsel %vm2889_vm7, %v14626_v2, 0.0  ;;  %11517 = vpow2.f32 %v5900_v57 }
 0xdc5   : > { %v6016_v52 = vadd.f32 %v6015_v59, %v6014_v50  ;;  %v5809_v16 = vmax.f32 %v5807_v44, %v5808_v11  ;;  %v5932_v29 = vadd.f32 %v5931_v23, %v14460_v39  ;;  %v5940_v40 = vrot.slane %v14492_v28, 1 }
 0xdc6   : > { %v6010_v0 = vrot.slane %v6009_v62, 2  ;;  %v5949_v33 = vrot.slane %v14513_v48, 1  ;;  %v5958_v14 = vrot.slane %v14534_v60, 1  ;;  %v5967_v37 = vrot.slane %v14540_v1, 1 }
 0xdc7   : > { %v11508_v31 = vpop.eup %11507  ;;  %v6017_v49 = vrot.slane %v6016_v52, 4  ;;  %v5840_v22 = vsub.f32 %v14582_v38, %v5809_v16  ;;  %v5841_v30 = vsub.f32 %v14579_v5, %v5809_v16  ;;  %11519 = vrcp.f32 %v5932_v29 }
 0xdc8   : > { %v6011_v41 = vadd.f32 %v6010_v0, %v6009_v62  ;;  %v6066_v51 = vmul.f32 %v11508_v31, %v14380_v4  ;;  %v6067_v39 = vmul.f32 %v11508_v31, %v14388_v56  ;;  %v5941_v15 = vadd.f32 %v5940_v40, %v14492_v28 }
 0xdc9   : > { %v6018_v63 = vadd.f32 %v6017_v49, %v6016_v52  ;;  %v5902_v3 = vmul.f32 1.442695, %v5840_v22  ;;  %v5904_v55 = vmul.f32 1.442695, %v5841_v30  ;;  %v5950_v57 = vadd.f32 %v5949_v33, %v14513_v48 }
 0xdca   : > { %v14646_v44 = vpop.eup %11509  ;;  %10596 = vmatprep.mubr.msk.f32.mxu1 %vm2889_vm7, %v6066_v51  ;;  %11521 = vrcp.f32 %v5941_v15  ;;  %v5959_v5 = vadd.f32 %v5958_v14, %v14534_v60  ;;  %v5968_v38 = vadd.f32 %v5967_v37, %v14540_v1  ;;  %v5976_v4 = vrot.slane %v14554_v12, 1 }
 0xdcb   : > { %v14652_v9 = vpop.eup %11511  ;;  %v6019_v56 = vrot.slane %v6018_v63, 2  ;;  %v6023_v28 = vsel %vm2889_vm7, %v14646_v44, 0.0  ;;  %11523 = vpow2.f32 %v5902_v3  ;;  %10597 = vmatmul.mubr.msk.f32.vlgmr.msra.gmra.mrb[172].mxu1 %vm2889_vm7, %v6067_v39  ;;  %v5985_v48 = vrot.slane %v14606_v10, 1 }
 0xdcc   : > { %v11514_v13 = vpop.eup %11513  ;;  %v6024_v50 = vsel %vm2889_vm7, %v14652_v9, 0.0  ;;  %11525 = vpow2.f32 %v5904_v55  ;;  %v5977_v60 = vadd.f32 %v5976_v4, %v14554_v12  ;;  %v5994_v1 = vrot.slane %v5993_v21, 1 }
 0xdcd   : > { %v14661_v11 = vpop.eup %11515  ;;  %v6020_v23 = vadd.f32 %v6019_v56, %v6018_v63  ;;  %v6025_v62 = vadd.f32 %v6024_v50, %v6023_v28  ;;  %v6068_v59 = vmul.f32 %v11514_v13, %v14398_v36  ;;  %v6069_v52 = vmul.f32 %v11514_v13, %v14402_v6 }
 0xdce   : > { %v14665_v16 = vpop.eup %11517  ;;  %v6032_v29 = vsel %vm2889_vm7, %v14661_v11, 0.0  ;;  %11527 = vrcp.f32 %v5950_v57  ;;  %v5986_v40 = vadd.f32 %v5985_v48, %v14606_v10  ;;  %v5995_v0 = vadd.f32 %v5994_v1, %v5993_v21 }
 0xdcf   : > { %v6026_v33 = vrot.slane %v6025_v62, 4  ;;  %v6033_v12 = vsel %vm2889_vm7, %v14665_v16, 0.0  ;;  %10599 = vmatprep.mubr.msk.f32.mxu1 %vm2889_vm7, %v6068_v59  ;;  %11529 = vrcp.f32 %v5959_v5  ;;  %v6003_v36 = vrot.slane %v14631_v47, 1 }
 0xdd0   : > { %v6034_v14 = vadd.f32 %v6033_v12, %v6032_v29  ;;  %10600 = vmatmul.mubr.msk.f32.gmra.mrb[174].mxu1 %vm2889_vm7, %v6069_v52  ;;  %11531 = vrcp.f32 %v5968_v38  ;;  %v6012_v6 = vrot.slane %v6011_v41, 1  ;;  %v6021_v37 = vrot.slane %v6020_v23, 1 }
 0xdd1   : > { %v11520_v31 = vpop.eup %11519  ;;  %v6027_v49 = vadd.f32 %v6026_v33, %v6025_v62  ;;  %11533 = vrcp.f32 %v5977_v60  ;;  %v6004_v10 = vadd.f32 %v6003_v36, %v14631_v47 }
 0xdd2   : > { %v6035_v21 = vrot.slane %v6034_v14, 4  ;;  %v6070_v22 = vmul.f32 %v11520_v31, %v14412_v24  ;;  %v6071_v30 = vmul.f32 %v11520_v31, %v14416_v42  ;;  %11535 = vrcp.f32 %v5986_v40 }
 0xdd3   : > { %v6028_v51 = vrot.slane %v6027_v49, 2  ;;  %11537 = vrcp.f32 %v5995_v0  ;;  %v6013_v39 = vadd.f32 %v6012_v6, %v6011_v41  ;;  %v6022_v15 = vadd.f32 %v6021_v37, %v6020_v23 }
 0xdd4   : > { %v11522_v63 = vpop.eup %11521  ;;  %v6036_v3 = vadd.f32 %v6035_v21, %v6034_v14  ;;  %10602 = vmatprep.mubr.msk.f32.mxu1 %vm2889_vm7, %v6070_v22  ;;  %11539 = vrcp.f32 %v6004_v10 }
 0xdd5   : > { %v14679_v55 = vpop.eup %11523  ;;  %v6029_v57 = vadd.f32 %v6028_v51, %v6027_v49  ;;  %10603 = vmatmul.mubr.msk.f32.gmra.mrb[176].mxu1 %vm2889_vm7, %v6071_v30  ;;  %v6072_v47 = vmul.f32 %v11522_v63, %v14430_v32  ;;  %v6073_v24 = vmul.f32 %v11522_v63, %v14432_v19  ;;  %11541 = vrcp.f32 %v6013_v39  ;;  %v9140_v63 = vld [vmem:[%s15623_s29 + $0x48] sm:$0xff] }
 0xdd6   : > { %v14684_v42 = vpop.eup %11525  ;;  %v6037_v5 = vrot.slane %v6036_v3, 2  ;;  %v6041_v41 = vsel %vm2889_vm7, %v14679_v55, 0.0  ;;  %11543 = vrcp.f32 %v6022_v15  ;;  %v9139_v15 = vld [vmem:[%s15623_s29 + $0x40] sm:$0xff] }
 0xdd7   : > { %v6042_v38 = vsel %vm2889_vm7, %v14684_v42, 0.0  ;;  %10605 = vmatprep.mubr.msk.f32.mxu1 %vm2889_vm7, %v6072_v47  ;;  %v6030_v4 = vrot.slane %v6029_v57, 1  ;;  %v9142_v47 = vld [vmem:[%s15623_s29 + $0x58] sm:$0xff] }
 0xdd8   : > { %v11528_v56 = vpop.eup %11527  ;;  %v6038_v28 = vadd.f32 %v6037_v5, %v6036_v3  ;;  %v6043_v48 = vadd.f32 %v6042_v38, %v6041_v41  ;;  %v9141_v3 = vld [vmem:[%s15623_s29 + $0x50] sm:$0xff]  ;;  %v9144_v5 = vld [vmem:[%s15623_s29 + $0x68] sm:$0xff] }
 0xdd9   : > { %v11530_v32 = vpop.eup %11529  ;;  %10606 = vmatmul.mubr.msk.f32.gmra.mrb[178].mxu1 %vm2889_vm7, %v6073_v24  ;;  %v6074_v19 = vmul.f32 %v11528_v56, %v14450_v46  ;;  %v6075_v13 = vmul.f32 %v11528_v56, %v14454_v43  ;;  %v6031_v50 = vadd.f32 %v6030_v4, %v6029_v57  ;;  %v11079_v57 = vpack.c.bf16 %v9140_v63, %v9139_v15 }
 0xdda   : > { %v11532_v60 = vpop.eup %11531  ;;  %v6044_v1 = vrot.slane %v6043_v48, 4  ;;  %v6076_v23 = vmul.f32 %v11530_v32, %v14478_v54  ;;  %v6077_v62 = vmul.f32 %v11530_v32, %v14480_v27  ;;  %v6039_v59 = vrot.slane %v6038_v28, 1 }
 0xddb   : > { %v11534_v52 = vpop.eup %11533  ;;  %10608 = vmatprep.mubr.msk.f32.mxu1 %vm2889_vm7, %v6074_v19  ;;  %v6078_v29 = vmul.f32 %v11532_v60, %v14500_v18  ;;  %v6079_v40 = vmul.f32 %v11532_v60, %v14507_v35  ;;  %11545 = vrcp.f32 %v6031_v50  ;;  %v11083_v24 = vpack.c.bf16 %v9142_v47, %v9141_v3  ;;  %11080 = vmatprep.subr.bf16.mxu1 %v11079_v57 }
 0xddc   : > { %v11536_v0 = vpop.eup %11535  ;;  %v6045_v46 = vadd.f32 %v6044_v1, %v6043_v48  ;;  %v6080_v43 = vmul.f32 %v11534_v52, %v14526_v20  ;;  %v6081_v33 = vmul.f32 %v11534_v52, %v14528_v45  ;;  %v6040_v12 = vadd.f32 %v6039_v59, %v6038_v28  ;;  %11082 = vmatpush3.bf16.msra.mxu1 %v11079_v57 }
 0xddd   : > { %v11538_v36 = vpop.eup %11537  ;;  %10609 = vmatmul.mubr.msk.f32.gmra.mrb[180].mxu1 %vm2889_vm7, %v6075_v13  ;;  %v6082_v54 = vmul.f32 %v11536_v0, %v14568_v53  ;;  %v6083_v27 = vmul.f32 %v11536_v0, %v14572_v58  ;;  %11084 = vmatprep.subr.bf16.mxu1 %v11083_v24 }
 0xdde   : > { %v11540_v14 = vpop.eup %11539  ;;  %v6046_v6 = vrot.slane %v6045_v46, 2  ;;  %10611 = vmatprep.mubr.msk.f32.mxu1 %vm2889_vm7, %v6076_v23  ;;  %v6084_v18 = vmul.f32 %v11538_v36, %v14590_v61  ;;  %v6085_v35 = vmul.f32 %v11538_v36, %v14594_v26  ;;  %11547 = vrcp.f32 %v6040_v12 }
 0xddf   : > { %v11542_v20 = vpop.eup %11541  ;;  %v6086_v45 = vmul.f32 %v11540_v14, %v14598_v25  ;;  %v6087_v37 = vmul.f32 %v11540_v14, %v14602_v17 }
 0xde0   : > { %v11544_v31 = vpop.eup %11543  ;;  %v6047_v49 = vadd.f32 %v6046_v6, %v6045_v46  ;;  %v6088_v53 = vmul.f32 %v11542_v20, %v14613_v34  ;;  %v6089_v58 = vmul.f32 %v11542_v20, %v14616_v7  ;;  %11086 = vmatpush3.bf16.msra.mxu1 %v11083_v24  ;;  %v15709_v46 = vld [vmem:[#allocation26_spill] sm:$0xff]  ;;  %v15710_v6 = vld [vmem:[#allocation27_spill] sm:$0xff]  ;;  %v15711_v20 = vld [vmem:[#allocation28_spill] sm:$0xff] }
 0xde1   : > { %10612 = vmatmul.mubr.msk.f32.gmra.mrb[182].mxu1 %vm2889_vm7, %v6077_v62  ;;  %v6090_v10 = vmul.f32 %v11544_v31, %v14624_v8  ;;  %v6091_v61 = vmul.f32 %v11544_v31, %v14626_v2 }
 0xde2   : > { %10614 = vmatprep.mubr.msk.f32.mxu1 %vm2889_vm7, %v6078_v29  ;;  %v6048_v26 = vrot.slane %v6047_v49, 1 }
 0xde4   : > { %v6049_v21 = vadd.f32 %v6048_v26, %v6047_v49 }
 0xde5   : > { %v11546_v22 = vpop.eup %11545  ;;  %10615 = vmatmul.mubr.msk.f32.gmra.mrb[184].mxu1 %vm2889_vm7, %v6079_v40  ;;  %v15708_v40 = vld [vmem:[#allocation25_spill] sm:$0xff] }
 0xde6   : > { %10617 = vmatprep.mubr.msk.f32.mxu1 %vm2889_vm7, %v6080_v43  ;;  %v6092_v25 = vmul.f32 %v11546_v22, %v14646_v44  ;;  %v6093_v17 = vmul.f32 %v11546_v22, %v14652_v9  ;;  %11549 = vrcp.f32 %v6049_v21  ;;  %v15713_v22 = vld [vmem:[#allocation30_spill] sm:$0xff] }
 0xde8   : > { %v11548_v34 = vpop.eup %11547 }
 0xde9   : > { %10618 = vmatmul.mubr.msk.f32.gmra.mrb[186].mxu1 %vm2889_vm7, %v6081_v33  ;;  %v6094_v7 = vmul.f32 %v11548_v34, %v14661_v11  ;;  %v6095_v8 = vmul.f32 %v11548_v34, %v14665_v16  ;;  %v14740_v11 = vpop.permute.xlu1 %4769  ;;  %v14742_v16 = vpop.permute.xlu0 %4767 }
 0xdea   : > { %10620 = vmatprep.mubr.msk.f32.mxu1 %vm2889_vm7, %v6082_v54 }
 0xded   : > { %10621 = vmatmul.mubr.msk.f32.gmra.mrb[188].mxu1 %vm2889_vm7, %v6083_v27  ;;  %v4738_v30 = vpop.permute.xlu1 %4737  ;;  %v4736_v51 = vpop.permute.xlu0 %4735 }
 0xdee   : > { %10623 = vmatprep.mubr.msk.f32.mxu1 %vm2889_vm7, %v6084_v18  ;;  %v4903_v0 = vadd.f32 %v15708_v40, %v4738_v30  ;;  %v4898_v43 = vadd.f32 %v15709_v46, %v4736_v51 }
 0xdf0   : > { %v11550_v2 = vpop.eup %11549 }
 0xdf1   : > { %10624 = vmatmul.mubr.msk.f32.gmra.mrb[190].mxu1 %vm2889_vm7, %v6085_v35  ;;  %v6096_v44 = vmul.f32 %v11550_v2, %v14679_v55  ;;  %v6097_v9 = vmul.f32 %v11550_v2, %v14684_v42  ;;  %v14744_v39 = vpop.permute.xlu1 %4773  ;;  %v14755_v55 = vpop.permute.xlu0 %4771  ;;  %v9143_v42 = vld [vmem:[%s15623_s29 + $0x60] sm:$0xff]  ;;  %v15714_v2 = vld [vmem:[#allocation31_spill] sm:$0xff] }
 0xdf2   : > { %10626 = vmatprep.mubr.msk.f32.mxu1 %vm2889_vm7, %v6086_v45  ;;  %v11087_v41 = vpack.c.bf16 %v9144_v5, %v9143_v42  ;;  %v15716_v42 = vld [vmem:[#allocation33_spill] sm:$0xff] }
 0xdf4   : > { %11088 = vmatprep.subr.bf16.mxu1 %v11087_v41 }
 0xdf5   : > { %10627 = vmatmul.mubr.msk.f32.gmra.mrb[192].mxu1 %vm2889_vm7, %v6087_v37  ;;  %v4742_v38 = vpop.permute.xlu1 %4741  ;;  %v4740_v4 = vpop.permute.xlu0 %4739 }
 0xdf6   : > { %10629 = vmatprep.mubr.msk.f32.mxu1 %vm2889_vm7, %v6088_v53  ;;  %11090 = vmatpush3.bf16.msra.mxu1 %v11087_v41  ;;  %v4913_v18 = vadd.f32 %v15710_v6, %v4742_v38  ;;  %v4908_v45 = vadd.f32 %v15711_v20, %v4740_v4  ;;  %v15717_v41 = vld [vmem:[#allocation34_spill] sm:$0xff] }
 0xdf9   : > { %10630 = vmatmul.mubr.msk.f32.gmra.mrb[194].mxu1 %vm2889_vm7, %v6089_v58  ;;  %v14766_v56 = vpop.permute.xlu1 %4777  ;;  %v14768_v28 = vpop.permute.xlu0 %4775 }
 0xdfa   : > { %10632 = vmatprep.mubr.msk.f32.mxu1 %vm2889_vm7, %v6090_v10  ;;  %v15712_v10 = vld [vmem:[#allocation29_spill] sm:$0xff] }
 0xdfd   : > { %10633 = vmatmul.mubr.msk.f32.gmra.mrb[196].mxu1 %vm2889_vm7, %v6091_v61  ;;  %v4746_v48 = vpop.permute.xlu1 %4745  ;;  %v4744_v32 = vpop.permute.xlu0 %4743 }
 0xdfe   : > { %10635 = vmatprep.mubr.msk.f32.mxu1 %vm2889_vm7, %v6092_v25  ;;  %v4923_v61 = vadd.f32 %v15712_v10, %v4746_v48  ;;  %v4918_v25 = vadd.f32 %v15713_v22, %v4744_v32 }
 0xe01   : > { %10636 = vmatmul.mubr.msk.f32.gmra.mrb[198].mxu1 %vm2889_vm7, %v6093_v17  ;;  %v14770_v19 = vpop.permute.xlu1 %4781  ;;  %v14772_v13 = vpop.permute.xlu0 %4779 }
 0xe02   : > { %10638 = vmatprep.mubr.msk.f32.mxu1 %vm2889_vm7, %v6094_v7 }
 0xe05   : > { %10639 = vmatmul.mubr.msk.f32.gmra.mrb[200].mxu1 %vm2889_vm7, %v6095_v8  ;;  %v4750_v50 = vpop.permute.xlu1 %4749  ;;  %v4748_v60 = vpop.permute.xlu0 %4747 }
 0xe06   : > { %10641 = vmatprep.mubr.msk.f32.mxu1 %vm2889_vm7, %v6096_v44  ;;  %v4933_v44 = vadd.f32 %v15714_v2, %v4750_v50  ;;  %v15722_v2 = vld [vmem:[#allocation39_spill] sm:$0xff] }
 0xe09   : > { %10642 = vmatmul.mubr.msk.f32.gmra.mrb[202].mxu1 %vm2889_vm7, %v6097_v9  ;;  %v14774_v1 = vpop.permute.xlu1 %4785  ;;  %v14776_v23 = vpop.permute.xlu0 %4783  ;;  %v15715_v9 = vld [vmem:[#allocation32_spill] sm:$0xff] }
 0xe0a   : > { %v4928_v30 = vadd.f32 %v15715_v9, %v4748_v60  ;;  %v15723_v9 = vld [vmem:[#allocation40_spill] sm:$0xff] }
 0xe0d   : > { %v4754_v62 = vpop.permute.xlu1 %4753  ;;  %v4752_v59 = vpop.permute.xlu0 %4751 }
 0xe0e   : > { %v4943_v5 = vadd.f32 %v15716_v42, %v4754_v62  ;;  %v4938_v38 = vadd.f32 %v15717_v41, %v4752_v59 }
 0xe11   : > { %v14778_v52 = vpop.permute.xlu1 %4789  ;;  %v14780_v29 = vpop.permute.xlu0 %4787 }
 0xe15   : > { %v4758_v54 = vpop.permute.xlu1 %4757  ;;  %v4756_v14 = vpop.permute.xlu0 %4755 }
 0xe19   : > { %v14796_v58 = vpop.permute.xlu1 %4793  ;;  %v14799_v26 = vpop.permute.xlu0 %4791 }
 0xe1d   : > { %v4762_v51 = vpop.permute.xlu1 %4761  ;;  %v4760_v3 = vpop.permute.xlu0 %4759 }
 0xe21   : > { %v14822_v60 = vpop.permute.xlu1 %4797 }
 0xe9e   : > { %v10598_v33 = vpop.f32.mrb[172].mxu1 }
 0xe9f   : > { %v14784_v12 = vmul.f32 %v10598_v33, %v4903_v0  ;;  %v6260_v36 = vpop.f32.mrb[173].mxu1  ;;  %v15718_v0 = vld [vmem:[#allocation35_spill] sm:$0xff]  ;;  %v15719_v33 = vld [vmem:[#allocation36_spill] sm:$0xff] }
 0xea0   : > { %v14786_v27 = vmul.f32 %v6260_v36, %v4898_v43  ;;  %v4953_v46 = vadd.f32 %v15718_v0, %v4758_v54  ;;  %v14827_v43 = vpop.permute.xlu0 %4795  ;;  %v4948_v36 = vadd.f32 %v15719_v33, %v4756_v14 }
 0xea2   : > { %v11049_v35 = vpack.c.bf16 %v14784_v12, %v14786_v27 }
 0xea3   : > { %v10601_v37 = vpop.f32.mrb[174].mxu1 }
 0xea4   : > { %v14792_v31 = vmul.f32 %v10601_v37, %v4913_v18  ;;  %v6270_v49 = vpop.f32.mrb[175].mxu1 }
 0xea5   : > { %v14794_v53 = vmul.f32 %v6270_v49, %v4908_v45  ;;  %v15720_v45 = vld [vmem:[#allocation37_spill] sm:$0xff]  ;;  %v15721_v49 = vld [vmem:[#allocation38_spill] sm:$0xff] }
 0xea6   : > { %v4963_v37 = vadd.f32 %v15720_v45, %v4762_v51  ;;  %v4958_v10 = vadd.f32 %v15721_v49, %v4760_v3  ;;  %v15727_v45 = vld [vmem:[#allocation44_spill] sm:$0xff] }
 0xea7   : > { %v11053_v21 = vpack.c.bf16 %v14792_v31, %v14794_v53 }
 0xea8   : > { %v10604_v17 = vpop.f32.mrb[176].mxu1 }
 0xea9   : > { %v14804_v34 = vmul.f32 %v10604_v17, %v4923_v61  ;;  %v6280_v7 = vpop.f32.mrb[177].mxu1  ;;  %v4766_v61 = vpop.permute.xlu1 %4765 }
 0xeaa   : > { %v14806_v8 = vmul.f32 %v6280_v7, %v4918_v25  ;;  %v4764_v25 = vpop.permute.xlu0 %4763 }
 0xeac   : > { %v11057_v15 = vpack.c.bf16 %v14804_v34, %v14806_v8  ;;  %v10607_v63 = vpop.f32.mrb[178].mxu1 }
 0xead   : > { %v14812_v57 = vmul.f32 %v10607_v63, %v4933_v44  ;;  %v6290_v47 = vpop.f32.mrb[179].mxu1  ;;  %v4973_v44 = vadd.f32 %v15722_v2, %v4766_v61 }
 0xeae   : > { %v14814_v24 = vmul.f32 %v6290_v47, %v4928_v30  ;;  %v4968_v30 = vadd.f32 %v15723_v9, %v4764_v25 }
 0xeb0   : > { %v11061_v4 = vpack.c.bf16 %v14812_v57, %v14814_v24  ;;  %v10610_v48 = vpop.f32.mrb[180].mxu1 }
 0xeb1   : > { %v14820_v32 = vmul.f32 %v10610_v48, %v4943_v5  ;;  %v6300_v50 = vpop.f32.mrb[181].mxu1  ;;  %v15724_v5 = vld [vmem:[#allocation41_spill] sm:$0xff] }
 0xeb2   : > { %v14824_v40 = vmul.f32 %v6300_v50, %v4938_v38  ;;  %v4983_v41 = vadd.f32 %v15724_v5, %v14740_v11  ;;  %v15725_v38 = vld [vmem:[#allocation42_spill] sm:$0xff] }
 0xeb3   : > { %v4978_v48 = vadd.f32 %v15725_v38, %v14742_v16  ;;  %v15728_v16 = vld [vmem:[#allocation45_spill] sm:$0xff] }
 0xeb4   : > { %v11065_v62 = vpack.c.bf16 %v14820_v32, %v14824_v40  ;;  %v10613_v59 = vpop.f32.mrb[182].mxu1  ;;  %v5003_v25 = vadd.f32 %v15728_v16, %v14766_v56  ;;  %v15731_v56 = vld [vmem:[#allocation48_spill] sm:$0xff]  ;;  %v15732_v38 = vld [vmem:[#allocation49_spill] sm:$0xff] }
 0xeb5   : > { %v14832_v6 = vmul.f32 %v10613_v59, %v4953_v46  ;;  %v6310_v18 = vpop.f32.mrb[183].mxu1  ;;  %v15726_v59 = vld [vmem:[#allocation43_spill] sm:$0xff]  ;;  %v5008_v12 = vadd.f32 %v15731_v56, %v14772_v13 }
 0xeb6   : > { %v14834_v20 = vmul.f32 %v6310_v18, %v4948_v36  ;;  %v4993_v18 = vadd.f32 %v15726_v59, %v14744_v39 }
 0xeb8   : > { %v11069_v54 = vpack.c.bf16 %v14832_v6, %v14834_v20  ;;  %v10616_v22 = vpop.f32.mrb[184].mxu1  ;;  %v11679_v6 = vld [vmem:[%s15480_s22 + $0x10] sm:$0xff] }
 0xeb9   : > { %v14840_v14 = vmul.f32 %v10616_v22, %v4963_v37  ;;  %v6320_v17 = vpop.f32.mrb[185].mxu1  ;;  %v4988_v37 = vadd.f32 %v15727_v45, %v14755_v55  ;;  %v15736_v45 = vld [vmem:[#allocation53_spill] sm:$0xff]  ;;  %v9145_v20 = vld [vmem:[%s15623_s29 + $0x70] sm:$0xff] }
 0xeba   : > { %v14842_v7 = vmul.f32 %v6320_v17, %v4958_v10  ;;  %v15729_v17 = vld [vmem:[#allocation46_spill] sm:$0xff] }
 0xebb   : > { %v4998_v2 = vadd.f32 %v15729_v17, %v14768_v28 }
 0xebc   : > { %v11073_v51 = vpack.c.bf16 %v14840_v14, %v14842_v7  ;;  %v10619_v63 = vpop.f32.mrb[186].mxu1  ;;  %v9151_v7 = vld [vmem:[%s15656_s1 + $0x20] sm:$0xff] }
 0xebd   : > { %v14848_v3 = vmul.f32 %v10619_v63, %v4973_v44  ;;  %v6330_v47 = vpop.f32.mrb[187].mxu1  ;;  %v15730_v63 = vld [vmem:[#allocation47_spill] sm:$0xff] }
 0xebe   : > { %v14850_v42 = vmul.f32 %v6330_v47, %v4968_v30  ;;  %v5013_v47 = vadd.f32 %v15730_v63, %v14770_v19  ;;  %v15733_v19 = vld [vmem:[#allocation50_spill] sm:$0xff] }
 0xebf   : > { %v5018_v31 = vadd.f32 %v15733_v19, %v14776_v23  ;;  %v9159_v63 = vld [vmem:[%s15658_s20 + $0x20] sm:$0xff] }
 0xec0   : > { %v11077_v50 = vpack.c.bf16 %v14848_v3, %v14850_v42  ;;  %v10622_v0 = vpop.f32.mrb[188].mxu1 }
 0xec1   : > { %v6436_v46 = vmul.f32 %v10622_v0, %v4983_v41  ;;  %v6340_v33 = vpop.f32.mrb[189].mxu1 }
 0xec2   : > { %v6435_v36 = vmul.f32 %v6340_v33, %v4978_v48  ;;  %v5023_v48 = vadd.f32 %v15732_v38, %v14774_v1  ;;  %v15734_v33 = vld [vmem:[#allocation51_spill] sm:$0xff]  ;;  %v15735_v1 = vld [vmem:[#allocation52_spill] sm:$0xff] }
 0xec3   : > { %v5028_v34 = vadd.f32 %v15735_v1, %v14780_v29 }
 0xec4   : > { %v11047_v49 = vpack.c.bf16 %v6436_v46, %v6435_v36  ;;  %v10625_v10 = vpop.f32.mrb[190].mxu1  ;;  %v5033_v36 = vadd.f32 %v15734_v33, %v14778_v52  ;;  %v15737_v52 = vld [vmem:[#allocation54_spill] sm:$0xff] }
 0xec5   : > { %v6438_v61 = vmul.f32 %v10625_v10, %v4993_v18  ;;  %v6350_v11 = vpop.f32.mrb[191].mxu1  ;;  %v5038_v57 = vadd.f32 %v15737_v52, %v14799_v26  ;;  %v9156_v33 = vld [vmem:[%s15663_s19 + $0x1] ss:$0 sm:$0xff] }
 0xec6   : > { %v6437_v22 = vmul.f32 %v6350_v11, %v4988_v37  ;;  %11048 = vmatprep.subr.bf16.mxu0 %v11047_v49  ;;  %v5043_v37 = vadd.f32 %v15736_v45, %v14796_v58  ;;  %v15739_v58 = vld [vmem:[#allocation16_spill] sm:$0xff]  ;;  %v15743_v52 = vld [vmem:[#allocation14_spill] sm:$0xff] }
 0xec7   : > { %11050 = vmatpush3.bf16.msra.mxu0 %v11049_v35  ;;  %v5048_v32 = vadd.f32 %v15739_v58, %v14827_v43  ;;  %v11678_v43 = vld [vmem:[%s15480_s22 + $0x18] sm:$0xff]  ;;  %v14987_v58 = vld [vmem:[%s15484_s26] sm:$0xff] }
 0xec8   : > { %v11051_v39 = vpack.c.bf16 %v6438_v61, %v6437_v22  ;;  %v10628_v44 = vpop.f32.mrb[192].mxu1  ;;  %v15738_v61 = vld [vmem:[#allocation17_spill] sm:$0xff] }
 0xec9   : > { %v6440_v9 = vmul.f32 %v10628_v44, %v5003_v25  ;;  %v6360_v55 = vpop.f32.mrb[193].mxu1  ;;  %v5053_v11 = vadd.f32 %v15738_v61, %v14822_v60  ;;  %v11677_v60 = vld [vmem:[%s15480_s22] sm:$0xff] }
 0xeca   : > { %v6439_v30 = vmul.f32 %v6360_v55, %v4998_v2  ;;  %11052 = vmatprep.subr.bf16.mxu0 %v11051_v39  ;;  %v9154_v55 = vld [vmem:[%s15656_s1 + $0x38] sm:$0xff] }
 0xecb   : > { %11054 = vmatpush3.bf16.msra.mxu0 %v11053_v21 }
 0xecc   : > { %v11055_v27 = vpack.c.bf16 %v6440_v9, %v6439_v30  ;;  %v10631_v35 = vpop.f32.mrb[194].mxu1  ;;  %v9153_v9 = vld [vmem:[%s15656_s1 + $0x30] sm:$0xff] }
 0xecd   : > { %v6442_v5 = vmul.f32 %v10631_v35, %v5013_v47  ;;  %v6370_v28 = vpop.f32.mrb[195].mxu1  ;;  %v11099_v30 = vpack.c.bf16 %v9154_v55, %v9153_v9  ;;  %v9160_v47 = vld [vmem:[%s15658_s20 + $0x28] sm:$0xff]  ;;  %v6930_v55 = vld [vmem:[%s15473_s15 + $0x20] sm:$0xff] }
 0xece   : > { %v6441_v41 = vmul.f32 %v6370_v28, %v5008_v12  ;;  %11056 = vmatprep.subr.bf16.mxu0 %v11055_v27  ;;  %v11103_v56 = vpack.c.bf16 %v9160_v47, %v9159_v63  ;;  %v15740_v27 = vld [vmem:[#allocation24_spill] sm:$0xff] }
 0xecf   : > { %11058 = vmatpush3.bf16.msra.mxu0 %v11057_v15  ;;  %v6932_v47 = vld [vmem:[%s15473_s15 + $0x30] sm:$0xff] }
 0xed0   : > { %v11059_v53 = vpack.c.bf16 %v6442_v5, %v6441_v41  ;;  %v10634_v21 = vpop.f32.mrb[196].mxu1  ;;  %v9150_v5 = vld [vmem:[%s15660_s28 + $0x1] ss:$0 sm:$0xff]  ;;  %v15741_v41 = vld [vmem:[#allocation23_spill] sm:$0xff] }
 0xed1   : > { %v6444_v0 = vmul.f32 %v10634_v21, %v5023_v48  ;;  %v6380_v13 = vpop.f32.mrb[197].mxu1 }
 0xed2   : > { %v6443_v46 = vmul.f32 %v6380_v13, %v5018_v31  ;;  %11060 = vmatprep.subr.bf16.mxu0 %v11059_v53  ;;  %v9161_v31 = vld [vmem:[%s15658_s20 + $0x30] sm:$0xff]  ;;  %v9162_v53 = vld [vmem:[%s15658_s20 + $0x38] sm:$0xff]  ;;  %v9168_v13 = vld [vmem:[%s15471_s13 + $0x28] sm:$0xff] }
 0xed3   : > { %11062 = vmatpush3.bf16.msra.mxu0 %v11061_v4  ;;  %v11107_v21 = vpack.c.bf16 %v9162_v53, %v9161_v31  ;;  %v6940_v53 = vld [vmem:[%s15473_s15 + $0x70] sm:$0xff] }
 0xed4   : > { %v11063_v8 = vpack.c.bf16 %v6444_v0, %v6443_v46  ;;  %v10637_v15 = vpop.f32.mrb[198].mxu1  ;;  %v9167_v0 = vld [vmem:[%s15471_s13 + $0x20] sm:$0xff] }
 0xed5   : > { %v6446_v59 = vmul.f32 %v10637_v15, %v5033_v36  ;;  %v6390_v23 = vpop.f32.mrb[199].mxu1  ;;  %v11111_v46 = vpack.c.bf16 %v9168_v13, %v9167_v0  ;;  %v6942_v13 = vld [vmem:[%s15473_s15 + $0x80] sm:$0xff] }
 0xed6   : > { %v6445_v18 = vmul.f32 %v6390_v23, %v5028_v34  ;;  %11064 = vmatprep.subr.bf16.mxu0 %v11063_v8  ;;  %v9169_v23 = vld [vmem:[%s15471_s13 + $0x30] sm:$0xff] }
 0xed7   : > { %11066 = vmatpush3.bf16.msra.mxu0 %v11065_v62 }
 0xed8   : > { %v11067_v24 = vpack.c.bf16 %v6446_v59, %v6445_v18  ;;  %v10640_v4 = vpop.f32.mrb[200].mxu1  ;;  %v9170_v18 = vld [vmem:[%s15471_s13 + $0x38] sm:$0xff] }
 0xed9   : > { %v6448_v49 = vmul.f32 %v10640_v4, %v5043_v37  ;;  %v6400_v29 = vpop.f32.mrb[201].mxu1  ;;  %v11115_v45 = vpack.c.bf16 %v9170_v18, %v9169_v23  ;;  %v15742_v37 = vld [vmem:[#allocation15_spill] sm:$0xff]  ;;  %v15745_v23 = vmov 0.0   ;;  %v6948_v18 = vld [vmem:[%s15473_s15 + $0xb0] sm:$0xf] }
 0xeda   : > { %v6447_v10 = vmul.f32 %v6400_v29, %v5038_v57  ;;  %11068 = vmatprep.subr.bf16.mxu0 %v11067_v24  ;;  %v15744_v57 = vpack.i.bf16 %v15742_v37, %v15743_v52  ;;  %v9164_v24 = vld [vmem:[%s15666_s11 + $0x1] ss:$0 sm:$0xff] }
 0xedb   : > { %11070 = vmatpush3.bf16.msra.mxu0 %v11069_v54  ;;  %v9146_v54 = vld [vmem:[%s15623_s29 + $0x78] sm:$0xff] }
 0xedc   : > { %v11071_v40 = vpack.c.bf16 %v6448_v49, %v6447_v10  ;;  %v10643_v62 = vpop.f32.mrb[202].mxu1  ;;  %v11091_v14 = vpack.c.bf16 %v9146_v54, %v9145_v20  ;;  %11355 = vrot.lane.b32.xlu0 %v15744_v57, %s15534_s30 }
 0xedd   : > { %v6450_v22 = vmul.f32 %v10643_v62, %v5053_v11  ;;  %v6410_v26 = vpop.f32.mrb[203].mxu1  ;;  %v9174_v62 = vld [vmem:[%s15472_s14 + $0x1] ss:$0 sm:$0xff] }
 0xede   : > { %v6449_v16 = vmul.f32 %v6410_v26, %v5048_v32  ;;  %11072 = vmatprep.subr.bf16.mxu0 %v11071_v40  ;;  %11092 = vmatprep.subr.bf16.mxu1 %v11091_v14 }
 0xedf   : > { %11074 = vmatpush3.bf16.msra.mxu0 %v11073_v51  ;;  %11094 = vmatpush3.bf16.msra.mxu1 %v11091_v14  ;;  %v9152_v51 = vld [vmem:[%s15656_s1 + $0x28] sm:$0xff]  ;;  %s15752_s1 = sld [smem:[#allocation70_spill]] }
 0xee0   : > { %v11075_v25 = vpack.c.bf16 %v6450_v22, %v6449_v16  ;;  %v11095_v3 = vpack.c.bf16 %v9152_v51, %v9151_v7  ;;  %11112 = vmatprep.subr.bf16.mxu1 %v11111_v46  ;;  %v15001_v7 = vld [vmem:[%s15484_s26 + $0x8] sm:$0xff]  ;;  %v15006_v51 = vld [vmem:[%s15485_s27] sm:$0xff] }
 0xee2   : > { %11076 = vmatprep.subr.bf16.mxu0 %v11075_v25 }
 0xee3   : > { %11078 = vmatpush3.bf16.msra.mxu0 %v11077_v50 }
 0xee4   : > { %11096 = vmatprep.subr.bf16.mxu0 %v11095_v3 }
 0xee6   : > { %6516 = vmatmul.mubr.f32.vlgmr.msra.gmra.mrb[202].mxu0 %v11677_v60 }
 0xee7   : > { %6520 = vmatprep.mubr.f32.mxu0 %v11678_v43  ;;  %11098 = vmatpush3.bf16.msra.mxu0 %v11095_v3  ;;  %v15015_v3 = vld [vmem:[%s15485_s27 + $0x8] sm:$0xff] }
 0xee8   : > { %11100 = vmatprep.subr.bf16.mxu0 %v11099_v30 }
 0xeea   : > { %6521 = vmatmul.mubr.f32.gmra.mrb[204].mxu0 %v11679_v6 }
 0xeeb   : > { %11102 = vmatpush3.bf16.msra.mxu0 %v11099_v30  ;;  %v6931_v30 = vld [vmem:[%s15473_s15 + $0x28] sm:$0xff] }
 0xeec   : > { %11104 = vmatprep.subr.bf16.mxu0 %v11103_v56  ;;  %v11134_v63 = vpack.c.bf16 %v6931_v30, %v6930_v55 }
 0xf4e   : > { %v11356_v32 = vpop.permute.xlu0 %11355 }
 0xf4f   : > { %v11358_v16 = vunpack.i.h.bf16 %v11356_v32  ;;  %v11357_v60 = vunpack.i.l.bf16 %v11356_v32 }
 0xfb9   : > { %v9801_v42 = vpop.f32.mrb[202].mxu0 }
 0xfba   : > { %v9802_v50 = vpop.f32.mrb[203].mxu0 }
 0xfbb   : > { %v9803_v17 = vadd.f32 %v9802_v50, %v9801_v42  ;;  %v6926_v42 = vld [vmem:[%s15473_s15] sm:$0xff]  ;;  %v6927_v50 = vld [vmem:[%s15473_s15 + $0x8] sm:$0xff] }
 0xfbd   : > { %v9804_v2 = vpop.f32.mrb[204].mxu0  ;;  %10660 = vmatprep.mubr.msk.f32.mxu1 %vm2535_vm6, %v9803_v17  ;;  %v6928_v17 = vld [vmem:[%s15473_s15 + $0x10] sm:$0xff] }
 0xfbe   : > { %v9805_v39 = vpop.f32.mrb[205].mxu0 }
 0xfbf   : > { %v9806_v44 = vadd.f32 %v9805_v39, %v9804_v2  ;;  %v11749_v2 = vmov 0.0|0.0   ;;  %v11128_v39 = vpack.c.bf16 %v6927_v50, %v6926_v42 }
 0xfc1   : > { %10661 = vmatmul.mubr.msk.f32.vlgmr.msra.gmra.mrb[204].mxu1 %vm2535_vm6, %v9806_v44  ;;  %v6929_v44 = vld [vmem:[%s15473_s15 + $0x18] sm:$0xff] }
 0xfc2   : > { %11114 = vmatpush3.bf16.msra.mxu1 %v11111_v46  ;;  %v11131_v9 = vpack.c.bf16 %v6929_v44, %v6928_v17  ;;  %v6943_v46 = vld [vmem:[%s15473_s15 + $0x88] sm:$0xff] }
 0xfc3   : > { %11116 = vmatprep.subr.bf16.mxu1 %v11115_v45 }
 0xfc6   : > { %11118 = vmatpush3.bf16.msra.mxu1 %v11115_v45 }
0x1094   : > { %v10662_v12 = vpop.f32.mrb[204].mxu1 }
0x1095   : > { %v6617_v35 = vadd.f32 %v10662_v12, %v15740_v27  ;;  %v6607_v28 = vpop.f32.mrb[205].mxu1  ;;  %v6934_v27 = vld [vmem:[%s15473_s15 + $0x40] sm:$0xff] }
0x1096   : > { %v6616_v38 = vadd.f32 %v6607_v28, %v15741_v41  ;;  %v6936_v28 = vld [vmem:[%s15473_s15 + $0x50] sm:$0xff]  ;;  %v6937_v41 = vld [vmem:[%s15473_s15 + $0x58] sm:$0xff] }
0x1097   : > { %v6627_v19 = vadd.f32 %v9150_v5, %v6617_v35  ;;  %v6935_v35 = vld [vmem:[%s15473_s15 + $0x48] sm:$0xff] }
0x1098   : > { %v6626_v48 = vadd.f32 %v9150_v5, %v6616_v38  ;;  %v11140_v5 = vpack.c.bf16 %v6935_v35, %v6934_v27  ;;  %v11143_v38 = vpack.c.bf16 %v6937_v41, %v6936_v28 }
0x109a   : > { %10671 = vmatprep.mubr.msk.f32.mxu0 %vm1092_vm4, %v6626_v48 }
0x109b   : > { %10672 = vmatmul.mubr.msk.f32.vlgmr.msra.gmra.mrb[206].mxu0 %vm1092_vm4, %v6627_v19 }
0x109c   : > { %11106 = vmatpush3.bf16.msra.mxu0 %v11103_v56  ;;  %v6933_v56 = vld [vmem:[%s15473_s15 + $0x38] sm:$0xff] }
0x109d   : > { %11108 = vmatprep.subr.bf16.mxu0 %v11107_v21  ;;  %v11137_v12 = vpack.c.bf16 %v6933_v56, %v6932_v47 }
0x10a0   : > { %11110 = vmatpush3.bf16.msra.mxu0 %v11107_v21  ;;  %v6941_v21 = vld [vmem:[%s15473_s15 + $0x78] sm:$0xff] }
0x10a1   : > { %v11149_v0 = vpack.c.bf16 %v6941_v21, %v6940_v53 }
0x116e   : > { %v10673_v36 = vpop.f32.mrb[206].mxu0 }
0x116f   : > { %v6719_v1 = vadd.f32 %v10673_v36, %v9156_v33  ;;  %v6713_v34 = vpop.f32.mrb[207].mxu0  ;;  %v6944_v36 = vld [vmem:[%s15473_s15 + $0x90] sm:$0xff] }
0x1170   : > { %v6714_v8 = vadd.f32 %v9156_v33, %v6713_v34  ;;  %v11152_v33 = vpack.c.bf16 %v6943_v46, %v6942_v13 }
0x1171   : > { %v6723_v59 = vmax.f32 %v6719_v1, 0.0  ;;  %v6945_v1 = vld [vmem:[%s15473_s15 + $0x98] sm:$0xff] }
0x1172   : > { %v6722_v15 = vmax.f32 %v6714_v8, 0.0  ;;  %v11155_v34 = vpack.c.bf16 %v6945_v1, %v6944_v36  ;;  %v6946_v8 = vld [vmem:[%s15473_s15 + $0xa0] sm:$0xff] }
0x1174   : > { %10682 = vmatprep.mubr.msk.f32.mxu0 %vm1092_vm4, %v6722_v15  ;;  %v6947_v15 = vld [vmem:[%s15473_s15 + $0xa8] sm:$0xff] }
0x1175   : > { %10683 = vmatmul.mubr.msk.f32.vlgmr.msra.gmra.mrb[208].mxu0 %vm1092_vm4, %v6723_v59  ;;  %v11158_v59 = vpack.c.bf16 %v6947_v15, %v6946_v8 }
0x1176   : > { %10700 = vmatprep.mubr.msk.f32.mxu0 %vm1178_vm5, %v14987_v58 }
0x1248   : > { %v10684_v4 = vpop.f32.mrb[208].mxu0 }
0x1249   : > { %v6815_v49 = vadd.f32 %v10684_v4, %v9164_v24  ;;  %v6809_v29 = vpop.f32.mrb[209].mxu0 }
0x124a   : > { %v6810_v10 = vadd.f32 %v9164_v24, %v6809_v29 }
0x124b   : > { %v6819_v11 = vmax.f32 %v6815_v49, 0.0 }
0x124c   : > { %v6818_v61 = vmax.f32 %v6810_v10, 0.0 }
0x124e   : > { %10693 = vmatprep.mubr.msk.f32.mxu1 %vm1092_vm4, %v6818_v61 }
0x124f   : > { %10694 = vmatmul.mubr.msk.f32.vlgmr.msra.gmra.mrb[206].mxu1 %vm1092_vm4, %v6819_v11 }
0x1250   : > { %10714 = vmatprep.mubr.msk.f32.mxu1 %vm1178_vm5, %v14987_v58 }
0x1322   : > { %v10695_v40 = vpop.f32.mrb[206].mxu1 }
0x1323   : > { %v6907_v22 = vadd.f32 %v10695_v40, %v6627_v19  ;;  %v6897_v26 = vpop.f32.mrb[207].mxu1  ;;  %v6939_v19 = vld [vmem:[%s15473_s15 + $0x68] sm:$0xff]  ;;  %v9179_v40 = vld [vmem:[%s15474_s16] ss:$0 sm:$0xff] }
0x1324   : > { %v6906_v25 = vadd.f32 %v6897_v26, %v6626_v48  ;;  %v6938_v48 = vld [vmem:[%s15473_s15 + $0x60] sm:$0xff] }
0x1325   : > { %v6917_v43 = vadd.f32 %v9174_v62, %v6907_v22  ;;  %v11146_v31 = vpack.c.bf16 %v6939_v19, %v6938_v48 }
0x1326   : > { %v6916_v6 = vadd.f32 %v9174_v62, %v6906_v25 }
0x1327   : > { %v6925_v20 = vsel %vm1092_vm4, %v6917_v43, %v11358_v16 }
0x1328   : > { %v6924_v54 = vsel %vm1092_vm4, %v6916_v6, %v11357_v60 }
0x1329   : > { %7118 = vrot.lane.b32.xlu1 %v6924_v54, %s11748_s8  ;;  %v11119_v14 = vpack.c.bf16 %v6925_v20, %v6924_v54 }
0x132b   : > { %11120 = vmatprep.subr.bf16.mxu0 %v11119_v14 }
0x132c   : > { %11122 = vmatpush3.bf16.msra.mxu0 %v11119_v14 }
0x132d   : > { %7120 = vrot.lane.b32.xlu1 %v6925_v20, %s11748_s8  ;;  %11124 = vmatprep.subr.bf16.mxu0 %v11119_v14  ;;  %s15746_s8 = sld [smem:[#allocation68_spill]] }
0x132f   : > { %10701 = vmatmul.mubr.msk.f32.vlgmr.msra.gmra.mrb[210].mxu0 %vm1178_vm5, %v15001_v7 }
0x1330   : > { %11126 = vmatpush3.bf16.msra.mxu0 %v11119_v14  ;;  %10707 = vmatprep.mubr.msk.f32.mxu0 %vm1178_vm5, %v15006_v51 }
0x1331   : > { %11127 = vmatprep.subr.bf16.mxu0 %v11749_v2 }
0x1333   : > { %10708 = vmatmul.mubr.msk.f32.vlgmr.msra.gmra.mrb[212].mxu0 %vm1178_vm5, %v15015_v3  ;;  %s15747_s2 = smov %s15746_s8 }
0x1334   : > { %11129 = vmatpush1.bf16.msra.mxu0 %v11128_v39 }
0x1335   : > { %11130 = vmatprep.subr.bf16.mxu0 %v11749_v2 }
0x1338   : > { %11132 = vmatpush1.bf16.msra.mxu0 %v11131_v9 }
0x1339   : > { %11133 = vmatprep.subr.bf16.mxu0 %v11749_v2 }
0x133c   : > { %11135 = vmatpush1.bf16.msra.mxu0 %v11134_v63 }
0x133d   : > { %11136 = vmatprep.subr.bf16.mxu0 %v11749_v2 }
0x1340   : > { %11138 = vmatpush1.bf16.msra.mxu0 %v11137_v12 }
0x1341   : > { %11139 = vmatprep.subr.bf16.mxu0 %v11749_v2 }
0x1344   : > { %11141 = vmatpush1.bf16.msra.mxu0 %v11140_v5 }
0x1345   : > { %11142 = vmatprep.subr.bf16.mxu0 %v11749_v2 }
0x1348   : > { %11144 = vmatpush1.bf16.msra.mxu0 %v11143_v38 }
0x1349   : > { %11145 = vmatprep.subr.bf16.mxu0 %v11749_v2 }
0x134c   : > { %11147 = vmatpush1.bf16.msra.mxu0 %v11146_v31 }
0x134d   : > { %11148 = vmatprep.subr.bf16.mxu0 %v11749_v2 }
0x1350   : > { %11150 = vmatpush1.bf16.msra.mxu0 %v11149_v0 }
0x1351   : > { %11151 = vmatprep.subr.bf16.mxu0 %v11749_v2 }
0x1354   : > { %11153 = vmatpush1.bf16.msra.mxu0 %v11152_v33 }
0x1355   : > { %11154 = vmatprep.subr.bf16.mxu0 %v11749_v2 }
0x1358   : > { %11156 = vmatpush1.bf16.msra.mxu0 %v11155_v34 }
0x1359   : > { %11157 = vmatprep.subr.bf16.mxu0 %v11749_v2 }
0x135c   : > { %11159 = vmatpush1.bf16.msra.mxu0 %v11158_v59 }
0x135d   : > { %7196 = vmatprep.subr.mxu0 %v15745_v23  ;;  %v7268_v23 = vld [vmem:[%s15475_s17] sm:$0xff] }
0x1360   : > { %9180 = vmatpush1.msk.msra.mxu0 %vm993_vm0, %v6948_v18  ;;  %v7269_v18 = vld [vmem:[%s15475_s17 + $0x8] sm:$0xff] }
0x139b   : > { %v7119_v24 = vpop.permute.xlu1 %7118 }
0x139f   : > { %v7121_v10 = vpop.permute.xlu1 %7120 }
0x1402   : > { %v10702_v45 = vpop.f32.mrb[210].mxu0 }
0x1403   : > { %v7024_v37 = vpop.f32.mrb[211].mxu0  ;;  %v7134_v61 = vsel %vm7132_vm8, %v10702_v45, %v7121_v10  ;;  %v7270_v45 = vld [vmem:[%s15475_s17 + $0x10] sm:$0xff]  ;;  %v7275_v10 = vld [vmem:[%s15475_s17 + $0x38] sm:$0xff] }
0x1404   : > { %v7133_v4 = vsel %vm7132_vm8, %v7024_v37, %v7119_v24  ;;  %v11168_v37 = vpack.c.bf16 %v7269_v18, %v7268_v23  ;;  %v7272_v24 = vld [vmem:[%s15475_s17 + $0x20] sm:$0xff] }
0x1406   : > { %v10709_v52 = vpop.f32.mrb[212].mxu0 }
0x1407   : > { %v7107_v57 = vpop.f32.mrb[213].mxu0 }
0x1408   : > { %7126 = vrot.lane.b32.xlu0 %v7107_v57, %s11750_s9 }
0x140c   : > { %7128 = vrot.lane.b32.xlu0 %v10709_v52, %s11750_s9  ;;  %v7271_v52 = vld [vmem:[%s15475_s17 + $0x18] sm:$0xff]  ;;  %s9278_s9 = sshll.u32 %s15751_s18, 8  ;;  %s11751_s18 = smov [#allocation2]  }
0x140d   : > { %v11172_v57 = vpack.c.bf16 %v7271_v52, %v7270_v45  ;;  %s11684_s6 = sshll.u32 %s11751_s18, 4  ;;  %s11685_s6 = int_to_ptr.vmem [resolvable:$false] %s11684_s6 }
0x147a   : > { %v7127_v49 = vpop.permute.xlu0 %7126 }
0x147b   : > { %v7136_v29 = vsel %vm7135_vm9, %v7133_v4, %v7127_v49  ;;  %9181 = vmatprep.mubr.msk.f32.mxu0 %vm7144_vm10, %v7127_v49  ;;  %v7273_v4 = vld [vmem:[%s15475_s17 + $0x28] sm:$0xff] }
0x147c   : > { %7217 = vmatmul.mubr.f32.vlgmr.msra.gmra.mrb[214].mxu0 %v7136_v29  ;;  %v11176_v49 = vpack.c.bf16 %v7273_v4, %v7272_v24  ;;  %v7274_v29 = vld [vmem:[%s15475_s17 + $0x30] sm:$0xff] }
0x147e   : > { %v7129_v11 = vpop.permute.xlu0 %7128 }
0x147f   : > { %9182 = vmatprep.mubr.msk.f32.mxu0 %vm7144_vm10, %v7129_v11  ;;  %v7137_v32 = vsel %vm7135_vm9, %v7134_v61, %v7129_v11  ;;  %v11180_v61 = vpack.c.bf16 %v7275_v10, %v7274_v29  ;;  %v7276_v11 = vld [vmem:[%s15475_s17 + $0x40] sm:$0xff] }
0x1480   : > { %7222 = vmatmul.mubr.f32.gmra.mrb[216].mxu0 %v7137_v32  ;;  %v7277_v32 = vld [vmem:[%s15475_s17 + $0x48] sm:$0xff] }
0x154f   : > { %v7218_v62 = vpop.f32.mrb[214].mxu0 }
0x1550   : > { %v7219_v22 = vadd.f32 %v9179_v40, %v7218_v62  ;;  %v7220_v26 = vpop.f32.mrb[215].mxu0  ;;  %v7278_v62 = vld [vmem:[%s15475_s17 + $0x50] sm:$0xff] }
0x1552   : > { %v7229_v16 = vmin.f32 %v7219_v22, 0.0  ;;  %vm7227_vm11 = vcmp.gt.f32.partialorder %v7219_v22, 0.0 }
0x1553   : > { %v7223_v25 = vpop.f32.mrb[216].mxu0 }
0x1554   : > { %v7231_v60 = vmul.f32 1.442695, %v7229_v16  ;;  %v7224_v43 = vadd.f32 %v9179_v40, %v7223_v25  ;;  %v7225_v6 = vpop.f32.mrb[217].mxu0  ;;  %v11184_v40 = vpack.c.bf16 %v7277_v32, %v7276_v11 }
0x1556   : > { %11551 = vpow2.f32 %v7231_v60  ;;  %v7230_v20 = vmin.f32 %v7224_v43, 0.0  ;;  %vm7228_vm12 = vcmp.gt.f32.partialorder %v7224_v43, 0.0 }
0x1558   : > { %v7233_v54 = vmul.f32 1.442695, %v7230_v20 }
0x155a   : > { %11553 = vpow2.f32 %v7233_v54 }
0x1560   : > { %v11552_v14 = vpop.eup %11551 }
0x1561   : > { %v9183_v42 = vadd.f32 -1.0, %v11552_v14 }
0x1563   : > { %v15093_v17 = vsel %vm7227_vm11, %v7219_v22, %v9183_v42  ;;  %v7279_v22 = vld [vmem:[%s15475_s17 + $0x58] sm:$0xff] }
0x1564   : > { %v11554_v50 = vpop.eup %11553  ;;  %v7239_v44 = vsel %vm1092_vm4, %v15093_v17, 0.0  ;;  %v11188_v26 = vpack.c.bf16 %v7279_v22, %v7278_v62 }
0x1565   : > { %v9184_v2 = vadd.f32 -1.0, %v11554_v50 }
0x1567   : > { %v15095_v39 = vsel %vm7228_vm12, %v7224_v43, %v9184_v2 }
0x1568   : > { %v7240_v9 = vsel %vm1092_vm4, %v15095_v39, 0.0 }
0x1569   : > { %v7241_v55 = vadd.f32 %v7240_v9, %v7239_v44  ;;  %v9207_v9 = vld [vmem:[%s15484_s26 + $0x10] sm:$0xff] }
0x156b   : > { %v7242_v30 = vrot.slane %v7241_v55, 4 }
0x156d   : > { %v7243_v63 = vadd.f32 %v7242_v30, %v7241_v55  ;;  %v9189_v55 = vld [vmem:[%s15746_s8] ss:$0 sm:$0xff]  ;;  %s15750_s8 = sld [smem:[#allocation6_spill]] }
0x156f   : > { %v7244_v47 = vrot.slane %v7243_v63, 2 }
0x1571   : > { %v7245_v56 = vadd.f32 %v7244_v47, %v7243_v63 }
0x1573   : > { %v7246_v12 = vrot.slane %v7245_v56, 1 }
0x1575   : > { %v7247_v27 = vadd.f32 %v7246_v12, %v7245_v56 }
0x1577   : > { %v7249_v35 = vmul.f32 0.0625, %v7247_v27 }
0x1579   : > { %v7250_v5 = vsub.f32 %v15093_v17, %v7249_v35  ;;  %v7251_v28 = vsub.f32 %v15095_v39, %v7249_v35 }
0x157b   : > { %v7252_v41 = vmul.f32 %v7250_v5, %v7250_v5  ;;  %v7253_v38 = vmul.f32 %v7251_v28, %v7251_v28 }
0x157d   : > { %v7254_v48 = vsel %vm1092_vm4, %v7252_v41, 0.0  ;;  %v7255_v19 = vsel %vm1092_vm4, %v7253_v38, 0.0 }
0x157e   : > { %v7256_v31 = vadd.f32 %v7255_v19, %v7254_v48 }
0x1580   : > { %v7257_v53 = vrot.slane %v7256_v31, 4 }
0x1582   : > { %v7258_v21 = vadd.f32 %v7257_v53, %v7256_v31 }
0x1584   : > { %v7259_v0 = vrot.slane %v7258_v21, 2 }
0x1586   : > { %v7260_v13 = vadd.f32 %v7259_v0, %v7258_v21 }
0x1588   : > { %v7261_v46 = vrot.slane %v7260_v13, 1 }
0x158a   : > { %v7262_v33 = vadd.f32 %v7261_v46, %v7260_v13 }
0x158c   : > { %v7263_v36 = vmul.f32 0.0625, %v7262_v33 }
0x158e   : > { %v7264_v1 = vadd.f32 1e-05, %v7263_v36 }
0x1590   : > { %11555 = vrsqrt.f32 %v7264_v1 }
0x159a   : > { %v11556_v34 = vpop.eup %11555 }
0x159b   : > { %v7267_v8 = vmul.f32 %v11556_v34, %v7251_v28  ;;  %v7266_v15 = vmul.f32 %v11556_v34, %v7250_v5 }
0x159d   : > { %7435 = vrot.lane.b32.xlu0 %v7267_v8, %s15534_s30  ;;  %7433 = vrot.lane.b32.xlu1 %v7266_v15, %s15534_s30  ;;  %v11160_v59 = vpack.c.bf16 %v7267_v8, %v7266_v15 }
0x159f   : > { %11161 = vmatprep.subr.bf16.mxu1 %v11160_v59 }
0x15a0   : > { %11163 = vmatpush3.bf16.msra.mxu1 %v11160_v59 }
0x15a1   : > { %11165 = vmatprep.subr.bf16.mxu1 %v11160_v59 }
0x15a3   : > { %10715 = vmatmul.mubr.msk.f32.vlgmr.msra.gmra.mrb[208].mxu1 %vm1178_vm5, %v15001_v7 }
0x15a4   : > { %11167 = vmatpush3.bf16.msra.mxu1 %v11160_v59  ;;  %10721 = vmatprep.mubr.msk.f32.mxu1 %vm1178_vm5, %v15006_v51 }
0x15a5   : > { %11169 = vmatprep.subr.bf16.mxu1 %v11168_v37 }
0x15a7   : > { %10722 = vmatmul.mubr.msk.f32.vlgmr.msra.gmra.mrb[210].mxu1 %vm1178_vm5, %v15015_v3 }
0x15a8   : > { %11171 = vmatpush3.bf16.msra.mxu1 %v11168_v37 }
0x15a9   : > { %11173 = vmatprep.subr.bf16.mxu1 %v11172_v57 }
0x15ac   : > { %11175 = vmatpush3.bf16.msra.mxu1 %v11172_v57 }
0x15ad   : > { %11177 = vmatprep.subr.bf16.mxu1 %v11176_v49 }
0x15b0   : > { %11179 = vmatpush3.bf16.msra.mxu1 %v11176_v49 }
0x15b1   : > { %11181 = vmatprep.subr.bf16.mxu1 %v11180_v61 }
0x15b4   : > { %11183 = vmatpush3.bf16.msra.mxu1 %v11180_v61 }
0x15b5   : > { %11185 = vmatprep.subr.bf16.mxu1 %v11184_v40 }
0x15b8   : > { %11187 = vmatpush3.bf16.msra.mxu1 %v11184_v40 }
0x15b9   : > { %11189 = vmatprep.subr.bf16.mxu1 %v11188_v26 }
0x15bc   : > { %11191 = vmatpush3.bf16.msra.mxu1 %v11188_v26  ;;  %v9208_v26 = vld [vmem:[%s15484_s26 + $0x18] sm:$0xff] }
0x160f   : > { %v7436_v6 = vpop.permute.xlu0 %7435  ;;  %v7434_v20 = vpop.permute.xlu1 %7433 }
0x1676   : > { %v10716_v16 = vpop.f32.mrb[208].mxu1 }
0x1677   : > { %v7347_v25 = vpop.f32.mrb[209].mxu1  ;;  %v7448_v50 = vsel %vm1092_vm4, %v10716_v16, %v7436_v6  ;;  %v9211_v16 = vld [vmem:[%s15485_s27 + $0x10] sm:$0xff] }
0x1678   : > { %v7447_v14 = vsel %vm1092_vm4, %v7347_v25, %v7434_v20  ;;  %v9212_v25 = vld [vmem:[%s15485_s27 + $0x18] sm:$0xff]  ;;  %v9196_v6 = vld [vmem:[%s15475_s17 + $0x70] sm:$0xff] }
0x167a   : > { %v10723_v60 = vpop.f32.mrb[210].mxu1 }
0x167b   : > { %7443 = vrot.lane.b32.xlu0 %v10723_v60, %s15585_s0  ;;  %v7422_v43 = vpop.f32.mrb[211].mxu1  ;;  %v9194_v60 = vld [vmem:[%s15475_s17 + $0x60] sm:$0xff] }
0x167c   : > { %7441 = vrot.lane.b32.xlu1 %v7422_v43, %s15585_s0  ;;  %v9195_v43 = vld [vmem:[%s15475_s17 + $0x68] sm:$0xff] }
0x167d   : > { %v11200_v20 = vpack.c.bf16 %v9195_v43, %v9194_v60 }
0x16ed   : > { %v7444_v54 = vpop.permute.xlu0 %7443 }
0x16ee   : > { %v7442_v42 = vpop.permute.xlu1 %7441  ;;  %v7450_v44 = vsel %vm2535_vm6, %v7448_v50, %v7444_v54  ;;  %v9197_v54 = vld [vmem:[%s15475_s17 + $0x78] sm:$0xff]  ;;  %v9199_v50 = vld [vmem:[%s15475_s17 + $0x88] sm:$0xff] }
0x16ef   : > { %v7449_v2 = vsel %vm2535_vm6, %v7447_v14, %v7442_v42  ;;  %v11204_v14 = vpack.c.bf16 %v9197_v54, %v9196_v6  ;;  %v9198_v42 = vld [vmem:[%s15475_s17 + $0x80] sm:$0xff] }
0x16f0   : > { %10748 = vmatprep.mubr.msk.f32.mxu1 %vm7457_vm13, %v7449_v2  ;;  %v11208_v2 = vpack.c.bf16 %v9199_v50, %v9198_v42 }
0x16f1   : > { %10749 = vmatmul.mubr.msk.f32.vlgmr.msra.gmra.mrb[212].mxu1 %vm7457_vm13, %v7450_v44  ;;  %v9200_v44 = vld [vmem:[%s15475_s17 + $0x90] sm:$0xff] }
0x16f2   : > { %10755 = vmatprep.mubr.msk.f32.mxu1 %vm1178_vm5, %v9207_v9  ;;  %v9201_v9 = vld [vmem:[%s15475_s17 + $0x98] sm:$0xff] }
0x17c4   : > { %v10750_v30 = vpop.f32.mrb[212].mxu1 }
0x17c5   : > { %v7536_v63 = vadd.f32 %v10750_v30, %v9189_v55  ;;  %v7530_v47 = vpop.f32.mrb[213].mxu1  ;;  %v9202_v30 = vld [vmem:[%s15475_s17 + $0xa0] sm:$0xff] }
0x17c6   : > { %v7531_v56 = vadd.f32 %v9189_v55, %v7530_v47  ;;  %v11212_v55 = vpack.c.bf16 %v9201_v9, %v9200_v44 }
0x17c7   : > { %v7542_v12 = vmin.f32 %v7536_v63, 0.0  ;;  %vm7540_vm14 = vcmp.gt.f32.partialorder %v7536_v63, 0.0 }
0x17c8   : > { %v7541_v27 = vmin.f32 %v7531_v56, 0.0  ;;  %vm7539_vm15 = vcmp.gt.f32.partialorder %v7531_v56, 0.0 }
0x17c9   : > { %v7545_v35 = vmul.f32 1.442695, %v7542_v12  ;;  %v9205_v12 = vld [vmem:[%s15475_s17 + $0xb8] sm:$0xff] }
0x17ca   : > { %v7543_v5 = vmul.f32 1.442695, %v7541_v27 }
0x17cb   : > { %11557 = vpow2.f32 %v7545_v35 }
0x17cc   : > { %11559 = vpow2.f32 %v7543_v5 }
0x17d5   : > { %v11558_v28 = vpop.eup %11557 }
0x17d6   : > { %v11560_v41 = vpop.eup %11559  ;;  %v9193_v38 = vadd.f32 -1.0, %v11558_v28 }
0x17d7   : > { %v9192_v48 = vadd.f32 -1.0, %v11560_v41 }
0x17d8   : > { %v7550_v19 = vsel %vm7540_vm14, %v7536_v63, %v9193_v38  ;;  %v9203_v63 = vld [vmem:[%s15475_s17 + $0xa8] sm:$0xff] }
0x17d9   : > { %v15165_v31 = vadd.f32 %v7550_v19, %v15095_v39  ;;  %v7549_v53 = vsel %vm7539_vm15, %v7531_v56, %v9192_v48  ;;  %v11216_v47 = vpack.c.bf16 %v9203_v63, %v9202_v30  ;;  %v9204_v56 = vld [vmem:[%s15475_s17 + $0xb0] sm:$0xff] }
0x17da   : > { %v15168_v21 = vadd.f32 %v7549_v53, %v15093_v17  ;;  %v11220_v27 = vpack.c.bf16 %v9205_v12, %v9204_v56  ;;  %v9234_v12 = vld [vmem:[%s15484_s26 + $0x28] sm:$0xff] }
0x17db   : > { %v7554_v0 = vsel %vm1092_vm4, %v15165_v31, 0.0 }
0x17dc   : > { %v7553_v13 = vsel %vm1092_vm4, %v15168_v21, 0.0 }
0x17dd   : > { %v7555_v46 = vadd.f32 %v7554_v0, %v7553_v13 }
0x17df   : > { %v7556_v33 = vrot.slane %v7555_v46, 4 }
0x17e1   : > { %v7557_v36 = vadd.f32 %v7556_v33, %v7555_v46 }
0x17e3   : > { %v7558_v1 = vrot.slane %v7557_v36, 2 }
0x17e5   : > { %v7559_v34 = vadd.f32 %v7558_v1, %v7557_v36  ;;  %v9233_v36 = vld [vmem:[%s15484_s26 + $0x20] sm:$0xff] }
0x17e6   : > { %10796 = vmatprep.mubr.msk.f32.mxu0 %vm1178_vm5, %v9233_v36  ;;  %v9215_v1 = vld [vmem:[%s15747_s2 + $0x1] ss:$0 sm:$0xff] }
0x17e7   : > { %v7560_v8 = vrot.slane %v7559_v34, 1 }
0x17e9   : > { %v7561_v15 = vadd.f32 %v7560_v8, %v7559_v34 }
0x17eb   : > { %v7562_v59 = vmul.f32 0.0625, %v7561_v15 }
0x17ed   : > { %v7563_v39 = vsub.f32 %v15168_v21, %v7562_v59  ;;  %v7564_v23 = vsub.f32 %v15165_v31, %v7562_v59 }
0x17ef   : > { %v7565_v17 = vmul.f32 %v7563_v39, %v7563_v39  ;;  %v7566_v18 = vmul.f32 %v7564_v23, %v7564_v23 }
0x17f1   : > { %v7567_v45 = vsel %vm1092_vm4, %v7565_v17, 0.0  ;;  %v7568_v37 = vsel %vm1092_vm4, %v7566_v18, 0.0 }
0x17f2   : > { %v7569_v52 = vadd.f32 %v7568_v37, %v7567_v45 }
0x17f4   : > { %v7570_v57 = vrot.slane %v7569_v52, 4 }
0x17f6   : > { %v7571_v24 = vadd.f32 %v7570_v57, %v7569_v52 }
0x17f8   : > { %v7572_v4 = vrot.slane %v7571_v24, 2 }
0x17fa   : > { %v7573_v49 = vadd.f32 %v7572_v4, %v7571_v24 }
0x17fc   : > { %v7574_v29 = vrot.slane %v7573_v49, 1 }
0x17fe   : > { %v7575_v10 = vadd.f32 %v7574_v29, %v7573_v49 }
0x1800   : > { %v7576_v61 = vmul.f32 0.0625, %v7575_v10 }
0x1802   : > { %v7577_v11 = vadd.f32 1e-05, %v7576_v61 }
0x1804   : > { %11561 = vrsqrt.f32 %v7577_v11 }
0x180e   : > { %v11562_v32 = vpop.eup %11561 }
0x180f   : > { %v7580_v40 = vmul.f32 %v11562_v32, %v7564_v23  ;;  %v7579_v62 = vmul.f32 %v11562_v32, %v7563_v39 }
0x1811   : > { %7768 = vrot.lane.b32.xlu0 %v7580_v40, %s15748_s5  ;;  %7766 = vrot.lane.b32.xlu1 %v7579_v62, %s15748_s5  ;;  %v11192_v22 = vpack.c.bf16 %v7580_v40, %v7579_v62 }
0x1813   : > { %11193 = vmatprep.subr.bf16.mxu1 %v11192_v22 }
0x1814   : > { %11195 = vmatpush3.bf16.msra.mxu1 %v11192_v22 }
0x1815   : > { %11197 = vmatprep.subr.bf16.mxu1 %v11192_v22 }
0x1817   : > { %10756 = vmatmul.mubr.msk.f32.vlgmr.msra.gmra.mrb[214].mxu1 %vm1178_vm5, %v9208_v26 }
0x1818   : > { %11199 = vmatpush3.bf16.msra.mxu1 %v11192_v22  ;;  %10762 = vmatprep.mubr.msk.f32.mxu1 %vm1178_vm5, %v9211_v16 }
0x1819   : > { %11201 = vmatprep.subr.bf16.mxu1 %v11200_v20 }
0x181b   : > { %10763 = vmatmul.mubr.msk.f32.vlgmr.msra.gmra.mrb[216].mxu1 %vm1178_vm5, %v9212_v25 }
0x181c   : > { %11203 = vmatpush3.bf16.msra.mxu1 %v11200_v20 }
0x181d   : > { %11205 = vmatprep.subr.bf16.mxu1 %v11204_v14 }
0x1820   : > { %11207 = vmatpush3.bf16.msra.mxu1 %v11204_v14 }
0x1821   : > { %11209 = vmatprep.subr.bf16.mxu1 %v11208_v2 }
0x1824   : > { %11211 = vmatpush3.bf16.msra.mxu1 %v11208_v2 }
0x1825   : > { %11213 = vmatprep.subr.bf16.mxu1 %v11212_v55 }
0x1828   : > { %11215 = vmatpush3.bf16.msra.mxu1 %v11212_v55 }
0x1829   : > { %11217 = vmatprep.subr.bf16.mxu1 %v11216_v47 }
0x182c   : > { %11219 = vmatpush3.bf16.msra.mxu1 %v11216_v47 }
0x182d   : > { %11221 = vmatprep.subr.bf16.mxu1 %v11220_v27 }
0x1830   : > { %11223 = vmatpush3.bf16.msra.mxu1 %v11220_v27  ;;  %v9237_v27 = vld [vmem:[%s15485_s27 + $0x20] sm:$0xff] }
0x1883   : > { %v7769_v38 = vpop.permute.xlu0 %7768  ;;  %v7767_v48 = vpop.permute.xlu1 %7766 }
0x18ea   : > { %v10757_v35 = vpop.f32.mrb[214].mxu1 }
0x18eb   : > { %v7671_v5 = vpop.f32.mrb[215].mxu1  ;;  %v7781_v13 = vsel %vm1092_vm4, %v10757_v35, %v7769_v38  ;;  %v9238_v35 = vld [vmem:[%s15485_s27 + $0x28] sm:$0xff] }
0x18ec   : > { %v7780_v53 = vsel %vm1092_vm4, %v7671_v5, %v7767_v48  ;;  %v9220_v5 = vld [vmem:[%s15475_s17 + $0xc0] sm:$0xff]  ;;  %v9223_v48 = vld [vmem:[%s15475_s17 + $0xd8] sm:$0xff] }
0x18ee   : > { %v10764_v28 = vpop.f32.mrb[216].mxu1 }
0x18ef   : > { %7776 = vrot.lane.b32.xlu0 %v10764_v28, %s15585_s0  ;;  %v7755_v41 = vpop.f32.mrb[217].mxu1  ;;  %v9221_v28 = vld [vmem:[%s15475_s17 + $0xc8] sm:$0xff] }
0x18f0   : > { %7774 = vrot.lane.b32.xlu1 %v7755_v41, %s15585_s0  ;;  %v9222_v41 = vld [vmem:[%s15475_s17 + $0xd0] sm:$0xff]  ;;  %v11232_v38 = vpack.c.bf16 %v9221_v28, %v9220_v5 }
0x1961   : > { %v7777_v19 = vpop.permute.xlu0 %7776 }
0x1962   : > { %v7775_v0 = vpop.permute.xlu1 %7774  ;;  %v7783_v33 = vsel %vm2535_vm6, %v7781_v13, %v7777_v19  ;;  %v11236_v19 = vpack.c.bf16 %v9223_v48, %v9222_v41 }
0x1963   : > { %v7782_v46 = vsel %vm2535_vm6, %v7780_v53, %v7775_v0  ;;  %v9224_v53 = vld [vmem:[%s15475_s17 + $0xe0] sm:$0xff]  ;;  %v9225_v0 = vld [vmem:[%s15475_s17 + $0xe8] sm:$0xff] }
0x1964   : > { %10789 = vmatprep.mubr.msk.f32.mxu1 %vm7457_vm13, %v7782_v46  ;;  %v11240_v13 = vpack.c.bf16 %v9225_v0, %v9224_v53  ;;  %v9226_v46 = vld [vmem:[%s15475_s17 + $0xf0] sm:$0xff] }
0x1965   : > { %10790 = vmatmul.mubr.msk.f32.vlgmr.msra.gmra.mrb[218].mxu1 %vm7457_vm13, %v7783_v33  ;;  %v9227_v33 = vld [vmem:[%s15475_s17 + $0xf8] sm:$0xff] }
0x1966   : > { %10837 = vmatprep.mubr.msk.f32.mxu1 %vm1178_vm5, %v14987_v58  ;;  %v11244_v36 = vpack.c.bf16 %v9227_v33, %v9226_v46 }
0x1a38   : > { %v10791_v34 = vpop.f32.mrb[218].mxu1 }
0x1a39   : > { %v7868_v8 = vadd.f32 %v10791_v34, %v9215_v1  ;;  %v7862_v15 = vpop.f32.mrb[219].mxu1  ;;  %v9229_v34 = vld [vmem:[%s15475_s17 + $0x108] sm:$0xff] }
0x1a3a   : > { %v7863_v59 = vadd.f32 %v9215_v1, %v7862_v15  ;;  %v9228_v1 = vld [vmem:[%s15475_s17 + $0x100] sm:$0xff]  ;;  %v9230_v15 = vld [vmem:[%s15475_s17 + $0x110] sm:$0xff] }
0x1a3b   : > { %v7874_v39 = vmin.f32 %v7868_v8, 0.0  ;;  %vm7872_vm0 = vcmp.gt.f32.partialorder %v7868_v8, 0.0 }
0x1a3c   : > { %v7873_v23 = vmin.f32 %v7863_v59, 0.0  ;;  %vm7871_vm1 = vcmp.gt.f32.partialorder %v7863_v59, 0.0 }
0x1a3d   : > { %v7877_v17 = vmul.f32 1.442695, %v7874_v39 }
0x1a3e   : > { %v7875_v18 = vmul.f32 1.442695, %v7873_v23 }
0x1a3f   : > { %11563 = vpow2.f32 %v7877_v17 }
0x1a40   : > { %11565 = vpow2.f32 %v7875_v18 }
0x1a49   : > { %v11564_v58 = vpop.eup %11563 }
0x1a4a   : > { %v11566_v45 = vpop.eup %11565  ;;  %v9219_v37 = vadd.f32 -1.0, %v11564_v58 }
0x1a4b   : > { %v9218_v52 = vadd.f32 -1.0, %v11566_v45 }
0x1a4c   : > { %v7882_v57 = vsel %vm7872_vm0, %v7868_v8, %v9219_v37  ;;  %v11248_v8 = vpack.c.bf16 %v9229_v34, %v9228_v1 }
0x1a4d   : > { %v15246_v24 = vadd.f32 %v7882_v57, %v15165_v31  ;;  %v7881_v4 = vsel %vm7871_vm1, %v7863_v59, %v9218_v52  ;;  %v9231_v59 = vld [vmem:[%s15475_s17 + $0x118] sm:$0xff] }
0x1a4e   : > { %v15249_v49 = vadd.f32 %v7881_v4, %v15168_v21  ;;  %v11252_v39 = vpack.c.bf16 %v9231_v59, %v9230_v15  ;;  %v9246_v15 = vld [vmem:[%s15475_s17 + $0x120] sm:$0xff]  ;;  %v9247_v59 = vld [vmem:[%s15475_s17 + $0x128] sm:$0xff] }
0x1a4f   : > { %v7886_v29 = vsel %vm1092_vm4, %v15246_v24, 0.0 }
0x1a50   : > { %v7885_v10 = vsel %vm1092_vm4, %v15249_v49, 0.0 }
0x1a51   : > { %v7887_v61 = vadd.f32 %v7886_v29, %v7885_v10 }
0x1a53   : > { %v7888_v11 = vrot.slane %v7887_v61, 4 }
0x1a55   : > { %v7889_v32 = vadd.f32 %v7888_v11, %v7887_v61  ;;  %v9241_v11 = vld [vmem:[%s15747_s2 + $0x2] ss:$0 sm:$0xff] }
0x1a57   : > { %v7890_v40 = vrot.slane %v7889_v32, 2 }
0x1a59   : > { %v7891_v62 = vadd.f32 %v7890_v40, %v7889_v32 }
0x1a5b   : > { %v7892_v22 = vrot.slane %v7891_v62, 1 }
0x1a5d   : > { %v7893_v26 = vadd.f32 %v7892_v22, %v7891_v62 }
0x1a5f   : > { %v7894_v16 = vmul.f32 0.0625, %v7893_v26 }
0x1a61   : > { %v7895_v31 = vsub.f32 %v15249_v49, %v7894_v16  ;;  %v7896_v25 = vsub.f32 %v15246_v24, %v7894_v16 }
0x1a63   : > { %v7897_v21 = vmul.f32 %v7895_v31, %v7895_v31  ;;  %v7898_v60 = vmul.f32 %v7896_v25, %v7896_v25 }
0x1a65   : > { %v7899_v43 = vsel %vm1092_vm4, %v7897_v21, 0.0  ;;  %v7900_v6 = vsel %vm1092_vm4, %v7898_v60, 0.0 }
0x1a66   : > { %v7901_v20 = vadd.f32 %v7900_v6, %v7899_v43 }
0x1a68   : > { %v7902_v54 = vrot.slane %v7901_v20, 4 }
0x1a6a   : > { %v7903_v14 = vadd.f32 %v7902_v54, %v7901_v20 }
0x1a6c   : > { %v7904_v42 = vrot.slane %v7903_v14, 2 }
0x1a6e   : > { %v7905_v50 = vadd.f32 %v7904_v42, %v7903_v14 }
0x1a70   : > { %v7906_v2 = vrot.slane %v7905_v50, 1 }
0x1a72   : > { %v7907_v44 = vadd.f32 %v7906_v2, %v7905_v50 }
0x1a74   : > { %v7908_v9 = vmul.f32 0.0625, %v7907_v44 }
0x1a76   : > { %v7909_v55 = vadd.f32 1e-05, %v7908_v9 }
0x1a78   : > { %11567 = vrsqrt.f32 %v7909_v55 }
0x1a82   : > { %v11568_v30 = vpop.eup %11567 }
0x1a83   : > { %v7912_v63 = vmul.f32 %v11568_v30, %v7896_v25  ;;  %v7911_v47 = vmul.f32 %v11568_v30, %v7895_v31 }
0x1a85   : > { %8100 = vrot.lane.b32.xlu0 %v7912_v63, %s15748_s5  ;;  %8098 = vrot.lane.b32.xlu1 %v7911_v47, %s15748_s5  ;;  %v11224_v56 = vpack.c.bf16 %v7912_v63, %v7911_v47 }
0x1a87   : > { %11225 = vmatprep.subr.bf16.mxu0 %v11224_v56 }
0x1a88   : > { %11227 = vmatpush3.bf16.msra.mxu0 %v11224_v56 }
0x1a89   : > { %11229 = vmatprep.subr.bf16.mxu0 %v11224_v56 }
0x1a8b   : > { %10797 = vmatmul.mubr.msk.f32.vlgmr.msra.gmra.mrb[218].mxu0 %vm1178_vm5, %v9234_v12 }
0x1a8c   : > { %11231 = vmatpush3.bf16.msra.mxu0 %v11224_v56  ;;  %10803 = vmatprep.mubr.msk.f32.mxu0 %vm1178_vm5, %v9237_v27 }
0x1a8d   : > { %11233 = vmatprep.subr.bf16.mxu0 %v11232_v38 }
0x1a8f   : > { %10804 = vmatmul.mubr.msk.f32.vlgmr.msra.gmra.mrb[220].mxu0 %vm1178_vm5, %v9238_v35 }
0x1a90   : > { %11235 = vmatpush3.bf16.msra.mxu0 %v11232_v38 }
0x1a91   : > { %11237 = vmatprep.subr.bf16.mxu0 %v11236_v19 }
0x1a94   : > { %11239 = vmatpush3.bf16.msra.mxu0 %v11236_v19 }
0x1a95   : > { %11241 = vmatprep.subr.bf16.mxu0 %v11240_v13 }
0x1a98   : > { %11243 = vmatpush3.bf16.msra.mxu0 %v11240_v13 }
0x1a99   : > { %11245 = vmatprep.subr.bf16.mxu0 %v11244_v36 }
0x1a9c   : > { %11247 = vmatpush3.bf16.msra.mxu0 %v11244_v36 }
0x1a9d   : > { %11249 = vmatprep.subr.bf16.mxu0 %v11248_v8 }
0x1aa0   : > { %11251 = vmatpush3.bf16.msra.mxu0 %v11248_v8 }
0x1aa1   : > { %11253 = vmatprep.subr.bf16.mxu0 %v11252_v39 }
0x1aa4   : > { %11255 = vmatpush3.bf16.msra.mxu0 %v11252_v39  ;;  %v9248_v39 = vld [vmem:[%s15475_s17 + $0x130] sm:$0xff] }
0x1af7   : > { %v8101_v45 = vpop.permute.xlu0 %8100  ;;  %v8099_v37 = vpop.permute.xlu1 %8098 }
0x1b5e   : > { %v10798_v23 = vpop.f32.mrb[218].mxu0 }
0x1b5f   : > { %v8003_v17 = vpop.f32.mrb[219].mxu0  ;;  %v8113_v29 = vsel %vm1092_vm4, %v10798_v23, %v8101_v45  ;;  %v9253_v45 = vld [vmem:[%s15475_s17 + $0x158] sm:$0xff] }
0x1b60   : > { %v8112_v57 = vsel %vm1092_vm4, %v8003_v17, %v8099_v37  ;;  %v9251_v17 = vld [vmem:[%s15475_s17 + $0x148] sm:$0xff] }
0x1b62   : > { %v10805_v18 = vpop.f32.mrb[220].mxu0 }
0x1b63   : > { %8108 = vrot.lane.b32.xlu0 %v10805_v18, %s15585_s0  ;;  %v8087_v58 = vpop.f32.mrb[221].mxu0 }
0x1b64   : > { %8106 = vrot.lane.b32.xlu1 %v8087_v58, %s15585_s0  ;;  %v9252_v58 = vld [vmem:[%s15475_s17 + $0x150] sm:$0xff] }
0x1b65   : > { %v11276_v37 = vpack.c.bf16 %v9253_v45, %v9252_v58 }
0x1bd5   : > { %v8109_v52 = vpop.permute.xlu0 %8108 }
0x1bd6   : > { %v8107_v4 = vpop.permute.xlu1 %8106  ;;  %v8115_v61 = vsel %vm2535_vm6, %v8113_v29, %v8109_v52  ;;  %v9254_v52 = vld [vmem:[%s15475_s17 + $0x160] sm:$0xff]  ;;  %v9256_v29 = vld [vmem:[%s15475_s17 + $0x170] sm:$0xff] }
0x1bd7   : > { %v8114_v10 = vsel %vm2535_vm6, %v8112_v57, %v8107_v4  ;;  %v9255_v57 = vld [vmem:[%s15475_s17 + $0x168] sm:$0xff] }
0x1bd8   : > { %10830 = vmatprep.mubr.msk.f32.mxu0 %vm7457_vm13, %v8114_v10  ;;  %v11280_v4 = vpack.c.bf16 %v9255_v57, %v9254_v52  ;;  %v9257_v10 = vld [vmem:[%s15475_s17 + $0x178] sm:$0xff] }
0x1bd9   : > { %10831 = vmatmul.mubr.msk.f32.vlgmr.msra.gmra.mrb[222].mxu0 %vm7457_vm13, %v8115_v61  ;;  %v11284_v61 = vpack.c.bf16 %v9257_v10, %v9256_v29 }
0x1cac   : > { %v10832_v32 = vpop.f32.mrb[222].mxu0 }
0x1cad   : > { %v8200_v40 = vadd.f32 %v10832_v32, %v9241_v11  ;;  %v8194_v62 = vpop.f32.mrb[223].mxu0 }
0x1cae   : > { %v8195_v22 = vadd.f32 %v9241_v11, %v8194_v62 }
0x1caf   : > { %v8206_v26 = vmin.f32 %v8200_v40, 0.0  ;;  %vm8204_vm2 = vcmp.gt.f32.partialorder %v8200_v40, 0.0 }
0x1cb0   : > { %v8205_v16 = vmin.f32 %v8195_v22, 0.0  ;;  %vm8203_vm3 = vcmp.gt.f32.partialorder %v8195_v22, 0.0 }
0x1cb1   : > { %v8209_v31 = vmul.f32 1.442695, %v8206_v26 }
0x1cb2   : > { %v8207_v25 = vmul.f32 1.442695, %v8205_v16 }
0x1cb3   : > { %11569 = vpow2.f32 %v8209_v31 }
0x1cb4   : > { %11571 = vpow2.f32 %v8207_v25 }
0x1cbd   : > { %v11570_v21 = vpop.eup %11569 }
0x1cbe   : > { %v11572_v60 = vpop.eup %11571  ;;  %v9245_v43 = vadd.f32 -1.0, %v11570_v21 }
0x1cbf   : > { %v9244_v6 = vadd.f32 -1.0, %v11572_v60 }
0x1cc0   : > { %v8214_v20 = vsel %vm8204_vm2, %v8200_v40, %v9245_v43 }
0x1cc1   : > { %v15321_v54 = vadd.f32 %v8214_v20, %v15246_v24  ;;  %v8213_v14 = vsel %vm8203_vm3, %v8195_v22, %v9244_v6  ;;  %v8531_v6 = vld [vmem:[%s15749_s24] sm:$0xff]  ;;  %v8532_v20 = vld [vmem:[%s15749_s24 + $0x8] sm:$0xff] }
0x1cc2   : > { %v15324_v42 = vadd.f32 %v8213_v14, %v15249_v49  ;;  %v11288_v14 = vpack.c.bf16 %v8532_v20, %v8531_v6 }
0x1cc3   : > { %v8218_v50 = vsel %vm1092_vm4, %v15321_v54, 0.0 }
0x1cc4   : > { %v8217_v2 = vsel %vm1092_vm4, %v15324_v42, 0.0  ;;  %11289 = vmatprep.subr.bf16.mxu0 %v11288_v14 }
0x1cc5   : > { %v8219_v44 = vadd.f32 %v8218_v50, %v8217_v2  ;;  %11291 = vmatpush3.bf16.msra.mxu0 %v11288_v14  ;;  %v8533_v50 = vld [vmem:[%s15749_s24 + $0x10] sm:$0xff]  ;;  %v8534_v2 = vld [vmem:[%s15749_s24 + $0x18] sm:$0xff] }
0x1cc7   : > { %v8220_v9 = vrot.slane %v8219_v44, 4 }
0x1cc9   : > { %v8221_v55 = vadd.f32 %v8220_v9, %v8219_v44  ;;  %v11292_v44 = vpack.c.bf16 %v8534_v2, %v8533_v50  ;;  %v9263_v9 = vld [vmem:[%s15747_s2 + $0x3] ss:$0 sm:$0xff] }
0x1ccb   : > { %v8222_v30 = vrot.slane %v8221_v55, 2  ;;  %11293 = vmatprep.subr.bf16.mxu0 %v11292_v44 }
0x1ccc   : > { %11295 = vmatpush3.bf16.msra.mxu0 %v11292_v44 }
0x1ccd   : > { %v8223_v63 = vadd.f32 %v8222_v30, %v8221_v55 }
0x1ccf   : > { %v8224_v47 = vrot.slane %v8223_v63, 1 }
0x1cd1   : > { %v8225_v56 = vadd.f32 %v8224_v47, %v8223_v63 }
0x1cd3   : > { %v8226_v12 = vmul.f32 0.0625, %v8225_v56 }
0x1cd5   : > { %v8227_v24 = vsub.f32 %v15324_v42, %v8226_v12  ;;  %v8228_v27 = vsub.f32 %v15321_v54, %v8226_v12 }
0x1cd7   : > { %v8229_v49 = vmul.f32 %v8227_v24, %v8227_v24  ;;  %v8230_v35 = vmul.f32 %v8228_v27, %v8228_v27 }
0x1cd9   : > { %v8231_v5 = vsel %vm1092_vm4, %v8229_v49, 0.0  ;;  %v8232_v28 = vsel %vm1092_vm4, %v8230_v35, 0.0 }
0x1cda   : > { %v8233_v41 = vadd.f32 %v8232_v28, %v8231_v5 }
0x1cdc   : > { %v8234_v38 = vrot.slane %v8233_v41, 4 }
0x1cde   : > { %v8235_v48 = vadd.f32 %v8234_v38, %v8233_v41 }
0x1ce0   : > { %v8236_v19 = vrot.slane %v8235_v48, 2 }
0x1ce2   : > { %v8237_v53 = vadd.f32 %v8236_v19, %v8235_v48 }
0x1ce4   : > { %v8238_v0 = vrot.slane %v8237_v53, 1 }
0x1ce6   : > { %v8239_v13 = vadd.f32 %v8238_v0, %v8237_v53  ;;  %v9268_v53 = vld [vmem:[%s15752_s1] ss:$0 sm:$0xff]  ;;  %s11686_s1 = scalar_lea.vmem %s11685_s6, 512 }
0x1ce8   : > { %v8240_v46 = vmul.f32 0.0625, %v8239_v13 }
0x1cea   : > { %v8241_v33 = vadd.f32 1e-05, %v8240_v46 }
0x1cec   : > { %11573 = vrsqrt.f32 %v8241_v33 }
0x1cf6   : > { %v11574_v36 = vpop.eup %11573 }
0x1cf7   : > { %v8244_v1 = vmul.f32 %v11574_v36, %v8228_v27  ;;  %v8243_v34 = vmul.f32 %v11574_v36, %v8227_v24 }
0x1cf9   : > { %8414 = vrot.lane.b32.xlu0 %v8244_v1, %s15748_s5  ;;  %8412 = vrot.lane.b32.xlu1 %v8243_v34, %s15748_s5  ;;  %v11256_v8 = vpack.c.bf16 %v8244_v1, %v8243_v34  ;;  %s851_s5 = sand.u32 1, %s15750_s8   ;;  %s15754_s8 = sld [smem:[#allocation72_spill]] }
0x1cfa   : > { %s15417_s3 = scalar_lea.sflag [#allocation3], %s851_s5 }
0x1cfb   : > { %11257 = vmatprep.subr.bf16.mxu1 %v11256_v8 }
0x1cfc   : > { %11259 = vmatpush3.bf16.msra.mxu1 %v11256_v8 }
0x1cfd   : > { %11261 = vmatprep.subr.bf16.mxu1 %v11256_v8 }
0x1cff   : > { %10838 = vmatmul.mubr.msk.f32.vlgmr.msra.gmra.mrb[220].mxu1 %vm1178_vm5, %v15001_v7  ;;  %v11264_v7 = vpack.c.bf16 %v9247_v59, %v9246_v15  ;;  %s15755_s11 = smov %s15754_s8  ;;  %s15415_s12 = scalar_lea.hbm %s15754_s8, %s9278_s9 }
0x1d00   : > { %11263 = vmatpush3.bf16.msra.mxu1 %v11256_v8  ;;  %10844 = vmatprep.mubr.msk.f32.mxu1 %vm1178_vm5, %v15006_v51  ;;  %v9249_v51 = vld [vmem:[%s15475_s17 + $0x138] sm:$0xff] }
0x1d01   : > { %v11268_v23 = vpack.c.bf16 %v9249_v51, %v9248_v39  ;;  %11265 = vmatprep.subr.bf16.mxu1 %v11264_v7 }
0x1d03   : > { %10845 = vmatmul.mubr.msk.f32.vlgmr.msra.gmra.mrb[222].mxu1 %vm1178_vm5, %v15015_v3  ;;  %v9250_v3 = vld [vmem:[%s15475_s17 + $0x140] sm:$0xff] }
0x1d04   : > { %11267 = vmatpush3.bf16.msra.mxu1 %v11264_v7  ;;  %v11272_v18 = vpack.c.bf16 %v9251_v17, %v9250_v3 }
0x1d05   : > { %11269 = vmatprep.subr.bf16.mxu1 %v11268_v23 }
0x1d08   : > { %11271 = vmatpush3.bf16.msra.mxu1 %v11268_v23 }
0x1d09   : > { %11273 = vmatprep.subr.bf16.mxu1 %v11272_v18 }
0x1d0c   : > { %11275 = vmatpush3.bf16.msra.mxu1 %v11272_v18 }
0x1d0d   : > { %11277 = vmatprep.subr.bf16.mxu1 %v11276_v37 }
0x1d10   : > { %11279 = vmatpush3.bf16.msra.mxu1 %v11276_v37 }
0x1d11   : > { %11281 = vmatprep.subr.bf16.mxu1 %v11280_v4 }
0x1d14   : > { %11283 = vmatpush3.bf16.msra.mxu1 %v11280_v4 }
0x1d15   : > { %11285 = vmatprep.subr.bf16.mxu1 %v11284_v61 }
0x1d18   : > { %11287 = vmatpush3.bf16.msra.mxu1 %v11284_v61 }
0x1d6b   : > { %v8415_v22 = vpop.permute.xlu0 %8414  ;;  %v8413_v26 = vpop.permute.xlu1 %8412 }
0x1dd2   : > { %v10839_v11 = vpop.f32.mrb[220].mxu1 }
0x1dd3   : > { %v8326_v32 = vpop.f32.mrb[221].mxu1  ;;  %v8427_v21 = vsel %vm1092_vm4, %v10839_v11, %v8415_v22 }
0x1dd4   : > { %v8426_v31 = vsel %vm1092_vm4, %v8326_v32, %v8413_v26 }
0x1dd6   : > { %v10846_v40 = vpop.f32.mrb[222].mxu1 }
0x1dd7   : > { %8422 = vrot.lane.b32.xlu0 %v10846_v40, %s15585_s0  ;;  %v8401_v62 = vpop.f32.mrb[223].mxu1 }
0x1dd8   : > { %8420 = vrot.lane.b32.xlu1 %v8401_v62, %s15585_s0  ;;  %s8717_s0 = sshll.u32 %s851_s5, 4 }
0x1dd9   : > { %s853_s4 = scalar_lea.vmem [#allocation2], %s8717_s0 }
0x1dda   : > { %s8639_s30 = sshll.u32 %s853_s4, 4  ;;  %s15410_s30 = int_to_ptr.vmem [resolvable:$true] %s8639_s30 }
0x1ddb   : > { %s11680_s0 = scalar_lea.vmem %s15410_s30, 256  ;;  %p11687_p0 = scmp.lt.s32.totalorder %s15410_s30, %s11685_s6 }
0x1ddc   : > { %p11681_p11 = scmp.ne.s32.totalorder %s15410_s30, %s11680_s0  ;;  %p11688_p1 = scmp.lt.s32.totalorder %s11686_s1, %s11680_s0 }
0x1dde   : > { %p11682_p12 = pnand %p11681_p11, %p11937_p5  ;;  %p11689_p2 = por %p11688_p1, %p11687_p0 }
0x1de0   : > { %p11683_p13 = pneg %p11682_p12 }
0x1de2   : > { %p11690_p3 = pnand %p11689_p2, %p11683_p13 }
0x1e49   : > { %v8423_v16 = vpop.permute.xlu0 %8422 }
0x1e4a   : > { %v8421_v25 = vpop.permute.xlu1 %8420  ;;  %v8429_v43 = vsel %vm2535_vm6, %v8427_v21, %v8423_v16 }
0x1e4b   : > { %v8428_v60 = vsel %vm2535_vm6, %v8426_v31, %v8421_v25 }
0x1e4c   : > { %10871 = vmatprep.mubr.msk.f32.mxu1 %vm7457_vm13, %v8428_v60 }
0x1e4d   : > { %10872 = vmatmul.mubr.msk.f32.vlgmr.msra.gmra.mrb[224].mxu1 %vm7457_vm13, %v8429_v43 }
0x1f20   : > { %v10873_v55 = vpop.f32.mrb[224].mxu1 }
0x1f21   : > { %v8514_v30 = vadd.f32 %v10873_v55, %v9263_v9  ;;  %v8508_v63 = vpop.f32.mrb[225].mxu1 }
0x1f22   : > { %v8509_v47 = vadd.f32 %v9263_v9, %v8508_v63 }
0x1f23   : > { %v8520_v56 = vmin.f32 %v8514_v30, 0.0  ;;  %vm8518_vm5 = vcmp.gt.f32.partialorder %v8514_v30, 0.0 }
0x1f24   : > { %v8519_v12 = vmin.f32 %v8509_v47, 0.0  ;;  %vm8517_vm6 = vcmp.gt.f32.partialorder %v8509_v47, 0.0 }
0x1f25   : > { %v8523_v24 = vmul.f32 1.442695, %v8520_v56 }
0x1f26   : > { %v8521_v27 = vmul.f32 1.442695, %v8519_v12 }
0x1f27   : > { %11575 = vpow2.f32 %v8523_v24 }
0x1f28   : > { %11577 = vpow2.f32 %v8521_v27 }
0x1f31   : > { %v11576_v49 = vpop.eup %11575 }
0x1f32   : > { %v11578_v35 = vpop.eup %11577  ;;  %v9267_v5 = vadd.f32 -1.0, %v11576_v49 }
0x1f33   : > { %v9266_v28 = vadd.f32 -1.0, %v11578_v35 }
0x1f34   : > { %v8528_v41 = vsel %vm8518_vm5, %v8514_v30, %v9267_v5 }
0x1f35   : > { %v8527_v38 = vsel %vm8517_vm6, %v8509_v47, %v9266_v28  ;;  %v8530_v19 = vadd.f32 %v8528_v41, %v15321_v54 }
0x1f36   : > { %v8529_v48 = vadd.f32 %v8527_v38, %v15324_v42 }
0x1f38   : > { %10882 = vmatprep.mubr.msk.f32.mxu0 %vm1092_vm4, %v8529_v48 }
0x1f39   : > { %10883 = vmatmul.mubr.msk.f32.vlgmr.msra.gmra.mrb[224].mxu0 %vm1092_vm4, %v8530_v19 }
0x200c   : > { %v10884_v0 = vpop.f32.mrb[224].mxu0 }
0x200d   : > { %v8620_v13 = vadd.f32 %v10884_v0, %v9268_v53  ;;  %v8614_v54 = vpop.f32.mrb[225].mxu0 }
0x200e   : > { %v8615_v42 = vadd.f32 %v9268_v53, %v8614_v54 }
0x200f   : > { %8624 = vst [vmem:[%s853_s4 + $0x8] sm:$0xff] %v8620_v13 }
0x2010   : > { %8623 = vst [vmem:[%s853_s4] sm:$0xff] %v8615_v42 }
0x2011   : > { %11693 = shalt.err (!%p11690_p3)
}
0x2012   : > { %s11694_s10 = scalar_lea.hbm %s15415_s12, 256  ;;  %s11698_s4 = scalar_lea.hbm %s15755_s11, 512 }
0x2013   : > { %p11695_p4 = scmp.ne.s32.totalorder %s15415_s12, %s11694_s10  ;;  %p11699_p9 = scmp.lt.u32.totalorder %s15415_s12, %s15755_s11 }
0x2014   : > { %p11700_p10 = scmp.lt.u32.totalorder %s11698_s4, %s11694_s10  ;;  %p11702_p12 = scmp.lt.u32.totalorder %s11694_s10, %s15415_s12 }
0x2015   : > { %p11696_p7 = pnand %p11695_p4, %p11937_p5 }
0x2016   : > { %p11701_p11 = por %p11700_p10, %p11699_p9 }
0x2017   : > { %p11697_p8 = pneg %p11696_p7 }
0x2018   : > { %p11703_p13 = por %p11702_p12, %p11701_p11 }
0x201a   : > { %p11704_p0 = pnand %p11703_p13, %p11697_p8 }
0x201c   : > { %11707 = shalt.err (!%p11704_p0)
}
0x201d   : > { %s11752_s0 = smov 128   ;;  %s11753_s18 = smov 8  }
0x201e   : > { %11296 = dma.vmem_to_hbm [thread:$0]  (%p11937_p5), %s15410_s30, 256, %s15415_s12, %s15417_s3, %s11752_s0, %s11752_s0, %s11753_s18  }
0x201f PF: > { %s15756_s6 = sld [smem:[#allocation8_spill]]  ;;  %s15757_s1 = sld [smem:[#allocation5_spill]] }
0x2025   : > { %p11302_p1 = scmp.ge.s32.totalorder %s15756_s6, 2  ;;  %s8654_s5 = sand.u32 1, %s15757_s1  }
0x2026   : > { %s8655_s10 = scalar_lea.sflag [#allocation3], %s8654_s5 }
0x2027   : > { %p11299_p2 = pnand %p11302_p1, %p11941_p6 }
0x2029   : > { %11725 = dma.done.wait (!%p11299_p2), %s8655_s10, 256  }
0x202a   : > { %11727 = vsyncadd (!%p11299_p2), %s8655_s10, 4294967040  ;;  %s15759_s30 = sld [smem:[#allocation10_spill]]  ;;  %s15760_s8 = sld [smem:[#allocation6_spill]] }
0x202b   : > { %s15761_s5 = sld [smem:[#allocation7_spill]]  ;;  %s15762_s9 = sld [smem:[#allocation11_spill]] }
0x2030   : > { %p38_p3 = scmp.ge.s32.totalorder %s15759_s30, 4  }
0x2032   :  { %40 = sbr.rel (!%p38_p3) target bundleno = 22 (0x16), region = 191 }
0x2039   :  { %8660 = vsyncpa [#allocation3], 1 }
0x203a   :  { %8662 = vsyncpa [#allocation3 + $0x1], 1 }

</bundles_post_ra>
